<compile_context>
chip_gen: v7x
topology: tpu7x:2x2x1
jax: 0.10.0
libtpu: 0.0.40
codegen_flags: <defaults>
</compile_context>

<pallas_src>
import functools

import jax
import jax.numpy as jnp
from jax import lax
from jax.experimental import pallas as pl
from jax.experimental.pallas import tpu as pltpu


def _kernel_act(name):
    """Activations used inside the kernel (EUP-friendly forms)."""
    if name == "sigmoid":
        # One EUP op (tanh) + cheap VPU mul/add instead of exp + reciprocal.
        return lambda v: 0.5 * (jnp.tanh(0.5 * v) + 1.0)
    if name == "tanh":
        return jnp.tanh
    raise ValueError(f"unsupported activation: {name}")


def _ref_act(name):
    if name == "sigmoid":
        return jax.nn.sigmoid
    if name == "tanh":
        return jnp.tanh
    raise ValueError(f"unsupported activation: {name}")


def one_to_many_kernel(x_ref, wx_ref, wsum_ref, b_ref, o_hbm,
                       stage, sem, *, t_out, hidden, rows, act1, act2, unroll):
    blk = pl.program_id(0)
    row0 = pl.multiple_of(blk * rows, rows)

    # Hoisted (1,4H)->(rows,4H) broadcast: JAX does not CSE broadcast_in_dim, so doing
    # it per step would re-emit sublane-broadcast work on the serial chain.
    bias = jnp.broadcast_to(b_ref[...], (rows, 4 * hidden))

    def out_copy(t, slot):
        # Identical descriptor is used for .start() and the matching .wait().
        return pltpu.make_async_copy(
            stage.at[slot], o_hbm.at[t, pl.ds(row0, rows), :], sem.at[slot])

    def emit(t, slot, h):
        stage[slot] = h.astype(stage.dtype)
        out_copy(t, slot).start()

    def gate_update(gates, c):
        f_t = act1(gates[:, 0:hidden])
        i_t = act1(gates[:, hidden:2 * hidden])
        o_t = act1(gates[:, 2 * hidden:3 * hidden])
        c_tilde = act2(gates[:, 3 * hidden:4 * hidden])
        c_new = f_t * c + i_t * c_tilde
        h_new = o_t * act2(c_new)
        return h_new, c_new

    def feedback_step(h_prev, c_prev):
        # Module feeds y_{t-1} back as BOTH cell input and hidden state, so
        # gates = y @ (Wx + Uh) + b: one fused MXU dot per step.
        g = jnp.dot(h_prev.astype(wsum_ref.dtype), wsum_ref[...],
                    preferred_element_type=jnp.float32) + bias
        return gate_update(g, c_prev)

    # ---- step 0: h0 = c0 = 0 (the module resets states), so the Uh matmul and the
    #      f_t*c0 term vanish: a single MXU dot.  If initial states ever become
    #      non-zero/learnable this shortcut is invalid.
    g0 = jnp.dot(x_ref[...], wx_ref[...],
                 preferred_element_type=jnp.float32) + bias
    i0 = act1(g0[:, hidden:2 * hidden])
    o0 = act1(g0[:, 2 * hidden:3 * hidden])
    ct0 = act2(g0[:, 3 * hidden:4 * hidden])
    c = i0 * ct0
    h = o0 * act2(c)
    emit(0, 0, h)

    # ---- step 1 (static; its staging slot is fresh, no wait needed).
    if t_out > 1:
        h, c = feedback_step(h, c)
        emit(1, 1, h)

    # ---- steps 2..T-1: compute first (overlaps the in-flight writeback of step t-2),
    #      then wait on that slot before overwriting its staging buffer.
    if t_out > 2:
        def body(t, carry):
            h_prev, c_prev = carry
            h_new, c_new = feedback_step(h_prev, c_prev)
            slot = t & 1
            out_copy(t - 2, slot).wait()
            emit(t, slot, h_new)
            return h_new, c_new

        lax.fori_loop(2, t_out, body, (h, c), unroll=unroll)

    # Drain the (up to two) writeback DMAs still in flight before this grid step ends.
    for t in range(max(t_out - 2, 0), t_out):
        out_copy(t, t & 1).wait()


def one_to_many_lstm(x, params, *, output_times, activation1="sigmoid",
                     activation2="tanh", mxu_dtype=jnp.bfloat16,
                     out_dtype=jnp.float32, num_row_blocks=None):
    """x: (B, S, H) with S == H == input_size == output_size (as the torch module requires).

    Returns the torch `result` tensor right before the module's final (shape-incompatible)
    reshape: shape (output_times * B, S, H).

    mxu_dtype : matmul-operand dtype (bf16 default = native MXU rate on v5e/v6e/v7x and
                half the weight/x bytes). Accumulation and gate/state math stay f32.
    out_dtype : set to bf16 if consumers tolerate it (halves HBM writeback bytes).
    num_row_blocks : rows (B*S) are independent through the recurrence; >1 shards them
                over a parallel grid axis so v7x's two TensorCores split the work.
    """
    B, S, H = x.shape
    assert S == H, "torch module needs x.shape[1] == input_size and x.shape[2] == input_size"
    wx, uh, b = params                                        # (H,4H), (H,4H), (1,4H)
    N = B * S

    if num_row_blocks is None:
        half = N // 2
        num_row_blocks = 2 if (N % 2 == 0 and half % 8 == 0 and half >= 256) else 1
    assert N % num_row_blocks == 0
    rows = N // num_row_blocks
    assert num_row_blocks == 1 or rows % 8 == 0, "row blocks must keep sublane alignment"

    # Fused feedback weights (input == hidden in the feedback phase), computed once here.
    w_sum = (wx + uh).astype(mxu_dtype)
    wx_m = wx.astype(mxu_dtype)
    x_flat = x.reshape(N, H).astype(mxu_dtype)
    b_f32 = b.astype(jnp.float32)

    kernel = functools.partial(
        one_to_many_kernel, t_out=output_times, hidden=H, rows=rows,
        act1=_kernel_act(activation1), act2=_kernel_act(activation2),
        unroll=min(max(output_times - 2, 1), 8))

    # Explicit scoped-VMEM budget: x block + weights/bias (x2: Pallas may double-buffer
    # constant-index blocks) + 2-slot output staging + headroom for (rows,4H) gate temps.
    mxu_bytes = jnp.dtype(mxu_dtype).itemsize
    out_bytes = jnp.dtype(out_dtype).itemsize
    need = (2 * rows * H * mxu_bytes
            + 2 * 2 * H * 4 * H * mxu_bytes
            + 2 * 1 * 4 * H * 4
            + 2 * rows * H * out_bytes
            + 8 * rows * 4 * H * 4)
    vmem_limit = int(min(max(2 * need, 16 * 2**20), 128 * 2**20))

    out = pl.pallas_call(
        kernel,
        out_shape=jax.ShapeDtypeStruct((output_times, N, H), out_dtype),
        grid_spec=pltpu.PrefetchScalarGridSpec(
            num_scalar_prefetch=0,
            grid=(num_row_blocks,),
            in_specs=[
                pl.BlockSpec((rows, H), lambda i: (i, 0)),
                pl.BlockSpec((H, 4 * H), lambda i: (0, 0)),
                pl.BlockSpec((H, 4 * H), lambda i: (0, 0)),
                pl.BlockSpec((1, 4 * H), lambda i: (0, 0)),
            ],
            out_specs=pl.BlockSpec(memory_space=pl.ANY),      # written via manual DMA
            scratch_shapes=[
                pltpu.VMEM((2, rows, H), out_dtype),          # 2-slot writeback staging
                pltpu.SemaphoreType.DMA((2,)),
            ],
        ),
        compiler_params=pltpu.CompilerParams(
            dimension_semantics=("parallel",),
            vmem_limit_bytes=vmem_limit),
    )(x_flat, wx_m, w_sum, b_f32)

    # torch: result = cat([y_1, ..., y_T], dim=0), each y_t of shape (B, S, H).
    # Row-major (T, B*S, H) -> (T*B, S, H) reproduces that exact ordering (pure reshape).
    result = out.reshape(output_times * B, S, H)
    # TODO(synk): torch.reshape(result, (B, output_times, H)) in the module is
    # element-count incompatible for H > 1; we return `result` instead.
    return result


def reference(x, params, output_times, activation1, activation2):
    """Pure-JAX port of the torch forward (up to the broken final reshape)."""
    B, S, H = x.shape
    wx, uh, b = params
    a1, a2 = _ref_act(activation1), _ref_act(activation2)
    hp = jax.lax.Precision.HIGHEST

    def cell(xin, h, c):
        g = jnp.dot(xin, wx, precision=hp) + jnp.dot(h, uh, precision=hp) + b
        f = a1(g[..., :H]); i = a1(g[..., H:2 * H]); o = a1(g[..., 2 * H:3 * H])
        ct = a2(g[..., 3 * H:])
        c = f * c + i * ct
        h = o * a2(c)
        return h, c

    h = jnp.zeros((1, H), jnp.float32)
    c = jnp.zeros((1, H), jnp.float32)
    y, c = cell(x, h, c)                      # (B, S, H)
    ys = [y]
    for _ in range(output_times - 1):
        y, c = cell(y, y, c)                  # input == hidden == previous output
        ys.append(y)
    return jnp.concatenate(ys, axis=0)        # (output_times*B, S, H)


if __name__ == "__main__":
    H = 128       # input_size == output_size; multiple of 128 -> lane-aligned gate slices
    B = 2         # x.shape[0]
    T_OUT = 4     # output_times
    # torch module requires x.shape[1] == input_size and nn.Linear requires
    # x.shape[2] == input_size, hence x is (B, H, H).

    key = jax.random.PRNGKey(0)
    keys = jax.random.split(key, 17)
    bound = 1.0 / float(jnp.sqrt(jnp.float32(H)))

    def u(k, shape):
        return jax.random.uniform(k, shape, jnp.float32, -bound, bound)

    # nn.Linear weights are (out, in) with bias (out,).  bias=False on the module only
    # zeroes the extra b_f/b_i/b_o/b_c parameters; the Linear biases remain.
    Wf, Wi, Wo, Wc = (u(keys[i], (H, H)) for i in range(4))
    Uf, Ui, Uo, Uc = (u(keys[4 + i], (H, H)) for i in range(4))
    bwf, bwi, bwo, bwc = (u(keys[8 + i], (H,)) for i in range(4))
    buf_, bui, buo, buc = (u(keys[12 + i], (H,)) for i in range(4))

    wx = jnp.concatenate([Wf.T, Wi.T, Wo.T, Wc.T], axis=1)        # (H, 4H)
    uh = jnp.concatenate([Uf.T, Ui.T, Uo.T, Uc.T], axis=1)        # (H, 4H)
    b = jnp.concatenate([bwf + buf_, bwi + bui, bwo + buo, bwc + buc]).reshape(1, 4 * H)

    x = jax.random.normal(keys[16], (B, H, H), jnp.float32)
    params = (wx, uh, b)

    ref = reference(x, params, T_OUT, "sigmoid", "tanh")

    # f32 MXU operands: faithful to the module up to dot associativity / sigmoid form.
    out_f32 = jax.block_until_ready(one_to_many_lstm(
        x, params, output_times=T_OUT, mxu_dtype=jnp.float32))
    assert out_f32.shape == (T_OUT * B, H, H), out_f32.shape
    err32 = float(jnp.max(jnp.abs(out_f32 - ref)))
    assert err32 < 2e-4, err32

    # bf16 MXU operands (default; perf review): f32 accumulation, but operand rounding
    # compounds over the recurrence -> loose tolerance.
    out_bf16 = jax.block_until_ready(one_to_many_lstm(x, params, output_times=T_OUT))
    assert out_bf16.shape == (T_OUT * B, H, H), out_bf16.shape
    errbf = float(jnp.max(jnp.abs(out_bf16 - ref)))
    assert errbf < 0.15, errbf

    print("KERNEL_OK")
</pallas_src>

<mosaic_0001>
module attributes {stable_mosaic.version = 11 : i64} {
  func.func @one_to_many_kernel(%arg0: i32, %arg1: memref<256x128xf32, #tpu.memory_space<vmem>>, %arg2: memref<128x512xf32, #tpu.memory_space<vmem>>, %arg3: memref<128x512xf32, #tpu.memory_space<vmem>>, %arg4: memref<1x512xf32, #tpu.memory_space<vmem>>, %arg5: memref<4x256x128xf32, #tpu.memory_space<any>>, %arg6: memref<2x256x128xf32, #tpu.memory_space<vmem>>, %arg7: memref<2x!tpu.dma_semaphore, #tpu.memory_space<semaphore_mem>>) attributes {dimension_semantics = [#tpu.dimension_semantics<parallel>], iteration_bounds = array<i64: 1>, scalar_prefetch = 0 : i64, scratch_operands = 2 : i64, tpu.core_type = #tpu.core_type<tc>, window_params = [{transform_indices = @transform_0, window_bounds = array<i64: 256, 128>}, {pipeline_mode = #tpu.pipeline_mode<synchronous>, transform_indices = @transform_1, window_bounds = array<i64: 128, 512>}, {pipeline_mode = #tpu.pipeline_mode<synchronous>, transform_indices = @transform_2, window_bounds = array<i64: 128, 512>}, {pipeline_mode = #tpu.pipeline_mode<synchronous>, transform_indices = @transform_3, window_bounds = array<i64: 1, 512>}, {}]} {
    %c256_i32 = arith.constant 256 : i32
    %0 = arith.muli %arg0, %c256_i32 : i32
    %1 = tpu.assume_multiple %0, 256 : i32
    %c0 = arith.constant 0 : index
    %c0_0 = arith.constant 0 : index
    %2 = vector.load %arg4[%c0, %c0_0] : memref<1x512xf32, #tpu.memory_space<vmem>>, vector<1x512xf32>
    %3 = vector.shape_cast %2 : vector<1x512xf32> to vector<1x512xf32>
    %4 = vector.broadcast %3 : vector<1x512xf32> to vector<256x512xf32>
    %c0_1 = arith.constant 0 : index
    %c0_2 = arith.constant 0 : index
    %5 = vector.load %arg1[%c0_1, %c0_2] : memref<256x128xf32, #tpu.memory_space<vmem>>, vector<256x128xf32>
    %c0_3 = arith.constant 0 : index
    %c0_4 = arith.constant 0 : index
    %6 = vector.load %arg2[%c0_3, %c0_4] : memref<128x512xf32, #tpu.memory_space<vmem>>, vector<128x512xf32>
    %cst = arith.constant dense<0.000000e+00> : vector<256x512xf32>
    %7 = tpu.matmul %5, %6, %cst {dimension_numbers = #tpu.dot_dimension_numbers<[1], [0], [0], [1], [0, 0, 1, 1], [], []>} : vector<256x128xf32>, vector<128x512xf32>, vector<256x512xf32> -> vector<256x512xf32>
    %8 = arith.addf %7, %4 : vector<256x512xf32>
    %9 = vector.extract_strided_slice %8 {offsets = [0, 128], sizes = [256, 128], strides = [1, 1]} : vector<256x512xf32> to vector<256x128xf32>
    %cst_5 = arith.constant 5.000000e-01 : f32
    %10 = vector.broadcast %cst_5 : f32 to vector<256x128xf32>
    %11 = arith.mulf %10, %9 : vector<256x128xf32>
    %12 = math.tanh %11 : vector<256x128xf32>
    %cst_6 = arith.constant 1.000000e+00 : f32
    %13 = vector.broadcast %cst_6 : f32 to vector<256x128xf32>
    %14 = arith.addf %12, %13 : vector<256x128xf32>
    %cst_7 = arith.constant 5.000000e-01 : f32
    %15 = vector.broadcast %cst_7 : f32 to vector<256x128xf32>
    %16 = arith.mulf %15, %14 : vector<256x128xf32>
    %17 = vector.extract_strided_slice %8 {offsets = [0, 256], sizes = [256, 128], strides = [1, 1]} : vector<256x512xf32> to vector<256x128xf32>
    %cst_8 = arith.constant 5.000000e-01 : f32
    %18 = vector.broadcast %cst_8 : f32 to vector<256x128xf32>
    %19 = arith.mulf %18, %17 : vector<256x128xf32>
    %20 = math.tanh %19 : vector<256x128xf32>
    %cst_9 = arith.constant 1.000000e+00 : f32
    %21 = vector.broadcast %cst_9 : f32 to vector<256x128xf32>
    %22 = arith.addf %20, %21 : vector<256x128xf32>
    %cst_10 = arith.constant 5.000000e-01 : f32
    %23 = vector.broadcast %cst_10 : f32 to vector<256x128xf32>
    %24 = arith.mulf %23, %22 : vector<256x128xf32>
    %25 = vector.extract_strided_slice %8 {offsets = [0, 384], sizes = [256, 128], strides = [1, 1]} : vector<256x512xf32> to vector<256x128xf32>
    %26 = math.tanh %25 : vector<256x128xf32>
    %27 = arith.mulf %16, %26 : vector<256x128xf32>
    %28 = math.tanh %27 : vector<256x128xf32>
    %29 = arith.mulf %24, %28 : vector<256x128xf32>
    %c0_11 = arith.constant 0 : index
    %c0_12 = arith.constant 0 : index
    %c0_13 = arith.constant 0 : index
    %30 = vector.load %arg6[%c0_11, %c0_12, %c0_13] : memref<2x256x128xf32, #tpu.memory_space<vmem>>, vector<1x256x128xf32>
    %31 = vector.shape_cast %30 : vector<1x256x128xf32> to vector<256x128xf32>
    %32 = vector.shape_cast %29 : vector<256x128xf32> to vector<1x256x128xf32>
    tpu.vector_store %arg6[%c0_11, %c0_12, %c0_13], %32 {strides = array<i32>} : memref<2x256x128xf32, #tpu.memory_space<vmem>>, vector<1x256x128xf32>,
    %c0_i32 = arith.constant 0 : i32
    %c0_i32_14 = arith.constant 0 : i32
    %c0_i32_15 = arith.constant 0 : i32
    %c0_i32_16 = arith.constant 0 : i32
    %c0_i32_17 = arith.constant 0 : i32
    %33 = tpu.memref_slice %arg6[%c0_i32, %c0_i32_16, %c0_i32_17] : memref<2x256x128xf32, #tpu.memory_space<vmem>> -> memref<1x256x128xf32, #tpu.memory_space<vmem>>
    %34 = tpu.memref_squeeze %33 : memref<1x256x128xf32, #tpu.memory_space<vmem>> -> memref<256x128xf32, #tpu.memory_space<vmem>>
    %c0_i32_18 = arith.constant 0 : i32
    %35 = tpu.memref_slice %arg5[%c0_i32_14, %1, %c0_i32_18] : memref<4x256x128xf32, #tpu.memory_space<any>> -> memref<1x256x128xf32, #tpu.memory_space<any>>
    %36 = tpu.memref_squeeze %35 : memref<1x256x128xf32, #tpu.memory_space<any>> -> memref<256x128xf32, #tpu.memory_space<any>>
    %37 = tpu.memref_slice %arg7[%c0_i32_15] : memref<2x!tpu.dma_semaphore, #tpu.memory_space<semaphore_mem>> -> memref<1x!tpu.dma_semaphore, #tpu.memory_space<semaphore_mem>>
    %38 = tpu.memref_squeeze %37 : memref<1x!tpu.dma_semaphore, #tpu.memory_space<semaphore_mem>> -> memref<!tpu.dma_semaphore, #tpu.memory_space<semaphore_mem>>
    tpu.enqueue_dma source(%34 : memref<256x128xf32, #tpu.memory_space<vmem>>) target(%36 : memref<256x128xf32, #tpu.memory_space<any>>) target_semaphore(%38 : memref<!tpu.dma_semaphore, #tpu.memory_space<semaphore_mem>>)
    %c0_19 = arith.constant 0 : index
    %c0_20 = arith.constant 0 : index
    %39 = vector.load %arg3[%c0_19, %c0_20] : memref<128x512xf32, #tpu.memory_space<vmem>>, vector<128x512xf32>
    %cst_21 = arith.constant dense<0.000000e+00> : vector<256x512xf32>
    %40 = tpu.matmul %29, %39, %cst_21 {dimension_numbers = #tpu.dot_dimension_numbers<[1], [0], [0], [1], [0, 0, 1, 1], [], []>} : vector<256x128xf32>, vector<128x512xf32>, vector<256x512xf32> -> vector<256x512xf32>
    %41 = arith.addf %40, %4 : vector<256x512xf32>
    %42 = vector.extract_strided_slice %41 {offsets = [0, 0], sizes = [256, 128], strides = [1, 1]} : vector<256x512xf32> to vector<256x128xf32>
    %cst_22 = arith.constant 5.000000e-01 : f32
    %43 = vector.broadcast %cst_22 : f32 to vector<256x128xf32>
    %44 = arith.mulf %43, %42 : vector<256x128xf32>
    %45 = math.tanh %44 : vector<256x128xf32>
    %cst_23 = arith.constant 1.000000e+00 : f32
    %46 = vector.broadcast %cst_23 : f32 to vector<256x128xf32>
    %47 = arith.addf %45, %46 : vector<256x128xf32>
    %cst_24 = arith.constant 5.000000e-01 : f32
    %48 = vector.broadcast %cst_24 : f32 to vector<256x128xf32>
    %49 = arith.mulf %48, %47 : vector<256x128xf32>
    %50 = vector.extract_strided_slice %41 {offsets = [0, 128], sizes = [256, 128], strides = [1, 1]} : vector<256x512xf32> to vector<256x128xf32>
    %cst_25 = arith.constant 5.000000e-01 : f32
    %51 = vector.broadcast %cst_25 : f32 to vector<256x128xf32>
    %52 = arith.mulf %51, %50 : vector<256x128xf32>
    %53 = math.tanh %52 : vector<256x128xf32>
    %cst_26 = arith.constant 1.000000e+00 : f32
    %54 = vector.broadcast %cst_26 : f32 to vector<256x128xf32>
    %55 = arith.addf %53, %54 : vector<256x128xf32>
    %cst_27 = arith.constant 5.000000e-01 : f32
    %56 = vector.broadcast %cst_27 : f32 to vector<256x128xf32>
    %57 = arith.mulf %56, %55 : vector<256x128xf32>
    %58 = vector.extract_strided_slice %41 {offsets = [0, 256], sizes = [256, 128], strides = [1, 1]} : vector<256x512xf32> to vector<256x128xf32>
    %cst_28 = arith.constant 5.000000e-01 : f32
    %59 = vector.broadcast %cst_28 : f32 to vector<256x128xf32>
    %60 = arith.mulf %59, %58 : vector<256x128xf32>
    %61 = math.tanh %60 : vector<256x128xf32>
    %cst_29 = arith.constant 1.000000e+00 : f32
    %62 = vector.broadcast %cst_29 : f32 to vector<256x128xf32>
    %63 = arith.addf %61, %62 : vector<256x128xf32>
    %cst_30 = arith.constant 5.000000e-01 : f32
    %64 = vector.broadcast %cst_30 : f32 to vector<256x128xf32>
    %65 = arith.mulf %64, %63 : vector<256x128xf32>
    %66 = vector.extract_strided_slice %41 {offsets = [0, 384], sizes = [256, 128], strides = [1, 1]} : vector<256x512xf32> to vector<256x128xf32>
    %67 = math.tanh %66 : vector<256x128xf32>
    %68 = arith.mulf %49, %27 : vector<256x128xf32>
    %69 = arith.mulf %57, %67 : vector<256x128xf32>
    %70 = arith.addf %68, %69 : vector<256x128xf32>
    %71 = math.tanh %70 : vector<256x128xf32>
    %72 = arith.mulf %65, %71 : vector<256x128xf32>
    %c1 = arith.constant 1 : index
    %c0_31 = arith.constant 0 : index
    %c0_32 = arith.constant 0 : index
    %73 = vector.load %arg6[%c1, %c0_31, %c0_32] : memref<2x256x128xf32, #tpu.memory_space<vmem>>, vector<1x256x128xf32>
    %74 = vector.shape_cast %73 : vector<1x256x128xf32> to vector<256x128xf32>
    %75 = vector.shape_cast %72 : vector<256x128xf32> to vector<1x256x128xf32>
    tpu.vector_store %arg6[%c1, %c0_31, %c0_32], %75 {strides = array<i32>} : memref<2x256x128xf32, #tpu.memory_space<vmem>>, vector<1x256x128xf32>,
    %c1_i32 = arith.constant 1 : i32
    %c1_i32_33 = arith.constant 1 : i32
    %c1_i32_34 = arith.constant 1 : i32
    %c0_i32_35 = arith.constant 0 : i32
    %c0_i32_36 = arith.constant 0 : i32
    %76 = tpu.memref_slice %arg6[%c1_i32, %c0_i32_35, %c0_i32_36] : memref<2x256x128xf32, #tpu.memory_space<vmem>> -> memref<1x256x128xf32, #tpu.memory_space<vmem>>
    %77 = tpu.memref_squeeze %76 : memref<1x256x128xf32, #tpu.memory_space<vmem>> -> memref<256x128xf32, #tpu.memory_space<vmem>>
    %c0_i32_37 = arith.constant 0 : i32
    %78 = tpu.memref_slice %arg5[%c1_i32_33, %1, %c0_i32_37] : memref<4x256x128xf32, #tpu.memory_space<any>> -> memref<1x256x128xf32, #tpu.memory_space<any>>
    %79 = tpu.memref_squeeze %78 : memref<1x256x128xf32, #tpu.memory_space<any>> -> memref<256x128xf32, #tpu.memory_space<any>>
    %80 = tpu.memref_slice %arg7[%c1_i32_34] : memref<2x!tpu.dma_semaphore, #tpu.memory_space<semaphore_mem>> -> memref<1x!tpu.dma_semaphore, #tpu.memory_space<semaphore_mem>>
    %81 = tpu.memref_squeeze %80 : memref<1x!tpu.dma_semaphore, #tpu.memory_space<semaphore_mem>> -> memref<!tpu.dma_semaphore, #tpu.memory_space<semaphore_mem>>
    tpu.enqueue_dma source(%77 : memref<256x128xf32, #tpu.memory_space<vmem>>) target(%79 : memref<256x128xf32, #tpu.memory_space<any>>) target_semaphore(%81 : memref<!tpu.dma_semaphore, #tpu.memory_space<semaphore_mem>>)
    %c2_i32 = arith.constant 2 : i32
    %c0_38 = arith.constant 0 : index
    %c0_39 = arith.constant 0 : index
    %82 = vector.load %arg3[%c0_38, %c0_39] : memref<128x512xf32, #tpu.memory_space<vmem>>, vector<128x512xf32>
    %cst_40 = arith.constant dense<0.000000e+00> : vector<256x512xf32>
    %83 = tpu.matmul %72, %82, %cst_40 {dimension_numbers = #tpu.dot_dimension_numbers<[1], [0], [0], [1], [0, 0, 1, 1], [], []>} : vector<256x128xf32>, vector<128x512xf32>, vector<256x512xf32> -> vector<256x512xf32>
    %84 = arith.addf %83, %4 : vector<256x512xf32>
    %85 = vector.extract_strided_slice %84 {offsets = [0, 0], sizes = [256, 128], strides = [1, 1]} : vector<256x512xf32> to vector<256x128xf32>
    %cst_41 = arith.constant 5.000000e-01 : f32
    %86 = vector.broadcast %cst_41 : f32 to vector<256x128xf32>
    %87 = arith.mulf %86, %85 : vector<256x128xf32>
    %88 = math.tanh %87 : vector<256x128xf32>
    %cst_42 = arith.constant 1.000000e+00 : f32
    %89 = vector.broadcast %cst_42 : f32 to vector<256x128xf32>
    %90 = arith.addf %88, %89 : vector<256x128xf32>
    %cst_43 = arith.constant 5.000000e-01 : f32
    %91 = vector.broadcast %cst_43 : f32 to vector<256x128xf32>
    %92 = arith.mulf %91, %90 : vector<256x128xf32>
    %93 = vector.extract_strided_slice %84 {offsets = [0, 128], sizes = [256, 128], strides = [1, 1]} : vector<256x512xf32> to vector<256x128xf32>
    %cst_44 = arith.constant 5.000000e-01 : f32
    %94 = vector.broadcast %cst_44 : f32 to vector<256x128xf32>
    %95 = arith.mulf %94, %93 : vector<256x128xf32>
    %96 = math.tanh %95 : vector<256x128xf32>
    %cst_45 = arith.constant 1.000000e+00 : f32
    %97 = vector.broadcast %cst_45 : f32 to vector<256x128xf32>
    %98 = arith.addf %96, %97 : vector<256x128xf32>
    %cst_46 = arith.constant 5.000000e-01 : f32
    %99 = vector.broadcast %cst_46 : f32 to vector<256x128xf32>
    %100 = arith.mulf %99, %98 : vector<256x128xf32>
    %101 = vector.extract_strided_slice %84 {offsets = [0, 256], sizes = [256, 128], strides = [1, 1]} : vector<256x512xf32> to vector<256x128xf32>
    %cst_47 = arith.constant 5.000000e-01 : f32
    %102 = vector.broadcast %cst_47 : f32 to vector<256x128xf32>
    %103 = arith.mulf %102, %101 : vector<256x128xf32>
    %104 = math.tanh %103 : vector<256x128xf32>
    %cst_48 = arith.constant 1.000000e+00 : f32
    %105 = vector.broadcast %cst_48 : f32 to vector<256x128xf32>
    %106 = arith.addf %104, %105 : vector<256x128xf32>
    %cst_49 = arith.constant 5.000000e-01 : f32
    %107 = vector.broadcast %cst_49 : f32 to vector<256x128xf32>
    %108 = arith.mulf %107, %106 : vector<256x128xf32>
    %109 = vector.extract_strided_slice %84 {offsets = [0, 384], sizes = [256, 128], strides = [1, 1]} : vector<256x512xf32> to vector<256x128xf32>
    %110 = math.tanh %109 : vector<256x128xf32>
    %111 = arith.mulf %92, %70 : vector<256x128xf32>
    %112 = arith.mulf %100, %110 : vector<256x128xf32>
    %113 = arith.addf %111, %112 : vector<256x128xf32>
    %114 = math.tanh %113 : vector<256x128xf32>
    %115 = arith.mulf %108, %114 : vector<256x128xf32>
    %c1_i32_50 = arith.constant 1 : i32
    %116 = arith.andi %c2_i32, %c1_i32_50 : i32
    %c2_i32_51 = arith.constant 2 : i32
    %117 = arith.subi %c2_i32, %c2_i32_51 : i32
    %c0_i32_52 = arith.constant 0 : i32
    %c0_i32_53 = arith.constant 0 : i32
    %118 = tpu.memref_slice %arg6[%116, %c0_i32_52, %c0_i32_53] : memref<2x256x128xf32, #tpu.memory_space<vmem>> -> memref<1x256x128xf32, #tpu.memory_space<vmem>>
    %119 = tpu.memref_squeeze %118 : memref<1x256x128xf32, #tpu.memory_space<vmem>> -> memref<256x128xf32, #tpu.memory_space<vmem>>
    %c0_i32_54 = arith.constant 0 : i32
    %120 = tpu.memref_slice %arg5[%117, %1, %c0_i32_54] : memref<4x256x128xf32, #tpu.memory_space<any>> -> memref<1x256x128xf32, #tpu.memory_space<any>>
    %121 = tpu.memref_squeeze %120 : memref<1x256x128xf32, #tpu.memory_space<any>> -> memref<256x128xf32, #tpu.memory_space<any>>
    %122 = tpu.memref_slice %arg7[%116] : memref<2x!tpu.dma_semaphore, #tpu.memory_space<semaphore_mem>> -> memref<1x!tpu.dma_semaphore, #tpu.memory_space<semaphore_mem>>
    %123 = tpu.memref_squeeze %122 : memref<1x!tpu.dma_semaphore, #tpu.memory_space<semaphore_mem>> -> memref<!tpu.dma_semaphore, #tpu.memory_space<semaphore_mem>>
    tpu.wait_dma2 semaphore(%123 : memref<!tpu.dma_semaphore, #tpu.memory_space<semaphore_mem>>) src(%119 : memref<256x128xf32, #tpu.memory_space<vmem>>) dst(%121 : memref<256x128xf32, #tpu.memory_space<any>>)
    %124 = arith.index_cast %116 : i32 to index
    %c0_55 = arith.constant 0 : index
    %c0_56 = arith.constant 0 : index
    %125 = vector.load %arg6[%124, %c0_55, %c0_56] : memref<2x256x128xf32, #tpu.memory_space<vmem>>, vector<1x256x128xf32>
    %126 = vector.shape_cast %125 : vector<1x256x128xf32> to vector<256x128xf32>
    %127 = vector.shape_cast %115 : vector<256x128xf32> to vector<1x256x128xf32>
    tpu.vector_store %arg6[%124, %c0_55, %c0_56], %127 {strides = array<i32>} : memref<2x256x128xf32, #tpu.memory_space<vmem>>, vector<1x256x128xf32>,
    %c0_i32_57 = arith.constant 0 : i32
    %c0_i32_58 = arith.constant 0 : i32
    %128 = tpu.memref_slice %arg6[%116, %c0_i32_57, %c0_i32_58] : memref<2x256x128xf32, #tpu.memory_space<vmem>> -> memref<1x256x128xf32, #tpu.memory_space<vmem>>
    %129 = tpu.memref_squeeze %128 : memref<1x256x128xf32, #tpu.memory_space<vmem>> -> memref<256x128xf32, #tpu.memory_space<vmem>>
    %c0_i32_59 = arith.constant 0 : i32
    %130 = tpu.memref_slice %arg5[%c2_i32, %1, %c0_i32_59] : memref<4x256x128xf32, #tpu.memory_space<any>> -> memref<1x256x128xf32, #tpu.memory_space<any>>
    %131 = tpu.memref_squeeze %130 : memref<1x256x128xf32, #tpu.memory_space<any>> -> memref<256x128xf32, #tpu.memory_space<any>>
    %132 = tpu.memref_slice %arg7[%116] : memref<2x!tpu.dma_semaphore, #tpu.memory_space<semaphore_mem>> -> memref<1x!tpu.dma_semaphore, #tpu.memory_space<semaphore_mem>>
    %133 = tpu.memref_squeeze %132 : memref<1x!tpu.dma_semaphore, #tpu.memory_space<semaphore_mem>> -> memref<!tpu.dma_semaphore, #tpu.memory_space<semaphore_mem>>
    tpu.enqueue_dma source(%129 : memref<256x128xf32, #tpu.memory_space<vmem>>) target(%131 : memref<256x128xf32, #tpu.memory_space<any>>) target_semaphore(%133 : memref<!tpu.dma_semaphore, #tpu.memory_space<semaphore_mem>>)
    %c3_i32 = arith.constant 3 : i32
    %c0_60 = arith.constant 0 : index
    %c0_61 = arith.constant 0 : index
    %134 = vector.load %arg3[%c0_60, %c0_61] : memref<128x512xf32, #tpu.memory_space<vmem>>, vector<128x512xf32>
    %cst_62 = arith.constant dense<0.000000e+00> : vector<256x512xf32>
    %135 = tpu.matmul %115, %134, %cst_62 {dimension_numbers = #tpu.dot_dimension_numbers<[1], [0], [0], [1], [0, 0, 1, 1], [], []>} : vector<256x128xf32>, vector<128x512xf32>, vector<256x512xf32> -> vector<256x512xf32>
    %136 = arith.addf %135, %4 : vector<256x512xf32>
    %137 = vector.extract_strided_slice %136 {offsets = [0, 0], sizes = [256, 128], strides = [1, 1]} : vector<256x512xf32> to vector<256x128xf32>
    %cst_63 = arith.constant 5.000000e-01 : f32
    %138 = vector.broadcast %cst_63 : f32 to vector<256x128xf32>
    %139 = arith.mulf %138, %137 : vector<256x128xf32>
    %140 = math.tanh %139 : vector<256x128xf32>
    %cst_64 = arith.constant 1.000000e+00 : f32
    %141 = vector.broadcast %cst_64 : f32 to vector<256x128xf32>
    %142 = arith.addf %140, %141 : vector<256x128xf32>
    %cst_65 = arith.constant 5.000000e-01 : f32
    %143 = vector.broadcast %cst_65 : f32 to vector<256x128xf32>
    %144 = arith.mulf %143, %142 : vector<256x128xf32>
    %145 = vector.extract_strided_slice %136 {offsets = [0, 128], sizes = [256, 128], strides = [1, 1]} : vector<256x512xf32> to vector<256x128xf32>
    %cst_66 = arith.constant 5.000000e-01 : f32
    %146 = vector.broadcast %cst_66 : f32 to vector<256x128xf32>
    %147 = arith.mulf %146, %145 : vector<256x128xf32>
    %148 = math.tanh %147 : vector<256x128xf32>
    %cst_67 = arith.constant 1.000000e+00 : f32
    %149 = vector.broadcast %cst_67 : f32 to vector<256x128xf32>
    %150 = arith.addf %148, %149 : vector<256x128xf32>
    %cst_68 = arith.constant 5.000000e-01 : f32
    %151 = vector.broadcast %cst_68 : f32 to vector<256x128xf32>
    %152 = arith.mulf %151, %150 : vector<256x128xf32>
    %153 = vector.extract_strided_slice %136 {offsets = [0, 256], sizes = [256, 128], strides = [1, 1]} : vector<256x512xf32> to vector<256x128xf32>
    %cst_69 = arith.constant 5.000000e-01 : f32
    %154 = vector.broadcast %cst_69 : f32 to vector<256x128xf32>
    %155 = arith.mulf %154, %153 : vector<256x128xf32>
    %156 = math.tanh %155 : vector<256x128xf32>
    %cst_70 = arith.constant 1.000000e+00 : f32
    %157 = vector.broadcast %cst_70 : f32 to vector<256x128xf32>
    %158 = arith.addf %156, %157 : vector<256x128xf32>
    %cst_71 = arith.constant 5.000000e-01 : f32
    %159 = vector.broadcast %cst_71 : f32 to vector<256x128xf32>
    %160 = arith.mulf %159, %158 : vector<256x128xf32>
    %161 = vector.extract_strided_slice %136 {offsets = [0, 384], sizes = [256, 128], strides = [1, 1]} : vector<256x512xf32> to vector<256x128xf32>
    %162 = math.tanh %161 : vector<256x128xf32>
    %163 = arith.mulf %144, %113 : vector<256x128xf32>
    %164 = arith.mulf %152, %162 : vector<256x128xf32>
    %165 = arith.addf %163, %164 : vector<256x128xf32>
    %166 = math.tanh %165 : vector<256x128xf32>
    %167 = arith.mulf %160, %166 : vector<256x128xf32>
    %c1_i32_72 = arith.constant 1 : i32
    %168 = arith.andi %c3_i32, %c1_i32_72 : i32
    %c2_i32_73 = arith.constant 2 : i32
    %169 = arith.subi %c3_i32, %c2_i32_73 : i32
    %c0_i32_74 = arith.constant 0 : i32
    %c0_i32_75 = arith.constant 0 : i32
    %170 = tpu.memref_slice %arg6[%168, %c0_i32_74, %c0_i32_75] : memref<2x256x128xf32, #tpu.memory_space<vmem>> -> memref<1x256x128xf32, #tpu.memory_space<vmem>>
    %171 = tpu.memref_squeeze %170 : memref<1x256x128xf32, #tpu.memory_space<vmem>> -> memref<256x128xf32, #tpu.memory_space<vmem>>
    %c0_i32_76 = arith.constant 0 : i32
    %172 = tpu.memref_slice %arg5[%169, %1, %c0_i32_76] : memref<4x256x128xf32, #tpu.memory_space<any>> -> memref<1x256x128xf32, #tpu.memory_space<any>>
    %173 = tpu.memref_squeeze %172 : memref<1x256x128xf32, #tpu.memory_space<any>> -> memref<256x128xf32, #tpu.memory_space<any>>
    %174 = tpu.memref_slice %arg7[%168] : memref<2x!tpu.dma_semaphore, #tpu.memory_space<semaphore_mem>> -> memref<1x!tpu.dma_semaphore, #tpu.memory_space<semaphore_mem>>
    %175 = tpu.memref_squeeze %174 : memref<1x!tpu.dma_semaphore, #tpu.memory_space<semaphore_mem>> -> memref<!tpu.dma_semaphore, #tpu.memory_space<semaphore_mem>>
    tpu.wait_dma2 semaphore(%175 : memref<!tpu.dma_semaphore, #tpu.memory_space<semaphore_mem>>) src(%171 : memref<256x128xf32, #tpu.memory_space<vmem>>) dst(%173 : memref<256x128xf32, #tpu.memory_space<any>>)
    %176 = arith.index_cast %168 : i32 to index
    %c0_77 = arith.constant 0 : index
    %c0_78 = arith.constant 0 : index
    %177 = vector.load %arg6[%176, %c0_77, %c0_78] : memref<2x256x128xf32, #tpu.memory_space<vmem>>, vector<1x256x128xf32>
    %178 = vector.shape_cast %177 : vector<1x256x128xf32> to vector<256x128xf32>
    %179 = vector.shape_cast %167 : vector<256x128xf32> to vector<1x256x128xf32>
    tpu.vector_store %arg6[%176, %c0_77, %c0_78], %179 {strides = array<i32>} : memref<2x256x128xf32, #tpu.memory_space<vmem>>, vector<1x256x128xf32>,
    %c0_i32_79 = arith.constant 0 : i32
    %c0_i32_80 = arith.constant 0 : i32
    %180 = tpu.memref_slice %arg6[%168, %c0_i32_79, %c0_i32_80] : memref<2x256x128xf32, #tpu.memory_space<vmem>> -> memref<1x256x128xf32, #tpu.memory_space<vmem>>
    %181 = tpu.memref_squeeze %180 : memref<1x256x128xf32, #tpu.memory_space<vmem>> -> memref<256x128xf32, #tpu.memory_space<vmem>>
    %c0_i32_81 = arith.constant 0 : i32
    %182 = tpu.memref_slice %arg5[%c3_i32, %1, %c0_i32_81] : memref<4x256x128xf32, #tpu.memory_space<any>> -> memref<1x256x128xf32, #tpu.memory_space<any>>
    %183 = tpu.memref_squeeze %182 : memref<1x256x128xf32, #tpu.memory_space<any>> -> memref<256x128xf32, #tpu.memory_space<any>>
    %184 = tpu.memref_slice %arg7[%168] : memref<2x!tpu.dma_semaphore, #tpu.memory_space<semaphore_mem>> -> memref<1x!tpu.dma_semaphore, #tpu.memory_space<semaphore_mem>>
    %185 = tpu.memref_squeeze %184 : memref<1x!tpu.dma_semaphore, #tpu.memory_space<semaphore_mem>> -> memref<!tpu.dma_semaphore, #tpu.memory_space<semaphore_mem>>
    tpu.enqueue_dma source(%181 : memref<256x128xf32, #tpu.memory_space<vmem>>) target(%183 : memref<256x128xf32, #tpu.memory_space<any>>) target_semaphore(%185 : memref<!tpu.dma_semaphore, #tpu.memory_space<semaphore_mem>>)
    %c2_i32_82 = arith.constant 2 : i32
    %c0_i32_83 = arith.constant 0 : i32
    %c2_i32_84 = arith.constant 2 : i32
    %c0_i32_85 = arith.constant 0 : i32
    %c0_i32_86 = arith.constant 0 : i32
    %c0_i32_87 = arith.constant 0 : i32
    %186 = tpu.memref_slice %arg6[%c0_i32_83, %c0_i32_86, %c0_i32_87] : memref<2x256x128xf32, #tpu.memory_space<vmem>> -> memref<1x256x128xf32, #tpu.memory_space<vmem>>
    %187 = tpu.memref_squeeze %186 : memref<1x256x128xf32, #tpu.memory_space<vmem>> -> memref<256x128xf32, #tpu.memory_space<vmem>>
    %c0_i32_88 = arith.constant 0 : i32
    %188 = tpu.memref_slice %arg5[%c2_i32_84, %1, %c0_i32_88] : memref<4x256x128xf32, #tpu.memory_space<any>> -> memref<1x256x128xf32, #tpu.memory_space<any>>
    %189 = tpu.memref_squeeze %188 : memref<1x256x128xf32, #tpu.memory_space<any>> -> memref<256x128xf32, #tpu.memory_space<any>>
    %190 = tpu.memref_slice %arg7[%c0_i32_85] : memref<2x!tpu.dma_semaphore, #tpu.memory_space<semaphore_mem>> -> memref<1x!tpu.dma_semaphore, #tpu.memory_space<semaphore_mem>>
    %191 = tpu.memref_squeeze %190 : memref<1x!tpu.dma_semaphore, #tpu.memory_space<semaphore_mem>> -> memref<!tpu.dma_semaphore, #tpu.memory_space<semaphore_mem>>
    tpu.wait_dma2 semaphore(%191 : memref<!tpu.dma_semaphore, #tpu.memory_space<semaphore_mem>>) src(%187 : memref<256x128xf32, #tpu.memory_space<vmem>>) dst(%189 : memref<256x128xf32, #tpu.memory_space<any>>)
    %c1_i32_89 = arith.constant 1 : i32
    %c3_i32_90 = arith.constant 3 : i32
    %c1_i32_91 = arith.constant 1 : i32
    %c0_i32_92 = arith.constant 0 : i32
    %c0_i32_93 = arith.constant 0 : i32
    %192 = tpu.memref_slice %arg6[%c1_i32_89, %c0_i32_92, %c0_i32_93] : memref<2x256x128xf32, #tpu.memory_space<vmem>> -> memref<1x256x128xf32, #tpu.memory_space<vmem>>
    %193 = tpu.memref_squeeze %192 : memref<1x256x128xf32, #tpu.memory_space<vmem>> -> memref<256x128xf32, #tpu.memory_space<vmem>>
    %c0_i32_94 = arith.constant 0 : i32
    %194 = tpu.memref_slice %arg5[%c3_i32_90, %1, %c0_i32_94] : memref<4x256x128xf32, #tpu.memory_space<any>> -> memref<1x256x128xf32, #tpu.memory_space<any>>
    %195 = tpu.memref_squeeze %194 : memref<1x256x128xf32, #tpu.memory_space<any>> -> memref<256x128xf32, #tpu.memory_space<any>>
    %196 = tpu.memref_slice %arg7[%c1_i32_91] : memref<2x!tpu.dma_semaphore, #tpu.memory_space<semaphore_mem>> -> memref<1x!tpu.dma_semaphore, #tpu.memory_space<semaphore_mem>>
    %197 = tpu.memref_squeeze %196 : memref<1x!tpu.dma_semaphore, #tpu.memory_space<semaphore_mem>> -> memref<!tpu.dma_semaphore, #tpu.memory_space<semaphore_mem>>
    tpu.wait_dma2 semaphore(%197 : memref<!tpu.dma_semaphore, #tpu.memory_space<semaphore_mem>>) src(%193 : memref<256x128xf32, #tpu.memory_space<vmem>>) dst(%195 : memref<256x128xf32, #tpu.memory_space<any>>)
    return
  }
  func.func @transform_0(%arg0: i32) -> (i32, i32) {
    %c0_i32 = arith.constant 0 : i32
    %c0_i32_0 = arith.constant 0 : i32
    return %arg0, %c0_i32 : i32, i32
  }
  func.func @transform_1(%arg0: i32) -> (i32, i32) {
    %c0_i32 = arith.constant 0 : i32
    %c0_i32_0 = arith.constant 0 : i32
    %c0_i32_1 = arith.constant 0 : i32
    return %c0_i32, %c0_i32_0 : i32, i32
  }
  func.func @transform_2(%arg0: i32) -> (i32, i32) {
    %c0_i32 = arith.constant 0 : i32
    %c0_i32_0 = arith.constant 0 : i32
    %c0_i32_1 = arith.constant 0 : i32
    return %c0_i32, %c0_i32_0 : i32, i32
  }
  func.func @transform_3(%arg0: i32) -> (i32, i32) {
    %c0_i32 = arith.constant 0 : i32
    %c0_i32_0 = arith.constant 0 : i32
    %c0_i32_1 = arith.constant 0 : i32
    return %c0_i32, %c0_i32_0 : i32, i32
  }
}

</mosaic_0001>

<bundles_post_ra>
// kernel: tpu_custom_call.1
= control target key start
LH: loop header
LB: loop body
LE: loop exit
PB: predicated region body
PF: predicated region fallthrough
CT: control target
= control target key end

     0   :  { %9 = vsyncpa [#allocation5], 0  ;;  %s8744_s0 = inlined_call_operand.hbm [shape: f32[256,128], index: 0, kind: input, shape index: {}]   ;;  %s8745_s1 = inlined_call_operand.hbm [shape: f32[128,512], index: 1, kind: input, shape index: {}]   ;;  %s8746_s2 = inlined_call_operand.hbm [shape: f32[128,512], index: 2, kind: input, shape index: {}]   ;;  %s8747_s3 = inlined_call_operand.vmem [shape: f32[1,512], index: 3, kind: input, shape index: {}]   ;;  %s8748_s4 = inlined_call_operand.hbm [shape: f32[4,256,128], index: 4, kind: output, shape index: {}]  }
   0x1   :  { %10 = vsyncpa [#allocation7], 0  ;;  %s6377_s15 = smov [#allocation6]   ;;  %s6202_s19 = scalar_lea.hbm %s8745_s1, 8192 }
   0x2   :  { %s28_s16 = sshll.u32 %s6377_s15, 4  ;;  %p6203_p0 = scmp.ne.s32.totalorder %s8745_s1, %s6202_s19  ;;  %s29_s16 = int_to_ptr.vmem [resolvable:$true] %s28_s16 }
   0x3   :  { %p6206_p1 = scmp.lt.u32.totalorder %s6202_s19, %s8745_s1 }
   0x5   :  { %p6208_p2 = pnand %p6206_p1, %p6203_p0 }
   0x7   :  { %6211 = shalt.err (!%p6208_p2)
}
   0x8   :  { %s6212_s24 = scalar_lea.vmem %s29_s16, 8192  ;;  %p6217_p4 = scmp.lt.s32.totalorder %s29_s16, %s29_s16 }
   0x9   :  { %p6213_p3 = scmp.ne.s32.totalorder %s29_s16, %s6212_s24  ;;  %p6218_p5 = scmp.lt.s32.totalorder %s6212_s24, %s6212_s24 }
   0xb   :  { %p6219_p6 = por %p6218_p5, %p6217_p4 }
   0xd   :  { %p6220_p7 = pnand %p6219_p6, %p6213_p3 }
   0xf   :  { %6223 = shalt.err (!%p6220_p7)
}
  0x10   :  { %s6378_s25 = smov 512   ;;  %s6379_s26 = smov 32  }
  0x11   :  { %34 = dma.hbm_to_vmem [thread:$0]  %s8745_s1, 8192, %s29_s16, [#allocation7], %s6378_s25, %s6378_s25, %s6379_s26  }
  0x12   :  { %s6380_s29 = smov [#allocation4]   ;;  %s6224_s7 = scalar_lea.hbm %s8744_s0, 4096 }
  0x13   :  { %s16_s30 = sshll.u32 %s6380_s29, 4  ;;  %p6225_p8 = scmp.ne.s32.totalorder %s8744_s0, %s6224_s7  ;;  %s17_s30 = int_to_ptr.vmem [resolvable:$true] %s16_s30 }
  0x14   :  { %p6228_p9 = scmp.lt.u32.totalorder %s6224_s7, %s8744_s0 }
  0x16   :  { %p6230_p10 = pnand %p6228_p9, %p6225_p8 }
  0x18   :  { %6233 = shalt.err (!%p6230_p10)
}
  0x19   :  { %s6234_s12 = scalar_lea.vmem %s17_s30, 4096  ;;  %p6239_p12 = scmp.lt.s32.totalorder %s17_s30, %s17_s30 }
  0x1a   :  { %p6235_p11 = scmp.ne.s32.totalorder %s17_s30, %s6234_s12  ;;  %p6240_p13 = scmp.lt.s32.totalorder %s6234_s12, %s6234_s12 }
  0x1c   :  { %p6241_p0 = por %p6240_p13, %p6239_p12 }
  0x1e   :  { %p6242_p1 = pnand %p6241_p0, %p6235_p11 }
  0x20   :  { %6245 = shalt.err (!%p6242_p1)
}
  0x21   :  { %s6381_s1 = smov 128   ;;  %s6382_s13 = smov 8  }
  0x22   :  { %22 = dma.hbm_to_vmem [thread:$0]  %s8744_s0, 4096, %s17_s30, [#allocation5], %s6381_s1, %s6381_s1, %s6382_s13  }
  0x23   :  { %s6383_s16 = smov [#allocation8]   ;;  %s6246_s20 = scalar_lea.hbm %s8746_s2, 8192 }
  0x24   :  { %s40_s17 = sshll.u32 %s6383_s16, 4  ;;  %p6247_p2 = scmp.ne.s32.totalorder %s8746_s2, %s6246_s20  ;;  %s41_s17 = int_to_ptr.vmem [resolvable:$true] %s40_s17 }
  0x25   :  { %p6250_p3 = scmp.lt.u32.totalorder %s6246_s20, %s8746_s2 }
  0x27   :  { %p6252_p4 = pnand %p6250_p3, %p6247_p2 }
  0x29   :  { %6255 = shalt.err (!%p6252_p4)
}
  0x2a   :  { %s6256_s27 = scalar_lea.vmem %s41_s17, 8192  ;;  %p6261_p6 = scmp.lt.s32.totalorder %s41_s17, %s41_s17 }
  0x2b   :  { %p6257_p5 = scmp.ne.s32.totalorder %s41_s17, %s6256_s27  ;;  %p6262_p7 = scmp.lt.s32.totalorder %s6256_s27, %s6256_s27 }
  0x2d   :  { %p6263_p8 = por %p6262_p7, %p6261_p6 }
  0x2f   :  { %p6264_p9 = pnand %p6263_p8, %p6257_p5 }
  0x31   :  { %6267 = shalt.err (!%p6264_p9)
}
  0x32   :  { %46 = dma.hbm_to_vmem [thread:$0]  %s8746_s2, 8192, %s41_s17, [#allocation7], %s6378_s25, %s6378_s25, %s6379_s26  }
  0x33   :  { %6365 = dma.done.wait [#allocation5], 4096  }
  0x34   :  { %6366 = vsyncadd [#allocation5], 4294963200 }
  0x35   :  { %6367 = dma.done.wait [#allocation7], 16384  }
  0x36   :  { %6368 = vsyncadd [#allocation7], 4294950912  ;;  %v8749_v0 = vmov 0.0   ;;  %v114_v1 = vld [vmem:[#allocation6 + $0x8] sm:$0xff]  ;;  %v113_v3 = vld [vmem:[#allocation6] sm:$0xff]  ;;  %s6385_s26 = smov [#allocation2]  }
  0x37   :  { %241 = vmatprep.mubr.f32.mxu0 %v8749_v0  ;;  %466 = vmatprep.mubr.f32.mxu1 %v8749_v0  ;;  %v118_v2 = vld [vmem:[#allocation6 + $0x28] sm:$0xff]  ;;  %v117_v5 = vld [vmem:[#allocation6 + $0x20] sm:$0xff]  ;;  %v116_v12 = vld [vmem:[#allocation6 + $0x18] sm:$0xff]  ;;  %s1084_s29 = sshll.u32 %s6385_s26, 4  ;;  %s6859_s29 = int_to_ptr.vmem [resolvable:$true] %s1084_s29 }
  0x38   :  { %v4719_v4 = vpack.c.bf16 %v118_v2, %v114_v1  ;;  %v122_v6 = vld [vmem:[#allocation6 + $0x48] sm:$0xff]  ;;  %v4721_v8 = vpack.c.bf16 %v117_v5, %v113_v3  ;;  %v121_v10 = vld [vmem:[#allocation6 + $0x40] sm:$0xff]  ;;  %v120_v13 = vld [vmem:[#allocation6 + $0x38] sm:$0xff]  ;;  %s6268_s30 = scalar_lea.vmem %s6859_s29, 4096  ;;  %s6272_s6 = scalar_lea.vmem %s6859_s29, 8192 }
  0x39   :  { %v126_v7 = vld [vmem:[#allocation6 + $0x68] sm:$0xff]  ;;  %v125_v11 = vld [vmem:[#allocation6 + $0x60] sm:$0xff]  ;;  %v115_v14 = vld [vmem:[#allocation6 + $0x10] sm:$0xff]  ;;  %v4751_v17 = vpack.c.bf16 %v120_v13, %v116_v12  ;;  %p6863_p10 = scmp.ne.s32.totalorder %s6859_s29, %s6268_s30  ;;  %p6273_p11 = scmp.lt.s32.totalorder %s6859_s29, %s6859_s29 }
  0x3a   :  { %v4723_v9 = vpack.c.bf16 %v126_v7, %v122_v6  ;;  %4720 = vmatprep.subr.bf16.mxu0 %v4719_v4  ;;  %v119_v15 = vld [vmem:[#allocation6 + $0x30] sm:$0xff]  ;;  %v4725_v16 = vpack.c.bf16 %v125_v11, %v121_v10  ;;  %v130_v19 = vld [vmem:[#allocation6 + $0x88] sm:$0xff]  ;;  %v129_v21 = vld [vmem:[#allocation6 + $0x80] sm:$0xff]  ;;  %p6274_p12 = scmp.lt.s32.totalorder %s6272_s6, %s6268_s30 }
  0x3b   :  { %4722 = vmatpush1.bf16.msra.mxu0 %v4721_v8  ;;  %v4753_v18 = vpack.c.bf16 %v119_v15, %v115_v14  ;;  %v134_v20 = vld [vmem:[#allocation6 + $0xa8] sm:$0xff]  ;;  %v133_v23 = vld [vmem:[#allocation6 + $0xa0] sm:$0xff]  ;;  %v124_v24 = vld [vmem:[#allocation6 + $0x58] sm:$0xff]  ;;  %4752 = vmatprep.subr.bf16.mxu1 %v4751_v17 }
  0x3c   :  { %4724 = vmatprep.subr.bf16.mxu0 %v4723_v9  ;;  %v4727_v22 = vpack.c.bf16 %v134_v20, %v130_v19  ;;  %v128_v25 = vld [vmem:[#allocation6 + $0x78] sm:$0xff]  ;;  %v123_v27 = vld [vmem:[#allocation6 + $0x50] sm:$0xff]  ;;  %v138_v29 = vld [vmem:[#allocation6 + $0xc8] sm:$0xff]  ;;  %v4729_v32 = vpack.c.bf16 %v133_v23, %v129_v21  ;;  %p6872_p13 = por %p6274_p12, %p6273_p11 }
  0x3d   :  { %v4755_v26 = vpack.c.bf16 %v128_v25, %v124_v24  ;;  %v127_v28 = vld [vmem:[#allocation6 + $0x70] sm:$0xff]  ;;  %4754 = vmatpush1.bf16.msra.mxu1 %v4753_v18  ;;  %v142_v31 = vld [vmem:[#allocation6 + $0xe8] sm:$0xff]  ;;  %v132_v33 = vld [vmem:[#allocation6 + $0x98] sm:$0xff] }
  0x3e   :  { %v4757_v30 = vpack.c.bf16 %v127_v28, %v123_v27  ;;  %v136_v34 = vld [vmem:[#allocation6 + $0xb8] sm:$0xff]  ;;  %v131_v35 = vld [vmem:[#allocation6 + $0x90] sm:$0xff]  ;;  %v4731_v36 = vpack.c.bf16 %v142_v31, %v138_v29  ;;  %v137_v37 = vld [vmem:[#allocation6 + $0xc0] sm:$0xff]  ;;  %p6276_p0 = pnand %p6872_p13, %p6863_p10 }
  0x3f   :  { %4726 = vmatpush1.bf16.msra.mxu0 %v4725_v16  ;;  %4756 = vmatprep.subr.bf16.mxu1 %v4755_v26  ;;  %v141_v38 = vld [vmem:[#allocation6 + $0xe0] sm:$0xff]  ;;  %v4759_v39 = vpack.c.bf16 %v136_v34, %v132_v33  ;;  %v135_v40 = vld [vmem:[#allocation6 + $0xb0] sm:$0xff]  ;;  %v146_v41 = vld [vmem:[#allocation6 + $0x108] sm:$0xff] }
  0x40   :  { %4728 = vmatprep.subr.bf16.mxu0 %v4727_v22  ;;  %v150_v42 = vld [vmem:[#allocation6 + $0x128] sm:$0xff]  ;;  %v140_v43 = vld [vmem:[#allocation6 + $0xd8] sm:$0xff]  ;;  %v4761_v44 = vpack.c.bf16 %v135_v40, %v131_v35  ;;  %v4733_v46 = vpack.c.bf16 %v141_v38, %v137_v37  ;;  %v145_v47 = vld [vmem:[#allocation6 + $0x100] sm:$0xff] }
  0x41   :  { %4758 = vmatpush1.bf16.msra.mxu1 %v4757_v30  ;;  %v144_v45 = vld [vmem:[#allocation6 + $0xf8] sm:$0xff]  ;;  %v139_v49 = vld [vmem:[#allocation6 + $0xd0] sm:$0xff]  ;;  %v4735_v51 = vpack.c.bf16 %v150_v42, %v146_v41  ;;  %v149_v52 = vld [vmem:[#allocation6 + $0x120] sm:$0xff] }
  0x42   :  { %4760 = vmatprep.subr.bf16.mxu1 %v4759_v39  ;;  %v4763_v48 = vpack.c.bf16 %v144_v45, %v140_v43  ;;  %v143_v50 = vld [vmem:[#allocation6 + $0xf0] sm:$0xff]  ;;  %v148_v53 = vld [vmem:[#allocation6 + $0x118] sm:$0xff]  ;;  %v154_v55 = vld [vmem:[#allocation6 + $0x148] sm:$0xff]  ;;  %v4737_v58 = vpack.c.bf16 %v149_v52, %v145_v47 }
  0x43   :  { %4730 = vmatpush1.bf16.msra.mxu0 %v4729_v32  ;;  %v152_v54 = vld [vmem:[#allocation6 + $0x138] sm:$0xff]  ;;  %v158_v56 = vld [vmem:[#allocation6 + $0x168] sm:$0xff]  ;;  %v4765_v57 = vpack.c.bf16 %v143_v50, %v139_v49  ;;  %v153_v59 = vld [vmem:[#allocation6 + $0x140] sm:$0xff] }
  0x44   :  { %4732 = vmatprep.subr.bf16.mxu0 %v4731_v36  ;;  %v4767_v60 = vpack.c.bf16 %v152_v54, %v148_v53  ;;  %v147_v61 = vld [vmem:[#allocation6 + $0x110] sm:$0xff]  ;;  %v4739_v63 = vpack.c.bf16 %v158_v56, %v154_v55  ;;  %v157_v1 = vld [vmem:[#allocation6 + $0x160] sm:$0xff]  ;;  %v156_v2 = vld [vmem:[#allocation6 + $0x158] sm:$0xff] }
  0x45   :  { %4762 = vmatpush1.bf16.msra.mxu1 %v4761_v44  ;;  %v151_v62 = vld [vmem:[#allocation6 + $0x130] sm:$0xff]  ;;  %v160_v3 = vld [vmem:[#allocation6 + $0x178] sm:$0xff]  ;;  %v162_v4 = vld [vmem:[#allocation6 + $0x188] sm:$0xff]  ;;  %v4741_v7 = vpack.c.bf16 %v157_v1, %v153_v59 }
  0x46   :  { %4764 = vmatprep.subr.bf16.mxu1 %v4763_v48  ;;  %v166_v5 = vld [vmem:[#allocation6 + $0x1a8] sm:$0xff]  ;;  %v4769_v6 = vpack.c.bf16 %v151_v62, %v147_v61  ;;  %v161_v8 = vld [vmem:[#allocation6 + $0x180] sm:$0xff]  ;;  %v4771_v9 = vpack.c.bf16 %v160_v3, %v156_v2  ;;  %v155_v10 = vld [vmem:[#allocation6 + $0x150] sm:$0xff] }
  0x47   :  { %4734 = vmatpush1.bf16.msra.mxu0 %v4733_v46  ;;  %v159_v11 = vld [vmem:[#allocation6 + $0x170] sm:$0xff]  ;;  %v4743_v12 = vpack.c.bf16 %v166_v5, %v162_v4  ;;  %v165_v13 = vld [vmem:[#allocation6 + $0x1a0] sm:$0xff]  ;;  %v164_v14 = vld [vmem:[#allocation6 + $0x198] sm:$0xff] }
  0x48   :  { %4736 = vmatprep.subr.bf16.mxu0 %v4735_v51  ;;  %v168_v15 = vld [vmem:[#allocation6 + $0x1b8] sm:$0xff]  ;;  %v170_v16 = vld [vmem:[#allocation6 + $0x1c8] sm:$0xff]  ;;  %v4773_v18 = vpack.c.bf16 %v159_v11, %v155_v10  ;;  %v4745_v19 = vpack.c.bf16 %v165_v13, %v161_v8  ;;  %v169_v20 = vld [vmem:[#allocation6 + $0x1c0] sm:$0xff] }
  0x49   :  { %4766 = vmatpush1.bf16.msra.mxu1 %v4765_v57  ;;  %v174_v17 = vld [vmem:[#allocation6 + $0x1e8] sm:$0xff]  ;;  %v4775_v21 = vpack.c.bf16 %v168_v15, %v164_v14  ;;  %v163_v22 = vld [vmem:[#allocation6 + $0x190] sm:$0xff]  ;;  %v173_v25 = vld [vmem:[#allocation6 + $0x1e0] sm:$0xff] }
  0x4a   :  { %4768 = vmatprep.subr.bf16.mxu1 %v4767_v60  ;;  %v167_v23 = vld [vmem:[#allocation6 + $0x1b0] sm:$0xff]  ;;  %v4747_v24 = vpack.c.bf16 %v174_v17, %v170_v16  ;;  %v172_v26 = vld [vmem:[#allocation6 + $0x1d8] sm:$0xff]  ;;  %v4749_v29 = vpack.c.bf16 %v173_v25, %v169_v20  ;;  %v1089_v34 = vld [vmem:[#allocation8 + $0x8] sm:$0xff] }
  0x4b   :  { %4738 = vmatpush1.bf16.msra.mxu0 %v4737_v58  ;;  %v176_v27 = vld [vmem:[#allocation6 + $0x1f8] sm:$0xff]  ;;  %v4777_v28 = vpack.c.bf16 %v167_v23, %v163_v22  ;;  %v171_v31 = vld [vmem:[#allocation6 + $0x1d0] sm:$0xff]  ;;  %v1093_v35 = vld [vmem:[#allocation8 + $0x28] sm:$0xff] }
  0x4c   :  { %4740 = vmatprep.subr.bf16.mxu0 %v4739_v63  ;;  %v4779_v30 = vpack.c.bf16 %v176_v27, %v172_v26  ;;  %v175_v32 = vld [vmem:[#allocation6 + $0x1f0] sm:$0xff]  ;;  %v81_v36 = vld [vmem:[#allocation4] sm:$0xff]  ;;  %v4783_v37 = vpack.c.bf16 %v1093_v35, %v1089_v34  ;;  %v1091_v41 = vld [vmem:[#allocation8 + $0x18] sm:$0xff] }
  0x4d   :  { %4770 = vmatpush1.bf16.msra.mxu1 %v4769_v6  ;;  %v4781_v33 = vpack.c.bf16 %v175_v32, %v171_v31  ;;  %v1088_v38 = vld [vmem:[#allocation8] sm:$0xff]  ;;  %v1095_v42 = vld [vmem:[#allocation8 + $0x38] sm:$0xff]  ;;  %v82_v43 = vld [vmem:[#allocation4 + $0x8] sm:$0xff] }
  0x4e   :  { %4772 = vmatprep.subr.bf16.mxu1 %v4771_v9  ;;  %v1092_v39 = vld [vmem:[#allocation8 + $0x20] sm:$0xff]  ;;  %v4815_v44 = vpack.c.bf16 %v1095_v42, %v1091_v41  ;;  %v1090_v45 = vld [vmem:[#allocation8 + $0x10] sm:$0xff]  ;;  %v1097_v47 = vld [vmem:[#allocation8 + $0x48] sm:$0xff] }
  0x4f   :  { %4742 = vmatpush1.bf16.msra.mxu0 %v4741_v7  ;;  %v4785_v40 = vpack.c.bf16 %v1092_v39, %v1088_v38  ;;  %v1094_v46 = vld [vmem:[#allocation8 + $0x30] sm:$0xff]  ;;  %v1101_v48 = vld [vmem:[#allocation8 + $0x68] sm:$0xff]  ;;  %v1096_v49 = vld [vmem:[#allocation8 + $0x40] sm:$0xff] }
  0x50   :  { %4744 = vmatprep.subr.bf16.mxu0 %v4743_v12  ;;  %v1100_v50 = vld [vmem:[#allocation8 + $0x60] sm:$0xff]  ;;  %v4817_v51 = vpack.c.bf16 %v1094_v46, %v1090_v45  ;;  %v4787_v52 = vpack.c.bf16 %v1101_v48, %v1097_v47  ;;  %v1099_v53 = vld [vmem:[#allocation8 + $0x58] sm:$0xff]  ;;  %v1098_v55 = vld [vmem:[#allocation8 + $0x50] sm:$0xff] }
  0x51   :  { %4774 = vmatpush1.bf16.msra.mxu1 %v4773_v18  ;;  %v1103_v54 = vld [vmem:[#allocation8 + $0x78] sm:$0xff]  ;;  %v4789_v56 = vpack.c.bf16 %v1100_v50, %v1096_v49  ;;  %v1102_v58 = vld [vmem:[#allocation8 + $0x70] sm:$0xff]  ;;  %v1105_v59 = vld [vmem:[#allocation8 + $0x88] sm:$0xff] }
  0x52   :  { %4776 = vmatprep.subr.bf16.mxu1 %v4775_v21  ;;  %v4819_v57 = vpack.c.bf16 %v1103_v54, %v1099_v53  ;;  %v1109_v60 = vld [vmem:[#allocation8 + $0xa8] sm:$0xff]  ;;  %v1104_v62 = vld [vmem:[#allocation8 + $0x80] sm:$0xff]  ;;  %v1107_v1 = vld [vmem:[#allocation8 + $0x98] sm:$0xff]  ;;  %v4821_v4 = vpack.c.bf16 %v1102_v58, %v1098_v55 }
  0x53   :  { %4746 = vmatpush1.bf16.msra.mxu0 %v4745_v19  ;;  %v4791_v61 = vpack.c.bf16 %v1109_v60, %v1105_v59  ;;  %v1108_v63 = vld [vmem:[#allocation8 + $0xa0] sm:$0xff]  ;;  %v1111_v2 = vld [vmem:[#allocation8 + $0xb8] sm:$0xff]  ;;  %v83_v3 = vld [vmem:[#allocation4 + $0x10] sm:$0xff] }
  0x54   :  { %4748 = vmatprep.subr.bf16.mxu0 %v4747_v24  ;;  %v1113_v5 = vld [vmem:[#allocation8 + $0xc8] sm:$0xff]  ;;  %v4793_v7 = vpack.c.bf16 %v1108_v63, %v1104_v62  ;;  %v4823_v8 = vpack.c.bf16 %v1111_v2, %v1107_v1  ;;  %v1106_v9 = vld [vmem:[#allocation8 + $0x90] sm:$0xff]  ;;  %v1112_v11 = vld [vmem:[#allocation8 + $0xc0] sm:$0xff] }
  0x55   :  { %4778 = vmatpush1.bf16.msra.mxu1 %v4777_v28  ;;  %v1117_v6 = vld [vmem:[#allocation8 + $0xe8] sm:$0xff]  ;;  %v1110_v10 = vld [vmem:[#allocation8 + $0xb0] sm:$0xff]  ;;  %v1116_v13 = vld [vmem:[#allocation8 + $0xe0] sm:$0xff] }
  0x56   :  { %4780 = vmatprep.subr.bf16.mxu1 %v4779_v30  ;;  %v4795_v12 = vpack.c.bf16 %v1117_v6, %v1113_v5  ;;  %v1115_v14 = vld [vmem:[#allocation8 + $0xd8] sm:$0xff]  ;;  %v1121_v16 = vld [vmem:[#allocation8 + $0x108] sm:$0xff]  ;;  %v4825_v19 = vpack.c.bf16 %v1110_v10, %v1106_v9  ;;  %v4797_v20 = vpack.c.bf16 %v1116_v13, %v1112_v11  ;;  %v1114_v22 = vld [vmem:[#allocation8 + $0xd0] sm:$0xff] }
  0x57   :  { %4750 = vmatpush1.bf16.msra.mxu0 %v4749_v29  ;;  %v1119_v15 = vld [vmem:[#allocation8 + $0xf8] sm:$0xff]  ;;  %v1125_v17 = vld [vmem:[#allocation8 + $0x128] sm:$0xff]  ;;  %v1118_v23 = vld [vmem:[#allocation8 + $0xf0] sm:$0xff] }
  0x58   :  { %4784 = vmatprep.subr.bf16.mxu0 %v4783_v37  ;;  %v84_v18 = vld [vmem:[#allocation4 + $0x18] sm:$0xff]  ;;  %v4827_v21 = vpack.c.bf16 %v1119_v15, %v1115_v14  ;;  %v1120_v24 = vld [vmem:[#allocation8 + $0x100] sm:$0xff]  ;;  %v4799_v25 = vpack.c.bf16 %v1125_v17, %v1121_v16  ;;  %v1129_v29 = vld [vmem:[#allocation8 + $0x148] sm:$0xff]  ;;  %v4829_v32 = vpack.c.bf16 %v1118_v23, %v1114_v22 }
  0x59   :  { %4782 = vmatpush1.bf16.msra.mxu1 %v4781_v33  ;;  %v1124_v26 = vld [vmem:[#allocation8 + $0x120] sm:$0xff]  ;;  %v1123_v27 = vld [vmem:[#allocation8 + $0x118] sm:$0xff]  ;;  %v1133_v30 = vld [vmem:[#allocation8 + $0x168] sm:$0xff] }
  0x5a   :  { %242 = vmatmul.mubr.f32.vlgmr.msra.gmra.mrb[0].mxu0 %v81_v36  ;;  %4816 = vmatprep.subr.bf16.mxu1 %v4815_v44  ;;  %v1127_v28 = vld [vmem:[#allocation8 + $0x138] sm:$0xff]  ;;  %v85_v31 = vld [vmem:[#allocation4 + $0x20] sm:$0xff]  ;;  %v4801_v33 = vpack.c.bf16 %v1124_v26, %v1120_v24  ;;  %v1122_v35 = vld [vmem:[#allocation8 + $0x110] sm:$0xff]  ;;  %v4803_v38 = vpack.c.bf16 %v1133_v30, %v1129_v29 }
  0x5b   :  { %246 = vmatprep.mubr.f32.mxu0 %v8749_v0  ;;  %4786 = vmatpush1.bf16.msra.mxu0 %v4785_v40  ;;  %v4831_v34 = vpack.c.bf16 %v1127_v28, %v1123_v27  ;;  %v1128_v37 = vld [vmem:[#allocation8 + $0x140] sm:$0xff]  ;;  %v1131_v40 = vld [vmem:[#allocation8 + $0x158] sm:$0xff]  ;;  %v86_v42 = vld [vmem:[#allocation4 + $0x28] sm:$0xff] }
  0x5c   :  { %467 = vmatmul.mubr.f32.vlgmr.msra.gmra.mrb[0].mxu1 %v81_v36  ;;  %4788 = vmatprep.subr.bf16.mxu0 %v4787_v52  ;;  %v1126_v36 = vld [vmem:[#allocation8 + $0x130] sm:$0xff]  ;;  %v1132_v39 = vld [vmem:[#allocation8 + $0x160] sm:$0xff]  ;;  %v1135_v41 = vld [vmem:[#allocation8 + $0x178] sm:$0xff] }
  0x5d   :  { %472 = vmatprep.mubr.f32.mxu1 %v8749_v0  ;;  %4818 = vmatpush1.bf16.msra.mxu1 %v4817_v51  ;;  %v4805_v44 = vpack.c.bf16 %v1132_v39, %v1128_v37  ;;  %v4835_v45 = vpack.c.bf16 %v1135_v41, %v1131_v40  ;;  %v1130_v46 = vld [vmem:[#allocation8 + $0x150] sm:$0xff]  ;;  %v88_v50 = vld [vmem:[#allocation4 + $0x38] sm:$0xff]  ;;  %v89_v51 = vld [vmem:[#allocation4 + $0x40] sm:$0xff] }
  0x5e   :  { %247 = vmatmul.mubr.f32.gmra.mrb[2].mxu0 %v82_v43  ;;  %4820 = vmatprep.subr.bf16.mxu1 %v4819_v57  ;;  %v1134_v47 = vld [vmem:[#allocation8 + $0x170] sm:$0xff]  ;;  %v90_v52 = vld [vmem:[#allocation4 + $0x48] sm:$0xff]  ;;  %v92_v54 = vld [vmem:[#allocation4 + $0x58] sm:$0xff] }
  0x5f   :  { %251 = vmatprep.mubr.f32.mxu0 %v8749_v0  ;;  %4790 = vmatpush1.bf16.msra.mxu0 %v4789_v56  ;;  %v87_v48 = vld [vmem:[#allocation4 + $0x30] sm:$0xff]  ;;  %v4837_v49 = vpack.c.bf16 %v1134_v47, %v1130_v46  ;;  %v93_v55 = vld [vmem:[#allocation4 + $0x60] sm:$0xff]  ;;  %v94_v56 = vld [vmem:[#allocation4 + $0x68] sm:$0xff] }
  0x60   :  { %473 = vmatmul.mubr.f32.gmra.mrb[2].mxu1 %v82_v43  ;;  %4792 = vmatprep.subr.bf16.mxu0 %v4791_v61  ;;  %v4833_v43 = vpack.c.bf16 %v1126_v36, %v1122_v35  ;;  %v91_v53 = vld [vmem:[#allocation4 + $0x50] sm:$0xff]  ;;  %v96_v58 = vld [vmem:[#allocation4 + $0x78] sm:$0xff]  ;;  %v97_v59 = vld [vmem:[#allocation4 + $0x80] sm:$0xff]  ;;  %v61_v36 = vlaneseq }
  0x61   :  { %478 = vmatprep.mubr.f32.mxu1 %v8749_v0  ;;  %4822 = vmatpush1.bf16.msra.mxu1 %v4821_v4  ;;  %v95_v57 = vld [vmem:[#allocation4 + $0x70] sm:$0xff]  ;;  %v98_v60 = vld [vmem:[#allocation4 + $0x88] sm:$0xff]  ;;  %v100_v62 = vld [vmem:[#allocation4 + $0x98] sm:$0xff] }
  0x62   :  { %252 = vmatmul.mubr.f32.gmra.mrb[4].mxu0 %v83_v3  ;;  %4824 = vmatprep.subr.bf16.mxu1 %v4823_v8  ;;  %v99_v61 = vld [vmem:[#allocation4 + $0x90] sm:$0xff]  ;;  %v101_v63 = vld [vmem:[#allocation4 + $0xa0] sm:$0xff]  ;;  %v102_v1 = vld [vmem:[#allocation4 + $0xa8] sm:$0xff]  ;;  %v6520_v37 = vshrl.u32 %v61_v36, 7 }
  0x63   :  { %256 = vmatprep.mubr.f32.mxu0 %v8749_v0  ;;  %4794 = vmatpush1.bf16.msra.mxu0 %v4793_v7  ;;  %v103_v2 = vld [vmem:[#allocation4 + $0xb0] sm:$0xff]  ;;  %v105_v4 = vld [vmem:[#allocation4 + $0xc0] sm:$0xff]  ;;  %v106_v5 = vld [vmem:[#allocation4 + $0xc8] sm:$0xff] }
  0x64   :  { %479 = vmatmul.mubr.f32.gmra.mrb[4].mxu1 %v83_v3  ;;  %4796 = vmatprep.subr.bf16.mxu0 %v4795_v12  ;;  %v104_v3 = vld [vmem:[#allocation4 + $0xb8] sm:$0xff]  ;;  %v107_v6 = vld [vmem:[#allocation4 + $0xd0] sm:$0xff]  ;;  %v1137_v7 = vld [vmem:[#allocation8 + $0x188] sm:$0xff]  ;;  %v71_v40 = vsub.s32 2, %v6520_v37  ;;  %v75_v41 = vsub.s32 3, %v6520_v37 }
  0x65   :  { %484 = vmatprep.mubr.f32.mxu1 %v8749_v0  ;;  %4826 = vmatpush1.bf16.msra.mxu1 %v4825_v19  ;;  %v1141_v8 = vld [vmem:[#allocation8 + $0x1a8] sm:$0xff]  ;;  %v1136_v9 = vld [vmem:[#allocation8 + $0x180] sm:$0xff]  ;;  %v108_v13 = vld [vmem:[#allocation4 + $0xd8] sm:$0xff] }
  0x66   :  { %257 = vmatmul.mubr.f32.gmra.mrb[6].mxu0 %v84_v18  ;;  %4828 = vmatprep.subr.bf16.mxu1 %v4827_v21  ;;  %v4807_v10 = vpack.c.bf16 %v1141_v8, %v1137_v7  ;;  %v1140_v11 = vld [vmem:[#allocation8 + $0x1a0] sm:$0xff]  ;;  %v1139_v14 = vld [vmem:[#allocation8 + $0x198] sm:$0xff]  ;;  %v1142_v19 = vld [vmem:[#allocation8 + $0x1b0] sm:$0xff] }
  0x67   :  { %261 = vmatprep.mubr.f32.mxu0 %v8749_v0  ;;  %4798 = vmatpush1.bf16.msra.mxu0 %v4797_v20  ;;  %v4809_v12 = vpack.c.bf16 %v1140_v11, %v1136_v9  ;;  %v1143_v15 = vld [vmem:[#allocation8 + $0x1b8] sm:$0xff]  ;;  %v109_v16 = vld [vmem:[#allocation4 + $0xe0] sm:$0xff]  ;;  %v110_v21 = vld [vmem:[#allocation4 + $0xe8] sm:$0xff] }
  0x68   :  { %485 = vmatmul.mubr.f32.gmra.mrb[6].mxu1 %v84_v18  ;;  %4800 = vmatprep.subr.bf16.mxu0 %v4799_v25  ;;  %v4839_v17 = vpack.c.bf16 %v1143_v15, %v1139_v14  ;;  %v1138_v18 = vld [vmem:[#allocation8 + $0x190] sm:$0xff]  ;;  %v1145_v22 = vld [vmem:[#allocation8 + $0x1c8] sm:$0xff]  ;;  %v1147_v24 = vld [vmem:[#allocation8 + $0x1d8] sm:$0xff] }
  0x69   :  { %490 = vmatprep.mubr.f32.mxu1 %v8749_v0  ;;  %4830 = vmatpush1.bf16.msra.mxu1 %v4829_v32  ;;  %v4841_v20 = vpack.c.bf16 %v1142_v19, %v1138_v18  ;;  %v1149_v23 = vld [vmem:[#allocation8 + $0x1e8] sm:$0xff]  ;;  %v1144_v26 = vld [vmem:[#allocation8 + $0x1c0] sm:$0xff]  ;;  %v1151_v28 = vld [vmem:[#allocation8 + $0x1f8] sm:$0xff] }
  0x6a   :  { %262 = vmatmul.mubr.f32.gmra.mrb[8].mxu0 %v85_v31  ;;  %4832 = vmatprep.subr.bf16.mxu1 %v4831_v34  ;;  %v4811_v25 = vpack.c.bf16 %v1149_v23, %v1145_v22  ;;  %v1148_v27 = vld [vmem:[#allocation8 + $0x1e0] sm:$0xff]  ;;  %v4843_v30 = vpack.c.bf16 %v1151_v28, %v1147_v24  ;;  %v1150_v32 = vld [vmem:[#allocation8 + $0x1f0] sm:$0xff]  ;;  %v112_v35 = vld [vmem:[#allocation4 + $0xf8] sm:$0xff] }
  0x6b   :  { %266 = vmatprep.mubr.f32.mxu0 %v8749_v0  ;;  %4802 = vmatpush1.bf16.msra.mxu0 %v4801_v33  ;;  %v4813_v29 = vpack.c.bf16 %v1148_v27, %v1144_v26  ;;  %v111_v33 = vld [vmem:[#allocation4 + $0xf0] sm:$0xff]  ;;  %v59_v39 = vld [vmem:[%s8747_s3] sm:$0xf] }
  0x6c   :  { %491 = vmatmul.mubr.f32.gmra.mrb[8].mxu1 %v85_v31  ;;  %4804 = vmatprep.subr.bf16.mxu0 %v4803_v38  ;;  %v1146_v31 = vld [vmem:[#allocation8 + $0x1d0] sm:$0xff]  ;;  %v67_v38 = vsub.s32 1, %v6520_v37  ;;  %v6532_v46 = vrot.slane %v59_v39, %v75_v41 }
  0x6d   :  { %496 = vmatprep.mubr.f32.mxu1 %v8749_v0  ;;  %4834 = vmatpush1.bf16.msra.mxu1 %v4833_v43  ;;  %v4845_v34 = vpack.c.bf16 %v1150_v32, %v1146_v31 }
  0x6e   :  { %267 = vmatmul.mubr.f32.gmra.mrb[10].mxu0 %v86_v42  ;;  %4836 = vmatprep.subr.bf16.mxu1 %v4835_v45  ;;  %v6530_v45 = vrot.slane %v59_v39, %v71_v40 }
  0x6f   :  { %271 = vmatprep.mubr.f32.mxu0 %v8749_v0  ;;  %4806 = vmatpush1.bf16.msra.mxu0 %v4805_v44 }
  0x70   :  { %497 = vmatmul.mubr.f32.gmra.mrb[10].mxu1 %v86_v42  ;;  %4808 = vmatprep.subr.bf16.mxu0 %v4807_v10  ;;  %v6528_v42 = vrot.slane %v59_v39, %v67_v38 }
  0x71   :  { %502 = vmatprep.mubr.f32.mxu1 %v8749_v0  ;;  %4838 = vmatpush1.bf16.msra.mxu1 %v4837_v49 }
  0x72   :  { %272 = vmatmul.mubr.f32.gmra.mrb[12].mxu0 %v87_v48  ;;  %4840 = vmatprep.subr.bf16.mxu1 %v4839_v17 }
  0x73   :  { %276 = vmatprep.mubr.f32.mxu0 %v8749_v0  ;;  %4810 = vmatpush1.bf16.msra.mxu0 %v4809_v12 }
  0x74   :  { %503 = vmatmul.mubr.f32.gmra.mrb[12].mxu1 %v87_v48  ;;  %4812 = vmatprep.subr.bf16.mxu0 %v4811_v25 }
  0x75   :  { %508 = vmatprep.mubr.f32.mxu1 %v8749_v0  ;;  %4842 = vmatpush1.bf16.msra.mxu1 %v4841_v20 }
  0x76   :  { %277 = vmatmul.mubr.f32.gmra.mrb[14].mxu0 %v88_v50  ;;  %4844 = vmatprep.subr.bf16.mxu1 %v4843_v30 }
  0x77   :  { %281 = vmatprep.mubr.f32.mxu0 %v8749_v0  ;;  %4814 = vmatpush1.bf16.msra.mxu0 %v4813_v29 }
  0x78   :  { %509 = vmatmul.mubr.f32.gmra.mrb[14].mxu1 %v88_v50 }
  0x79   :  { %514 = vmatprep.mubr.f32.mxu1 %v8749_v0  ;;  %4846 = vmatpush1.bf16.msra.mxu1 %v4845_v34 }
  0x7a   :  { %282 = vmatmul.mubr.f32.gmra.mrb[16].mxu0 %v89_v51 }
  0x7b   :  { %286 = vmatprep.mubr.f32.mxu0 %v8749_v0 }
  0x7c   :  { %515 = vmatmul.mubr.f32.gmra.mrb[16].mxu1 %v89_v51 }
  0x7d   :  { %520 = vmatprep.mubr.f32.mxu1 %v8749_v0 }
  0x7e   :  { %287 = vmatmul.mubr.f32.gmra.mrb[18].mxu0 %v90_v52 }
  0x7f   :  { %291 = vmatprep.mubr.f32.mxu0 %v8749_v0 }
  0x80   :  { %521 = vmatmul.mubr.f32.gmra.mrb[18].mxu1 %v90_v52 }
  0x81   :  { %526 = vmatprep.mubr.f32.mxu1 %v8749_v0 }
  0x82   :  { %292 = vmatmul.mubr.f32.gmra.mrb[20].mxu0 %v91_v53 }
  0x83   :  { %296 = vmatprep.mubr.f32.mxu0 %v8749_v0 }
  0x84   :  { %527 = vmatmul.mubr.f32.gmra.mrb[20].mxu1 %v91_v53 }
  0x85   :  { %532 = vmatprep.mubr.f32.mxu1 %v8749_v0 }
  0x86   :  { %297 = vmatmul.mubr.f32.gmra.mrb[22].mxu0 %v92_v54 }
  0x87   :  { %301 = vmatprep.mubr.f32.mxu0 %v8749_v0 }
  0x88   :  { %533 = vmatmul.mubr.f32.gmra.mrb[22].mxu1 %v92_v54 }
  0x89   :  { %538 = vmatprep.mubr.f32.mxu1 %v8749_v0 }
  0x8a   :  { %302 = vmatmul.mubr.f32.gmra.mrb[24].mxu0 %v93_v55 }
  0x8b   :  { %306 = vmatprep.mubr.f32.mxu0 %v8749_v0 }
  0x8c   :  { %539 = vmatmul.mubr.f32.gmra.mrb[24].mxu1 %v93_v55 }
  0x8d   :  { %544 = vmatprep.mubr.f32.mxu1 %v8749_v0 }
  0x8e   :  { %307 = vmatmul.mubr.f32.gmra.mrb[26].mxu0 %v94_v56 }
  0x8f   :  { %311 = vmatprep.mubr.f32.mxu0 %v8749_v0 }
  0x90   :  { %545 = vmatmul.mubr.f32.gmra.mrb[26].mxu1 %v94_v56 }
  0x91   :  { %550 = vmatprep.mubr.f32.mxu1 %v8749_v0 }
  0x92   :  { %312 = vmatmul.mubr.f32.gmra.mrb[28].mxu0 %v95_v57 }
  0x93   :  { %316 = vmatprep.mubr.f32.mxu0 %v8749_v0 }
  0x94   :  { %551 = vmatmul.mubr.f32.gmra.mrb[28].mxu1 %v95_v57 }
  0x95   :  { %556 = vmatprep.mubr.f32.mxu1 %v8749_v0 }
  0x96   :  { %317 = vmatmul.mubr.f32.gmra.mrb[30].mxu0 %v96_v58 }
  0x97   :  { %321 = vmatprep.mubr.f32.mxu0 %v8749_v0 }
  0x98   :  { %557 = vmatmul.mubr.f32.gmra.mrb[30].mxu1 %v96_v58 }
  0x99   :  { %562 = vmatprep.mubr.f32.mxu1 %v8749_v0 }
  0x9a   :  { %322 = vmatmul.mubr.f32.gmra.mrb[32].mxu0 %v97_v59 }
  0x9b   :  { %326 = vmatprep.mubr.f32.mxu0 %v8749_v0 }
  0x9c   :  { %563 = vmatmul.mubr.f32.gmra.mrb[32].mxu1 %v97_v59 }
  0x9d   :  { %568 = vmatprep.mubr.f32.mxu1 %v8749_v0 }
  0x9e   :  { %327 = vmatmul.mubr.f32.gmra.mrb[34].mxu0 %v98_v60 }
  0x9f   :  { %331 = vmatprep.mubr.f32.mxu0 %v8749_v0 }
  0xa0   :  { %569 = vmatmul.mubr.f32.gmra.mrb[34].mxu1 %v98_v60 }
  0xa1   :  { %574 = vmatprep.mubr.f32.mxu1 %v8749_v0 }
  0xa2   :  { %332 = vmatmul.mubr.f32.gmra.mrb[36].mxu0 %v99_v61 }
  0xa3   :  { %336 = vmatprep.mubr.f32.mxu0 %v8749_v0 }
  0xa4   :  { %575 = vmatmul.mubr.f32.gmra.mrb[36].mxu1 %v99_v61 }
  0xa5   :  { %580 = vmatprep.mubr.f32.mxu1 %v8749_v0 }
  0xa6   :  { %337 = vmatmul.mubr.f32.gmra.mrb[38].mxu0 %v100_v62 }
  0xa7   :  { %341 = vmatprep.mubr.f32.mxu0 %v8749_v0 }
  0xa8   :  { %581 = vmatmul.mubr.f32.gmra.mrb[38].mxu1 %v100_v62 }
  0xa9   :  { %586 = vmatprep.mubr.f32.mxu1 %v8749_v0 }
  0xaa   :  { %342 = vmatmul.mubr.f32.gmra.mrb[40].mxu0 %v101_v63 }
  0xab   :  { %346 = vmatprep.mubr.f32.mxu0 %v8749_v0 }
  0xac   :  { %587 = vmatmul.mubr.f32.gmra.mrb[40].mxu1 %v101_v63 }
  0xad   :  { %592 = vmatprep.mubr.f32.mxu1 %v8749_v0 }
  0xae   :  { %347 = vmatmul.mubr.f32.gmra.mrb[42].mxu0 %v102_v1 }
  0xaf   :  { %351 = vmatprep.mubr.f32.mxu0 %v8749_v0 }
  0xb0   :  { %593 = vmatmul.mubr.f32.gmra.mrb[42].mxu1 %v102_v1 }
  0xb1   :  { %598 = vmatprep.mubr.f32.mxu1 %v8749_v0 }
  0xb2   :  { %352 = vmatmul.mubr.f32.gmra.mrb[44].mxu0 %v103_v2 }
  0xb3   :  { %356 = vmatprep.mubr.f32.mxu0 %v8749_v0 }
  0xb4   :  { %599 = vmatmul.mubr.f32.gmra.mrb[44].mxu1 %v103_v2 }
  0xb5   :  { %604 = vmatprep.mubr.f32.mxu1 %v8749_v0 }
  0xb6   :  { %357 = vmatmul.mubr.f32.gmra.mrb[46].mxu0 %v104_v3 }
  0xb7   :  { %361 = vmatprep.mubr.f32.mxu0 %v8749_v0 }
  0xb8   :  { %605 = vmatmul.mubr.f32.gmra.mrb[46].mxu1 %v104_v3 }
  0xb9   :  { %610 = vmatprep.mubr.f32.mxu1 %v8749_v0 }
  0xba   :  { %362 = vmatmul.mubr.f32.gmra.mrb[48].mxu0 %v105_v4 }
  0xbb   :  { %366 = vmatprep.mubr.f32.mxu0 %v8749_v0 }
  0xbc   :  { %611 = vmatmul.mubr.f32.gmra.mrb[48].mxu1 %v105_v4 }
  0xbd   :  { %616 = vmatprep.mubr.f32.mxu1 %v8749_v0 }
  0xbe   :  { %367 = vmatmul.mubr.f32.gmra.mrb[50].mxu0 %v106_v5 }
  0xbf   :  { %371 = vmatprep.mubr.f32.mxu0 %v8749_v0 }
  0xc0   :  { %617 = vmatmul.mubr.f32.gmra.mrb[50].mxu1 %v106_v5 }
  0xc1   :  { %622 = vmatprep.mubr.f32.mxu1 %v8749_v0 }
  0xc2   :  { %372 = vmatmul.mubr.f32.gmra.mrb[52].mxu0 %v107_v6 }
  0xc3   :  { %376 = vmatprep.mubr.f32.mxu0 %v8749_v0 }
  0xc4   :  { %623 = vmatmul.mubr.f32.gmra.mrb[52].mxu1 %v107_v6 }
  0xc5   :  { %628 = vmatprep.mubr.f32.mxu1 %v8749_v0 }
  0xc6   :  { %377 = vmatmul.mubr.f32.gmra.mrb[54].mxu0 %v108_v13 }
  0xc7   :  { %381 = vmatprep.mubr.f32.mxu0 %v8749_v0 }
  0xc8   :  { %629 = vmatmul.mubr.f32.gmra.mrb[54].mxu1 %v108_v13 }
  0xc9   :  { %634 = vmatprep.mubr.f32.mxu1 %v8749_v0 }
  0xca   :  { %382 = vmatmul.mubr.f32.gmra.mrb[56].mxu0 %v109_v16 }
  0xcb   :  { %386 = vmatprep.mubr.f32.mxu0 %v8749_v0 }
  0xcc   :  { %635 = vmatmul.mubr.f32.gmra.mrb[56].mxu1 %v109_v16 }
  0xcd   :  { %640 = vmatprep.mubr.f32.mxu1 %v8749_v0 }
  0xce   :  { %387 = vmatmul.mubr.f32.gmra.mrb[58].mxu0 %v110_v21 }
  0xcf   :  { %391 = vmatprep.mubr.f32.mxu0 %v8749_v0 }
  0xd0   :  { %641 = vmatmul.mubr.f32.gmra.mrb[58].mxu1 %v110_v21 }
  0xd1   :  { %646 = vmatprep.mubr.f32.mxu1 %v8749_v0 }
  0xd2   :  { %392 = vmatmul.mubr.f32.gmra.mrb[60].mxu0 %v111_v33 }
  0xd3   :  { %396 = vmatprep.mubr.f32.mxu0 %v8749_v0 }
  0xd4   :  { %647 = vmatmul.mubr.f32.gmra.mrb[60].mxu1 %v111_v33 }
  0xd5   :  { %652 = vmatprep.mubr.f32.mxu1 %v8749_v0 }
  0xd6   :  { %397 = vmatmul.mubr.f32.gmra.mrb[62].mxu0 %v112_v35 }
  0xd7   :  { %1216 = vmatprep.mubr.f32.mxu0 %v8749_v0 }
  0xd8   :  { %653 = vmatmul.mubr.f32.gmra.mrb[62].mxu1 %v112_v35 }
  0xd9   :  { %1473 = vmatprep.mubr.f32.mxu1 %v8749_v0 }
 0x12d   :  { %v243_v43 = vpop.f32.mrb[0].mxu0 }
 0x12e   :  { %v244_v44 = vpop.f32.mrb[1].mxu0 }
 0x12f   :  { %v245_v47 = vadd.f32 %v244_v44, %v6528_v42  ;;  %v468_v48 = vpop.f32.mrb[0].mxu1 }
 0x130   :  { %v470_v51 = vpop.f32.mrb[1].mxu1  ;;  %v469_v53 = vadd.f32 %v468_v48, %v6530_v45 }
 0x131   :  { %v659_v49 = vmul.f32 0.5, %v245_v47  ;;  %v248_v50 = vpop.f32.mrb[2].mxu0  ;;  %v471_v54 = vadd.f32 %v470_v51, %v6532_v46 }
 0x132   :  { %v249_v52 = vpop.f32.mrb[3].mxu0  ;;  %v787_v61 = vmul.f32 0.5, %v469_v53 }
 0x133   :  { %4985 = vtanh.f32 %v659_v49  ;;  %v250_v55 = vadd.f32 %v249_v52, %v6528_v42  ;;  %v474_v56 = vpop.f32.mrb[2].mxu1 }
 0x134   :  { %4987 = vtanh.f32 %v471_v54  ;;  %v475_v59 = vadd.f32 %v474_v56, %v6530_v45  ;;  %v476_v60 = vpop.f32.mrb[3].mxu1 }
 0x135   :  { %v660_v57 = vmul.f32 0.5, %v250_v55  ;;  %v253_v58 = vpop.f32.mrb[4].mxu0  ;;  %v477_v63 = vadd.f32 %v476_v60, %v6532_v46 }
 0x136   :  { %v254_v62 = vpop.f32.mrb[5].mxu0  ;;  %v788_v2 = vmul.f32 0.5, %v475_v59 }
 0x137   :  { %4989 = vtanh.f32 %v660_v57  ;;  %v255_v1 = vadd.f32 %v254_v62, %v6528_v42  ;;  %v480_v3 = vpop.f32.mrb[4].mxu1 }
 0x138   :  { %4991 = vtanh.f32 %v477_v63  ;;  %v481_v6 = vadd.f32 %v480_v3, %v6530_v45  ;;  %v482_v7 = vpop.f32.mrb[5].mxu1 }
 0x139   :  { %v661_v4 = vmul.f32 0.5, %v255_v1  ;;  %v258_v5 = vpop.f32.mrb[6].mxu0  ;;  %4993 = vtanh.f32 %v787_v61  ;;  %v483_v9 = vadd.f32 %v482_v7, %v6532_v46 }
 0x13a   :  { %v259_v8 = vpop.f32.mrb[7].mxu0  ;;  %v789_v11 = vmul.f32 0.5, %v481_v6 }
 0x13b   :  { %4995 = vtanh.f32 %v661_v4  ;;  %v260_v10 = vadd.f32 %v259_v8, %v6528_v42  ;;  %v486_v12 = vpop.f32.mrb[6].mxu1  ;;  %v2291_v8 = vld [vmem:[#allocation8 + $0x8] sm:$0xff] }
 0x13c   :  { %4997 = vtanh.f32 %v788_v2  ;;  %v487_v16 = vadd.f32 %v486_v12, %v6530_v45  ;;  %v488_v17 = vpop.f32.mrb[7].mxu1 }
 0x13d   :  { %v4986_v13 = vpop.eup %4985  ;;  %v662_v14 = vmul.f32 0.5, %v260_v10  ;;  %4999 = vtanh.f32 %v483_v9  ;;  %v263_v15 = vpop.f32.mrb[8].mxu0  ;;  %v489_v20 = vadd.f32 %v488_v17, %v6532_v46  ;;  %v2295_v9 = vld [vmem:[#allocation8 + $0x28] sm:$0xff] }
 0x13e   :  { %v723_v18 = vadd.f32 1.0, %v4986_v13  ;;  %v264_v19 = vpop.f32.mrb[9].mxu0  ;;  %v4988_v21 = vpop.eup %4987  ;;  %v790_v23 = vmul.f32 0.5, %v487_v16  ;;  %v4847_v17 = vpack.c.bf16 %v2295_v9, %v2291_v8 }
 0x13f   :  { %5001 = vtanh.f32 %v662_v14  ;;  %v265_v22 = vadd.f32 %v264_v19, %v6528_v42  ;;  %v492_v25 = vpop.f32.mrb[8].mxu1 }
 0x140   :  { %v755_v24 = vmul.f32 0.5, %v723_v18  ;;  %5003 = vtanh.f32 %v789_v11  ;;  %v493_v29 = vadd.f32 %v492_v25, %v6530_v45  ;;  %v494_v30 = vpop.f32.mrb[9].mxu1  ;;  %v2294_v25 = vld [vmem:[#allocation8 + $0x20] sm:$0xff]  ;;  %4848 = vmatprep.subr.bf16.mxu0 %v4847_v17 }
 0x141   :  { %v4990_v26 = vpop.eup %4989  ;;  %v663_v27 = vmul.f32 0.5, %v265_v22  ;;  %5005 = vtanh.f32 %v489_v20  ;;  %v268_v28 = vpop.f32.mrb[10].mxu0  ;;  %v495_v34 = vadd.f32 %v494_v30, %v6532_v46 }
 0x142   :  { %v724_v31 = vadd.f32 1.0, %v4990_v26  ;;  %v6548_v32 = vmul.f32 %v4988_v21, %v755_v24  ;;  %5007 = vtanh.f32 %v790_v23  ;;  %v269_v33 = vpop.f32.mrb[11].mxu0  ;;  %v4992_v35 = vpop.eup %4991  ;;  %v791_v38 = vmul.f32 0.5, %v493_v29  ;;  %v2290_v24 = vld [vmem:[#allocation8] sm:$0xff] }
 0x143   :  { %5009 = vtanh.f32 %v663_v27  ;;  %v270_v36 = vadd.f32 %v269_v33, %v6528_v42  ;;  %v4994_v39 = vpop.eup %4993  ;;  %v498_v41 = vpop.f32.mrb[10].mxu1  ;;  %v2297_v33 = vld [vmem:[#allocation8 + $0x38] sm:$0xff] }
 0x144   :  { %v756_v40 = vmul.f32 0.5, %v724_v31  ;;  %5011 = vtanh.f32 %v6548_v32  ;;  %v499_v48 = vadd.f32 %v498_v41, %v6530_v45  ;;  %v500_v49 = vpop.f32.mrb[11].mxu1  ;;  %v851_v61 = vadd.f32 1.0, %v4994_v39  ;;  %v2293_v31 = vld [vmem:[#allocation8 + $0x18] sm:$0xff] }
 0x145   :  { %v4996_v43 = vpop.eup %4995  ;;  %v664_v44 = vmul.f32 0.5, %v270_v36  ;;  %5013 = vtanh.f32 %v791_v38  ;;  %v273_v47 = vpop.f32.mrb[12].mxu0  ;;  %v501_v57 = vadd.f32 %v500_v49, %v6532_v46 }
 0x146   :  { %v4998_v50 = vpop.eup %4997  ;;  %v725_v51 = vadd.f32 1.0, %v4996_v43  ;;  %v6554_v52 = vmul.f32 %v4992_v35, %v756_v40  ;;  %5015 = vtanh.f32 %v495_v34  ;;  %v274_v53 = vpop.f32.mrb[13].mxu0  ;;  %v792_v56 = vmul.f32 0.5, %v499_v48 }
 0x147   :  { %v5000_v54 = vpop.eup %4999  ;;  %5017 = vtanh.f32 %v664_v44  ;;  %v275_v55 = vadd.f32 %v274_v53, %v6528_v42  ;;  %v504_v59 = vpop.f32.mrb[12].mxu1  ;;  %v852_v4 = vadd.f32 1.0, %v4998_v50  ;;  %v883_v19 = vmul.f32 0.5, %v851_v61 }
 0x148   :  { %v757_v58 = vmul.f32 0.5, %v725_v51  ;;  %5019 = vtanh.f32 %v6554_v52  ;;  %v505_v1 = vadd.f32 %v504_v59, %v6530_v45  ;;  %v506_v2 = vpop.f32.mrb[13].mxu1  ;;  %v4849_v44 = vpack.c.bf16 %v2294_v25, %v2290_v24  ;;  %v2292_v59 = vld [vmem:[#allocation8 + $0x10] sm:$0xff] }
 0x149   :  { %v5002_v60 = vpop.eup %5001  ;;  %v665_v62 = vmul.f32 0.5, %v275_v55  ;;  %5021 = vtanh.f32 %v792_v56  ;;  %v278_v63 = vpop.f32.mrb[14].mxu0  ;;  %v507_v13 = vadd.f32 %v506_v2, %v6532_v46  ;;  %v884_v27 = vmul.f32 0.5, %v852_v4 }
 0x14a   :  { %v5004_v3 = vpop.eup %5003  ;;  %v726_v5 = vadd.f32 1.0, %v5002_v60  ;;  %v6560_v6 = vmul.f32 %v5000_v54, %v757_v58  ;;  %5023 = vtanh.f32 %v501_v57  ;;  %v279_v7 = vpop.f32.mrb[15].mxu0  ;;  %v793_v12 = vmul.f32 0.5, %v505_v1  ;;  %v2296_v60 = vld [vmem:[#allocation8 + $0x30] sm:$0xff] }
 0x14b   :  { %v5006_v10 = vpop.eup %5005  ;;  %5025 = vtanh.f32 %v665_v62  ;;  %v280_v11 = vadd.f32 %v279_v7, %v6528_v42  ;;  %v510_v16 = vpop.f32.mrb[14].mxu1  ;;  %v4879_v53 = vpack.c.bf16 %v2297_v33, %v2293_v31  ;;  %v853_v55 = vadd.f32 1.0, %v5004_v3 }
 0x14c   :  { %v5008_v14 = vpop.eup %5007  ;;  %v758_v15 = vmul.f32 0.5, %v726_v5  ;;  %5027 = vtanh.f32 %v6560_v6  ;;  %v511_v22 = vadd.f32 %v510_v16, %v6530_v45  ;;  %v512_v23 = vpop.f32.mrb[15].mxu1 }
 0x14d   :  { %v5010_v18 = vpop.eup %5009  ;;  %v666_v20 = vmul.f32 0.5, %v280_v11  ;;  %5029 = vtanh.f32 %v793_v12  ;;  %v283_v21 = vpop.f32.mrb[16].mxu0  ;;  %v513_v38 = vadd.f32 %v512_v23, %v6532_v46  ;;  %v854_v3 = vadd.f32 1.0, %v5008_v14  ;;  %4880 = vmatprep.subr.bf16.mxu1 %v4879_v53 }
 0x14e   :  { %v5012_v26 = vpop.eup %5011  ;;  %v727_v28 = vadd.f32 1.0, %v5010_v18  ;;  %v6566_v29 = vmul.f32 %v5006_v10, %v758_v15  ;;  %5031 = vtanh.f32 %v507_v13  ;;  %v284_v30 = vpop.f32.mrb[17].mxu0  ;;  %v794_v36 = vmul.f32 0.5, %v511_v22 }
 0x14f   :  { %v6568_v34 = vpop.eup %5013  ;;  %5033 = vtanh.f32 %v666_v20  ;;  %v285_v35 = vadd.f32 %v284_v30, %v6528_v42  ;;  %v1011_v41 = vmul.f32 %v5012_v26, %v883_v19  ;;  %v516_v43 = vpop.f32.mrb[16].mxu1  ;;  %v4881_v13 = vpack.c.bf16 %v2296_v60, %v2292_v59  ;;  %v2299_v19 = vld [vmem:[#allocation8 + $0x48] sm:$0xff] }
 0x150   :  { %v5016_v39 = vpop.eup %5015  ;;  %v759_v40 = vmul.f32 0.5, %v727_v28  ;;  %5035 = vtanh.f32 %v6566_v29  ;;  %v517_v50 = vadd.f32 %v516_v43, %v6530_v45  ;;  %v518_v51 = vpop.f32.mrb[17].mxu1  ;;  %v885_v16 = vmul.f32 0.5, %v853_v55  ;;  %v2303_v20 = vld [vmem:[#allocation8 + $0x68] sm:$0xff] }
 0x151   :  { %v5018_v47 = vpop.eup %5017  ;;  %v667_v48 = vmul.f32 0.5, %v285_v35  ;;  %5037 = vtanh.f32 %v794_v36  ;;  %v288_v49 = vpop.f32.mrb[18].mxu0  ;;  %1043 = vst [vmem:[#allocation2] sm:$0xff] %v1011_v41  ;;  %1217 = vmatmul.mubr.f32.vlgmr.msra.gmra.mrb[64].mxu0 %v1011_v41  ;;  %1474 = vmatmul.mubr.f32.vlgmr.msra.gmra.mrb[64].mxu1 %v1011_v41  ;;  %v519_v1 = vadd.f32 %v518_v51, %v6532_v46  ;;  %v886_v26 = vmul.f32 0.5, %v854_v3 }
 0x152   :  { %v5020_v54 = vpop.eup %5019  ;;  %v728_v56 = vadd.f32 1.0, %v5018_v47  ;;  %v6574_v57 = vmul.f32 %v5016_v39, %v759_v40  ;;  %5039 = vtanh.f32 %v513_v38  ;;  %v289_v58 = vpop.f32.mrb[19].mxu0  ;;  %v795_v63 = vmul.f32 0.5, %v517_v50  ;;  %1222 = vmatprep.mubr.f32.mxu0 %v8749_v0  ;;  %1479 = vmatprep.mubr.f32.mxu1 %v8749_v0  ;;  %v2302_v49 = vld [vmem:[#allocation8 + $0x60] sm:$0xff] }
 0x153   :  { %v6576_v61 = vpop.eup %5021  ;;  %5041 = vtanh.f32 %v667_v48  ;;  %v290_v62 = vadd.f32 %v289_v58, %v6528_v42  ;;  %v1012_v5 = vmul.f32 %v5020_v54, %v884_v27  ;;  %v522_v7 = vpop.f32.mrb[18].mxu1  ;;  %4850 = vmatpush1.bf16.msra.mxu0 %v4849_v44  ;;  %4882 = vmatpush1.bf16.msra.mxu1 %v4881_v13  ;;  %v4851_v39 = vpack.c.bf16 %v2303_v20, %v2299_v19  ;;  %v2298_v48 = vld [vmem:[#allocation8 + $0x40] sm:$0xff] }
 0x154   :  { %v5024_v2 = vpop.eup %5023  ;;  %v760_v4 = vmul.f32 0.5, %v728_v56  ;;  %5043 = vtanh.f32 %v6574_v57  ;;  %v523_v11 = vadd.f32 %v522_v7, %v6530_v45  ;;  %v524_v12 = vpop.f32.mrb[19].mxu1  ;;  %v855_v41 = vadd.f32 1.0, %v6568_v34 }
 0x155   :  { %v5026_v8 = vpop.eup %5025  ;;  %v668_v9 = vmul.f32 0.5, %v290_v62  ;;  %5045 = vtanh.f32 %v795_v63  ;;  %v293_v10 = vpop.f32.mrb[20].mxu0  ;;  %1044 = vst [vmem:[#allocation2 + $0x8] sm:$0xff] %v1012_v5  ;;  %1223 = vmatmul.mubr.f32.gmra.mrb[66].mxu0 %v1012_v5  ;;  %1480 = vmatmul.mubr.f32.gmra.mrb[66].mxu1 %v1012_v5  ;;  %v525_v24 = vadd.f32 %v524_v12, %v6532_v46  ;;  %v856_v55 = vadd.f32 1.0, %v6576_v61 }
 0x156   :  { %v5028_v15 = vpop.eup %5027  ;;  %v729_v17 = vadd.f32 1.0, %v5026_v8  ;;  %v6584_v18 = vmul.f32 %v5024_v2, %v760_v4  ;;  %5047 = vtanh.f32 %v519_v1  ;;  %v294_v14 = vpop.f32.mrb[21].mxu0  ;;  %v796_v23 = vmul.f32 0.5, %v523_v11  ;;  %1228 = vmatprep.mubr.f32.mxu0 %v8749_v0  ;;  %1485 = vmatprep.mubr.f32.mxu1 %v8749_v0  ;;  %v2305_v10 = vld [vmem:[#allocation8 + $0x78] sm:$0xff] }
 0x157   :  { %v6586_v21 = vpop.eup %5029  ;;  %5049 = vtanh.f32 %v668_v9  ;;  %v295_v22 = vadd.f32 %v294_v14, %v6528_v42  ;;  %v1013_v28 = vmul.f32 %v5028_v15, %v885_v16  ;;  %v528_v30 = vpop.f32.mrb[20].mxu1  ;;  %4852 = vmatprep.subr.bf16.mxu0 %v4851_v39  ;;  %v4853_v3 = vpack.c.bf16 %v2302_v49, %v2298_v48  ;;  %v2301_v9 = vld [vmem:[#allocation8 + $0x58] sm:$0xff] }
 0x158   :  { %v5032_v25 = vpop.eup %5031  ;;  %v761_v27 = vmul.f32 0.5, %v729_v17  ;;  %5051 = vtanh.f32 %v6584_v18  ;;  %v529_v36 = vadd.f32 %v528_v30, %v6530_v45  ;;  %v530_v38 = vpop.f32.mrb[21].mxu1  ;;  %v887_v5 = vmul.f32 0.5, %v855_v41 }
 0x159   :  { %v5034_v31 = vpop.eup %5033  ;;  %v669_v33 = vmul.f32 0.5, %v295_v22  ;;  %5053 = vtanh.f32 %v796_v23  ;;  %v298_v35 = vpop.f32.mrb[22].mxu0  ;;  %1045 = vst [vmem:[#allocation2 + $0x10] sm:$0xff] %v1013_v28  ;;  %1229 = vmatmul.mubr.f32.gmra.mrb[68].mxu0 %v1013_v28  ;;  %1486 = vmatmul.mubr.f32.gmra.mrb[68].mxu1 %v1013_v28  ;;  %v531_v54 = vadd.f32 %v530_v38, %v6532_v46  ;;  %v888_v17 = vmul.f32 0.5, %v856_v55  ;;  %v2304_v38 = vld [vmem:[#allocation8 + $0x70] sm:$0xff] }
 0x15a   :  { %v5036_v40 = vpop.eup %5035  ;;  %v730_v43 = vadd.f32 1.0, %v5034_v31  ;;  %v6595_v44 = vmul.f32 %v5032_v25, %v761_v27  ;;  %5055 = vtanh.f32 %v525_v24  ;;  %v299_v47 = vpop.f32.mrb[23].mxu0  ;;  %v797_v53 = vmul.f32 0.5, %v529_v36  ;;  %1234 = vmatprep.mubr.f32.mxu0 %v8749_v0  ;;  %1491 = vmatprep.mubr.f32.mxu1 %v8749_v0  ;;  %v2300_v36 = vld [vmem:[#allocation8 + $0x50] sm:$0xff] }
 0x15b   :  { %v6597_v50 = vpop.eup %5037  ;;  %5057 = vtanh.f32 %v669_v33  ;;  %v300_v51 = vadd.f32 %v299_v47, %v6528_v42  ;;  %v1014_v58 = vmul.f32 %v5036_v40, %v886_v26  ;;  %v534_v59 = vpop.f32.mrb[22].mxu1  ;;  %4854 = vmatpush1.bf16.msra.mxu0 %v4853_v3  ;;  %v4883_v27 = vpack.c.bf16 %v2305_v10, %v2301_v9 }
 0x15c   :  { %v5040_v34 = vpop.eup %5039  ;;  %v762_v56 = vmul.f32 0.5, %v730_v43  ;;  %5059 = vtanh.f32 %v6595_v44  ;;  %v535_v1 = vadd.f32 %v534_v59, %v6530_v45  ;;  %v536_v2 = vpop.f32.mrb[23].mxu1  ;;  %v857_v30 = vadd.f32 1.0, %v6586_v21 }
 0x15d   :  { %v5042_v60 = vpop.eup %5041  ;;  %v670_v62 = vmul.f32 0.5, %v300_v51  ;;  %5061 = vtanh.f32 %v797_v53  ;;  %v303_v63 = vpop.f32.mrb[24].mxu0  ;;  %1046 = vst [vmem:[#allocation2 + $0x18] sm:$0xff] %v1014_v58  ;;  %1235 = vmatmul.mubr.f32.gmra.mrb[70].mxu0 %v1014_v58  ;;  %1492 = vmatmul.mubr.f32.gmra.mrb[70].mxu1 %v1014_v58  ;;  %v537_v15 = vadd.f32 %v536_v2, %v6532_v46  ;;  %v858_v47 = vadd.f32 1.0, %v6597_v50  ;;  %v2311_v2 = vld [vmem:[#allocation8 + $0xa8] sm:$0xff] }
 0x15e   :  { %v5044_v4 = vpop.eup %5043  ;;  %v731_v7 = vadd.f32 1.0, %v5042_v60  ;;  %v6606_v8 = vmul.f32 %v5040_v34, %v762_v56  ;;  %5063 = vtanh.f32 %v531_v54  ;;  %v304_v61 = vpop.f32.mrb[25].mxu0  ;;  %v798_v13 = vmul.f32 0.5, %v535_v1  ;;  %1240 = vmatprep.mubr.f32.mxu0 %v8749_v0  ;;  %1497 = vmatprep.mubr.f32.mxu1 %v8749_v0  ;;  %v2307_v1 = vld [vmem:[#allocation8 + $0x88] sm:$0xff] }
 0x15f   :  { %v6608_v11 = vpop.eup %5045  ;;  %5065 = vtanh.f32 %v670_v62  ;;  %v305_v12 = vadd.f32 %v304_v61, %v6528_v42  ;;  %v1015_v19 = vmul.f32 %v5044_v4, %v887_v5  ;;  %v540_v20 = vpop.f32.mrb[24].mxu1  ;;  %4884 = vmatprep.subr.bf16.mxu1 %v4883_v27  ;;  %v4885_v58 = vpack.c.bf16 %v2304_v38, %v2300_v36  ;;  %v2306_v27 = vld [vmem:[#allocation8 + $0x80] sm:$0xff] }
 0x160   :  { %v5048_v16 = vpop.eup %5047  ;;  %v763_v14 = vmul.f32 0.5, %v731_v7  ;;  %5067 = vtanh.f32 %v6606_v8  ;;  %v541_v25 = vadd.f32 %v540_v20, %v6530_v45  ;;  %v542_v26 = vpop.f32.mrb[25].mxu1  ;;  %v889_v60 = vmul.f32 0.5, %v857_v30 }
 0x161   :  { %v5050_v22 = vpop.eup %5049  ;;  %v671_v23 = vmul.f32 0.5, %v305_v12  ;;  %5069 = vtanh.f32 %v798_v13  ;;  %v308_v24 = vpop.f32.mrb[26].mxu0  ;;  %1047 = vst [vmem:[#allocation2 + $0x20] sm:$0xff] %v1015_v19  ;;  %1241 = vmatmul.mubr.f32.gmra.mrb[72].mxu0 %v1015_v19  ;;  %1498 = vmatmul.mubr.f32.gmra.mrb[72].mxu1 %v1015_v19  ;;  %v543_v43 = vadd.f32 %v542_v26, %v6532_v46  ;;  %v890_v9 = vmul.f32 0.5, %v858_v47 }
 0x162   :  { %v5052_v28 = vpop.eup %5051  ;;  %v732_v31 = vadd.f32 1.0, %v5050_v22  ;;  %v6617_v33 = vmul.f32 %v5048_v16, %v763_v14  ;;  %5071 = vtanh.f32 %v537_v15  ;;  %v309_v35 = vpop.f32.mrb[27].mxu0  ;;  %v799_v41 = vmul.f32 0.5, %v541_v25  ;;  %1246 = vmatprep.mubr.f32.mxu0 %v8749_v0  ;;  %1503 = vmatprep.mubr.f32.mxu1 %v8749_v0 }
 0x163   :  { %v6619_v39 = vpop.eup %5053  ;;  %5073 = vtanh.f32 %v671_v23  ;;  %v310_v40 = vadd.f32 %v309_v35, %v6528_v42  ;;  %v1016_v49 = vmul.f32 %v5052_v28, %v888_v17  ;;  %v546_v51 = vpop.f32.mrb[26].mxu1  ;;  %4886 = vmatpush1.bf16.msra.mxu1 %v4885_v58  ;;  %v4855_v20 = vpack.c.bf16 %v2311_v2, %v2307_v1  ;;  %v2310_v28 = vld [vmem:[#allocation8 + $0xa0] sm:$0xff]  ;;  %v2309_v58 = vld [vmem:[#allocation8 + $0x98] sm:$0xff] }
 0x164   :  { %v5056_v21 = vpop.eup %5055  ;;  %v764_v48 = vmul.f32 0.5, %v732_v31  ;;  %5075 = vtanh.f32 %v6617_v33  ;;  %v547_v55 = vadd.f32 %v546_v51, %v6530_v45  ;;  %v548_v56 = vpop.f32.mrb[27].mxu1  ;;  %v859_v23 = vadd.f32 1.0, %v6608_v11 }
 0x165   :  { %v5058_v53 = vpop.eup %5057  ;;  %v672_v54 = vmul.f32 0.5, %v310_v40  ;;  %5077 = vtanh.f32 %v799_v41  ;;  %v313_v34 = vpop.f32.mrb[28].mxu0  ;;  %1048 = vst [vmem:[#allocation2 + $0x28] sm:$0xff] %v1016_v49  ;;  %1247 = vmatmul.mubr.f32.gmra.mrb[74].mxu0 %v1016_v49  ;;  %1504 = vmatmul.mubr.f32.gmra.mrb[74].mxu1 %v1016_v49  ;;  %v549_v7 = vadd.f32 %v548_v56, %v6532_v46  ;;  %v860_v38 = vadd.f32 1.0, %v6619_v39 }
 0x166   :  { %v5060_v59 = vpop.eup %5059  ;;  %v733_v62 = vadd.f32 1.0, %v5058_v53  ;;  %v6628_v63 = vmul.f32 %v5056_v21, %v764_v48  ;;  %5079 = vtanh.f32 %v543_v43  ;;  %v314_v50 = vpop.f32.mrb[29].mxu0  ;;  %v800_v5 = vmul.f32 0.5, %v547_v55  ;;  %1252 = vmatprep.mubr.f32.mxu0 %v8749_v0  ;;  %1509 = vmatprep.mubr.f32.mxu1 %v8749_v0 }
 0x167   :  { %v6630_v3 = vpop.eup %5061  ;;  %5081 = vtanh.f32 %v672_v54  ;;  %v315_v4 = vadd.f32 %v314_v50, %v6528_v42  ;;  %v1017_v12 = vmul.f32 %v5060_v59, %v889_v60  ;;  %v552_v13 = vpop.f32.mrb[28].mxu1  ;;  %4856 = vmatprep.subr.bf16.mxu0 %v4855_v20  ;;  %v4857_v53 = vpack.c.bf16 %v2310_v28, %v2306_v27  ;;  %v2313_v59 = vld [vmem:[#allocation8 + $0xb8] sm:$0xff] }
 0x168   :  { %v5064_v61 = vpop.eup %5063  ;;  %v765_v10 = vmul.f32 0.5, %v733_v62  ;;  %5083 = vtanh.f32 %v6628_v63  ;;  %v553_v14 = vadd.f32 %v552_v13, %v6530_v45  ;;  %v554_v19 = vpop.f32.mrb[29].mxu1  ;;  %v891_v34 = vmul.f32 0.5, %v859_v23  ;;  %v2308_v23 = vld [vmem:[#allocation8 + $0x90] sm:$0xff] }
 0x169   :  { %v5066_v15 = vpop.eup %5065  ;;  %v673_v16 = vmul.f32 0.5, %v315_v4  ;;  %5085 = vtanh.f32 %v800_v5  ;;  %v318_v17 = vpop.f32.mrb[30].mxu0  ;;  %1049 = vst [vmem:[#allocation2 + $0x30] sm:$0xff] %v1017_v12  ;;  %1253 = vmatmul.mubr.f32.gmra.mrb[76].mxu0 %v1017_v12  ;;  %1510 = vmatmul.mubr.f32.gmra.mrb[76].mxu1 %v1017_v12  ;;  %v555_v36 = vadd.f32 %v554_v19, %v6532_v46  ;;  %v892_v4 = vmul.f32 0.5, %v860_v38 }
 0x16a   :  { %v5068_v22 = vpop.eup %5067  ;;  %v734_v24 = vadd.f32 1.0, %v5066_v15  ;;  %v6639_v25 = vmul.f32 %v5064_v61, %v765_v10  ;;  %5087 = vtanh.f32 %v549_v7  ;;  %v319_v26 = vpop.f32.mrb[31].mxu0  ;;  %v801_v35 = vmul.f32 0.5, %v553_v14  ;;  %1258 = vmatprep.mubr.f32.mxu0 %v8749_v0  ;;  %1515 = vmatprep.mubr.f32.mxu1 %v8749_v0 }
 0x16b   :  { %v6641_v30 = vpop.eup %5069  ;;  %5089 = vtanh.f32 %v673_v16  ;;  %v320_v31 = vadd.f32 %v319_v26, %v6528_v42  ;;  %v1018_v41 = vmul.f32 %v5068_v22, %v890_v9  ;;  %v558_v43 = vpop.f32.mrb[30].mxu1  ;;  %4858 = vmatpush1.bf16.msra.mxu0 %v4857_v53  ;;  %v4887_v16 = vpack.c.bf16 %v2313_v59, %v2309_v58 }
 0x16c   :  { %v5072_v11 = vpop.eup %5071  ;;  %v766_v40 = vmul.f32 0.5, %v734_v24  ;;  %5091 = vtanh.f32 %v6639_v25  ;;  %v559_v49 = vadd.f32 %v558_v43, %v6530_v45  ;;  %v560_v51 = vpop.f32.mrb[31].mxu1  ;;  %v861_v14 = vadd.f32 1.0, %v6630_v3  ;;  %v2312_v24 = vld [vmem:[#allocation8 + $0xb0] sm:$0xff] }
 0x16d   :  { %v5074_v21 = vpop.eup %5073  ;;  %v674_v47 = vmul.f32 0.5, %v320_v31  ;;  %5093 = vtanh.f32 %v801_v35  ;;  %v323_v48 = vpop.f32.mrb[32].mxu0  ;;  %1050 = vst [vmem:[#allocation2 + $0x38] sm:$0xff] %v1018_v41  ;;  %1259 = vmatmul.mubr.f32.gmra.mrb[78].mxu0 %v1018_v41  ;;  %1516 = vmatmul.mubr.f32.gmra.mrb[78].mxu1 %v1018_v41  ;;  %v561_v1 = vadd.f32 %v560_v51, %v6532_v46  ;;  %v862_v35 = vadd.f32 1.0, %v6641_v30 }
 0x16e   :  { %v5076_v54 = vpop.eup %5075  ;;  %v735_v55 = vadd.f32 1.0, %v5074_v21  ;;  %v6650_v56 = vmul.f32 %v5072_v11, %v766_v40  ;;  %5095 = vtanh.f32 %v555_v36  ;;  %v324_v39 = vpop.f32.mrb[33].mxu0  ;;  %v802_v50 = vmul.f32 0.5, %v559_v49  ;;  %1264 = vmatprep.mubr.f32.mxu0 %v8749_v0  ;;  %1521 = vmatprep.mubr.f32.mxu1 %v8749_v0 }
 0x16f   :  { %v6652_v60 = vpop.eup %5077  ;;  %5097 = vtanh.f32 %v674_v47  ;;  %v325_v62 = vadd.f32 %v324_v39, %v6528_v42  ;;  %v1019_v7 = vmul.f32 %v5076_v54, %v891_v34  ;;  %v564_v61 = vpop.f32.mrb[32].mxu1  ;;  %4888 = vmatprep.subr.bf16.mxu1 %v4887_v16  ;;  %v4889_v48 = vpack.c.bf16 %v2312_v24, %v2308_v23  ;;  %v2315_v34 = vld [vmem:[#allocation8 + $0xc8] sm:$0xff]  ;;  %v2318_v23 = vld [vmem:[#allocation8 + $0xe0] sm:$0xff] }
 0x170   :  { %v5080_v2 = vpop.eup %5079  ;;  %v767_v5 = vmul.f32 0.5, %v735_v55  ;;  %5099 = vtanh.f32 %v6650_v56  ;;  %v565_v13 = vadd.f32 %v564_v61, %v6530_v45  ;;  %v566_v15 = vpop.f32.mrb[33].mxu1  ;;  %v893_v51 = vmul.f32 0.5, %v861_v14  ;;  %v2319_v55 = vld [vmem:[#allocation8 + $0xe8] sm:$0xff] }
 0x171   :  { %v5082_v9 = vpop.eup %5081  ;;  %v675_v10 = vmul.f32 0.5, %v325_v62  ;;  %5101 = vtanh.f32 %v802_v50  ;;  %v328_v12 = vpop.f32.mrb[34].mxu0  ;;  %1051 = vst [vmem:[#allocation2 + $0x40] sm:$0xff] %v1019_v7  ;;  %1265 = vmatmul.mubr.f32.gmra.mrb[80].mxu0 %v1019_v7  ;;  %1522 = vmatmul.mubr.f32.gmra.mrb[80].mxu1 %v1019_v7  ;;  %v567_v31 = vadd.f32 %v566_v15, %v6532_v46  ;;  %v863_v16 = vadd.f32 1.0, %v6652_v60 }
 0x172   :  { %v5084_v17 = vpop.eup %5083  ;;  %v736_v19 = vadd.f32 1.0, %v5082_v9  ;;  %v6661_v20 = vmul.f32 %v5080_v2, %v767_v5  ;;  %5103 = vtanh.f32 %v561_v1  ;;  %v329_v22 = vpop.f32.mrb[35].mxu0  ;;  %v803_v28 = vmul.f32 0.5, %v565_v13  ;;  %1270 = vmatprep.mubr.f32.mxu0 %v8749_v0  ;;  %1527 = vmatprep.mubr.f32.mxu1 %v8749_v0 }
 0x173   :  { %v6663_v26 = vpop.eup %5085  ;;  %5105 = vtanh.f32 %v675_v10  ;;  %v330_v27 = vadd.f32 %v329_v22, %v6528_v42  ;;  %v1020_v11 = vmul.f32 %v5084_v17, %v892_v4  ;;  %v570_v38 = vpop.f32.mrb[34].mxu1  ;;  %v894_v1 = vmul.f32 0.5, %v862_v35  ;;  %4890 = vmatpush1.bf16.msra.mxu1 %v4889_v48  ;;  %v2314_v22 = vld [vmem:[#allocation8 + $0xc0] sm:$0xff] }
 0x174   :  { %v5088_v3 = vpop.eup %5087  ;;  %v768_v36 = vmul.f32 0.5, %v736_v19  ;;  %5107 = vtanh.f32 %v6661_v20  ;;  %v571_v21 = vadd.f32 %v570_v38, %v6530_v45  ;;  %v572_v47 = vpop.f32.mrb[35].mxu1  ;;  %v4859_v13 = vpack.c.bf16 %v2319_v55, %v2315_v34  ;;  %v2321_v34 = vld [vmem:[#allocation8 + $0xf8] sm:$0xff] }
 0x175   :  { %v5090_v40 = vpop.eup %5089  ;;  %v676_v41 = vmul.f32 0.5, %v330_v27  ;;  %5109 = vtanh.f32 %v803_v28  ;;  %v333_v43 = vpop.f32.mrb[36].mxu0  ;;  %1052 = vst [vmem:[#allocation2 + $0x48] sm:$0xff] %v1020_v11  ;;  %1271 = vmatmul.mubr.f32.gmra.mrb[82].mxu0 %v1020_v11  ;;  %1528 = vmatmul.mubr.f32.gmra.mrb[82].mxu1 %v1020_v11  ;;  %v573_v62 = vadd.f32 %v572_v47, %v6532_v46  ;;  %v4861_v47 = vpack.c.bf16 %v2318_v23, %v2314_v22  ;;  %v2316_v23 = vld [vmem:[#allocation8 + $0xd0] sm:$0xff] }
 0x176   :  { %v5092_v49 = vpop.eup %5091  ;;  %v737_v53 = vadd.f32 1.0, %v5090_v40  ;;  %v6672_v54 = vmul.f32 %v5088_v3, %v768_v36  ;;  %5111 = vtanh.f32 %v567_v31  ;;  %v334_v30 = vpop.f32.mrb[37].mxu0  ;;  %v804_v59 = vmul.f32 0.5, %v571_v21  ;;  %1276 = vmatprep.mubr.f32.mxu0 %v8749_v0  ;;  %1533 = vmatprep.mubr.f32.mxu1 %v8749_v0 }
 0x177   :  { %v6674_v39 = vpop.eup %5093  ;;  %5113 = vtanh.f32 %v676_v41  ;;  %v335_v58 = vadd.f32 %v334_v30, %v6528_v42  ;;  %v1021_v4 = vmul.f32 %v5092_v49, %v893_v51  ;;  %v576_v5 = vpop.f32.mrb[36].mxu1  ;;  %v864_v3 = vadd.f32 1.0, %v6663_v26  ;;  %4860 = vmatprep.subr.bf16.mxu0 %v4859_v13  ;;  %v2317_v30 = vld [vmem:[#allocation8 + $0xd8] sm:$0xff] }
 0x178   :  { %v5096_v50 = vpop.eup %5095  ;;  %v769_v2 = vmul.f32 0.5, %v737_v53  ;;  %5115 = vtanh.f32 %v6672_v54  ;;  %v577_v10 = vadd.f32 %v576_v5, %v6530_v45  ;;  %v578_v12 = vpop.f32.mrb[37].mxu1  ;;  %v895_v49 = vmul.f32 0.5, %v863_v16  ;;  %4862 = vmatpush1.bf16.msra.mxu0 %v4861_v47 }
 0x179   :  { %v5098_v7 = vpop.eup %5097  ;;  %v677_v61 = vmul.f32 0.5, %v335_v58  ;;  %5117 = vtanh.f32 %v804_v59  ;;  %v338_v9 = vpop.f32.mrb[38].mxu0  ;;  %1053 = vst [vmem:[#allocation2 + $0x50] sm:$0xff] %v1021_v4  ;;  %1277 = vmatmul.mubr.f32.gmra.mrb[84].mxu0 %v1021_v4  ;;  %1534 = vmatmul.mubr.f32.gmra.mrb[84].mxu1 %v1021_v4  ;;  %v579_v31 = vadd.f32 %v578_v12, %v6532_v46  ;;  %v4891_v13 = vpack.c.bf16 %v2321_v34, %v2317_v30  ;;  %v2323_v34 = vld [vmem:[#allocation8 + $0x108] sm:$0xff] }
 0x17a   :  { %v5100_v15 = vpop.eup %5099  ;;  %v738_v17 = vadd.f32 1.0, %v5098_v7  ;;  %v6683_v14 = vmul.f32 %v5096_v50, %v769_v2  ;;  %5119 = vtanh.f32 %v573_v62  ;;  %v339_v19 = vpop.f32.mrb[39].mxu0  ;;  %v805_v28 = vmul.f32 0.5, %v577_v10  ;;  %1282 = vmatprep.mubr.f32.mxu0 %v8749_v0  ;;  %1539 = vmatprep.mubr.f32.mxu1 %v8749_v0 }
 0x17b   :  { %v6685_v24 = vpop.eup %5101  ;;  %5121 = vtanh.f32 %v677_v61  ;;  %v340_v27 = vadd.f32 %v339_v19, %v6528_v42  ;;  %v1022_v36 = vmul.f32 %v5100_v15, %v894_v1  ;;  %v582_v11 = vpop.f32.mrb[38].mxu1  ;;  %v896_v1 = vmul.f32 0.5, %v864_v3  ;;  %4892 = vmatprep.subr.bf16.mxu1 %v4891_v13 }
 0x17c   :  { %v5104_v60 = vpop.eup %5103  ;;  %v770_v35 = vmul.f32 0.5, %v738_v17  ;;  %5123 = vtanh.f32 %v6683_v14  ;;  %v583_v43 = vadd.f32 %v582_v11, %v6530_v45  ;;  %v584_v21 = vpop.f32.mrb[39].mxu1  ;;  %v865_v16 = vadd.f32 1.0, %v6674_v39 }
 0x17d   :  { %v5106_v38 = vpop.eup %5105  ;;  %v678_v40 = vmul.f32 0.5, %v340_v27  ;;  %5125 = vtanh.f32 %v805_v28  ;;  %v343_v41 = vpop.f32.mrb[40].mxu0  ;;  %1054 = vst [vmem:[#allocation2 + $0x58] sm:$0xff] %v1022_v36  ;;  %1283 = vmatmul.mubr.f32.gmra.mrb[86].mxu0 %v1022_v36  ;;  %1540 = vmatmul.mubr.f32.gmra.mrb[86].mxu1 %v1022_v36  ;;  %v585_v62 = vadd.f32 %v584_v21, %v6532_v46  ;;  %v2320_v27 = vld [vmem:[#allocation8 + $0xf0] sm:$0xff] }
 0x17e   :  { %v5108_v48 = vpop.eup %5107  ;;  %v739_v51 = vadd.f32 1.0, %v5106_v38  ;;  %v6694_v53 = vmul.f32 %v5104_v60, %v770_v35  ;;  %5127 = vtanh.f32 %v579_v31  ;;  %v344_v26 = vpop.f32.mrb[41].mxu0  ;;  %v806_v59 = vmul.f32 0.5, %v583_v43  ;;  %1288 = vmatprep.mubr.f32.mxu0 %v8749_v0  ;;  %1545 = vmatprep.mubr.f32.mxu1 %v8749_v0 }
 0x17f   :  { %v6696_v55 = vpop.eup %5109  ;;  %5129 = vtanh.f32 %v678_v40  ;;  %v345_v58 = vadd.f32 %v344_v26, %v6528_v42  ;;  %v1023_v4 = vmul.f32 %v5108_v48, %v895_v49  ;;  %v588_v5 = vpop.f32.mrb[40].mxu1  ;;  %v866_v35 = vadd.f32 1.0, %v6685_v24 }
 0x180   :  { %v5112_v50 = vpop.eup %5111  ;;  %v771_v2 = vmul.f32 0.5, %v739_v51  ;;  %5131 = vtanh.f32 %v6694_v53  ;;  %v589_v10 = vadd.f32 %v588_v5, %v6530_v45  ;;  %v590_v12 = vpop.f32.mrb[41].mxu1  ;;  %v4893_v48 = vpack.c.bf16 %v2320_v27, %v2316_v23 }
 0x181   :  { %v5114_v7 = vpop.eup %5113  ;;  %v679_v61 = vmul.f32 0.5, %v345_v58  ;;  %5133 = vtanh.f32 %v806_v59  ;;  %v348_v9 = vpop.f32.mrb[42].mxu0  ;;  %1055 = vst [vmem:[#allocation2 + $0x60] sm:$0xff] %v1023_v4  ;;  %1289 = vmatmul.mubr.f32.gmra.mrb[88].mxu0 %v1023_v4  ;;  %1546 = vmatmul.mubr.f32.gmra.mrb[88].mxu1 %v1023_v4  ;;  %v591_v3 = vadd.f32 %v590_v12, %v6532_v46  ;;  %v897_v51 = vmul.f32 0.5, %v865_v16  ;;  %v2327_v58 = vld [vmem:[#allocation8 + $0x128] sm:$0xff] }
 0x182   :  { %v5116_v15 = vpop.eup %5115  ;;  %v740_v17 = vadd.f32 1.0, %v5114_v7  ;;  %v6705_v19 = vmul.f32 %v5112_v50, %v771_v2  ;;  %5135 = vtanh.f32 %v585_v62  ;;  %v349_v22 = vpop.f32.mrb[43].mxu0  ;;  %v807_v60 = vmul.f32 0.5, %v589_v10  ;;  %1294 = vmatprep.mubr.f32.mxu0 %v8749_v0  ;;  %1551 = vmatprep.mubr.f32.mxu1 %v8749_v0 }
 0x183   :  { %v6707_v28 = vpop.eup %5117  ;;  %5137 = vtanh.f32 %v679_v61  ;;  %v350_v31 = vadd.f32 %v349_v22, %v6528_v42  ;;  %v1024_v11 = vmul.f32 %v5116_v15, %v896_v1  ;;  %v594_v38 = vpop.f32.mrb[42].mxu1  ;;  %v898_v4 = vmul.f32 0.5, %v866_v35  ;;  %4894 = vmatpush1.bf16.msra.mxu1 %v4893_v48 }
 0x184   :  { %v5120_v39 = vpop.eup %5119  ;;  %v772_v36 = vmul.f32 0.5, %v740_v17  ;;  %5139 = vtanh.f32 %v6705_v19  ;;  %v595_v21 = vadd.f32 %v594_v38, %v6530_v45  ;;  %v596_v47 = vpop.f32.mrb[43].mxu1  ;;  %v4863_v16 = vpack.c.bf16 %v2327_v58, %v2323_v34 }
 0x185   :  { %v5122_v40 = vpop.eup %5121  ;;  %v680_v41 = vmul.f32 0.5, %v350_v31  ;;  %5141 = vtanh.f32 %v807_v60  ;;  %v353_v43 = vpop.f32.mrb[44].mxu0  ;;  %1056 = vst [vmem:[#allocation2 + $0x68] sm:$0xff] %v1024_v11  ;;  %1295 = vmatmul.mubr.f32.gmra.mrb[90].mxu0 %v1024_v11  ;;  %1552 = vmatmul.mubr.f32.gmra.mrb[90].mxu1 %v1024_v11  ;;  %v597_v1 = vadd.f32 %v596_v47, %v6532_v46  ;;  %v867_v22 = vadd.f32 1.0, %v6696_v55  ;;  %v2322_v60 = vld [vmem:[#allocation8 + $0x100] sm:$0xff] }
 0x186   :  { %v5124_v49 = vpop.eup %5123  ;;  %v741_v26 = vadd.f32 1.0, %v5122_v40  ;;  %v6716_v30 = vmul.f32 %v5120_v39, %v772_v36  ;;  %5143 = vtanh.f32 %v591_v3  ;;  %v354_v24 = vpop.f32.mrb[45].mxu0  ;;  %v808_v50 = vmul.f32 0.5, %v595_v21  ;;  %1300 = vmatprep.mubr.f32.mxu0 %v8749_v0  ;;  %1557 = vmatprep.mubr.f32.mxu1 %v8749_v0  ;;  %v2326_v3 = vld [vmem:[#allocation8 + $0x120] sm:$0xff] }
 0x187   :  { %v6718_v59 = vpop.eup %5125  ;;  %5145 = vtanh.f32 %v680_v41  ;;  %v355_v62 = vadd.f32 %v354_v24, %v6528_v42  ;;  %v1025_v7 = vmul.f32 %v5124_v49, %v897_v51  ;;  %v600_v61 = vpop.f32.mrb[44].mxu1  ;;  %v868_v38 = vadd.f32 1.0, %v6707_v28  ;;  %4864 = vmatprep.subr.bf16.mxu0 %v4863_v16 }
 0x188   :  { %8820 = vst [vmem:[#allocation25_spill] sm:$0xff] %v6716_v30  ;;  %v5128_v2 = vpop.eup %5127  ;;  %v773_v5 = vmul.f32 0.5, %v741_v26  ;;  %5147 = vtanh.f32 %v6716_v30  ;;  %v601_v13 = vadd.f32 %v600_v61, %v6530_v45  ;;  %v602_v15 = vpop.f32.mrb[45].mxu1  ;;  %v4865_v26 = vpack.c.bf16 %v2326_v3, %v2322_v60 }
 0x189   :  { %v5130_v9 = vpop.eup %5129  ;;  %v681_v10 = vmul.f32 0.5, %v355_v62  ;;  %5149 = vtanh.f32 %v808_v50  ;;  %v358_v12 = vpop.f32.mrb[46].mxu0  ;;  %1057 = vst [vmem:[#allocation2 + $0x70] sm:$0xff] %v1025_v7  ;;  %1301 = vmatmul.mubr.f32.gmra.mrb[92].mxu0 %v1025_v7  ;;  %1558 = vmatmul.mubr.f32.gmra.mrb[92].mxu1 %v1025_v7  ;;  %v603_v11 = vadd.f32 %v602_v15, %v6532_v46  ;;  %v899_v34 = vmul.f32 0.5, %v867_v22  ;;  %v2325_v50 = vld [vmem:[#allocation8 + $0x118] sm:$0xff] }
 0x18a   :  { %v5132_v17 = vpop.eup %5131  ;;  %v742_v23 = vadd.f32 1.0, %v5130_v9  ;;  %v6727_v27 = vmul.f32 %v5128_v2, %v773_v5  ;;  %5151 = vtanh.f32 %v597_v1  ;;  %v359_v31 = vpop.f32.mrb[47].mxu0  ;;  %v809_v36 = vmul.f32 0.5, %v601_v13  ;;  %1306 = vmatprep.mubr.f32.mxu0 %v8749_v0  ;;  %1563 = vmatprep.mubr.f32.mxu1 %v8749_v0  ;;  %v2329_v1 = vld [vmem:[#allocation8 + $0x138] sm:$0xff] }
 0x18b   :  { %v6729_v39 = vpop.eup %5133  ;;  %5153 = vtanh.f32 %v681_v10  ;;  %v360_v35 = vadd.f32 %v359_v31, %v6528_v42  ;;  %v1026_v41 = vmul.f32 %v5132_v17, %v898_v4  ;;  %v606_v43 = vpop.f32.mrb[46].mxu1  ;;  %v900_v9 = vmul.f32 0.5, %v868_v38  ;;  %4866 = vmatpush1.bf16.msra.mxu0 %v4865_v26  ;;  %v2328_v38 = vld [vmem:[#allocation8 + $0x130] sm:$0xff] }
 0x18c   :  { %8821 = vst [vmem:[#allocation26_spill] sm:$0xff] %v6727_v27  ;;  %v5136_v55 = vpop.eup %5135  ;;  %v774_v40 = vmul.f32 0.5, %v742_v23  ;;  %5155 = vtanh.f32 %v6727_v27  ;;  %v607_v49 = vadd.f32 %v606_v43, %v6530_v45  ;;  %v608_v51 = vpop.f32.mrb[47].mxu1  ;;  %v4895_v31 = vpack.c.bf16 %v2329_v1, %v2325_v50 }
 0x18d   :  { %v5138_v21 = vpop.eup %5137  ;;  %v682_v47 = vmul.f32 0.5, %v360_v35  ;;  %5157 = vtanh.f32 %v809_v36  ;;  %v363_v48 = vpop.f32.mrb[48].mxu0  ;;  %1058 = vst [vmem:[#allocation2 + $0x78] sm:$0xff] %v1026_v41  ;;  %1307 = vmatmul.mubr.f32.gmra.mrb[94].mxu0 %v1026_v41  ;;  %1564 = vmatmul.mubr.f32.gmra.mrb[94].mxu1 %v1026_v41  ;;  %v609_v7 = vadd.f32 %v608_v51, %v6532_v46  ;;  %v869_v3 = vadd.f32 1.0, %v6718_v59 }
 0x18e   :  { %v5140_v24 = vpop.eup %5139  ;;  %v743_v58 = vadd.f32 1.0, %v5138_v21  ;;  %v6738_v62 = vmul.f32 %v5136_v55, %v774_v40  ;;  %5159 = vtanh.f32 %v603_v11  ;;  %v364_v28 = vpop.f32.mrb[49].mxu0  ;;  %v810_v5 = vmul.f32 0.5, %v607_v49  ;;  %1312 = vmatprep.mubr.f32.mxu0 %v8749_v0  ;;  %1569 = vmatprep.mubr.f32.mxu1 %v8749_v0  ;;  %v2324_v55 = vld [vmem:[#allocation8 + $0x110] sm:$0xff] }
 0x18f   :  { %v6740_v2 = vpop.eup %5141  ;;  %5161 = vtanh.f32 %v682_v47  ;;  %v365_v4 = vadd.f32 %v364_v28, %v6528_v42  ;;  %v1027_v12 = vmul.f32 %v5140_v24, %v899_v34  ;;  %v612_v13 = vpop.f32.mrb[48].mxu1  ;;  %v870_v47 = vadd.f32 1.0, %v6729_v39  ;;  %4896 = vmatprep.subr.bf16.mxu1 %v4895_v31 }
 0x190   :  { %8822 = vst [vmem:[#allocation27_spill] sm:$0xff] %v6738_v62  ;;  %v5144_v61 = vpop.eup %5143  ;;  %v775_v10 = vmul.f32 0.5, %v743_v58  ;;  %5163 = vtanh.f32 %v6738_v62  ;;  %v613_v22 = vadd.f32 %v612_v13, %v6530_v45  ;;  %v614_v23 = vpop.f32.mrb[49].mxu1  ;;  %v4897_v50 = vpack.c.bf16 %v2328_v38, %v2324_v55 }
 0x191   :  { %v5146_v15 = vpop.eup %5145  ;;  %v683_v16 = vmul.f32 0.5, %v365_v4  ;;  %5165 = vtanh.f32 %v810_v5  ;;  %v368_v17 = vpop.f32.mrb[50].mxu0  ;;  %1059 = vst [vmem:[#allocation2 + $0x80] sm:$0xff] %v1027_v12  ;;  %1313 = vmatmul.mubr.f32.gmra.mrb[96].mxu0 %v1027_v12  ;;  %1570 = vmatmul.mubr.f32.gmra.mrb[96].mxu1 %v1027_v12  ;;  %v615_v21 = vadd.f32 %v614_v23, %v6532_v46  ;;  %v901_v4 = vmul.f32 0.5, %v869_v3 }
 0x192   :  { %v5148_v60 = vpop.eup %5147  ;;  %v744_v35 = vadd.f32 1.0, %v5146_v15  ;;  %v6749_v36 = vmul.f32 %v5144_v61, %v775_v10  ;;  %5167 = vtanh.f32 %v609_v7  ;;  %v369_v11 = vpop.f32.mrb[51].mxu0  ;;  %v811_v43 = vmul.f32 0.5, %v613_v22  ;;  %1318 = vmatprep.mubr.f32.mxu0 %v8749_v0  ;;  %1575 = vmatprep.mubr.f32.mxu1 %v8749_v0  ;;  %v2331_v61 = vld [vmem:[#allocation8 + $0x148] sm:$0xff] }
 0x193   :  { %v6751_v40 = vpop.eup %5149  ;;  %5169 = vtanh.f32 %v683_v16  ;;  %v370_v41 = vadd.f32 %v369_v11, %v6528_v42  ;;  %v1028_v49 = vmul.f32 %v5148_v60, %v900_v9  ;;  %v618_v51 = vpop.f32.mrb[50].mxu1  ;;  %v2335_v9 = vld [vmem:[#allocation8 + $0x168] sm:$0xff]  ;;  %v902_v17 = vmul.f32 0.5, %v870_v47  ;;  %4898 = vmatpush1.bf16.msra.mxu1 %v4897_v50 }
 0x194   :  { %8823 = vst [vmem:[#allocation28_spill] sm:$0xff] %v6749_v36  ;;  %v5152_v59 = vpop.eup %5151  ;;  %v776_v48 = vmul.f32 0.5, %v744_v35  ;;  %5171 = vtanh.f32 %v6749_v36  ;;  %v619_v58 = vadd.f32 %v618_v51, %v6530_v45  ;;  %v620_v28 = vpop.f32.mrb[51].mxu1  ;;  %v4867_v38 = vpack.c.bf16 %v2335_v9, %v2331_v61 }
 0x195   :  { %v5154_v26 = vpop.eup %5153  ;;  %v684_v24 = vmul.f32 0.5, %v370_v41  ;;  %5173 = vtanh.f32 %v811_v43  ;;  %v373_v34 = vpop.f32.mrb[52].mxu0  ;;  %1060 = vst [vmem:[#allocation2 + $0x88] sm:$0xff] %v1028_v49  ;;  %1319 = vmatmul.mubr.f32.gmra.mrb[98].mxu0 %v1028_v49  ;;  %1576 = vmatmul.mubr.f32.gmra.mrb[98].mxu1 %v1028_v49  ;;  %v621_v15 = vadd.f32 %v620_v28, %v6532_v46  ;;  %v871_v43 = vadd.f32 1.0, %v6740_v2  ;;  %v2334_v49 = vld [vmem:[#allocation8 + $0x160] sm:$0xff] }
 0x196   :  { %v5156_v1 = vpop.eup %5155  ;;  %v745_v5 = vadd.f32 1.0, %v5154_v26  ;;  %v6760_v7 = vmul.f32 %v5152_v59, %v776_v48  ;;  %5175 = vtanh.f32 %v615_v21  ;;  %v374_v39 = vpop.f32.mrb[53].mxu0  ;;  %v812_v13 = vmul.f32 0.5, %v619_v58  ;;  %1324 = vmatprep.mubr.f32.mxu0 %v8749_v0  ;;  %1581 = vmatprep.mubr.f32.mxu1 %v8749_v0  ;;  %v2330_v48 = vld [vmem:[#allocation8 + $0x140] sm:$0xff] }
 0x197   :  { %v6762_v10 = vpop.eup %5157  ;;  %5177 = vtanh.f32 %v684_v24  ;;  %v375_v12 = vadd.f32 %v374_v39, %v6528_v42  ;;  %v1029_v23 = vmul.f32 %v5156_v1, %v901_v4  ;;  %v624_v31 = vpop.f32.mrb[52].mxu1  ;;  %v872_v58 = vadd.f32 1.0, %v6751_v40  ;;  %4868 = vmatprep.subr.bf16.mxu0 %v4867_v38 }
 0x198   :  { %8824 = vst [vmem:[#allocation29_spill] sm:$0xff] %v6760_v7  ;;  %v5160_v16 = vpop.eup %5159  ;;  %v777_v22 = vmul.f32 0.5, %v745_v5  ;;  %5179 = vtanh.f32 %v6760_v7  ;;  %v625_v11 = vadd.f32 %v624_v31, %v6530_v45  ;;  %v626_v55 = vpop.f32.mrb[53].mxu1 }
 0x199   :  { %v5162_v60 = vpop.eup %5161  ;;  %v685_v3 = vmul.f32 0.5, %v375_v12  ;;  %5181 = vtanh.f32 %v812_v13  ;;  %v378_v35 = vpop.f32.mrb[54].mxu0  ;;  %1061 = vst [vmem:[#allocation2 + $0x90] sm:$0xff] %v1029_v23  ;;  %1325 = vmatmul.mubr.f32.gmra.mrb[100].mxu0 %v1029_v23  ;;  %1582 = vmatmul.mubr.f32.gmra.mrb[100].mxu1 %v1029_v23  ;;  %v627_v34 = vadd.f32 %v626_v55, %v6532_v46  ;;  %v4869_v12 = vpack.c.bf16 %v2334_v49, %v2330_v48  ;;  %v2337_v23 = vld [vmem:[#allocation8 + $0x178] sm:$0xff] }
 0x19a   :  { %v5164_v41 = vpop.eup %5163  ;;  %v746_v21 = vadd.f32 1.0, %v5162_v60  ;;  %v6771_v59 = vmul.f32 %v5160_v16, %v777_v22  ;;  %5183 = vtanh.f32 %v621_v15  ;;  %v379_v47 = vpop.f32.mrb[55].mxu0  ;;  %v813_v24 = vmul.f32 0.5, %v625_v11  ;;  %1330 = vmatprep.mubr.f32.mxu0 %v8749_v0  ;;  %1587 = vmatprep.mubr.f32.mxu1 %v8749_v0 }
 0x19b   :  { %v6773_v51 = vpop.eup %5165  ;;  %5185 = vtanh.f32 %v685_v3  ;;  %v380_v26 = vadd.f32 %v379_v47, %v6528_v42  ;;  %v1030_v50 = vmul.f32 %v5164_v41, %v902_v17  ;;  %v630_v1 = vpop.f32.mrb[54].mxu1  ;;  %v903_v15 = vmul.f32 0.5, %v871_v43  ;;  %v2333_v17 = vld [vmem:[#allocation8 + $0x158] sm:$0xff]  ;;  %4870 = vmatpush1.bf16.msra.mxu0 %v4869_v12 }
 0x19c   :  { %8825 = vst [vmem:[#allocation30_spill] sm:$0xff] %v6771_v59  ;;  %v5168_v2 = vpop.eup %5167  ;;  %v778_v28 = vmul.f32 0.5, %v746_v21  ;;  %5187 = vtanh.f32 %v6771_v59  ;;  %v631_v61 = vadd.f32 %v630_v1, %v6530_v45  ;;  %v632_v9 = vpop.f32.mrb[55].mxu1  ;;  %v904_v55 = vmul.f32 0.5, %v872_v58  ;;  %v2332_v1 = vld [vmem:[#allocation8 + $0x150] sm:$0xff] }
 0x19d   :  { %v5170_v4 = vpop.eup %5169  ;;  %v686_v5 = vmul.f32 0.5, %v380_v26  ;;  %5189 = vtanh.f32 %v813_v24  ;;  %v383_v39 = vpop.f32.mrb[56].mxu0  ;;  %1062 = vst [vmem:[#allocation2 + $0x98] sm:$0xff] %v1030_v50  ;;  %1331 = vmatmul.mubr.f32.gmra.mrb[102].mxu0 %v1030_v50  ;;  %1588 = vmatmul.mubr.f32.gmra.mrb[102].mxu1 %v1030_v50  ;;  %v633_v35 = vadd.f32 %v632_v9, %v6532_v46  ;;  %v4899_v24 = vpack.c.bf16 %v2337_v23, %v2333_v17 }
 0x19e   :  { %v5172_v13 = vpop.eup %5171  ;;  %v747_v16 = vadd.f32 1.0, %v5170_v4  ;;  %v6782_v22 = vmul.f32 %v5168_v2, %v778_v28  ;;  %5191 = vtanh.f32 %v627_v34  ;;  %v384_v40 = vpop.f32.mrb[57].mxu0  ;;  %v814_v3 = vmul.f32 0.5, %v631_v61  ;;  %1336 = vmatprep.mubr.f32.mxu0 %v8749_v0  ;;  %1593 = vmatprep.mubr.f32.mxu1 %v8749_v0  ;;  %v2336_v4 = vld [vmem:[#allocation8 + $0x170] sm:$0xff] }
 0x19f   :  { %v6784_v31 = vpop.eup %5173  ;;  %5193 = vtanh.f32 %v686_v5  ;;  %v385_v60 = vadd.f32 %v384_v40, %v6528_v42  ;;  %v1031_v41 = vmul.f32 %v5172_v13, %v903_v15  ;;  %v636_v43 = vpop.f32.mrb[56].mxu1  ;;  %v873_v2 = vadd.f32 1.0, %v6762_v10  ;;  %4900 = vmatprep.subr.bf16.mxu1 %v4899_v24 }
 0x1a0   :  { %8826 = vst [vmem:[#allocation31_spill] sm:$0xff] %v6782_v22  ;;  %v5176_v11 = vpop.eup %5175  ;;  %v779_v38 = vmul.f32 0.5, %v747_v16  ;;  %5195 = vtanh.f32 %v6782_v22  ;;  %v637_v49 = vadd.f32 %v636_v43, %v6530_v45  ;;  %v638_v26 = vpop.f32.mrb[57].mxu1  ;;  %v874_v9 = vadd.f32 1.0, %v6773_v51 }
 0x1a1   :  { %v5178_v21 = vpop.eup %5177  ;;  %v687_v47 = vmul.f32 0.5, %v385_v60  ;;  %5197 = vtanh.f32 %v814_v3  ;;  %v388_v48 = vpop.f32.mrb[58].mxu0  ;;  %1063 = vst [vmem:[#allocation2 + $0xa0] sm:$0xff] %v1031_v41  ;;  %1337 = vmatmul.mubr.f32.gmra.mrb[104].mxu0 %v1031_v41  ;;  %1594 = vmatmul.mubr.f32.gmra.mrb[104].mxu1 %v1031_v41  ;;  %v639_v61 = vadd.f32 %v638_v26, %v6532_v46 }
 0x1a2   :  { %v5180_v34 = vpop.eup %5179  ;;  %v748_v28 = vadd.f32 1.0, %v5178_v21  ;;  %v6793_v50 = vmul.f32 %v5176_v11, %v779_v38  ;;  %5199 = vtanh.f32 %v633_v35  ;;  %v389_v58 = vpop.f32.mrb[59].mxu0  ;;  %1342 = vmatprep.mubr.f32.mxu0 %v8749_v0  ;;  %1599 = vmatprep.mubr.f32.mxu1 %v8749_v0  ;;  %v815_v17 = vmul.f32 0.5, %v637_v49 }
 0x1a3   :  { %v6795_v5 = vpop.eup %5181  ;;  %5201 = vtanh.f32 %v687_v47  ;;  %v390_v39 = vadd.f32 %v389_v58, %v6528_v42  ;;  %v1032_v13 = vmul.f32 %v5180_v34, %v904_v55  ;;  %v642_v15 = vpop.f32.mrb[58].mxu1  ;;  %v4901_v35 = vpack.c.bf16 %v2336_v4, %v2332_v1 }
 0x1a4   :  { %8827 = vst [vmem:[#allocation32_spill] sm:$0xff] %v6793_v50  ;;  %v5184_v10 = vpop.eup %5183  ;;  %v780_v12 = vmul.f32 0.5, %v748_v28  ;;  %5203 = vtanh.f32 %v6793_v50  ;;  %v643_v60 = vadd.f32 %v642_v15, %v6530_v45  ;;  %v644_v3 = vpop.f32.mrb[59].mxu1  ;;  %v905_v38 = vmul.f32 0.5, %v873_v2 }
 0x1a5   :  { %v5186_v16 = vpop.eup %5185  ;;  %v688_v40 = vmul.f32 0.5, %v390_v39  ;;  %v393_v23 = vpop.f32.mrb[60].mxu0  ;;  %5205 = vtanh.f32 %v639_v61  ;;  %1064 = vst [vmem:[#allocation2 + $0xa8] sm:$0xff] %v1032_v13  ;;  %1343 = vmatmul.mubr.f32.gmra.mrb[106].mxu0 %v1032_v13  ;;  %1600 = vmatmul.mubr.f32.gmra.mrb[106].mxu1 %v1032_v13  ;;  %v645_v47 = vadd.f32 %v644_v3, %v6532_v46  ;;  %v906_v49 = vmul.f32 0.5, %v874_v9 }
 0x1a6   :  { %v5188_v11 = vpop.eup %5187  ;;  %v749_v41 = vadd.f32 1.0, %v5186_v16  ;;  %v6804_v43 = vmul.f32 %v5184_v10, %v780_v12  ;;  %v394_v51 = vpop.f32.mrb[61].mxu0  ;;  %1348 = vmatprep.mubr.f32.mxu0 %v8749_v0  ;;  %1605 = vmatprep.mubr.f32.mxu1 %v8749_v0  ;;  %v875_v28 = vadd.f32 1.0, %v6784_v31  ;;  %v816_v1 = vmul.f32 0.5, %v643_v60 }
 0x1a7   :  { %v6806_v55 = vpop.eup %5189  ;;  %5207 = vtanh.f32 %v688_v40  ;;  %v395_v21 = vadd.f32 %v394_v51, %v6528_v42  ;;  %v1033_v24 = vmul.f32 %v5188_v11, %v905_v38  ;;  %v648_v34 = vpop.f32.mrb[60].mxu1  ;;  %4902 = vmatpush1.bf16.msra.mxu1 %v4901_v35  ;;  %v876_v11 = vadd.f32 1.0, %v6795_v5 }
 0x1a8   :  { %8828 = vst [vmem:[#allocation33_spill] sm:$0xff] %v6804_v43  ;;  %v5192_v48 = vpop.eup %5191  ;;  %v781_v26 = vmul.f32 0.5, %v749_v41  ;;  %5209 = vtanh.f32 %v6804_v43  ;;  %v650_v39 = vpop.f32.mrb[61].mxu1  ;;  %v649_v13 = vadd.f32 %v648_v34, %v6530_v45  ;;  %v907_v35 = vmul.f32 0.5, %v875_v28 }
 0x1a9   :  { %v5194_v2 = vpop.eup %5193  ;;  %5211 = vtanh.f32 %v815_v17  ;;  %v689_v58 = vmul.f32 0.5, %v395_v21  ;;  %v398_v4 = vpop.f32.mrb[62].mxu0  ;;  %1065 = vst [vmem:[#allocation2 + $0xb0] sm:$0xff] %v1033_v24  ;;  %1349 = vmatmul.mubr.f32.gmra.mrb[108].mxu0 %v1033_v24  ;;  %1606 = vmatmul.mubr.f32.gmra.mrb[108].mxu1 %v1033_v24  ;;  %v651_v16 = vadd.f32 %v650_v39, %v6532_v46  ;;  %v908_v28 = vmul.f32 0.5, %v876_v11 }
 0x1aa   :  { %v5196_v61 = vpop.eup %5195  ;;  %v750_v10 = vadd.f32 1.0, %v5194_v2  ;;  %v6814_v12 = vmul.f32 %v5192_v48, %v781_v26  ;;  %5213 = vtanh.f32 %v645_v47  ;;  %v399_v9 = vpop.f32.mrb[63].mxu0  ;;  %1354 = vmatprep.mubr.f32.mxu0 %v8749_v0  ;;  %1611 = vmatprep.mubr.f32.mxu1 %v8749_v0  ;;  %v817_v48 = vmul.f32 0.5, %v649_v13 }
 0x1ab   :  { %v5198_v15 = vpop.eup %5197  ;;  %5215 = vtanh.f32 %v689_v58  ;;  %v400_v31 = vadd.f32 %v399_v9, %v6528_v42  ;;  %v1034_v23 = vmul.f32 %v5196_v61, %v906_v49  ;;  %v654_v60 = vpop.f32.mrb[62].mxu1  ;;  %v877_v58 = vadd.f32 1.0, %v6806_v55 }
 0x1ac   :  { %8829 = vst [vmem:[#allocation34_spill] sm:$0xff] %v6814_v12  ;;  %v5200_v40 = vpop.eup %5199  ;;  %v782_v17 = vmul.f32 0.5, %v750_v10  ;;  %5217 = vtanh.f32 %v6814_v12  ;;  %v656_v41 = vpop.f32.mrb[63].mxu1  ;;  %v655_v49 = vadd.f32 %v654_v60, %v6530_v45 }
 0x1ad   :  { %v5202_v3 = vpop.eup %5201  ;;  %5219 = vtanh.f32 %v816_v1  ;;  %v690_v38 = vmul.f32 0.5, %v400_v31  ;;  %1066 = vst [vmem:[#allocation2 + $0xb8] sm:$0xff] %v1034_v23  ;;  %1355 = vmatmul.mubr.f32.gmra.mrb[110].mxu0 %v1034_v23  ;;  %1612 = vmatmul.mubr.f32.gmra.mrb[110].mxu1 %v1034_v23  ;;  %v657_v26 = vadd.f32 %v656_v41, %v6532_v46 }
 0x1ae   :  { %v5204_v51 = vpop.eup %5203  ;;  %v751_v21 = vadd.f32 1.0, %v5202_v3  ;;  %v6823_v47 = vmul.f32 %v5200_v40, %v782_v17  ;;  %5221 = vtanh.f32 %v651_v16  ;;  %1360 = vmatprep.mubr.f32.mxu0 %v8749_v0  ;;  %1617 = vmatprep.mubr.f32.mxu1 %v8749_v0  ;;  %v818_v10 = vmul.f32 0.5, %v655_v49 }
 0x1af   :  { %5223 = vtanh.f32 %v690_v38  ;;  %v1035_v5 = vmul.f32 %v5204_v51, %v907_v35  ;;  %v5206_v24 = vpop.eup %5205  ;;  %v909_v16 = vmul.f32 0.5, %v877_v58  ;;  %v878_v40 = vadd.f32 1.0, %v5198_v15 }
 0x1b0   :  { %8830 = vst [vmem:[#allocation35_spill] sm:$0xff] %v6823_v47  ;;  %v783_v34 = vmul.f32 0.5, %v751_v21  ;;  %5225 = vtanh.f32 %v6823_v47 }
 0x1b1   :  { %v5208_v2 = vpop.eup %5207  ;;  %1067 = vst [vmem:[#allocation2 + $0xc0] sm:$0xff] %v1035_v5  ;;  %5227 = vtanh.f32 %v657_v26  ;;  %1361 = vmatmul.mubr.f32.gmra.mrb[112].mxu0 %v1035_v5  ;;  %1618 = vmatmul.mubr.f32.gmra.mrb[112].mxu1 %v1035_v5  ;;  %v910_v15 = vmul.f32 0.5, %v878_v40 }
 0x1b2   :  { %v5210_v1 = vpop.eup %5209  ;;  %v752_v4 = vadd.f32 1.0, %v5208_v2  ;;  %v6831_v39 = vmul.f32 %v5206_v24, %v783_v34  ;;  %5229 = vtanh.f32 %v817_v48  ;;  %1366 = vmatprep.mubr.f32.mxu0 %v8749_v0  ;;  %1623 = vmatprep.mubr.f32.mxu1 %v8749_v0 }
 0x1b3   :  { %v5212_v61 = vpop.eup %5211  ;;  %v1036_v9 = vmul.f32 %v5210_v1, %v908_v28 }
 0x1b4   :  { %8831 = vst [vmem:[#allocation36_spill] sm:$0xff] %v6831_v39  ;;  %v5214_v13 = vpop.eup %5213  ;;  %v784_v31 = vmul.f32 0.5, %v752_v4  ;;  %5231 = vtanh.f32 %v6831_v39  ;;  %v879_v51 = vadd.f32 1.0, %v5212_v61 }
 0x1b5   :  { %v5216_v55 = vpop.eup %5215  ;;  %1068 = vst [vmem:[#allocation2 + $0xc8] sm:$0xff] %v1036_v9  ;;  %1367 = vmatmul.mubr.f32.gmra.mrb[114].mxu0 %v1036_v9  ;;  %1624 = vmatmul.mubr.f32.gmra.mrb[114].mxu1 %v1036_v9  ;;  %5233 = vtanh.f32 %v818_v10 }
 0x1b6   :  { %v5218_v17 = vpop.eup %5217  ;;  %v753_v23 = vadd.f32 1.0, %v5216_v55  ;;  %v6836_v60 = vmul.f32 %v5214_v13, %v784_v31  ;;  %1372 = vmatprep.mubr.f32.mxu0 %v8749_v0  ;;  %1629 = vmatprep.mubr.f32.mxu1 %v8749_v0  ;;  %v911_v2 = vmul.f32 0.5, %v879_v51  ;;  %v2339_v13 = vld [vmem:[#allocation8 + $0x188] sm:$0xff]  ;;  %v2338_v55 = vld [vmem:[#allocation8 + $0x180] sm:$0xff] }
 0x1b7   :  { %v5220_v3 = vpop.eup %5219  ;;  %v1037_v35 = vmul.f32 %v5218_v17, %v909_v16  ;;  %v2343_v31 = vld [vmem:[#allocation8 + $0x1a8] sm:$0xff]  ;;  %v2342_v17 = vld [vmem:[#allocation8 + $0x1a0] sm:$0xff] }
 0x1b8   :  { %8832 = vst [vmem:[#allocation37_spill] sm:$0xff] %v6836_v60  ;;  %v5222_v11 = vpop.eup %5221  ;;  %v785_v38 = vmul.f32 0.5, %v753_v23  ;;  %5235 = vtanh.f32 %v6836_v60  ;;  %v880_v28 = vadd.f32 1.0, %v5220_v3  ;;  %v4871_v40 = vpack.c.bf16 %v2343_v31, %v2339_v13  ;;  %v2341_v23 = vld [vmem:[#allocation8 + $0x198] sm:$0xff] }
 0x1b9   :  { %v5224_v41 = vpop.eup %5223  ;;  %1069 = vst [vmem:[#allocation2 + $0xd0] sm:$0xff] %v1037_v35  ;;  %1373 = vmatmul.mubr.f32.gmra.mrb[116].mxu0 %v1037_v35  ;;  %1630 = vmatmul.mubr.f32.gmra.mrb[116].mxu1 %v1037_v35  ;;  %v2345_v3 = vld [vmem:[#allocation8 + $0x1b8] sm:$0xff] }
 0x1ba   :  { %v5226_v21 = vpop.eup %5225  ;;  %v754_v48 = vadd.f32 1.0, %v5224_v41  ;;  %v6841_v49 = vmul.f32 %v5222_v11, %v785_v38  ;;  %1378 = vmatprep.mubr.f32.mxu0 %v8749_v0  ;;  %1635 = vmatprep.mubr.f32.mxu1 %v8749_v0  ;;  %v912_v10 = vmul.f32 0.5, %v880_v28  ;;  %v4873_v11 = vpack.c.bf16 %v2342_v17, %v2338_v55  ;;  %v2340_v41 = vld [vmem:[#allocation8 + $0x190] sm:$0xff]  ;;  %v2347_v28 = vld [vmem:[#allocation8 + $0x1c8] sm:$0xff]  ;;  %v2353_v13 = vld [vmem:[#allocation8 + $0x1f8] sm:$0xff] }
 0x1bb   :  { %v1038_v26 = vmul.f32 %v5226_v21, %v910_v15  ;;  %v5228_v5 = vpop.eup %5227  ;;  %v4903_v38 = vpack.c.bf16 %v2345_v3, %v2341_v23  ;;  %v2344_v15 = vld [vmem:[#allocation8 + $0x1b0] sm:$0xff]  ;;  %4872 = vmatprep.subr.bf16.mxu0 %v4871_v40 }
 0x1bc   :  { %8833 = vst [vmem:[#allocation38_spill] sm:$0xff] %v6841_v49  ;;  %v786_v24 = vmul.f32 0.5, %v754_v48  ;;  %5237 = vtanh.f32 %v6841_v49  ;;  %v5230_v34 = vpop.eup %5229  ;;  %v4905_v51 = vpack.c.bf16 %v2344_v15, %v2340_v41  ;;  %4874 = vmatpush1.bf16.msra.mxu0 %v4873_v11  ;;  %v2352_v40 = vld [vmem:[#allocation8 + $0x1f0] sm:$0xff] }
 0x1bd   :  { %1070 = vst [vmem:[#allocation2 + $0xd8] sm:$0xff] %v1038_v26  ;;  %1379 = vmatmul.mubr.f32.gmra.mrb[118].mxu0 %v1038_v26  ;;  %1636 = vmatmul.mubr.f32.gmra.mrb[118].mxu1 %v1038_v26  ;;  %v881_v9 = vadd.f32 1.0, %v5230_v34 }
 0x1be   :  { %v5232_v58 = vpop.eup %5231  ;;  %v6846_v1 = vmul.f32 %v5228_v5, %v786_v24  ;;  %1384 = vmatprep.mubr.f32.mxu0 %v8749_v0  ;;  %1641 = vmatprep.mubr.f32.mxu1 %v8749_v0 }
 0x1bf   :  { %v1039_v4 = vmul.f32 %v5232_v58, %v911_v2  ;;  %v5234_v61 = vpop.eup %5233  ;;  %v913_v21 = vmul.f32 0.5, %v881_v9  ;;  %4904 = vmatprep.subr.bf16.mxu1 %v4903_v38  ;;  %v2351_v58 = vld [vmem:[#allocation8 + $0x1e8] sm:$0xff]  ;;  %v2350_v9 = vld [vmem:[#allocation8 + $0x1e0] sm:$0xff] }
 0x1c0   :  { %8834 = vst [vmem:[#allocation39_spill] sm:$0xff] %v6846_v1  ;;  %5239 = vtanh.f32 %v6846_v1  ;;  %v882_v48 = vadd.f32 1.0, %v5234_v61  ;;  %4906 = vmatpush1.bf16.msra.mxu1 %v4905_v51  ;;  %v4875_v61 = vpack.c.bf16 %v2351_v58, %v2347_v28 }
 0x1c1   :  { %1071 = vst [vmem:[#allocation2 + $0xe0] sm:$0xff] %v1039_v4  ;;  %1385 = vmatmul.mubr.f32.gmra.mrb[120].mxu0 %v1039_v4  ;;  %1642 = vmatmul.mubr.f32.gmra.mrb[120].mxu1 %v1039_v4  ;;  %v2349_v4 = vld [vmem:[#allocation8 + $0x1d8] sm:$0xff] }
 0x1c2   :  { %v5236_v16 = vpop.eup %5235  ;;  %1390 = vmatprep.mubr.f32.mxu0 %v8749_v0  ;;  %1647 = vmatprep.mubr.f32.mxu1 %v8749_v0  ;;  %v914_v24 = vmul.f32 0.5, %v882_v48  ;;  %v4907_v55 = vpack.c.bf16 %v2353_v13, %v2349_v4 }
 0x1c3   :  { %v1040_v35 = vmul.f32 %v5236_v16, %v912_v10  ;;  %v2346_v10 = vld [vmem:[#allocation8 + $0x1c0] sm:$0xff]  ;;  %v2348_v16 = vld [vmem:[#allocation8 + $0x1d0] sm:$0xff]  ;;  %4876 = vmatprep.subr.bf16.mxu0 %v4875_v61 }
 0x1c4   :  { %v4877_v31 = vpack.c.bf16 %v2350_v9, %v2346_v10  ;;  %v4909_v17 = vpack.c.bf16 %v2352_v40, %v2348_v16  ;;  %4908 = vmatprep.subr.bf16.mxu1 %v4907_v55 }
 0x1c5   :  { %1072 = vst [vmem:[#allocation2 + $0xe8] sm:$0xff] %v1040_v35  ;;  %1391 = vmatmul.mubr.f32.gmra.mrb[122].mxu0 %v1040_v35  ;;  %1648 = vmatmul.mubr.f32.gmra.mrb[122].mxu1 %v1040_v35 }
 0x1c6   :  { %v5238_v26 = vpop.eup %5237  ;;  %1396 = vmatprep.mubr.f32.mxu0 %v8749_v0  ;;  %1653 = vmatprep.mubr.f32.mxu1 %v8749_v0 }
 0x1c7   :  { %v1041_v5 = vmul.f32 %v5238_v26, %v913_v21  ;;  %4878 = vmatpush1.bf16.msra.mxu0 %v4877_v31  ;;  %4910 = vmatpush1.bf16.msra.mxu1 %v4909_v17 }
 0x1c9   :  { %1073 = vst [vmem:[#allocation2 + $0xf0] sm:$0xff] %v1041_v5  ;;  %1397 = vmatmul.mubr.f32.gmra.mrb[124].mxu0 %v1041_v5  ;;  %1654 = vmatmul.mubr.f32.gmra.mrb[124].mxu1 %v1041_v5 }
 0x1ca   :  { %v5240_v34 = vpop.eup %5239  ;;  %1402 = vmatprep.mubr.f32.mxu0 %v8749_v0  ;;  %1659 = vmatprep.mubr.f32.mxu1 %v8749_v0 }
 0x1cb   :  { %v1042_v2 = vmul.f32 %v5240_v34, %v914_v24 }
 0x1cd   :  { %1074 = vst [vmem:[#allocation2 + $0xf8] sm:$0xff] %v1042_v2  ;;  %1403 = vmatmul.mubr.f32.gmra.mrb[126].mxu0 %v1042_v2  ;;  %1660 = vmatmul.mubr.f32.gmra.mrb[126].mxu1 %v1042_v2 }
 0x1ce   :  { %2418 = vmatprep.mubr.f32.mxu0 %v8749_v0  ;;  %2675 = vmatprep.mubr.f32.mxu1 %v8749_v0 }
 0x1cf   :  { %6279 = shalt.err (!%p6276_p0)  }
 0x1d0   :  { %s6888_s10 = scalar_lea.hbm %s8748_s4, 4096  ;;  %s6897_s14 = scalar_lea.hbm %s8748_s4, 16384 }
 0x1d1   :  { %p6281_p1 = scmp.ne.s32.totalorder %s8748_s4, %s6888_s10  ;;  %p6283_p2 = scmp.lt.u32.totalorder %s6897_s14, %s6888_s10 }
 0x1d2   :  { %p6284_p3 = scmp.lt.u32.totalorder %s6888_s10, %s8748_s4 }
 0x1d4   :  { %p6285_p4 = por %p6284_p3, %p6283_p2 }
 0x1d6   :  { %p6286_p5 = pnand %p6285_p4, %p6281_p1 }
 0x1d8   :  { %6289 = shalt.err (!%p6286_p5)  }
 0x1d9   :  { %1087 = dma.vmem_to_hbm [thread:$0]  %s6859_s29, 4096, %s8748_s4, [#allocation3]  ;;  %v63_v23 = vsub.s32 0, %v6520_v37  ;;  %v5881_v3 = vld [vmem:[%s8747_s3] sm:$0xf] }
 0x1da   :  { %s6386_s3 = smov [#allocation2 + $0x100]  }
 0x1db   :  { %v6918_v35 = vrot.slane %v5881_v3, %v63_v23  ;;  %s2286_s23 = sshll.u32 %s6386_s3, 4  ;;  %s7725_s23 = int_to_ptr.vmem [resolvable:$true] %s2286_s23 }
 0x1dc   :  { %s6290_s24 = scalar_lea.vmem %s7725_s23, 4096  ;;  %p6295_p7 = scmp.lt.s32.totalorder %s7725_s23, %s6859_s29 }
 0x1dd   :  { %p7732_p6 = scmp.ne.s32.totalorder %s7725_s23, %s6290_s24  ;;  %p6296_p8 = scmp.lt.s32.totalorder %s6272_s6, %s6290_s24 }
 0x1df   :  { %p7740_p9 = por %p6296_p8, %p6295_p7 }
 0x1e1   :  { %p6298_p11 = pnand %p7740_p9, %p7732_p6 }
 0x224   :  { %v1218_v11 = vpop.f32.mrb[64].mxu0  ;;  %v1475_v38 = vpop.f32.mrb[64].mxu1 }
 0x225   :  { %v1219_v41 = vadd.f32 %v1218_v11, %v6918_v35  ;;  %v1476_v15 = vadd.f32 %v1475_v38, %v6530_v45  ;;  %v1220_v51 = vpop.f32.mrb[65].mxu0  ;;  %v1477_v21 = vpop.f32.mrb[65].mxu1 }
 0x226   :  { %v1221_v48 = vadd.f32 %v1220_v51, %v6528_v42  ;;  %v1478_v26 = vadd.f32 %v1477_v21, %v6532_v46 }
 0x227   :  { %v1666_v5 = vmul.f32 0.5, %v1219_v41  ;;  %v1922_v37 = vmul.f32 0.5, %v1476_v15 }
 0x228   :  { %v1794_v24 = vmul.f32 0.5, %v1221_v48  ;;  %5241 = vtanh.f32 %v1478_v26  ;;  %v1224_v34 = vpop.f32.mrb[66].mxu0  ;;  %v1481_v2 = vpop.f32.mrb[66].mxu1 }
 0x229   :  { %5243 = vtanh.f32 %v1666_v5  ;;  %v1225_v28 = vadd.f32 %v1224_v34, %v6918_v35  ;;  %v1482_v58 = vadd.f32 %v1481_v2, %v6530_v45  ;;  %v1226_v4 = vpop.f32.mrb[67].mxu0  ;;  %v1483_v61 = vpop.f32.mrb[67].mxu1 }
 0x22a   :  { %5245 = vtanh.f32 %v1922_v37  ;;  %v1227_v10 = vadd.f32 %v1226_v4, %v6528_v42  ;;  %v1484_v9 = vadd.f32 %v1483_v61, %v6532_v46 }
 0x22b   :  { %5247 = vtanh.f32 %v1794_v24  ;;  %v1667_v13 = vmul.f32 0.5, %v1225_v28  ;;  %v1923_v31 = vmul.f32 0.5, %v1482_v58 }
 0x22c   :  { %v1795_v55 = vmul.f32 0.5, %v1227_v10  ;;  %5249 = vtanh.f32 %v1484_v9  ;;  %v1230_v16 = vpop.f32.mrb[68].mxu0  ;;  %v1487_v40 = vpop.f32.mrb[68].mxu1 }
 0x22d   :  { %5251 = vtanh.f32 %v1667_v13  ;;  %v1231_v17 = vadd.f32 %v1230_v16, %v6918_v35  ;;  %v1488_v23 = vadd.f32 %v1487_v40, %v6530_v45  ;;  %v1232_v3 = vpop.f32.mrb[69].mxu0  ;;  %v1489_v11 = vpop.f32.mrb[69].mxu1 }
 0x22e   :  { %5253 = vtanh.f32 %v1923_v31  ;;  %v1233_v38 = vadd.f32 %v1232_v3, %v6528_v42  ;;  %v1490_v41 = vadd.f32 %v1489_v11, %v6532_v46 }
 0x22f   :  { %5255 = vtanh.f32 %v1795_v55  ;;  %v1668_v15 = vmul.f32 0.5, %v1231_v17  ;;  %v1924_v51 = vmul.f32 0.5, %v1488_v23 }
 0x230   :  { %v1796_v21 = vmul.f32 0.5, %v1233_v38  ;;  %5257 = vtanh.f32 %v1490_v41  ;;  %v1236_v48 = vpop.f32.mrb[70].mxu0  ;;  %v1493_v26 = vpop.f32.mrb[70].mxu1 }
 0x231   :  { %5259 = vtanh.f32 %v1668_v15  ;;  %v1237_v5 = vadd.f32 %v1236_v48, %v6918_v35  ;;  %v1494_v37 = vadd.f32 %v1493_v26, %v6530_v45  ;;  %v1238_v24 = vpop.f32.mrb[71].mxu0  ;;  %v1495_v34 = vpop.f32.mrb[71].mxu1 }
 0x232   :  { %v5242_v2 = vpop.eup %5241  ;;  %5261 = vtanh.f32 %v1924_v51  ;;  %v1239_v28 = vadd.f32 %v1238_v24, %v6528_v42  ;;  %v1496_v58 = vadd.f32 %v1495_v34, %v6532_v46 }
 0x233   :  { %v5244_v4 = vpop.eup %5243  ;;  %5263 = vtanh.f32 %v1796_v21  ;;  %v1669_v61 = vmul.f32 0.5, %v1237_v5  ;;  %v1925_v10 = vmul.f32 0.5, %v1494_v37 }
 0x234   :  { %v6936_v9 = vpop.eup %5245  ;;  %v1730_v13 = vadd.f32 1.0, %v5244_v4  ;;  %v1797_v31 = vmul.f32 0.5, %v1239_v28  ;;  %5265 = vtanh.f32 %v1496_v58  ;;  %v1242_v55 = vpop.f32.mrb[72].mxu0 }
 0x235   :  { %v1499_v16 = vpop.f32.mrb[72].mxu1  ;;  %v5248_v40 = vpop.eup %5247  ;;  %5267 = vtanh.f32 %v1669_v61  ;;  %v1243_v17 = vadd.f32 %v1242_v55, %v6918_v35 }
 0x236   :  { %v1500_v23 = vadd.f32 %v1499_v16, %v6530_v45  ;;  %v1244_v3 = vpop.f32.mrb[73].mxu0  ;;  %v1501_v11 = vpop.f32.mrb[73].mxu1  ;;  %v1762_v41 = vmul.f32 0.5, %v1730_v13  ;;  %v1858_v15 = vadd.f32 1.0, %v5248_v40  ;;  %5269 = vtanh.f32 %v1925_v10 }
 0x237   :  { %v5250_v38 = vpop.eup %5249  ;;  %v1245_v51 = vadd.f32 %v1244_v3, %v6528_v42  ;;  %5271 = vtanh.f32 %v1797_v31  ;;  %v1670_v48 = vmul.f32 0.5, %v1243_v17  ;;  %v1502_v13 = vadd.f32 %v1501_v11, %v6532_v46 }
 0x238   :  { %v5252_v21 = vpop.eup %5251  ;;  %v1926_v26 = vmul.f32 0.5, %v1500_v23  ;;  %v2082_v37 = vmul.f32 %v1762_v41, %v6548_v32  ;;  %v1890_v24 = vmul.f32 0.5, %v1858_v15  ;;  %v1248_v58 = vpop.f32.mrb[74].mxu0 }
 0x239   :  { %v6941_v5 = vpop.eup %5253  ;;  %v1731_v34 = vadd.f32 1.0, %v5252_v21  ;;  %v1798_v28 = vmul.f32 0.5, %v1245_v51  ;;  %v1505_v4 = vpop.f32.mrb[74].mxu1  ;;  %5273 = vtanh.f32 %v1670_v48  ;;  %v1249_v10 = vadd.f32 %v1248_v58, %v6918_v35 }
 0x23a   :  { %v5256_v61 = vpop.eup %5255  ;;  %v1250_v55 = vpop.f32.mrb[75].mxu0  ;;  %v2114_v40 = vmul.f32 %v5242_v2, %v1890_v24  ;;  %5275 = vtanh.f32 %v1926_v26  ;;  %v1506_v41 = vadd.f32 %v1505_v4, %v6530_v45 }
 0x23b   :  { %v1507_v16 = vpop.f32.mrb[75].mxu1  ;;  %v5258_v31 = vpop.eup %5257  ;;  %v1763_v17 = vmul.f32 0.5, %v1731_v34  ;;  %v1859_v23 = vadd.f32 1.0, %v5256_v61  ;;  %5277 = vtanh.f32 %v1798_v28  ;;  %v1671_v32 = vmul.f32 0.5, %v1249_v10 }
 0x23c   :  { %v5260_v3 = vpop.eup %5259  ;;  %v6949_v51 = vadd.f32 %v2114_v40, %v2082_v37  ;;  %v1254_v58 = vpop.f32.mrb[76].mxu0  ;;  %5279 = vtanh.f32 %v1502_v13  ;;  %v1927_v2 = vmul.f32 0.5, %v1506_v41  ;;  %v1251_v26 = vadd.f32 %v1250_v55, %v6528_v42 }
 0x23d   :  { %v6947_v15 = vpop.eup %5261  ;;  %v2083_v11 = vmul.f32 %v1763_v17, %v6554_v52  ;;  %v1891_v21 = vmul.f32 0.5, %v1859_v23  ;;  %v1732_v48 = vadd.f32 1.0, %v5260_v3  ;;  %v1511_v0 = vpop.f32.mrb[76].mxu1  ;;  %v1508_v40 = vadd.f32 %v1507_v16, %v6532_v46 }
 0x23e   :  { %8837 = vst [vmem:[#allocation40_spill] sm:$0xff] %v6949_v51  ;;  %v5264_v1 = vpop.eup %5263  ;;  %v1256_v24 = vpop.f32.mrb[77].mxu0  ;;  %5281 = vtanh.f32 %v6949_v51  ;;  %v1799_v52 = vmul.f32 0.5, %v1251_v26  ;;  %v1988_v22 = vadd.f32 1.0, %v6947_v15 }
 0x23f   :  { %v1513_v34 = vpop.f32.mrb[77].mxu1  ;;  %v5266_v28 = vpop.eup %5265  ;;  %v2115_v4 = vmul.f32 %v5250_v38, %v1891_v21  ;;  %v1764_v61 = vmul.f32 0.5, %v1732_v48  ;;  %v1860_v37 = vadd.f32 1.0, %v5264_v1  ;;  %5283 = vtanh.f32 %v1671_v32 }
 0x240   :  { %v5268_v10 = vpop.eup %5267  ;;  %v1260_v41 = vpop.f32.mrb[78].mxu0  ;;  %5285 = vtanh.f32 %v1927_v2  ;;  %v1255_v38 = vadd.f32 %v1254_v58, %v6918_v35  ;;  %v1512_v1 = vadd.f32 %v1511_v0, %v6530_v45 }
 0x241   :  { %v6955_v17 = vpop.eup %5269  ;;  %v6957_v23 = vadd.f32 %v2115_v4, %v2083_v11  ;;  %v2084_v13 = vmul.f32 %v1764_v61, %v6560_v6  ;;  %v1892_v55 = vmul.f32 0.5, %v1860_v37  ;;  %v1733_v3 = vadd.f32 1.0, %v5268_v10  ;;  %v1517_v49 = vpop.f32.mrb[78].mxu1 }
 0x242   :  { %v5272_v60 = vpop.eup %5271  ;;  %v1262_v32 = vpop.f32.mrb[79].mxu0  ;;  %5287 = vtanh.f32 %v1799_v52  ;;  %v1672_v4 = vmul.f32 0.5, %v1255_v38  ;;  %v1928_v6 = vmul.f32 0.5, %v1512_v1 }
 0x243   :  { %8838 = vst [vmem:[#allocation41_spill] sm:$0xff] %v6957_v23  ;;  %v1519_v21 = vpop.f32.mrb[79].mxu1  ;;  %v2116_v48 = vmul.f32 %v5258_v31, %v1892_v55  ;;  %v1765_v16 = vmul.f32 0.5, %v1733_v3  ;;  %v1861_v26 = vadd.f32 1.0, %v5272_v60  ;;  %v5274_v11 = vpop.eup %5273  ;;  %5289 = vtanh.f32 %v1508_v40 }
 0x244   :  { %v6962_v61 = vpop.eup %5275  ;;  %v1734_v58 = vadd.f32 1.0, %v5274_v11  ;;  %v1266_v51 = vpop.f32.mrb[80].mxu0  ;;  %5291 = vtanh.f32 %v1672_v4  ;;  %v1257_v31 = vadd.f32 %v1256_v24, %v6528_v42  ;;  %v1514_v60 = vadd.f32 %v1513_v34, %v6532_v46 }
 0x245   :  { %v6964_v37 = vadd.f32 %v2116_v48, %v2084_v13  ;;  %v2085_v2 = vmul.f32 %v1765_v16, %v6566_v29  ;;  %v1893_v10 = vmul.f32 0.5, %v1861_v26  ;;  %v1523_v0 = vpop.f32.mrb[80].mxu1  ;;  %v5278_v39 = vpop.eup %5277  ;;  %5293 = vtanh.f32 %v1928_v6 }
 0x246   :  { %v1268_v52 = vpop.f32.mrb[81].mxu0  ;;  %v1525_v40 = vpop.f32.mrb[81].mxu1  ;;  %v1766_v3 = vmul.f32 0.5, %v1734_v58  ;;  %v1862_v38 = vadd.f32 1.0, %v5278_v39  ;;  %v1800_v1 = vmul.f32 0.5, %v1257_v31  ;;  %5295 = vtanh.f32 %v1514_v60 }
 0x247   :  { %8839 = vst [vmem:[#allocation42_spill] sm:$0xff] %v6964_v37  ;;  %v2117_v55 = vmul.f32 %v5266_v28, %v1893_v10  ;;  %v5280_v13 = vpop.eup %5279  ;;  %v1261_v29 = vadd.f32 %v1260_v41, %v6918_v35  ;;  %v1518_v34 = vadd.f32 %v1517_v49, %v6530_v45  ;;  %v1263_v6 = vadd.f32 %v1262_v32, %v6528_v42 }
 0x248   :  { %v6970_v48 = vpop.eup %5281  ;;  %v2086_v26 = vmul.f32 %v1766_v3, %v6574_v57  ;;  %v1894_v24 = vmul.f32 0.5, %v1862_v38  ;;  %v1272_v11 = vpop.f32.mrb[82].mxu0  ;;  %5297 = vtanh.f32 %v1800_v1  ;;  %v1520_v10 = vadd.f32 %v1519_v21, %v6532_v46 }
 0x249   :  { %v6972_v16 = vadd.f32 %v2117_v55, %v2085_v2  ;;  %v1529_v4 = vpop.f32.mrb[82].mxu1  ;;  %v5284_v28 = vpop.eup %5283  ;;  %v1673_v39 = vmul.f32 0.5, %v1261_v29  ;;  %v1929_v2 = vmul.f32 0.5, %v1518_v34  ;;  %v1267_v55 = vadd.f32 %v1266_v51, %v6918_v35 }
 0x24a   :  { %v1274_v58 = vpop.f32.mrb[83].mxu0  ;;  %v1531_v41 = vpop.f32.mrb[83].mxu1  ;;  %v2118_v31 = vmul.f32 %v5280_v13, %v1894_v24  ;;  %v1735_v60 = vadd.f32 1.0, %v5284_v28  ;;  %v1801_v49 = vmul.f32 0.5, %v1263_v6  ;;  %v1524_v3 = vadd.f32 %v1523_v0, %v6530_v45 }
 0x24b   :  { %8840 = vst [vmem:[#allocation43_spill] sm:$0xff] %v6972_v16  ;;  %v6979_v57 = vpop.eup %5285  ;;  %5299 = vtanh.f32 %v1673_v39  ;;  %v1269_v38 = vadd.f32 %v1268_v52, %v6528_v42  ;;  %v1986_v24 = vadd.f32 1.0, %v6936_v9  ;;  %v1674_v51 = vmul.f32 0.5, %v1267_v55 }
 0x24c   :  { %v5288_v1 = vpop.eup %5287  ;;  %v6983_v29 = vadd.f32 %v2118_v31, %v2086_v26  ;;  %v1767_v32 = vmul.f32 0.5, %v1735_v60  ;;  %5301 = vtanh.f32 %v1929_v2  ;;  %v1278_v21 = vpop.f32.mrb[84].mxu0  ;;  %v1930_v6 = vmul.f32 0.5, %v1524_v3 }
 0x24d   :  { %v1535_v47 = vpop.f32.mrb[84].mxu1  ;;  %v5290_v13 = vpop.eup %5289  ;;  %v1863_v34 = vadd.f32 1.0, %v5288_v1  ;;  %5303 = vtanh.f32 %v1801_v49  ;;  %v1802_v0 = vmul.f32 0.5, %v1269_v38  ;;  %v1273_v31 = vadd.f32 %v1272_v11, %v6918_v35 }
 0x24e   :  { %8841 = vst [vmem:[#allocation44_spill] sm:$0xff] %v6983_v29  ;;  %v1280_v28 = vpop.f32.mrb[85].mxu0  ;;  %v1537_v39 = vpop.f32.mrb[85].mxu1  ;;  %5305 = vtanh.f32 %v1520_v10  ;;  %v2087_v52 = vmul.f32 %v1767_v32, %v6584_v18  ;;  %v1526_v9 = vadd.f32 %v1525_v40, %v6532_v46  ;;  %v1530_v49 = vadd.f32 %v1529_v4, %v6530_v45 }
 0x24f   :  { %v5292_v12 = vpop.eup %5291  ;;  %v1895_v26 = vmul.f32 0.5, %v1863_v34  ;;  %5307 = vtanh.f32 %v1674_v51  ;;  %v1275_v55 = vadd.f32 %v1274_v58, %v6528_v42  ;;  %v2018_v38 = vmul.f32 0.5, %v1986_v24 }
 0x250   :  { %v6988_v60 = vpop.eup %5293  ;;  %v1736_v2 = vadd.f32 1.0, %v5292_v12  ;;  %v1284_v1 = vpop.f32.mrb[86].mxu0  ;;  %5309 = vtanh.f32 %v1802_v0  ;;  %v1675_v18 = vmul.f32 0.5, %v1273_v31  ;;  %v1931_v12 = vmul.f32 0.5, %v1530_v49 }
 0x251   :  { %v1541_v10 = vpop.f32.mrb[86].mxu1  ;;  %v5296_v3 = vpop.eup %5295  ;;  %v2119_v43 = vmul.f32 %v5290_v13, %v1895_v26  ;;  %5311 = vtanh.f32 %v1930_v6  ;;  %v1803_v51 = vmul.f32 0.5, %v1275_v55  ;;  %v1532_v4 = vadd.f32 %v1531_v41, %v6532_v46 }
 0x252   :  { %v6993_v32 = vpop.f32.mrb[87].mxu0  ;;  %v6995_v34 = vpop.f32.mrb[87].mxu1  ;;  %v1768_v11 = vmul.f32 0.5, %v1736_v2  ;;  %5313 = vtanh.f32 %v1675_v18  ;;  %v2210_v13 = vmul.f32 %v6970_v48, %v2018_v38  ;;  %v1279_v6 = vadd.f32 %v1278_v21, %v6918_v35 }
 0x253   :  { %v5298_v40 = vpop.eup %5297  ;;  %v6997_v50 = vadd.f32 %v2119_v43, %v2087_v52  ;;  %5315 = vtanh.f32 %v1526_v9  ;;  %v1281_v31 = vadd.f32 %v1280_v28, %v6528_v42  ;;  %v1536_v21 = vadd.f32 %v1535_v47, %v6530_v45 }
 0x254   :  { %v1864_v58 = vadd.f32 1.0, %v5298_v40  ;;  %v7001_v24 = vpop.f32.mrb[88].mxu0  ;;  %v7003_v0 = vpop.f32.mrb[88].mxu1  ;;  %5317 = vtanh.f32 %v1803_v51  ;;  %v2088_v41 = vmul.f32 %v1768_v11, %v6595_v44  ;;  %2243 = vst [vmem:[#allocation2 + $0x100] sm:$0xff] %v2210_v13  ;;  %2419 = vmatmul.mubr.f32.vlgmr.msra.gmra.mrb[128].mxu0 %v2210_v13  ;;  %2676 = vmatmul.mubr.f32.vlgmr.msra.gmra.mrb[128].mxu1 %v2210_v13  ;;  %v1676_v55 = vmul.f32 0.5, %v1279_v6 }
 0x255   :  { %8842 = vst [vmem:[#allocation45_spill] sm:$0xff] %v6997_v50  ;;  %v5300_v26 = vpop.eup %5299  ;;  %v7007_v2 = vpop.f32.mrb[89].mxu0  ;;  %5319 = vtanh.f32 %v1931_v12  ;;  %v1538_v28 = vadd.f32 %v1537_v39, %v6532_v46  ;;  %v8843_v38 = vmov 0.0   ;;  %v1804_v40 = vmul.f32 0.5, %v1281_v31 }
 0x256   :  { %v7009_v43 = vpop.f32.mrb[89].mxu1  ;;  %v7011_v52 = vpop.eup %5301  ;;  %v1896_v9 = vmul.f32 0.5, %v1864_v58  ;;  %v1737_v48 = vadd.f32 1.0, %v5300_v26  ;;  %5321 = vtanh.f32 %v1532_v4  ;;  %2424 = vmatprep.mubr.f32.mxu0 %v8843_v38  ;;  %2681 = vmatprep.mubr.f32.mxu1 %v8843_v38  ;;  %v1987_v4 = vadd.f32 1.0, %v6941_v5 }
 0x257   :  { %v5304_v49 = vpop.eup %5303  ;;  %5323 = vtanh.f32 %v1676_v55  ;;  %v1285_v47 = vadd.f32 %v1284_v1, %v6918_v35  ;;  %v1542_v39 = vadd.f32 %v1541_v10, %v6530_v45  ;;  %v1932_v59 = vmul.f32 0.5, %v1536_v21 }
 0x258   :  { %v5306_v18 = vpop.eup %5305  ;;  %v2120_v51 = vmul.f32 %v5296_v3, %v1896_v9  ;;  %v1769_v44 = vmul.f32 0.5, %v1737_v48  ;;  %v1865_v11 = vadd.f32 1.0, %v5304_v49  ;;  %v7018_v12 = vpop.f32.mrb[90].mxu0  ;;  %5325 = vtanh.f32 %v1538_v28 }
 0x259   :  { %v7020_v58 = vpop.f32.mrb[90].mxu1  ;;  %v5308_v13 = vpop.eup %5307  ;;  %v1677_v5 = vmul.f32 0.5, %v1285_v47  ;;  %5327 = vtanh.f32 %v1804_v40  ;;  %v1287_v15 = vadd.f32 %v6993_v32, %v6528_v42 }
 0x25a   :  { %v7025_v26 = vpop.f32.mrb[91].mxu0  ;;  %v7027_v6 = vpop.f32.mrb[91].mxu1  ;;  %v7029_v3 = vadd.f32 %v2120_v51, %v2088_v41  ;;  %v2089_v31 = vmul.f32 %v1769_v44, %v6606_v8  ;;  %v1897_v9 = vmul.f32 0.5, %v1865_v11  ;;  %v1738_v48 = vadd.f32 1.0, %v5308_v13 }
 0x25b   :  { %v5310_v49 = vpop.eup %5309  ;;  %v7039_v8 = vmul.f32 0.5, %v1987_v4  ;;  %5329 = vtanh.f32 %v6957_v23  ;;  %v1933_v44 = vmul.f32 0.5, %v1542_v39  ;;  %v7051_v4 = vmul.f32 0.5, %v1988_v22 }
 0x25c   :  { %8844 = vst [vmem:[#allocation46_spill] sm:$0xff] %v7029_v3  ;;  %v7033_v55 = vpop.eup %5311  ;;  %v2121_v1 = vmul.f32 %v5306_v18, %v1897_v9  ;;  %v1770_v10 = vmul.f32 0.5, %v1738_v48  ;;  %v1866_v7 = vadd.f32 1.0, %v5310_v49  ;;  %v7035_v36 = vpop.f32.mrb[92].mxu0  ;;  %5331 = vtanh.f32 %v1677_v5 }
 0x25d   :  { %v7037_v41 = vpop.f32.mrb[92].mxu1  ;;  %v5314_v51 = vpop.eup %5313  ;;  %v1805_v48 = vmul.f32 0.5, %v1287_v15  ;;  %v1291_v39 = vadd.f32 %v7001_v24, %v6918_v35  ;;  %5333 = vtanh.f32 %v1932_v59  ;;  %v1548_v5 = vadd.f32 %v7003_v0, %v6530_v45 }
 0x25e   :  { %v7044_v21 = vpop.f32.mrb[93].mxu0  ;;  %v7046_v28 = vpop.f32.mrb[93].mxu1  ;;  %v7048_v11 = vadd.f32 %v2121_v1, %v2089_v31  ;;  %v2090_v40 = vmul.f32 %v1770_v10, %v6617_v33  ;;  %v1898_v13 = vmul.f32 0.5, %v1866_v7  ;;  %v1739_v47 = vadd.f32 1.0, %v5314_v51 }
 0x25f   :  { %v5316_v18 = vpop.eup %5315  ;;  %5335 = vtanh.f32 %v1805_v48  ;;  %v1544_v7 = vadd.f32 %v6995_v34, %v6532_v46  ;;  %v1678_v22 = vmul.f32 0.5, %v1291_v39  ;;  %v1934_v34 = vmul.f32 0.5, %v1548_v5 }
 0x260   :  { %8845 = vst [vmem:[#allocation47_spill] sm:$0xff] %v7048_v11  ;;  %v5318_v9 = vpop.eup %5317  ;;  %v2122_v49 = vmul.f32 %v5316_v18, %v1898_v13  ;;  %v1771_v23 = vmul.f32 0.5, %v1739_v47  ;;  %v7057_v31 = vpop.f32.mrb[94].mxu0  ;;  %5337 = vtanh.f32 %v1933_v44  ;;  %v1989_v13 = vadd.f32 1.0, %v6955_v17 }
 0x261   :  { %v7055_v32 = vpop.eup %5319  ;;  %v1867_v62 = vadd.f32 1.0, %v5318_v9  ;;  %v7059_v1 = vpop.f32.mrb[94].mxu1  ;;  %5339 = vtanh.f32 %v6964_v37  ;;  %v1293_v47 = vadd.f32 %v7007_v2, %v6528_v42  ;;  %v1554_v17 = vadd.f32 %v7020_v58, %v6530_v45 }
 0x262   :  { %v5322_v33 = vpop.eup %5321  ;;  %v7065_v24 = vpop.f32.mrb[95].mxu0  ;;  %v7069_v51 = vadd.f32 %v2122_v49, %v2090_v40  ;;  %v2091_v59 = vmul.f32 %v1771_v23, %v6628_v63  ;;  %5341 = vtanh.f32 %v1678_v22  ;;  %v1297_v40 = vadd.f32 %v7018_v12, %v6918_v35 }
 0x263   :  { %v7067_v10 = vpop.f32.mrb[95].mxu1  ;;  %v1899_v15 = vmul.f32 0.5, %v1867_v62  ;;  %v5324_v18 = vpop.eup %5323  ;;  %5343 = vtanh.f32 %v1544_v7  ;;  %v1806_v23 = vmul.f32 0.5, %v1293_v47  ;;  %v1299_v44 = vadd.f32 %v7025_v26, %v6528_v42 }
 0x264   :  { %8846 = vst [vmem:[#allocation48_spill] sm:$0xff] %v7069_v51  ;;  %v1740_v9 = vadd.f32 1.0, %v5324_v18  ;;  %v7078_v48 = vpop.f32.mrb[96].mxu0  ;;  %v7080_v63 = vpop.f32.mrb[96].mxu1  ;;  %5345 = vtanh.f32 %v1934_v34  ;;  %v1550_v22 = vadd.f32 %v7009_v43, %v6532_v46  ;;  %v7094_v5 = vmul.f32 0.5, %v1989_v13 }
 0x265   :  { %v2123_v0 = vmul.f32 %v5322_v33, %v1899_v15  ;;  %v5326_v62 = vpop.eup %5325  ;;  %v7086_v2 = vpop.f32.mrb[97].mxu0  ;;  %5347 = vtanh.f32 %v1806_v23  ;;  %v1679_v58 = vmul.f32 0.5, %v1297_v40  ;;  %v1990_v26 = vadd.f32 1.0, %v6962_v61 }
 0x266   :  { %v7088_v39 = vpop.f32.mrb[97].mxu1  ;;  %v5328_v49 = vpop.eup %5327  ;;  %v1772_v12 = vmul.f32 0.5, %v1740_v9  ;;  %5349 = vtanh.f32 %v6972_v16  ;;  %v1935_v47 = vmul.f32 0.5, %v1554_v17  ;;  %v1807_v13 = vmul.f32 0.5, %v1299_v44 }
 0x267   :  { %v7090_v33 = vadd.f32 %v2123_v0, %v2091_v59  ;;  %v5330_v7 = vpop.eup %5329  ;;  %v1868_v15 = vadd.f32 1.0, %v5328_v49  ;;  %5351 = vtanh.f32 %v1679_v58  ;;  %v1303_v23 = vadd.f32 %v7035_v36, %v6918_v35 }
 0x268   :  { %v2211_v18 = vmul.f32 %v5330_v7, %v7039_v8  ;;  %v7099_v59 = vpop.f32.mrb[98].mxu0  ;;  %v7101_v0 = vpop.f32.mrb[98].mxu1  ;;  %v2092_v43 = vmul.f32 %v1772_v12, %v6639_v25  ;;  %5353 = vtanh.f32 %v1550_v22  ;;  %v1560_v25 = vadd.f32 %v7037_v41, %v6530_v45 }
 0x269   :  { %8847 = vst [vmem:[#allocation49_spill] sm:$0xff] %v7090_v33  ;;  %v5332_v34 = vpop.eup %5331  ;;  %v1900_v9 = vmul.f32 0.5, %v1868_v15  ;;  %v7104_v49 = vpop.f32.mrb[99].mxu0  ;;  %5355 = vtanh.f32 %v1807_v13  ;;  %v1556_v44 = vadd.f32 %v7027_v6, %v6532_v46  ;;  %v1305_v7 = vadd.f32 %v7044_v21, %v6528_v42 }
 0x26a   :  { %v7106_v40 = vpop.f32.mrb[99].mxu1  ;;  %v7108_v61 = vpop.eup %5333  ;;  %2244 = vst [vmem:[#allocation2 + $0x108] sm:$0xff] %v2211_v18  ;;  %2425 = vmatmul.mubr.f32.gmra.mrb[130].mxu0 %v2211_v18  ;;  %2682 = vmatmul.mubr.f32.gmra.mrb[130].mxu1 %v2211_v18  ;;  %v1741_v8 = vadd.f32 1.0, %v5332_v34  ;;  %5357 = vtanh.f32 %v1935_v47  ;;  %v1680_v58 = vmul.f32 0.5, %v1303_v23  ;;  %v7126_v34 = vmul.f32 0.5, %v1990_v26 }
 0x26b   :  { %v5336_v17 = vpop.eup %5335  ;;  %v2124_v12 = vmul.f32 %v5326_v62, %v1900_v9  ;;  %2430 = vmatprep.mubr.f32.mxu0 %v8843_v38  ;;  %2687 = vmatprep.mubr.f32.mxu1 %v8843_v38  ;;  %5359 = vtanh.f32 %v6983_v29  ;;  %v1936_v6 = vmul.f32 0.5, %v1560_v25  ;;  %v1808_v26 = vmul.f32 0.5, %v1305_v7 }
 0x26c   :  { %v7120_v22 = vpop.eup %5337  ;;  %v1773_v15 = vmul.f32 0.5, %v1741_v8  ;;  %v1869_v36 = vadd.f32 1.0, %v5336_v17  ;;  %v7122_v41 = vpop.f32.mrb[100].mxu0  ;;  %5361 = vtanh.f32 %v1680_v58  ;;  %v1991_v25 = vadd.f32 1.0, %v6979_v57 }
 0x26d   :  { %8848 = vst [vmem:[#allocation50_spill] sm:$0xff] %v7120_v22  ;;  %v7124_v62 = vpop.f32.mrb[100].mxu1  ;;  %v5340_v18 = vpop.eup %5339  ;;  %v7128_v9 = vadd.f32 %v2124_v12, %v2092_v43  ;;  %5363 = vtanh.f32 %v1556_v44  ;;  %v1562_v43 = vadd.f32 %v7046_v28, %v6532_v46  ;;  %v1311_v57 = vadd.f32 %v7065_v24, %v6528_v42 }
 0x26e   :  { %v7131_v13 = vpop.f32.mrb[101].mxu0  ;;  %v7133_v21 = vpop.f32.mrb[101].mxu1  ;;  %v2093_v47 = vmul.f32 %v1773_v15, %v6650_v56  ;;  %v1901_v23 = vmul.f32 0.5, %v1869_v36  ;;  %v2212_v17 = vmul.f32 %v5340_v18, %v7051_v4  ;;  %5365 = vtanh.f32 %v6997_v50 }
 0x26f   :  { %8849 = vst [vmem:[#allocation51_spill] sm:$0xff] %v7128_v9  ;;  %v5342_v8 = vpop.eup %5341  ;;  %v1309_v56 = vadd.f32 %v7057_v31, %v6918_v35  ;;  %5367 = vtanh.f32 %v1808_v26  ;;  %v1992_v58 = vadd.f32 1.0, %v6988_v60  ;;  %v1809_v27 = vmul.f32 0.5, %v1311_v57 }
 0x270   :  { %v5344_v16 = vpop.eup %5343  ;;  %v1742_v37 = vadd.f32 1.0, %v5342_v8  ;;  %2245 = vst [vmem:[#allocation2 + $0x110] sm:$0xff] %v2212_v17  ;;  %2431 = vmatmul.mubr.f32.gmra.mrb[132].mxu0 %v2212_v17  ;;  %2688 = vmatmul.mubr.f32.gmra.mrb[132].mxu1 %v2212_v17  ;;  %v7145_v4 = vpop.f32.mrb[102].mxu0  ;;  %5369 = vtanh.f32 %v1936_v6  ;;  %v1568_v60 = vadd.f32 %v7067_v10, %v6532_v46 }
 0x271   :  { %v7139_v12 = vpop.eup %5345  ;;  %v2125_v29 = vmul.f32 %v5344_v16, %v1901_v23  ;;  %v7147_v44 = vpop.f32.mrb[102].mxu1  ;;  %2436 = vmatprep.mubr.f32.mxu0 %v8843_v38  ;;  %2693 = vmatprep.mubr.f32.mxu1 %v8843_v38  ;;  %v1566_v16 = vadd.f32 %v7059_v1, %v6530_v45  ;;  %5371 = vtanh.f32 %v1562_v43  ;;  %v1681_v17 = vmul.f32 0.5, %v1309_v56 }
 0x272   :  { %8850 = vst [vmem:[#allocation52_spill] sm:$0xff] %v7139_v12  ;;  %v5348_v7 = vpop.eup %5347  ;;  %v1774_v15 = vmul.f32 0.5, %v1742_v37  ;;  %v7155_v28 = vpop.f32.mrb[103].mxu0 }
 0x273   :  { %v7157_v31 = vpop.f32.mrb[103].mxu1  ;;  %v5350_v36 = vpop.eup %5349  ;;  %v7160_v18 = vadd.f32 %v2125_v29, %v2093_v47  ;;  %v1870_v37 = vadd.f32 1.0, %v5348_v7  ;;  %v1937_v1 = vmul.f32 0.5, %v1566_v16  ;;  %5373 = vtanh.f32 %v1681_v17 }
 0x274   :  { %v5352_v8 = vpop.eup %5351  ;;  %v2213_v23 = vmul.f32 %v5350_v36, %v7094_v5  ;;  %v2094_v24 = vmul.f32 %v1774_v15, %v6661_v20  ;;  %v7164_v22 = vpop.f32.mrb[104].mxu0  ;;  %v1315_v5 = vadd.f32 %v7078_v48, %v6918_v35  ;;  %v1572_v20 = vadd.f32 %v7080_v63, %v6530_v45 }
 0x275   :  { %8851 = vst [vmem:[#allocation53_spill] sm:$0xff] %v7160_v18  ;;  %v5354_v26 = vpop.eup %5353  ;;  %v1902_v50 = vmul.f32 0.5, %v1870_v37  ;;  %v1743_v12 = vadd.f32 1.0, %v5352_v8  ;;  %v7166_v30 = vpop.f32.mrb[104].mxu1  ;;  %5375 = vtanh.f32 %v1937_v1  ;;  %v2023_v16 = vmul.f32 0.5, %v1991_v25 }
 0x276   :  { %v5356_v29 = vpop.eup %5355  ;;  %2246 = vst [vmem:[#allocation2 + $0x118] sm:$0xff] %v2213_v23  ;;  %2437 = vmatmul.mubr.f32.gmra.mrb[134].mxu0 %v2213_v23  ;;  %2694 = vmatmul.mubr.f32.gmra.mrb[134].mxu1 %v2213_v23  ;;  %v7174_v6 = vpop.f32.mrb[105].mxu0  ;;  %5377 = vtanh.f32 %v1809_v27  ;;  %v1682_v48 = vmul.f32 0.5, %v1315_v5  ;;  %v1938_v57 = vmul.f32 0.5, %v1572_v20  ;;  %v1317_v27 = vadd.f32 %v7086_v2, %v6528_v42 }
 0x277   :  { %v7176_v47 = vpop.f32.mrb[105].mxu1  ;;  %v7178_v43 = vpop.eup %5357  ;;  %v2126_v56 = vmul.f32 %v5354_v26, %v1902_v50  ;;  %v1775_v7 = vmul.f32 0.5, %v1743_v12  ;;  %v1871_v15 = vadd.f32 1.0, %v5356_v29  ;;  %2442 = vmatprep.mubr.f32.mxu0 %v8843_v38  ;;  %2699 = vmatprep.mubr.f32.mxu1 %v8843_v38  ;;  %v7190_v26 = vmul.f32 0.5, %v1992_v58 }
 0x278   :  { %v5360_v10 = vpop.eup %5359  ;;  %v7186_v12 = vpop.f32.mrb[106].mxu0  ;;  %5379 = vtanh.f32 %v1568_v60  ;;  %v1321_v58 = vadd.f32 %v7099_v59, %v6918_v35  ;;  %v1810_v20 = vmul.f32 0.5, %v1317_v27  ;;  %v1584_v27 = vadd.f32 %v7124_v62, %v6530_v45 }
 0x279   :  { %v5362_v63 = vpop.eup %5361  ;;  %v7182_v36 = vadd.f32 %v2126_v56, %v2094_v24  ;;  %v2095_v37 = vmul.f32 %v1775_v7, %v6672_v54  ;;  %v1903_v8 = vmul.f32 0.5, %v1871_v15  ;;  %v2214_v50 = vmul.f32 %v5360_v10, %v7126_v34  ;;  %v7188_v23 = vpop.f32.mrb[106].mxu1 }
 0x27a   :  { %v5364_v17 = vpop.eup %5363  ;;  %v1744_v1 = vadd.f32 1.0, %v5362_v63  ;;  %v7194_v25 = vpop.f32.mrb[107].mxu0  ;;  %5381 = vtanh.f32 %v7029_v3  ;;  %v1574_v34 = vadd.f32 %v7088_v39, %v6532_v46  ;;  %v1993_v7 = vadd.f32 1.0, %v7011_v52 }
 0x27b   :  { %8852 = vst [vmem:[#allocation54_spill] sm:$0xff] %v7182_v36  ;;  %v7196_v24 = vpop.f32.mrb[107].mxu1  ;;  %v5366_v54 = vpop.eup %5365  ;;  %v2127_v29 = vmul.f32 %v5364_v17, %v1903_v8  ;;  %2247 = vst [vmem:[#allocation2 + $0x120] sm:$0xff] %v2214_v50  ;;  %2443 = vmatmul.mubr.f32.gmra.mrb[136].mxu0 %v2214_v50  ;;  %2700 = vmatmul.mubr.f32.gmra.mrb[136].mxu1 %v2214_v50  ;;  %5383 = vtanh.f32 %v1682_v48  ;;  %v1578_v48 = vadd.f32 %v7101_v0, %v6530_v45 }
 0x27c   :  { %v5368_v60 = vpop.eup %5367  ;;  %v1776_v5 = vmul.f32 0.5, %v1744_v1  ;;  %2448 = vmatprep.mubr.f32.mxu0 %v8843_v38  ;;  %2705 = vmatprep.mubr.f32.mxu1 %v8843_v38  ;;  %v2215_v2 = vmul.f32 %v5366_v54, %v2023_v16  ;;  %5385 = vtanh.f32 %v1938_v57  ;;  %v7210_v39 = vpop.f32.mrb[108].mxu0  ;;  %v1683_v16 = vmul.f32 0.5, %v1321_v58 }
 0x27d   :  { %v7205_v56 = vpop.eup %5369  ;;  %v7208_v15 = vadd.f32 %v2127_v29, %v2095_v37  ;;  %v1872_v10 = vadd.f32 1.0, %v5368_v60  ;;  %v7212_v59 = vpop.f32.mrb[108].mxu1  ;;  %5387 = vtanh.f32 %v1810_v20  ;;  %v1323_v57 = vadd.f32 %v7104_v49, %v6528_v42 }
 0x27e   :  { %v5372_v63 = vpop.eup %5371  ;;  %v2096_v8 = vmul.f32 %v1776_v5, %v6683_v14  ;;  %2248 = vst [vmem:[#allocation2 + $0x128] sm:$0xff] %v2215_v2  ;;  %v7217_v50 = vpop.f32.mrb[109].mxu0  ;;  %5389 = vtanh.f32 %v1574_v34  ;;  %v1580_v14 = vadd.f32 %v7106_v40, %v6532_v46  ;;  %v1939_v0 = vmul.f32 0.5, %v1578_v48 }
 0x27f   :  { %8853 = vst [vmem:[#allocation55_spill] sm:$0xff] %v7208_v15  ;;  %v7219_v52 = vpop.f32.mrb[109].mxu1  ;;  %v1904_v37 = vmul.f32 0.5, %v1872_v10  ;;  %2449 = vmatmul.mubr.f32.gmra.mrb[138].mxu0 %v2215_v2  ;;  %2706 = vmatmul.mubr.f32.gmra.mrb[138].mxu1 %v2215_v2  ;;  %v5374_v17 = vpop.eup %5373  ;;  %5391 = vtanh.f32 %v7048_v11  ;;  %v1327_v1 = vadd.f32 %v7122_v41, %v6918_v35  ;;  %v1811_v40 = vmul.f32 0.5, %v1323_v57 }
 0x280   :  { %2454 = vmatprep.mubr.f32.mxu0 %v8843_v38  ;;  %2711 = vmatprep.mubr.f32.mxu1 %v8843_v38  ;;  %v7232_v54 = vpop.eup %5375  ;;  %v1745_v29 = vadd.f32 1.0, %v5374_v17  ;;  %5393 = vtanh.f32 %v1683_v16  ;;  %v7234_v34 = vpop.f32.mrb[110].mxu0  ;;  %v2025_v5 = vmul.f32 0.5, %v1993_v7  ;;  %v1940_v20 = vmul.f32 0.5, %v1584_v27 }
 0x281   :  { %v2128_v49 = vmul.f32 %v5372_v63, %v1904_v37  ;;  %v7236_v58 = vpop.f32.mrb[110].mxu1  ;;  %v5378_v60 = vpop.eup %5377  ;;  %5395 = vtanh.f32 %v1939_v0  ;;  %v1684_v2 = vmul.f32 0.5, %v1327_v1  ;;  %v1994_v37 = vadd.f32 1.0, %v7033_v55 }
 0x282   :  { %v7238_v10 = vpop.f32.mrb[111].mxu0  ;;  %v7240_v41 = vpop.f32.mrb[111].mxu1  ;;  %v1777_v48 = vmul.f32 0.5, %v1745_v29  ;;  %v1873_v63 = vadd.f32 1.0, %v5378_v60  ;;  %5397 = vtanh.f32 %v1811_v40  ;;  %v1329_v57 = vadd.f32 %v7131_v13, %v6528_v42 }
 0x283   :  { %v7242_v62 = vadd.f32 %v2128_v49, %v2096_v8  ;;  %v5380_v16 = vpop.eup %5379  ;;  %5399 = vtanh.f32 %v1580_v14  ;;  %v1586_v7 = vadd.f32 %v7133_v21, %v6532_v46  ;;  %v1333_v8 = vadd.f32 %v7145_v4, %v6918_v35 }
 0x284   :  { %v5382_v17 = vpop.eup %5381  ;;  %v2097_v0 = vmul.f32 %v1777_v48, %v6694_v53  ;;  %v1905_v1 = vmul.f32 0.5, %v1873_v63  ;;  %5401 = vtanh.f32 %v7069_v51  ;;  %v7253_v27 = vpop.f32.mrb[112].mxu0  ;;  %v1812_v13 = vmul.f32 0.5, %v1329_v57 }
 0x285   :  { %8854 = vst [vmem:[#allocation56_spill] sm:$0xff] %v7242_v62  ;;  %v7255_v49 = vpop.f32.mrb[112].mxu1  ;;  %v5384_v55 = vpop.eup %5383  ;;  %v2216_v14 = vmul.f32 %v5382_v17, %v7190_v26  ;;  %5403 = vtanh.f32 %v1684_v2  ;;  %v1590_v21 = vadd.f32 %v7147_v44, %v6530_v45  ;;  %v1685_v48 = vmul.f32 0.5, %v1333_v8 }
 0x286   :  { %v7260_v29 = vpop.f32.mrb[113].mxu0  ;;  %v7262_v53 = vpop.f32.mrb[113].mxu1  ;;  %v2129_v60 = vmul.f32 %v5380_v16, %v1905_v1  ;;  %v1746_v4 = vadd.f32 1.0, %v5384_v55  ;;  %5405 = vtanh.f32 %v1940_v20  ;;  %v2026_v51 = vmul.f32 0.5, %v1994_v37 }
 0x287   :  { %v7264_v40 = vpop.eup %5385  ;;  %2249 = vst [vmem:[#allocation2 + $0x130] sm:$0xff] %v2216_v14  ;;  %2455 = vmatmul.mubr.f32.gmra.mrb[140].mxu0 %v2216_v14  ;;  %2712 = vmatmul.mubr.f32.gmra.mrb[140].mxu1 %v2216_v14  ;;  %5407 = vtanh.f32 %v1812_v13  ;;  %v1941_v26 = vmul.f32 0.5, %v1590_v21  ;;  %v1335_v44 = vadd.f32 %v7155_v28, %v6528_v42  ;;  %v1995_v1 = vadd.f32 1.0, %v7055_v32 }
 0x288   :  { %v5388_v63 = vpop.eup %5387  ;;  %v7268_v57 = vadd.f32 %v2129_v60, %v2097_v0  ;;  %v1778_v17 = vmul.f32 0.5, %v1746_v4  ;;  %2460 = vmatprep.mubr.f32.mxu0 %v8843_v38  ;;  %2717 = vmatprep.mubr.f32.mxu1 %v8843_v38  ;;  %5409 = vtanh.f32 %v1586_v7  ;;  %v7272_v20 = vpop.f32.mrb[114].mxu0  ;;  %v1592_v0 = vadd.f32 %v7157_v31, %v6532_v46 }
 0x289   :  { %v5390_v2 = vpop.eup %5389  ;;  %v1874_v11 = vadd.f32 1.0, %v5388_v63  ;;  %v7274_v16 = vpop.f32.mrb[114].mxu1  ;;  %5411 = vtanh.f32 %v7090_v33  ;;  %v1813_v28 = vmul.f32 0.5, %v1335_v44  ;;  %v1339_v32 = vadd.f32 %v7164_v22, %v6918_v35 }
 0x28a   :  { %v5392_v37 = vpop.eup %5391  ;;  %v7280_v8 = vpop.f32.mrb[115].mxu0  ;;  %v2098_v7 = vmul.f32 %v1778_v17, %v6705_v19  ;;  %5413 = vtanh.f32 %v1685_v48  ;;  %v1596_v31 = vadd.f32 %v7166_v30, %v6530_v45  ;;  %v1996_v44 = vadd.f32 1.0, %v7108_v61 }
 0x28b   :  { %v7282_v55 = vpop.f32.mrb[115].mxu1  ;;  %v5394_v14 = vpop.eup %5393  ;;  %v1906_v13 = vmul.f32 0.5, %v1874_v11  ;;  %v2217_v21 = vmul.f32 %v5392_v37, %v2025_v5  ;;  %5415 = vtanh.f32 %v1941_v26  ;;  %v1341_v19 = vadd.f32 %v7174_v6, %v6528_v42 }
 0x28c   :  { %v7285_v60 = vpop.eup %5395  ;;  %v1747_v4 = vadd.f32 1.0, %v5394_v14  ;;  %5417 = vtanh.f32 %v1813_v28  ;;  %v7294_v11 = vpop.f32.mrb[116].mxu0  ;;  %v1686_v30 = vmul.f32 0.5, %v1339_v32  ;;  %v2027_v37 = vmul.f32 0.5, %v1995_v1 }
 0x28d   :  { %8855 = vst [vmem:[#allocation57_spill] sm:$0xff] %v7285_v60  ;;  %v5398_v63 = vpop.eup %5397  ;;  %v2130_v33 = vmul.f32 %v5390_v2, %v1906_v13  ;;  %2250 = vst [vmem:[#allocation2 + $0x138] sm:$0xff] %v2217_v21  ;;  %2461 = vmatmul.mubr.f32.gmra.mrb[142].mxu0 %v2217_v21  ;;  %2718 = vmatmul.mubr.f32.gmra.mrb[142].mxu1 %v2217_v21  ;;  %v7296_v5 = vpop.f32.mrb[116].mxu1  ;;  %5419 = vtanh.f32 %v1592_v0  ;;  %v1942_v28 = vmul.f32 0.5, %v1596_v31  ;;  %v8856_v13 = vld [vmem:[#allocation25_spill] sm:$0xff]  ;;  %v1814_v32 = vmul.f32 0.5, %v1341_v19 }
 0x28e   :  { %v5400_v48 = vpop.eup %5399  ;;  %v1779_v22 = vmul.f32 0.5, %v1747_v4  ;;  %v1875_v26 = vadd.f32 1.0, %v5398_v63  ;;  %2466 = vmatprep.mubr.f32.mxu0 %v8843_v38  ;;  %2723 = vmatprep.mubr.f32.mxu1 %v8843_v38  ;;  %v7300_v61 = vpop.f32.mrb[117].mxu0  ;;  %5421 = vtanh.f32 %v7128_v9  ;;  %v1598_v60 = vadd.f32 %v7176_v47, %v6532_v46 }
 0x28f   :  { %v7302_v2 = vpop.f32.mrb[117].mxu1  ;;  %v5402_v17 = vpop.eup %5401  ;;  %v7304_v6 = vadd.f32 %v2130_v33, %v2098_v7  ;;  %5423 = vtanh.f32 %v1686_v30  ;;  %v2028_v31 = vmul.f32 0.5, %v1996_v44  ;;  %v1602_v44 = vadd.f32 %v7188_v23, %v6530_v45 }
 0x290   :  { %v5404_v14 = vpop.eup %5403  ;;  %v2099_v21 = vmul.f32 %v1779_v22, %v8856_v13  ;;  %v1907_v4 = vmul.f32 0.5, %v1875_v26  ;;  %v2218_v63 = vmul.f32 %v5402_v17, %v2026_v51  ;;  %5425 = vtanh.f32 %v1942_v28  ;;  %v7312_v1 = vpop.f32.mrb[118].mxu0  ;;  %v8859_v17 = vld [vmem:[#allocation50_spill] sm:$0xff] }
 0x291   :  { %v7308_v3 = vpop.eup %5405  ;;  %v1748_v0 = vadd.f32 1.0, %v5404_v14  ;;  %v7314_v33 = vpop.f32.mrb[118].mxu1  ;;  %5427 = vtanh.f32 %v7160_v18  ;;  %v1345_v51 = vadd.f32 %v7186_v12, %v6918_v35  ;;  %v1997_v28 = vadd.f32 1.0, %v8859_v17 }
 0x292   :  { %8857 = vst [vmem:[#allocation25_spill] sm:$0xff] %v7308_v3  ;;  %v5408_v7 = vpop.eup %5407  ;;  %v2131_v9 = vmul.f32 %v5400_v48, %v1907_v4  ;;  %2251 = vst [vmem:[#allocation2 + $0x140] sm:$0xff] %v2218_v63  ;;  %2467 = vmatmul.mubr.f32.gmra.mrb[144].mxu0 %v2218_v63  ;;  %2724 = vmatmul.mubr.f32.gmra.mrb[144].mxu1 %v2218_v63  ;;  %v7319_v22 = vpop.f32.mrb[119].mxu0  ;;  %5429 = vtanh.f32 %v1814_v32  ;;  %v8860_v4 = vld [vmem:[#allocation26_spill] sm:$0xff]  ;;  %v1943_v18 = vmul.f32 0.5, %v1602_v44 }
 0x293   :  { %v7321_v19 = vpop.f32.mrb[119].mxu1  ;;  %v5410_v47 = vpop.eup %5409  ;;  %v1780_v26 = vmul.f32 0.5, %v1748_v0  ;;  %v1876_v30 = vadd.f32 1.0, %v5408_v7  ;;  %2472 = vmatprep.mubr.f32.mxu0 %v8843_v38  ;;  %2729 = vmatprep.mubr.f32.mxu1 %v8843_v38  ;;  %5431 = vtanh.f32 %v1598_v60  ;;  %v1687_v12 = vmul.f32 0.5, %v1345_v51 }
 0x294   :  { %8858 = vst [vmem:[#allocation58_spill] sm:$0xff] %v7321_v19  ;;  %v5412_v48 = vpop.eup %5411  ;;  %v7328_v14 = vadd.f32 %v2131_v9, %v2099_v21  ;;  %v7331_v19 = vpop.f32.mrb[120].mxu0  ;;  %v1347_v9 = vadd.f32 %v7194_v25, %v6528_v42  ;;  %v1604_v60 = vadd.f32 %v7196_v24, %v6532_v46 }
 0x295   :  { %v5414_v13 = vpop.eup %5413  ;;  %v2100_v63 = vmul.f32 %v1780_v26, %v8860_v4  ;;  %v1908_v0 = vmul.f32 0.5, %v1876_v30  ;;  %v2219_v7 = vmul.f32 %v5412_v48, %v2027_v37  ;;  %v7333_v3 = vpop.f32.mrb[120].mxu1  ;;  %5433 = vtanh.f32 %v1687_v12  ;;  %v8863_v26 = vld [vmem:[#allocation52_spill] sm:$0xff] }
 0x296   :  { %v7335_v32 = vpop.eup %5415  ;;  %v1749_v23 = vadd.f32 1.0, %v5414_v13  ;;  %v7341_v21 = vpop.f32.mrb[121].mxu0  ;;  %v1998_v30 = vadd.f32 1.0, %v8863_v26  ;;  %5435 = vtanh.f32 %v1943_v18  ;;  %v1351_v48 = vadd.f32 %v7210_v39, %v6918_v35 }
 0x297   :  { %8861 = vst [vmem:[#allocation50_spill] sm:$0xff] %v7335_v32  ;;  %v7343_v51 = vpop.f32.mrb[121].mxu1  ;;  %v5418_v37 = vpop.eup %5417  ;;  %v2132_v44 = vmul.f32 %v5410_v47, %v1908_v0  ;;  %2252 = vst [vmem:[#allocation2 + $0x148] sm:$0xff] %v2219_v7  ;;  %2473 = vmatmul.mubr.f32.gmra.mrb[146].mxu0 %v2219_v7  ;;  %2730 = vmatmul.mubr.f32.gmra.mrb[146].mxu1 %v2219_v7  ;;  %v1815_v24 = vmul.f32 0.5, %v1347_v9  ;;  %5437 = vtanh.f32 %v1604_v60  ;;  %v2029_v4 = vmul.f32 0.5, %v1997_v28  ;;  %v8864_v7 = vld [vmem:[#allocation27_spill] sm:$0xff] }
 0x298   :  { %8862 = vst [vmem:[#allocation26_spill] sm:$0xff] %v7343_v51  ;;  %v5420_v17 = vpop.eup %5419  ;;  %v1781_v25 = vmul.f32 0.5, %v1749_v23  ;;  %v1877_v12 = vadd.f32 1.0, %v5418_v37  ;;  %2478 = vmatprep.mubr.f32.mxu0 %v8843_v38  ;;  %2735 = vmatprep.mubr.f32.mxu1 %v8843_v38  ;;  %5439 = vtanh.f32 %v7182_v36  ;;  %v1688_v47 = vmul.f32 0.5, %v1351_v48  ;;  %v7353_v18 = vpop.f32.mrb[122].mxu0 }
 0x299   :  { %v5422_v13 = vpop.eup %5421  ;;  %v7350_v26 = vadd.f32 %v2132_v44, %v2100_v63  ;;  %v7355_v0 = vpop.f32.mrb[122].mxu1  ;;  %5441 = vtanh.f32 %v1815_v24  ;;  %v1608_v60 = vadd.f32 %v7212_v59, %v6530_v45  ;;  %v1353_v44 = vadd.f32 %v7217_v50, %v6528_v42 }
 0x29a   :  { %v5424_v39 = vpop.eup %5423  ;;  %v2101_v23 = vmul.f32 %v1781_v25, %v8864_v7  ;;  %v1909_v37 = vmul.f32 0.5, %v1877_v12  ;;  %v2220_v32 = vmul.f32 %v5422_v13, %v2028_v31  ;;  %v7358_v51 = vpop.f32.mrb[123].mxu0  ;;  %5443 = vtanh.f32 %v1688_v47 }
 0x29b   :  { %v7360_v9 = vpop.f32.mrb[123].mxu1  ;;  %v7362_v28 = vpop.eup %5425  ;;  %v1750_v63 = vadd.f32 1.0, %v5424_v39  ;;  %v2030_v36 = vmul.f32 0.5, %v1998_v30  ;;  %v1610_v31 = vadd.f32 %v7219_v52, %v6532_v46  ;;  %5445 = vtanh.f32 %v7208_v15 }
 0x29c   :  { %v5428_v48 = vpop.eup %5427  ;;  %v2133_v25 = vmul.f32 %v5420_v17, %v1909_v37  ;;  %2253 = vst [vmem:[#allocation2 + $0x150] sm:$0xff] %v2220_v32  ;;  %2479 = vmatmul.mubr.f32.gmra.mrb[148].mxu0 %v2220_v32  ;;  %2736 = vmatmul.mubr.f32.gmra.mrb[148].mxu1 %v2220_v32  ;;  %v1944_v13 = vmul.f32 0.5, %v1608_v60  ;;  %v1816_v50 = vmul.f32 0.5, %v1353_v44  ;;  %v7373_v47 = vpop.f32.mrb[124].mxu0  ;;  %v1999_v32 = vadd.f32 1.0, %v7178_v43 }
 0x29d   :  { %v5430_v12 = vpop.eup %5429  ;;  %v1782_v24 = vmul.f32 0.5, %v1750_v63  ;;  %2484 = vmatprep.mubr.f32.mxu0 %v8843_v38  ;;  %2741 = vmatprep.mubr.f32.mxu1 %v8843_v38  ;;  %v2221_v59 = vmul.f32 %v5428_v48, %v2029_v4  ;;  %v7375_v30 = vpop.f32.mrb[124].mxu1  ;;  %5447 = vtanh.f32 %v1610_v31  ;;  %v8865_v63 = vld [vmem:[#allocation28_spill] sm:$0xff]  ;;  %v1357_v4 = vadd.f32 %v7234_v34, %v6918_v35 }
 0x29e   :  { %v5432_v17 = vpop.eup %5431  ;;  %v7378_v39 = vadd.f32 %v2133_v25, %v2101_v23  ;;  %v1878_v52 = vadd.f32 1.0, %v5430_v12  ;;  %v7380_v7 = vpop.f32.mrb[125].mxu0  ;;  %5449 = vtanh.f32 %v1944_v13  ;;  %v1614_v60 = vadd.f32 %v7236_v58, %v6530_v45 }
 0x29f   :  { %v7382_v37 = vpop.f32.mrb[125].mxu1  ;;  %v2102_v15 = vmul.f32 %v1782_v24, %v8865_v63  ;;  %2254 = vst [vmem:[#allocation2 + $0x158] sm:$0xff] %v2221_v59  ;;  %v5434_v44 = vpop.eup %5433  ;;  %5451 = vtanh.f32 %v1816_v50  ;;  %v1359_v23 = vadd.f32 %v7238_v10, %v6528_v42  ;;  %v1616_v48 = vadd.f32 %v7240_v41, %v6532_v46 }
 0x2a0   :  { %v1910_v43 = vmul.f32 0.5, %v1878_v52  ;;  %2485 = vmatmul.mubr.f32.gmra.mrb[150].mxu0 %v2221_v59  ;;  %2742 = vmatmul.mubr.f32.gmra.mrb[150].mxu1 %v2221_v59  ;;  %v7393_v25 = vpop.eup %5435  ;;  %v1751_v31 = vadd.f32 1.0, %v5434_v44  ;;  %v1689_v34 = vmul.f32 0.5, %v1357_v4  ;;  %v1945_v58 = vmul.f32 0.5, %v1614_v60  ;;  %v7398_v12 = vpop.f32.mrb[126].mxu0 }
 0x2a1   :  { %8866 = vst [vmem:[#allocation52_spill] sm:$0xff] %v7393_v25  ;;  %2490 = vmatprep.mubr.f32.mxu0 %v8843_v38  ;;  %2747 = vmatprep.mubr.f32.mxu1 %v8843_v38  ;;  %5453 = vtanh.f32 %v7242_v62  ;;  %v7400_v24 = vpop.f32.mrb[126].mxu1  ;;  %v5438_v59 = vpop.eup %5437  ;;  %v2031_v10 = vmul.f32 0.5, %v1999_v32  ;;  %v1817_v50 = vmul.f32 0.5, %v1359_v23  ;;  %v1363_v4 = vadd.f32 %v7253_v27, %v6918_v35 }
 0x2a2   :  { %8867 = vst [vmem:[#allocation27_spill] sm:$0xff] %v7400_v24  ;;  %v2134_v13 = vmul.f32 %v5432_v17, %v1910_v43  ;;  %5455 = vtanh.f32 %v1616_v48  ;;  %v7402_v41 = vpop.f32.mrb[127].mxu0  ;;  %v7404_v52 = vpop.f32.mrb[127].mxu1  ;;  %v1783_v44 = vmul.f32 0.5, %v1751_v31  ;;  %v1620_v60 = vadd.f32 %v7255_v49, %v6530_v45 }
 0x2a3   :  { %8868 = vst [vmem:[#allocation28_spill] sm:$0xff] %v7404_v52  ;;  %v5440_v63 = vpop.eup %5439  ;;  %5457 = vtanh.f32 %v1689_v34  ;;  %v2000_v24 = vadd.f32 1.0, %v7205_v56  ;;  %v2001_v23 = vadd.f32 1.0, %v7232_v54  ;;  %v1690_v31 = vmul.f32 0.5, %v1363_v4  ;;  %v8869_v52 = vld [vmem:[#allocation29_spill] sm:$0xff] }
 0x2a4   :  { %v5442_v62 = vpop.eup %5441  ;;  %v7411_v32 = vadd.f32 %v2134_v13, %v2102_v15  ;;  %v2222_v17 = vmul.f32 %v5440_v63, %v2030_v36  ;;  %5459 = vtanh.f32 %v1945_v58  ;;  %v2103_v25 = vmul.f32 %v1783_v44, %v8869_v52 }
 0x2a5   :  { %v5444_v43 = vpop.eup %5443  ;;  %v1879_v48 = vadd.f32 1.0, %v5442_v62  ;;  %5461 = vtanh.f32 %v1817_v50  ;;  %v1946_v49 = vmul.f32 0.5, %v1620_v60  ;;  %v1365_v56 = vadd.f32 %v7260_v29, %v6528_v42 }
 0x2a6   :  { %v5446_v34 = vpop.eup %5445  ;;  %2255 = vst [vmem:[#allocation2 + $0x160] sm:$0xff] %v2222_v17  ;;  %2491 = vmatmul.mubr.f32.gmra.mrb[152].mxu0 %v2222_v17  ;;  %2748 = vmatmul.mubr.f32.gmra.mrb[152].mxu1 %v2222_v17  ;;  %v1752_v27 = vadd.f32 1.0, %v5444_v43  ;;  %5463 = vtanh.f32 %v1690_v31  ;;  %v1369_v54 = vadd.f32 %v7272_v20, %v6918_v35  ;;  %v1622_v50 = vadd.f32 %v7262_v53, %v6532_v46  ;;  %v8870_v31 = vld [vmem:[#allocation30_spill] sm:$0xff] }
 0x2a7   :  { %v1911_v15 = vmul.f32 0.5, %v1879_v48  ;;  %2496 = vmatprep.mubr.f32.mxu0 %v8843_v38  ;;  %2753 = vmatprep.mubr.f32.mxu1 %v8843_v38  ;;  %v2223_v36 = vmul.f32 %v5446_v34, %v2031_v10  ;;  %v5448_v62 = vpop.eup %5447  ;;  %v1818_v13 = vmul.f32 0.5, %v1365_v56  ;;  %v1626_v52 = vadd.f32 %v7274_v16, %v6530_v45 }
 0x2a8   :  { %v1784_v58 = vmul.f32 0.5, %v1752_v27  ;;  %v7425_v29 = vpop.eup %5449  ;;  %5465 = vtanh.f32 %v1946_v49  ;;  %v1691_v44 = vmul.f32 0.5, %v1369_v54  ;;  %v1371_v10 = vadd.f32 %v7280_v8, %v6528_v42 }
 0x2a9   :  { %v2135_v63 = vmul.f32 %v5438_v59, %v1911_v15  ;;  %2256 = vst [vmem:[#allocation2 + $0x168] sm:$0xff] %v2223_v36  ;;  %v5452_v4 = vpop.eup %5451  ;;  %v2032_v20 = vmul.f32 0.5, %v2000_v24  ;;  %5467 = vtanh.f32 %v1818_v13  ;;  %v1947_v60 = vmul.f32 0.5, %v1626_v52 }
 0x2aa   :  { %2497 = vmatmul.mubr.f32.gmra.mrb[154].mxu0 %v2223_v36  ;;  %2754 = vmatmul.mubr.f32.gmra.mrb[154].mxu1 %v2223_v36  ;;  %v1880_v43 = vadd.f32 1.0, %v5452_v4  ;;  %5469 = vtanh.f32 %v7268_v57  ;;  %v1819_v16 = vmul.f32 0.5, %v1371_v10  ;;  %v2033_v48 = vmul.f32 0.5, %v2001_v23 }
 0x2ab   :  { %v5454_v17 = vpop.eup %5453  ;;  %v7429_v53 = vadd.f32 %v2135_v63, %v2103_v25  ;;  %2502 = vmatprep.mubr.f32.mxu0 %v8843_v38  ;;  %2759 = vmatprep.mubr.f32.mxu1 %v8843_v38  ;;  %5471 = vtanh.f32 %v1691_v44  ;;  %v2104_v34 = vmul.f32 %v1784_v58, %v8870_v31  ;;  %v1375_v25 = vadd.f32 %v7294_v11, %v6918_v35 }
 0x2ac   :  { %v5456_v59 = vpop.eup %5455  ;;  %v2224_v8 = vmul.f32 %v5454_v17, %v2032_v20  ;;  %v1912_v27 = vmul.f32 0.5, %v1880_v43  ;;  %5473 = vtanh.f32 %v1622_v50  ;;  %v1628_v23 = vadd.f32 %v7282_v55, %v6532_v46  ;;  %v8872_v17 = vld [vmem:[#allocation57_spill] sm:$0xff] }
 0x2ad   :  { %v5458_v24 = vpop.eup %5457  ;;  %5475 = vtanh.f32 %v1819_v16  ;;  %v1377_v15 = vadd.f32 %v7300_v61, %v6528_v42  ;;  %v2002_v54 = vadd.f32 1.0, %v7264_v40  ;;  %v1692_v11 = vmul.f32 0.5, %v1375_v25 }
 0x2ae   :  { %v7437_v49 = vpop.eup %5459  ;;  %v1753_v56 = vadd.f32 1.0, %v5458_v24  ;;  %2257 = vst [vmem:[#allocation2 + $0x170] sm:$0xff] %v2224_v8  ;;  %2503 = vmatmul.mubr.f32.gmra.mrb[156].mxu0 %v2224_v8  ;;  %2760 = vmatmul.mubr.f32.gmra.mrb[156].mxu1 %v2224_v8  ;;  %v2136_v58 = vmul.f32 %v5448_v62, %v1912_v27  ;;  %5477 = vtanh.f32 %v1947_v60  ;;  %v1632_v55 = vadd.f32 %v7296_v5, %v6530_v45  ;;  %v8871_v62 = vld [vmem:[#allocation31_spill] sm:$0xff] }
 0x2af   :  { %v5462_v36 = vpop.eup %5461  ;;  %2508 = vmatprep.mubr.f32.mxu0 %v8843_v38  ;;  %2765 = vmatprep.mubr.f32.mxu1 %v8843_v38  ;;  %5479 = vtanh.f32 %v7304_v6  ;;  %v1820_v61 = vmul.f32 0.5, %v1377_v15  ;;  %v1634_v40 = vadd.f32 %v7302_v2, %v6532_v46  ;;  %v2034_v60 = vmul.f32 0.5, %v2002_v54 }
 0x2b0   :  { %v1785_v13 = vmul.f32 0.5, %v1753_v56  ;;  %v1881_v50 = vadd.f32 1.0, %v5462_v36  ;;  %v5464_v52 = vpop.eup %5463  ;;  %v7449_v63 = vadd.f32 %v2136_v58, %v2104_v34  ;;  %5481 = vtanh.f32 %v1692_v11  ;;  %v8873_v36 = vld [vmem:[#allocation32_spill] sm:$0xff] }
 0x2b1   :  { %v1754_v4 = vadd.f32 1.0, %v5464_v52  ;;  %5483 = vtanh.f32 %v1628_v23  ;;  %v2003_v43 = vadd.f32 1.0, %v8872_v17  ;;  %v1381_v5 = vadd.f32 %v7312_v1, %v6918_v35 }
 0x2b2   :  { %v2105_v44 = vmul.f32 %v1785_v13, %v8871_v62  ;;  %v1913_v10 = vmul.f32 0.5, %v1881_v50  ;;  %v7454_v20 = vpop.eup %5465  ;;  %5485 = vtanh.f32 %v1820_v61  ;;  %v1948_v31 = vmul.f32 0.5, %v1632_v55  ;;  %v8874_v50 = vld [vmem:[#allocation25_spill] sm:$0xff] }
 0x2b3   :  { %v5468_v16 = vpop.eup %5467  ;;  %v1786_v24 = vmul.f32 0.5, %v1754_v4  ;;  %v1383_v2 = vadd.f32 %v7319_v22, %v6528_v42  ;;  %5487 = vtanh.f32 %v7328_v14  ;;  %v1693_v25 = vmul.f32 0.5, %v1381_v5 }
 0x2b4   :  { %v2137_v8 = vmul.f32 %v5456_v59, %v1913_v10  ;;  %v5470_v34 = vpop.eup %5469  ;;  %v1882_v27 = vadd.f32 1.0, %v5468_v16  ;;  %v1638_v56 = vadd.f32 %v7314_v33, %v6530_v45  ;;  %5489 = vtanh.f32 %v1634_v40  ;;  %v8875_v33 = vld [vmem:[#allocation58_spill] sm:$0xff] }
 0x2b5   :  { %v5472_v23 = vpop.eup %5471  ;;  %v2106_v1 = vmul.f32 %v1786_v24, %v8873_v36  ;;  %v2225_v54 = vmul.f32 %v5470_v34, %v2033_v48  ;;  %5491 = vtanh.f32 %v1693_v25  ;;  %v1821_v22 = vmul.f32 0.5, %v1383_v2 }
 0x2b6   :  { %v7464_v15 = vadd.f32 %v2137_v8, %v2105_v44  ;;  %v5474_v59 = vpop.eup %5473  ;;  %v1914_v58 = vmul.f32 0.5, %v1882_v27  ;;  %v1755_v11 = vadd.f32 1.0, %v5472_v23  ;;  %v2004_v55 = vadd.f32 1.0, %v8874_v50  ;;  %v8878_v50 = vld [vmem:[#allocation34_spill] sm:$0xff] }
 0x2b7   :  { %v5476_v13 = vpop.eup %5475  ;;  %2258 = vst [vmem:[#allocation2 + $0x178] sm:$0xff] %v2225_v54  ;;  %2509 = vmatmul.mubr.f32.gmra.mrb[158].mxu0 %v2225_v54  ;;  %2766 = vmatmul.mubr.f32.gmra.mrb[158].mxu1 %v2225_v54  ;;  %5493 = vtanh.f32 %v1948_v31  ;;  %v1640_v52 = vadd.f32 %v8875_v33, %v6532_v46  ;;  %v1387_v61 = vadd.f32 %v7331_v19, %v6918_v35  ;;  %v1949_v4 = vmul.f32 0.5, %v1638_v56  ;;  %v8876_v19 = vld [vmem:[#allocation33_spill] sm:$0xff] }
 0x2b8   :  { %v7472_v48 = vpop.eup %5477  ;;  %v2138_v40 = vmul.f32 %v5474_v59, %v1914_v58  ;;  %v1787_v62 = vmul.f32 0.5, %v1755_v11  ;;  %v1883_v44 = vadd.f32 1.0, %v5476_v13  ;;  %2514 = vmatprep.mubr.f32.mxu0 %v8843_v38  ;;  %2771 = vmatprep.mubr.f32.mxu1 %v8843_v38  ;;  %5495 = vtanh.f32 %v1821_v22 }
 0x2b9   :  { %v5480_v10 = vpop.eup %5479  ;;  %5497 = vtanh.f32 %v1640_v52  ;;  %v1694_v17 = vmul.f32 0.5, %v1387_v61  ;;  %v1644_v5 = vadd.f32 %v7333_v3, %v6530_v45  ;;  %v1389_v56 = vadd.f32 %v7341_v21, %v6528_v42  ;;  %v8877_v21 = vld [vmem:[#allocation26_spill] sm:$0xff] }
 0x2ba   :  { %v5482_v16 = vpop.eup %5481  ;;  %v7478_v8 = vadd.f32 %v2138_v40, %v2106_v1  ;;  %v2107_v24 = vmul.f32 %v1787_v62, %v8876_v19  ;;  %v1915_v31 = vmul.f32 0.5, %v1883_v44  ;;  %v2226_v2 = vmul.f32 %v5480_v10, %v2034_v60 }
 0x2bb   :  { %v5484_v34 = vpop.eup %5483  ;;  %v1756_v27 = vadd.f32 1.0, %v5482_v16  ;;  %5499 = vtanh.f32 %v7350_v26  ;;  %v1950_v25 = vmul.f32 0.5, %v1644_v5  ;;  %v2035_v36 = vmul.f32 0.5, %v2003_v43  ;;  %v8879_v16 = vld [vmem:[#allocation50_spill] sm:$0xff] }
 0x2bc   :  { %v5486_v23 = vpop.eup %5485  ;;  %v2036_v54 = vmul.f32 0.5, %v2004_v55  ;;  %v2139_v59 = vmul.f32 %v5484_v34, %v1915_v31  ;;  %2259 = vst [vmem:[#allocation2 + $0x180] sm:$0xff] %v2226_v2  ;;  %2515 = vmatmul.mubr.f32.gmra.mrb[160].mxu0 %v2226_v2  ;;  %2772 = vmatmul.mubr.f32.gmra.mrb[160].mxu1 %v2226_v2  ;;  %5501 = vtanh.f32 %v1694_v17  ;;  %v1822_v60 = vmul.f32 0.5, %v1389_v56 }
 0x2bd   :  { %v1788_v3 = vmul.f32 0.5, %v1756_v27  ;;  %v1884_v1 = vadd.f32 1.0, %v5486_v23  ;;  %2520 = vmatprep.mubr.f32.mxu0 %v8843_v38  ;;  %2777 = vmatprep.mubr.f32.mxu1 %v8843_v38  ;;  %5503 = vtanh.f32 %v1949_v4  ;;  %v5488_v58 = vpop.eup %5487  ;;  %v1646_v43 = vadd.f32 %v8877_v21, %v6532_v46  ;;  %v8880_v23 = vld [vmem:[#allocation35_spill] sm:$0xff] }
 0x2be   :  { %v7486_v11 = vadd.f32 %v2139_v59, %v2107_v24  ;;  %5505 = vtanh.f32 %v1950_v25  ;;  %v1393_v22 = vadd.f32 %v7353_v18, %v6918_v35  ;;  %v5490_v13 = vpop.eup %5489  ;;  %v2227_v52 = vmul.f32 %v5488_v58, %v2035_v36 }
 0x2bf   :  { %v2108_v55 = vmul.f32 %v1788_v3, %v8878_v50  ;;  %v1916_v33 = vmul.f32 0.5, %v1884_v1  ;;  %5507 = vtanh.f32 %v1822_v60  ;;  %v5492_v61 = vpop.eup %5491  ;;  %v1650_v62 = vadd.f32 %v7355_v0, %v6530_v45 }
 0x2c0   :  { %5509 = vtanh.f32 %v7378_v39  ;;  %v1695_v40 = vmul.f32 0.5, %v1393_v22  ;;  %v1395_v44 = vadd.f32 %v7358_v51, %v6528_v42  ;;  %2260 = vst [vmem:[#allocation2 + $0x188] sm:$0xff] %v2227_v52  ;;  %2521 = vmatmul.mubr.f32.gmra.mrb[162].mxu0 %v2227_v52  ;;  %2778 = vmatmul.mubr.f32.gmra.mrb[162].mxu1 %v2227_v52  ;;  %v1757_v18 = vadd.f32 1.0, %v5492_v61 }
 0x2c1   :  { %v7498_v10 = vpop.eup %5493  ;;  %v2140_v4 = vmul.f32 %v5490_v13, %v1916_v33  ;;  %v1652_v17 = vadd.f32 %v7360_v9, %v6532_v46  ;;  %5511 = vtanh.f32 %v7411_v32  ;;  %v2005_v19 = vadd.f32 1.0, %v8879_v16  ;;  %2526 = vmatprep.mubr.f32.mxu0 %v8843_v38  ;;  %2783 = vmatprep.mubr.f32.mxu1 %v8843_v38 }
 0x2c2   :  { %v5496_v5 = vpop.eup %5495  ;;  %5513 = vtanh.f32 %v1695_v40  ;;  %v1951_v51 = vmul.f32 0.5, %v1650_v62  ;;  %v1823_v0 = vmul.f32 0.5, %v1395_v44  ;;  %v1789_v2 = vmul.f32 0.5, %v1757_v18 }
 0x2c3   :  { %v5498_v24 = vpop.eup %5497  ;;  %v7506_v31 = vadd.f32 %v2140_v4, %v2108_v55  ;;  %v1885_v34 = vadd.f32 1.0, %v5496_v5  ;;  %5515 = vtanh.f32 %v1646_v43  ;;  %v2006_v9 = vadd.f32 1.0, %v7362_v28  ;;  %v8881_v4 = vld [vmem:[#allocation52_spill] sm:$0xff] }
 0x2c4   :  { %5517 = vtanh.f32 %v1652_v17  ;;  %v1399_v27 = vadd.f32 %v7373_v47, %v6918_v35  ;;  %v1656_v25 = vadd.f32 %v7375_v30, %v6530_v45  ;;  %v2109_v36 = vmul.f32 %v1789_v2, %v8880_v23  ;;  %v8882_v17 = vld [vmem:[#allocation36_spill] sm:$0xff] }
 0x2c5   :  { %v5500_v56 = vpop.eup %5499  ;;  %v1917_v59 = vmul.f32 0.5, %v1885_v34  ;;  %5519 = vtanh.f32 %v1823_v0  ;;  %v1401_v3 = vadd.f32 %v7380_v7, %v6528_v42  ;;  %v2037_v13 = vmul.f32 0.5, %v2005_v19  ;;  %v8883_v2 = vld [vmem:[#allocation28_spill] sm:$0xff] }
 0x2c6   :  { %v5502_v1 = vpop.eup %5501  ;;  %v2228_v60 = vmul.f32 %v5500_v56, %v2036_v54  ;;  %5521 = vtanh.f32 %v1951_v51  ;;  %v1696_v58 = vmul.f32 0.5, %v1399_v27  ;;  %v1952_v28 = vmul.f32 0.5, %v1656_v25 }
 0x2c7   :  { %v7516_v21 = vpop.eup %5503  ;;  %v2141_v43 = vmul.f32 %v5498_v24, %v1917_v59  ;;  %v1758_v47 = vadd.f32 1.0, %v5502_v1  ;;  %v1824_v22 = vmul.f32 0.5, %v1401_v3  ;;  %5523 = vtanh.f32 %v7429_v53 }
 0x2c8   :  { %v7519_v30 = vpop.eup %5505  ;;  %2261 = vst [vmem:[#allocation2 + $0x190] sm:$0xff] %v2228_v60  ;;  %2527 = vmatmul.mubr.f32.gmra.mrb[164].mxu0 %v2228_v60  ;;  %2784 = vmatmul.mubr.f32.gmra.mrb[164].mxu1 %v2228_v60  ;;  %5525 = vtanh.f32 %v1696_v58  ;;  %v1405_v7 = vadd.f32 %v7398_v12, %v6918_v35  ;;  %v1658_v33 = vadd.f32 %v7382_v37, %v6532_v46  ;;  %v2038_v40 = vmul.f32 0.5, %v2006_v9  ;;  %v8884_v60 = vld [vmem:[#allocation27_spill] sm:$0xff] }
 0x2c9   :  { %v5508_v54 = vpop.eup %5507  ;;  %v7523_v50 = vadd.f32 %v2141_v43, %v2109_v36  ;;  %v1790_v55 = vmul.f32 0.5, %v1758_v47  ;;  %2532 = vmatprep.mubr.f32.mxu0 %v8843_v38  ;;  %2789 = vmatprep.mubr.f32.mxu1 %v8843_v38  ;;  %v1407_v52 = vadd.f32 %v7402_v41, %v6528_v42  ;;  %5527 = vtanh.f32 %v1824_v22  ;;  %v8885_v43 = vld [vmem:[#allocation37_spill] sm:$0xff] }
 0x2ca   :  { %v5510_v61 = vpop.eup %5509  ;;  %v1886_v62 = vadd.f32 1.0, %v5508_v54  ;;  %v1697_v44 = vmul.f32 0.5, %v1405_v7  ;;  %v2007_v18 = vadd.f32 1.0, %v8881_v4  ;;  %5529 = vtanh.f32 %v1952_v28 }
 0x2cb   :  { %v5512_v12 = vpop.eup %5511  ;;  %v2110_v5 = vmul.f32 %v1790_v55, %v8882_v17  ;;  %v2229_v16 = vmul.f32 %v5510_v61, %v2037_v13  ;;  %v1825_v37 = vmul.f32 0.5, %v1407_v52  ;;  %v1664_v34 = vadd.f32 %v8883_v2, %v6532_v46  ;;  %v8886_v17 = vld [vmem:[#allocation38_spill] sm:$0xff] }
 0x2cc   :  { %v5514_v19 = vpop.eup %5513  ;;  %v1918_v51 = vmul.f32 0.5, %v1886_v62  ;;  %v2230_v0 = vmul.f32 %v5512_v12, %v2038_v40  ;;  %5531 = vtanh.f32 %v1697_v44  ;;  %v2039_v36 = vmul.f32 0.5, %v2007_v18 }
 0x2cd   :  { %v5516_v24 = vpop.eup %5515  ;;  %2262 = vst [vmem:[#allocation2 + $0x198] sm:$0xff] %v2229_v16  ;;  %2533 = vmatmul.mubr.f32.gmra.mrb[166].mxu0 %v2229_v16  ;;  %2790 = vmatmul.mubr.f32.gmra.mrb[166].mxu1 %v2229_v16  ;;  %v1759_v41 = vadd.f32 1.0, %v5514_v19  ;;  %5533 = vtanh.f32 %v1658_v33  ;;  %v1662_v58 = vadd.f32 %v8884_v60, %v6530_v45  ;;  %v2008_v55 = vadd.f32 1.0, %v7425_v29 }
 0x2ce   :  { %v5518_v9 = vpop.eup %5517  ;;  %v2142_v27 = vmul.f32 %v5516_v24, %v1918_v51  ;;  %2538 = vmatprep.mubr.f32.mxu0 %v8843_v38  ;;  %2795 = vmatprep.mubr.f32.mxu1 %v8843_v38  ;;  %2263 = vst [vmem:[#allocation2 + $0x1a0] sm:$0xff] %v2230_v0  ;;  %5535 = vtanh.f32 %v1825_v37  ;;  %v2009_v12 = vadd.f32 1.0, %v7437_v49  ;;  %v2010_v4 = vadd.f32 1.0, %v7454_v20 }
 0x2cf   :  { %v5520_v25 = vpop.eup %5519  ;;  %v1791_v56 = vmul.f32 0.5, %v1759_v41  ;;  %5537 = vtanh.f32 %v1664_v34  ;;  %v1953_v62 = vmul.f32 0.5, %v1662_v58  ;;  %v2011_v37 = vadd.f32 1.0, %v7472_v48  ;;  %v8887_v48 = vld [vmem:[#allocation39_spill] sm:$0xff] }
 0x2d0   :  { %v7537_v23 = vpop.eup %5521  ;;  %v7539_v59 = vadd.f32 %v2142_v27, %v2110_v5  ;;  %v1887_v3 = vadd.f32 1.0, %v5520_v25  ;;  %5539 = vtanh.f32 %v7449_v63  ;;  %v2012_v49 = vadd.f32 1.0, %v7498_v10 }
 0x2d1   :  { %v5524_v1 = vpop.eup %5523  ;;  %2539 = vmatmul.mubr.f32.gmra.mrb[168].mxu0 %v2230_v0  ;;  %2796 = vmatmul.mubr.f32.gmra.mrb[168].mxu1 %v2230_v0  ;;  %5541 = vtanh.f32 %v7464_v15  ;;  %v2111_v47 = vmul.f32 %v1791_v56, %v8885_v43  ;;  %v2040_v0 = vmul.f32 0.5, %v2008_v55  ;;  %v2042_v27 = vmul.f32 0.5, %v2010_v4 }
 0x2d2   :  { %v5526_v28 = vpop.eup %5525  ;;  %v1919_v22 = vmul.f32 0.5, %v1887_v3  ;;  %2544 = vmatprep.mubr.f32.mxu0 %v8843_v38  ;;  %2801 = vmatprep.mubr.f32.mxu1 %v8843_v38  ;;  %v2231_v13 = vmul.f32 %v5524_v1, %v2039_v36  ;;  %5543 = vtanh.f32 %v7478_v8  ;;  %v2013_v25 = vadd.f32 1.0, %v7516_v21 }
 0x2d3   :  { %v1760_v7 = vadd.f32 1.0, %v5526_v28  ;;  %5545 = vtanh.f32 %v7486_v11  ;;  %v5528_v54 = vpop.eup %5527  ;;  %v2014_v56 = vadd.f32 1.0, %v7519_v30  ;;  %v2043_v28 = vmul.f32 0.5, %v2011_v37 }
 0x2d4   :  { %v2143_v33 = vmul.f32 %v5518_v9, %v1919_v22  ;;  %2264 = vst [vmem:[#allocation2 + $0x1a8] sm:$0xff] %v2231_v13  ;;  %5547 = vtanh.f32 %v7506_v31  ;;  %v7552_v52 = vpop.eup %5529  ;;  %v1888_v40 = vadd.f32 1.0, %v5528_v54  ;;  %v2041_v9 = vmul.f32 0.5, %v2009_v12 }
 0x2d5   :  { %v1792_v61 = vmul.f32 0.5, %v1760_v7  ;;  %2545 = vmatmul.mubr.f32.gmra.mrb[170].mxu0 %v2231_v13  ;;  %2802 = vmatmul.mubr.f32.gmra.mrb[170].mxu1 %v2231_v13  ;;  %5549 = vtanh.f32 %v7523_v50  ;;  %v2044_v43 = vmul.f32 0.5, %v2012_v49  ;;  %v2015_v13 = vadd.f32 1.0, %v7537_v23 }
 0x2d6   :  { %v5532_v44 = vpop.eup %5531  ;;  %v7557_v18 = vadd.f32 %v2143_v33, %v2111_v47  ;;  %2550 = vmatprep.mubr.f32.mxu0 %v8843_v38  ;;  %2807 = vmatprep.mubr.f32.mxu1 %v8843_v38  ;;  %5551 = vtanh.f32 %v7539_v59  ;;  %v1920_v16 = vmul.f32 0.5, %v1888_v40  ;;  %v2045_v54 = vmul.f32 0.5, %v2013_v25 }
 0x2d7   :  { %v5534_v29 = vpop.eup %5533  ;;  %v2112_v5 = vmul.f32 %v1792_v61, %v8886_v17  ;;  %v1761_v19 = vadd.f32 1.0, %v5532_v44  ;;  %v2046_v61 = vmul.f32 0.5, %v2014_v56  ;;  %v2047_v12 = vmul.f32 0.5, %v2015_v13 }
 0x2d8   :  { %v5536_v51 = vpop.eup %5535  ;;  %5553 = vtanh.f32 %v7557_v18  ;;  %v2144_v24 = vmul.f32 %v5534_v29, %v1920_v16  ;;  %v2016_v17 = vadd.f32 1.0, %v7552_v52 }
 0x2d9   :  { %v5538_v20 = vpop.eup %5537  ;;  %v1793_v41 = vmul.f32 0.5, %v1761_v19  ;;  %5555 = vtanh.f32 %v1953_v62  ;;  %v1889_v2 = vadd.f32 1.0, %v5536_v51 }
 0x2da   :  { %v5540_v34 = vpop.eup %5539  ;;  %v7568_v3 = vadd.f32 %v2144_v24, %v2112_v5  ;;  %v2048_v19 = vmul.f32 0.5, %v2016_v17 }
 0x2db   :  { %v5542_v36 = vpop.eup %5541  ;;  %v2113_v1 = vmul.f32 %v1793_v41, %v8887_v48  ;;  %v1921_v10 = vmul.f32 0.5, %v1889_v2  ;;  %v2232_v60 = vmul.f32 %v5540_v34, %v2040_v0 }
 0x2dc   :  { %v5544_v58 = vpop.eup %5543  ;;  %v2233_v47 = vmul.f32 %v5542_v36, %v2041_v9  ;;  %5557 = vtanh.f32 %v7568_v3 }
 0x2dd   :  { %v5546_v22 = vpop.eup %5545  ;;  %v2145_v7 = vmul.f32 %v5538_v20, %v1921_v10  ;;  %2265 = vst [vmem:[#allocation2 + $0x1b0] sm:$0xff] %v2232_v60  ;;  %2551 = vmatmul.mubr.f32.gmra.mrb[172].mxu0 %v2232_v60  ;;  %2808 = vmatmul.mubr.f32.gmra.mrb[172].mxu1 %v2232_v60  ;;  %v2234_v21 = vmul.f32 %v5544_v58, %v2042_v27 }
 0x2de   :  { %v5548_v30 = vpop.eup %5547  ;;  %2556 = vmatprep.mubr.f32.mxu0 %v8843_v38  ;;  %2813 = vmatprep.mubr.f32.mxu1 %v8843_v38  ;;  %2266 = vst [vmem:[#allocation2 + $0x1b8] sm:$0xff] %v2233_v47  ;;  %v2235_v55 = vmul.f32 %v5546_v22, %v2043_v28 }
 0x2df   :  { %v5550_v33 = vpop.eup %5549  ;;  %v7575_v40 = vadd.f32 %v2145_v7, %v2113_v1  ;;  %2267 = vst [vmem:[#allocation2 + $0x1c0] sm:$0xff] %v2234_v21  ;;  %v2236_v23 = vmul.f32 %v5548_v30, %v2044_v43 }
 0x2e0   :  { %v5552_v62 = vpop.eup %5551  ;;  %2268 = vst [vmem:[#allocation2 + $0x1c8] sm:$0xff] %v2235_v55  ;;  %v2237_v44 = vmul.f32 %v5550_v33, %v2045_v54 }
 0x2e1   :  { %2557 = vmatmul.mubr.f32.gmra.mrb[174].mxu0 %v2233_v47  ;;  %2814 = vmatmul.mubr.f32.gmra.mrb[174].mxu1 %v2233_v47  ;;  %2269 = vst [vmem:[#allocation2 + $0x1d0] sm:$0xff] %v2236_v23  ;;  %v2238_v4 = vmul.f32 %v5552_v62, %v2046_v61  ;;  %5559 = vtanh.f32 %v7575_v40  ;;  %v8888_v47 = vld [vmem:[#allocation40_spill] sm:$0xff] }
 0x2e2   :  { %v5554_v29 = vpop.eup %5553  ;;  %2562 = vmatprep.mubr.f32.mxu0 %v8843_v38  ;;  %2819 = vmatprep.mubr.f32.mxu1 %v8843_v38  ;;  %2270 = vst [vmem:[#allocation2 + $0x1d8] sm:$0xff] %v2237_v44 }
 0x2e3   :  { %v5556_v5 = vpop.eup %5555  ;;  %2271 = vst [vmem:[#allocation2 + $0x1e0] sm:$0xff] %v2238_v4  ;;  %v2239_v16 = vmul.f32 %v5554_v29, %v2047_v12 }
 0x2e4   :  { %v2017_v51 = vadd.f32 1.0, %v5556_v5 }
 0x2e5   :  { %2563 = vmatmul.mubr.f32.gmra.mrb[176].mxu0 %v2234_v21  ;;  %2820 = vmatmul.mubr.f32.gmra.mrb[176].mxu1 %v2234_v21  ;;  %2272 = vst [vmem:[#allocation2 + $0x1e8] sm:$0xff] %v2239_v16 }
 0x2e6   :  { %2568 = vmatprep.mubr.f32.mxu0 %v8843_v38  ;;  %2825 = vmatprep.mubr.f32.mxu1 %v8843_v38  ;;  %v5558_v0 = vpop.eup %5557  ;;  %v2049_v52 = vmul.f32 0.5, %v2017_v51 }
 0x2e7   :  { %v2240_v37 = vmul.f32 %v5558_v0, %v2048_v19 }
 0x2e9   :  { %2569 = vmatmul.mubr.f32.gmra.mrb[178].mxu0 %v2235_v55  ;;  %2826 = vmatmul.mubr.f32.gmra.mrb[178].mxu1 %v2235_v55  ;;  %2273 = vst [vmem:[#allocation2 + $0x1f0] sm:$0xff] %v2240_v37 }
 0x2ea   :  { %2574 = vmatprep.mubr.f32.mxu0 %v8843_v38  ;;  %2831 = vmatprep.mubr.f32.mxu1 %v8843_v38 }
 0x2eb   :  { %v5560_v49 = vpop.eup %5559 }
 0x2ec   :  { %v2241_v20 = vmul.f32 %v5560_v49, %v2049_v52 }
 0x2ed   :  { %2575 = vmatmul.mubr.f32.gmra.mrb[180].mxu0 %v2236_v23  ;;  %2832 = vmatmul.mubr.f32.gmra.mrb[180].mxu1 %v2236_v23 }
 0x2ee   :  { %2580 = vmatprep.mubr.f32.mxu0 %v8843_v38  ;;  %2837 = vmatprep.mubr.f32.mxu1 %v8843_v38  ;;  %2274 = vst [vmem:[#allocation2 + $0x1f8] sm:$0xff] %v2241_v20 }
 0x2f1   :  { %2581 = vmatmul.mubr.f32.gmra.mrb[182].mxu0 %v2237_v44  ;;  %2838 = vmatmul.mubr.f32.gmra.mrb[182].mxu1 %v2237_v44 }
 0x2f2   :  { %2586 = vmatprep.mubr.f32.mxu0 %v8843_v38  ;;  %2843 = vmatprep.mubr.f32.mxu1 %v8843_v38 }
 0x2f5   :  { %2587 = vmatmul.mubr.f32.gmra.mrb[184].mxu0 %v2238_v4  ;;  %2844 = vmatmul.mubr.f32.gmra.mrb[184].mxu1 %v2238_v4 }
 0x2f6   :  { %2592 = vmatprep.mubr.f32.mxu0 %v8843_v38  ;;  %2849 = vmatprep.mubr.f32.mxu1 %v8843_v38 }
 0x2f9   :  { %2593 = vmatmul.mubr.f32.gmra.mrb[186].mxu0 %v2239_v16  ;;  %2850 = vmatmul.mubr.f32.gmra.mrb[186].mxu1 %v2239_v16 }
 0x2fa   :  { %2598 = vmatprep.mubr.f32.mxu0 %v8843_v38  ;;  %2855 = vmatprep.mubr.f32.mxu1 %v8843_v38 }
 0x2fd   :  { %2599 = vmatmul.mubr.f32.gmra.mrb[188].mxu0 %v2240_v37  ;;  %2856 = vmatmul.mubr.f32.gmra.mrb[188].mxu1 %v2240_v37 }
 0x2fe   :  { %2604 = vmatprep.mubr.f32.mxu0 %v8843_v38  ;;  %2861 = vmatprep.mubr.f32.mxu1 %v8843_v38 }
 0x301   :  { %2605 = vmatmul.mubr.f32.gmra.mrb[190].mxu0 %v2241_v20  ;;  %2862 = vmatmul.mubr.f32.gmra.mrb[190].mxu1 %v2241_v20 }
 0x327   :  { %v2420_v24 = vpop.f32.mrb[128].mxu0  ;;  %v2677_v41 = vpop.f32.mrb[128].mxu1 }
 0x328   :  { %v2421_v2 = vadd.f32 %v2420_v24, %v6918_v35  ;;  %v2422_v34 = vpop.f32.mrb[129].mxu0  ;;  %v2679_v9 = vpop.f32.mrb[129].mxu1  ;;  %v2678_v48 = vadd.f32 %v2677_v41, %v6530_v45 }
 0x329   :  { %v2423_v27 = vadd.f32 %v2422_v34, %v6528_v42  ;;  %v2680_v36 = vadd.f32 %v2679_v9, %v6532_v46 }
 0x32a   :  { %v2868_v25 = vmul.f32 0.5, %v2421_v2  ;;  %v3124_v1 = vmul.f32 0.5, %v2678_v48 }
 0x32b   :  { %v2996_v56 = vmul.f32 0.5, %v2423_v27 }
 0x32c   :  { %5561 = vtanh.f32 %v2868_v25 }
 0x32d   :  { %5563 = vtanh.f32 %v2996_v56 }
 0x32e   :  { %5565 = vtanh.f32 %v2680_v36 }
 0x32f   :  { %5567 = vtanh.f32 %v3124_v1 }
 0x336   :  { %v5562_v10 = vpop.eup %5561 }
 0x337   :  { %v2932_v60 = vadd.f32 1.0, %v5562_v10  ;;  %v5564_v58 = vpop.eup %5563 }
 0x338   :  { %v3060_v43 = vadd.f32 1.0, %v5564_v58  ;;  %v5566_v30 = vpop.eup %5565 }
 0x339   :  { %v2964_v28 = vmul.f32 0.5, %v2932_v60  ;;  %v5568_v51 = vpop.eup %5567 }
 0x33a   :  { %v3092_v13 = vmul.f32 0.5, %v3060_v43  ;;  %v3188_v20 = vadd.f32 1.0, %v5568_v51 }
 0x33b   :  { %v3284_v22 = vmul.f32 %v2964_v28, %v8888_v47 }
 0x33c   :  { %v3316_v61 = vmul.f32 %v5566_v30, %v3092_v13  ;;  %v3220_v60 = vmul.f32 0.5, %v3188_v20 }
 0x33d   :  { %v2426_v7 = vpop.f32.mrb[130].mxu0  ;;  %v2683_v21 = vpop.f32.mrb[130].mxu1 }
 0x33e   :  { %v2427_v54 = vadd.f32 %v2426_v7, %v6918_v35  ;;  %v2428_v55 = vpop.f32.mrb[131].mxu0  ;;  %v2685_v33 = vpop.f32.mrb[131].mxu1  ;;  %v7602_v44 = vadd.f32 %v3316_v61, %v3284_v22  ;;  %v2684_v17 = vadd.f32 %v2683_v21, %v6530_v45 }
 0x33f   :  { %v2429_v23 = vadd.f32 %v2428_v55, %v6528_v42  ;;  %v2686_v0 = vadd.f32 %v2685_v33, %v6532_v46 }
 0x340   :  { %v2869_v62 = vmul.f32 0.5, %v2427_v54  ;;  %8889 = vst [vmem:[#allocation29_spill] sm:$0xff] %v7602_v44  ;;  %v3125_v24 = vmul.f32 0.5, %v2684_v17  ;;  %v8890_v17 = vld [vmem:[#allocation41_spill] sm:$0xff] }
 0x341   :  { %v2997_v12 = vmul.f32 0.5, %v2429_v23 }
 0x342   :  { %5569 = vtanh.f32 %v2869_v62 }
 0x343   :  { %5571 = vtanh.f32 %v7602_v44  ;;  %v2432_v4 = vpop.f32.mrb[132].mxu0  ;;  %v2689_v29 = vpop.f32.mrb[132].mxu1 }
 0x344   :  { %v2433_v5 = vadd.f32 %v2432_v4, %v6918_v35  ;;  %v2434_v16 = vpop.f32.mrb[133].mxu0  ;;  %v2691_v19 = vpop.f32.mrb[133].mxu1  ;;  %5573 = vtanh.f32 %v2997_v12  ;;  %v2690_v41 = vadd.f32 %v2689_v29, %v6530_v45 }
 0x345   :  { %v2435_v37 = vadd.f32 %v2434_v16, %v6528_v42  ;;  %v2692_v56 = vadd.f32 %v2691_v19, %v6532_v46 }
 0x346   :  { %v2870_v52 = vmul.f32 0.5, %v2433_v5  ;;  %v3126_v58 = vmul.f32 0.5, %v2690_v41 }
 0x347   :  { %v2998_v49 = vmul.f32 0.5, %v2435_v37 }
 0x348   :  { %5575 = vtanh.f32 %v2870_v52 }
 0x349   :  { %v2438_v2 = vpop.f32.mrb[134].mxu0  ;;  %v2695_v34 = vpop.f32.mrb[134].mxu1  ;;  %5577 = vtanh.f32 %v2686_v0 }
 0x34a   :  { %v2439_v9 = vadd.f32 %v2438_v2, %v6918_v35  ;;  %v2440_v27 = vpop.f32.mrb[135].mxu0  ;;  %v2697_v25 = vpop.f32.mrb[135].mxu1  ;;  %5579 = vtanh.f32 %v2998_v49  ;;  %v2696_v1 = vadd.f32 %v2695_v34, %v6530_v45 }
 0x34b   :  { %v2441_v36 = vadd.f32 %v2440_v27, %v6528_v42  ;;  %5581 = vtanh.f32 %v3125_v24  ;;  %v2698_v22 = vadd.f32 %v2697_v25, %v6532_v46 }
 0x34c   :  { %v2871_v48 = vmul.f32 0.5, %v2439_v9  ;;  %v5570_v10 = vpop.eup %5569  ;;  %v3127_v62 = vmul.f32 0.5, %v2696_v1 }
 0x34d   :  { %v2999_v28 = vmul.f32 0.5, %v2441_v36  ;;  %v5572_v43 = vpop.eup %5571  ;;  %v2933_v47 = vadd.f32 1.0, %v5570_v10 }
 0x34e   :  { %5583 = vtanh.f32 %v2871_v48  ;;  %v2444_v13 = vpop.f32.mrb[136].mxu0  ;;  %v2701_v7 = vpop.f32.mrb[136].mxu1  ;;  %v7615_v21 = vmul.f32 %v5572_v43, %v3220_v60 }
 0x34f   :  { %5585 = vtanh.f32 %v2692_v56  ;;  %v2445_v30 = vadd.f32 %v2444_v13, %v6918_v35  ;;  %v2702_v54 = vadd.f32 %v2701_v7, %v6530_v45  ;;  %v2446_v55 = vpop.f32.mrb[137].mxu0  ;;  %v2703_v33 = vpop.f32.mrb[137].mxu1  ;;  %v2965_v23 = vmul.f32 0.5, %v2933_v47  ;;  %v8892_v47 = vld [vmem:[#allocation42_spill] sm:$0xff] }
 0x350   :  { %v5574_v61 = vpop.eup %5573  ;;  %5587 = vtanh.f32 %v2999_v28  ;;  %v2447_v12 = vadd.f32 %v2446_v55, %v6528_v42  ;;  %v2704_v9 = vadd.f32 %v2703_v33, %v6532_v46 }
 0x351   :  { %v3061_v4 = vadd.f32 1.0, %v5574_v61  ;;  %5589 = vtanh.f32 %v3126_v58  ;;  %v2872_v29 = vmul.f32 0.5, %v2445_v30  ;;  %v3285_v5 = vmul.f32 %v2965_v23, %v8890_v17 }
 0x352   :  { %5591 = vtanh.f32 %v2698_v22  ;;  %v3128_v16 = vmul.f32 0.5, %v2702_v54  ;;  %v3000_v19 = vmul.f32 0.5, %v2447_v12  ;;  %v2450_v51 = vpop.f32.mrb[138].mxu0  ;;  %v2707_v0 = vpop.f32.mrb[138].mxu1 }
 0x353   :  { %v5576_v37 = vpop.eup %5575  ;;  %v3093_v52 = vmul.f32 0.5, %v3061_v4  ;;  %5593 = vtanh.f32 %v2872_v29  ;;  %v2451_v49 = vadd.f32 %v2450_v51, %v6918_v35  ;;  %v2708_v20 = vadd.f32 %v2707_v0, %v6530_v45  ;;  %v2452_v24 = vpop.f32.mrb[139].mxu0 }
 0x354   :  { %v2709_v41 = vpop.f32.mrb[139].mxu1  ;;  %v5578_v2 = vpop.eup %5577  ;;  %v2934_v34 = vadd.f32 1.0, %v5576_v37  ;;  %5595 = vtanh.f32 %v3127_v62  ;;  %v2453_v27 = vadd.f32 %v2452_v24, %v6528_v42 }
 0x355   :  { %v5580_v25 = vpop.eup %5579  ;;  %v3317_v56 = vmul.f32 %v5578_v2, %v3093_v52  ;;  %5597 = vtanh.f32 %v3000_v19  ;;  %v2873_v36 = vmul.f32 0.5, %v2451_v49  ;;  %v3129_v58 = vmul.f32 0.5, %v2708_v20  ;;  %v8894_v52 = vld [vmem:[#allocation43_spill] sm:$0xff] }
 0x356   :  { %v2966_v48 = vmul.f32 0.5, %v2934_v34  ;;  %v3062_v1 = vadd.f32 1.0, %v5580_v25  ;;  %5599 = vtanh.f32 %v3128_v16  ;;  %v5582_v10 = vpop.eup %5581  ;;  %v3001_v28 = vmul.f32 0.5, %v2453_v27 }
 0x357   :  { %v7625_v60 = vadd.f32 %v3317_v56, %v3285_v5  ;;  %5601 = vtanh.f32 %v2873_v36  ;;  %v2710_v7 = vadd.f32 %v2709_v41, %v6532_v46  ;;  %v3189_v23 = vadd.f32 1.0, %v5582_v10 }
 0x358   :  { %v5584_v43 = vpop.eup %5583  ;;  %v3286_v22 = vmul.f32 %v2966_v48, %v8892_v47  ;;  %v3094_v13 = vmul.f32 0.5, %v3062_v1  ;;  %5603 = vtanh.f32 %v2704_v9 }
 0x359   :  { %8891 = vst [vmem:[#allocation30_spill] sm:$0xff] %v7625_v60  ;;  %v5586_v30 = vpop.eup %5585  ;;  %5605 = vtanh.f32 %v7625_v60  ;;  %v2935_v54 = vadd.f32 1.0, %v5584_v43  ;;  %v3221_v1 = vmul.f32 0.5, %v3189_v23 }
 0x35a   :  { %v5588_v55 = vpop.eup %5587  ;;  %v3318_v33 = vmul.f32 %v5586_v30, %v3094_v13  ;;  %5607 = vtanh.f32 %v3001_v28  ;;  %v2456_v4 = vpop.f32.mrb[140].mxu0 }
 0x35b   :  { %v5590_v61 = vpop.eup %5589  ;;  %v2967_v62 = vmul.f32 0.5, %v2935_v54  ;;  %v3063_v12 = vadd.f32 1.0, %v5588_v55  ;;  %5609 = vtanh.f32 %v3129_v58  ;;  %v2713_v29 = vpop.f32.mrb[140].mxu1  ;;  %v2457_v16 = vadd.f32 %v2456_v4, %v6918_v35 }
 0x35c   :  { %v5592_v17 = vpop.eup %5591  ;;  %v7630_v5 = vadd.f32 %v3318_v33, %v3286_v22  ;;  %5611 = vtanh.f32 %v2710_v7  ;;  %v2714_v19 = vadd.f32 %v2713_v29, %v6530_v45  ;;  %v2458_v51 = vpop.f32.mrb[141].mxu0  ;;  %v3190_v22 = vadd.f32 1.0, %v5590_v61  ;;  %v8896_v33 = vld [vmem:[#allocation44_spill] sm:$0xff] }
 0x35d   :  { %v2715_v0 = vpop.f32.mrb[141].mxu1  ;;  %v5594_v37 = vpop.eup %5593  ;;  %v3287_v49 = vmul.f32 %v2967_v62, %v8894_v52  ;;  %v3095_v20 = vmul.f32 0.5, %v3063_v12  ;;  %v2459_v24 = vadd.f32 %v2458_v51, %v6528_v42  ;;  %v2874_v9 = vmul.f32 0.5, %v2457_v16 }
 0x35e   :  { %8893 = vst [vmem:[#allocation31_spill] sm:$0xff] %v7630_v5  ;;  %v2716_v41 = vadd.f32 %v2715_v0, %v6532_v46  ;;  %v5596_v2 = vpop.eup %5595  ;;  %5613 = vtanh.f32 %v7630_v5  ;;  %v2936_v34 = vadd.f32 1.0, %v5594_v37  ;;  %v3130_v27 = vmul.f32 0.5, %v2714_v19 }
 0x35f   :  { %v5598_v25 = vpop.eup %5597  ;;  %v3319_v56 = vmul.f32 %v5592_v17, %v3095_v20  ;;  %v3002_v36 = vmul.f32 0.5, %v2459_v24  ;;  %v3191_v29 = vadd.f32 1.0, %v5596_v2 }
 0x360   :  { %5615 = vtanh.f32 %v2716_v41  ;;  %v5600_v48 = vpop.eup %5599  ;;  %v2968_v10 = vmul.f32 0.5, %v2936_v34  ;;  %v3064_v58 = vadd.f32 1.0, %v5598_v25  ;;  %v2462_v28 = vpop.f32.mrb[142].mxu0 }
 0x361   :  { %5617 = vtanh.f32 %v2874_v9  ;;  %v2719_v43 = vpop.f32.mrb[142].mxu1  ;;  %v5602_v47 = vpop.eup %5601  ;;  %v7638_v13 = vadd.f32 %v3319_v56, %v3287_v49  ;;  %v2463_v7 = vadd.f32 %v2462_v28, %v6918_v35  ;;  %v3222_v49 = vmul.f32 0.5, %v3190_v22 }
 0x362   :  { %5619 = vtanh.f32 %v3130_v27  ;;  %v2464_v30 = vpop.f32.mrb[143].mxu0  ;;  %v2721_v54 = vpop.f32.mrb[143].mxu1  ;;  %v3288_v62 = vmul.f32 %v2968_v10, %v8896_v33  ;;  %v3096_v12 = vmul.f32 0.5, %v3064_v58  ;;  %v2937_v4 = vadd.f32 1.0, %v5602_v47  ;;  %v8898_v27 = vld [vmem:[#allocation45_spill] sm:$0xff] }
 0x363   :  { %8895 = vst [vmem:[#allocation57_spill] sm:$0xff] %v7638_v13  ;;  %v5604_v55 = vpop.eup %5603  ;;  %5621 = vtanh.f32 %v3002_v36  ;;  %v2875_v17 = vmul.f32 0.5, %v2463_v7  ;;  %v2720_v61 = vadd.f32 %v2719_v43, %v6530_v45  ;;  %v2465_v37 = vadd.f32 %v2464_v30, %v6528_v42 }
 0x364   :  { %v5606_v23 = vpop.eup %5605  ;;  %5623 = vtanh.f32 %v7638_v13  ;;  %v3320_v51 = vmul.f32 %v5604_v55, %v3096_v12  ;;  %v2969_v0 = vmul.f32 0.5, %v2937_v4  ;;  %v2722_v36 = vadd.f32 %v2721_v54, %v6532_v46 }
 0x365   :  { %v5608_v16 = vpop.eup %5607  ;;  %v7644_v19 = vmul.f32 %v5606_v23, %v3221_v1  ;;  %5625 = vtanh.f32 %v2875_v17  ;;  %v3131_v24 = vmul.f32 0.5, %v2720_v61  ;;  %v2468_v41 = vpop.f32.mrb[144].mxu0  ;;  %v3003_v56 = vmul.f32 0.5, %v2465_v37 }
 0x366   :  { %v5610_v52 = vpop.eup %5609  ;;  %v3065_v20 = vadd.f32 1.0, %v5608_v16  ;;  %v2725_v34 = vpop.f32.mrb[144].mxu1  ;;  %v7647_v9 = vadd.f32 %v3320_v51, %v3288_v62  ;;  %v3289_v25 = vmul.f32 %v2969_v0, %v8898_v27  ;;  %v2469_v28 = vadd.f32 %v2468_v41, %v6918_v35 }
 0x367   :  { %v5612_v2 = vpop.eup %5611  ;;  %v2470_v1 = vpop.f32.mrb[145].mxu0  ;;  %5627 = vtanh.f32 %v3131_v24  ;;  %v2726_v43 = vadd.f32 %v2725_v34, %v6530_v45  ;;  %v3223_v22 = vmul.f32 0.5, %v3191_v29  ;;  %v3192_v7 = vadd.f32 1.0, %v5600_v48 }
 0x368   :  { %8897 = vst [vmem:[#allocation32_spill] sm:$0xff] %v7647_v9  ;;  %v2727_v10 = vpop.f32.mrb[145].mxu1  ;;  %v3097_v58 = vmul.f32 0.5, %v3065_v20  ;;  %v5614_v47 = vpop.eup %5613  ;;  %5629 = vtanh.f32 %v7647_v9  ;;  %v2471_v30 = vadd.f32 %v2470_v1, %v6528_v42  ;;  %v2876_v54 = vmul.f32 0.5, %v2469_v28  ;;  %v8900_v28 = vld [vmem:[#allocation46_spill] sm:$0xff] }
 0x369   :  { %v7655_v33 = vmul.f32 %v5614_v47, %v3222_v49  ;;  %5631 = vtanh.f32 %v3003_v56  ;;  %v3132_v4 = vmul.f32 0.5, %v2726_v43  ;;  %v2728_v17 = vadd.f32 %v2727_v10, %v6532_v46 }
 0x36a   :  { %v5616_v55 = vpop.eup %5615  ;;  %v3321_v62 = vmul.f32 %v5612_v2, %v3097_v58  ;;  %5633 = vtanh.f32 %v2722_v36  ;;  %v3004_v23 = vmul.f32 0.5, %v2471_v30  ;;  %v2474_v61 = vpop.f32.mrb[146].mxu0  ;;  %v3224_v24 = vmul.f32 0.5, %v3192_v7 }
 0x36b   :  { %v5618_v12 = vpop.eup %5617  ;;  %v2731_v16 = vpop.f32.mrb[146].mxu1  ;;  %5635 = vtanh.f32 %v2876_v54  ;;  %v2475_v0 = vadd.f32 %v2474_v61, %v6918_v35  ;;  %v3193_v1 = vadd.f32 1.0, %v5610_v52 }
 0x36c   :  { %v7658_v29 = vpop.eup %5619  ;;  %v7660_v48 = vadd.f32 %v3321_v62, %v3289_v25  ;;  %v2938_v51 = vadd.f32 1.0, %v5618_v12  ;;  %v2476_v37 = vpop.f32.mrb[147].mxu0  ;;  %5637 = vtanh.f32 %v3132_v4  ;;  %v2732_v41 = vadd.f32 %v2731_v16, %v6530_v45 }
 0x36d   :  { %v2733_v49 = vpop.f32.mrb[147].mxu1  ;;  %v5622_v20 = vpop.eup %5621  ;;  %v2477_v34 = vadd.f32 %v2476_v37, %v6528_v42  ;;  %v2877_v25 = vmul.f32 0.5, %v2475_v0 }
 0x36e   :  { %8899 = vst [vmem:[#allocation25_spill] sm:$0xff] %v7660_v48  ;;  %v5624_v2 = vpop.eup %5623  ;;  %5639 = vtanh.f32 %v7660_v48  ;;  %v2970_v27 = vmul.f32 0.5, %v2938_v51  ;;  %v3066_v56 = vadd.f32 1.0, %v5622_v20  ;;  %v3133_v10 = vmul.f32 0.5, %v2732_v41 }
 0x36f   :  { %v7666_v36 = vmul.f32 %v5624_v2, %v3223_v22  ;;  %5641 = vtanh.f32 %v3004_v23  ;;  %v5626_v58 = vpop.eup %5625  ;;  %v3005_v7 = vmul.f32 0.5, %v2477_v34  ;;  %v2480_v30 = vpop.f32.mrb[148].mxu0  ;;  %v2734_v12 = vadd.f32 %v2733_v49, %v6532_v46 }
 0x370   :  { %v3290_v43 = vmul.f32 %v2970_v27, %v8900_v28  ;;  %v3098_v47 = vmul.f32 0.5, %v3066_v56  ;;  %5643 = vtanh.f32 %v2728_v17  ;;  %v2737_v62 = vpop.f32.mrb[148].mxu1  ;;  %v2939_v54 = vadd.f32 1.0, %v5626_v58  ;;  %v2482_v61 = vpop.f32.mrb[149].mxu0 }
 0x371   :  { %5645 = vtanh.f32 %v2877_v25  ;;  %v2481_v4 = vadd.f32 %v2480_v30, %v6918_v35  ;;  %v2739_v22 = vpop.f32.mrb[149].mxu1  ;;  %v7671_v16 = vpop.eup %5627  ;;  %v2738_v23 = vadd.f32 %v2737_v62, %v6530_v45  ;;  %v2483_v51 = vadd.f32 %v2482_v61, %v6528_v42  ;;  %v8902_v25 = vld [vmem:[#allocation47_spill] sm:$0xff] }
 0x372   :  { %v3322_v52 = vmul.f32 %v5616_v55, %v3098_v47  ;;  %5647 = vtanh.f32 %v3133_v10  ;;  %v5630_v17 = vpop.eup %5629  ;;  %v2971_v0 = vmul.f32 0.5, %v2939_v54  ;;  %v3225_v55 = vmul.f32 0.5, %v3193_v1 }
 0x373   :  { %5649 = vtanh.f32 %v3005_v7  ;;  %v2878_v37 = vmul.f32 0.5, %v2481_v4  ;;  %v5632_v20 = vpop.eup %5631  ;;  %v7675_v41 = vmul.f32 %v5630_v17, %v3224_v24  ;;  %v3134_v34 = vmul.f32 0.5, %v2738_v23  ;;  %v2486_v2 = vpop.f32.mrb[150].mxu0 }
 0x374   :  { %v7677_v49 = vadd.f32 %v3322_v52, %v3290_v43  ;;  %5651 = vtanh.f32 %v2734_v12  ;;  %v2743_v27 = vpop.f32.mrb[150].mxu1  ;;  %v5634_v56 = vpop.eup %5633  ;;  %v3291_v10 = vmul.f32 %v2971_v0, %v8902_v25  ;;  %v3067_v58 = vadd.f32 1.0, %v5632_v20 }
 0x375   :  { %5653 = vtanh.f32 %v2878_v37  ;;  %v2488_v28 = vpop.f32.mrb[151].mxu0  ;;  %v2745_v47 = vpop.f32.mrb[151].mxu1  ;;  %v3006_v7 = vmul.f32 0.5, %v2483_v51  ;;  %v2740_v24 = vadd.f32 %v2739_v22, %v6532_v46  ;;  %v2487_v43 = vadd.f32 %v2486_v2, %v6918_v35 }
 0x376   :  { %8901 = vst [vmem:[#allocation58_spill] sm:$0xff] %v7677_v49  ;;  %v5636_v30 = vpop.eup %5635  ;;  %5655 = vtanh.f32 %v7677_v49  ;;  %v3099_v54 = vmul.f32 0.5, %v3067_v58  ;;  %v2744_v1 = vadd.f32 %v2743_v27, %v6530_v45  ;;  %v3194_v61 = vadd.f32 1.0, %v7658_v29  ;;  %v8904_v29 = vld [vmem:[#allocation48_spill] sm:$0xff] }
 0x377   :  { %v5638_v62 = vpop.eup %5637  ;;  %v2940_v12 = vadd.f32 1.0, %v5636_v30  ;;  %5657 = vtanh.f32 %v3134_v34  ;;  %v2879_v52 = vmul.f32 0.5, %v2487_v43  ;;  %v2489_v23 = vadd.f32 %v2488_v28, %v6528_v42 }
 0x378   :  { %v5640_v4 = vpop.eup %5639  ;;  %5659 = vtanh.f32 %v3006_v7  ;;  %v3323_v51 = vmul.f32 %v5634_v56, %v3099_v54  ;;  %v3135_v2 = vmul.f32 0.5, %v2744_v1  ;;  %v2746_v28 = vadd.f32 %v2745_v47, %v6532_v46 }
 0x379   :  { %v5642_v17 = vpop.eup %5641  ;;  %v7686_v0 = vmul.f32 %v5640_v4, %v3225_v55  ;;  %v2972_v22 = vmul.f32 0.5, %v2940_v12  ;;  %5661 = vtanh.f32 %v2740_v24  ;;  %v2492_v34 = vpop.f32.mrb[152].mxu0  ;;  %v3007_v7 = vmul.f32 0.5, %v2489_v23 }
 0x37a   :  { %v5644_v37 = vpop.eup %5643  ;;  %v3068_v20 = vadd.f32 1.0, %v5642_v17  ;;  %5663 = vtanh.f32 %v2879_v52  ;;  %v2749_v25 = vpop.f32.mrb[152].mxu1  ;;  %v7688_v58 = vadd.f32 %v3323_v51, %v3291_v10  ;;  %v2493_v24 = vadd.f32 %v2492_v34, %v6918_v35 }
 0x37b   :  { %v5646_v27 = vpop.eup %5645  ;;  %v3292_v30 = vmul.f32 %v2972_v22, %v8904_v29  ;;  %v2494_v43 = vpop.f32.mrb[153].mxu0  ;;  %5665 = vtanh.f32 %v3135_v2  ;;  %v3226_v1 = vmul.f32 0.5, %v3194_v61  ;;  %v2750_v34 = vadd.f32 %v2749_v25, %v6530_v45 }
 0x37c   :  { %8903 = vst [vmem:[#allocation33_spill] sm:$0xff] %v7688_v58  ;;  %v2751_v55 = vpop.f32.mrb[153].mxu1  ;;  %v5648_v4 = vpop.eup %5647  ;;  %v3100_v56 = vmul.f32 0.5, %v3068_v20  ;;  %v2941_v54 = vadd.f32 1.0, %v5646_v27  ;;  %5667 = vtanh.f32 %v7688_v58  ;;  %v2495_v10 = vadd.f32 %v2494_v43, %v6528_v42  ;;  %v8906_v43 = vld [vmem:[#allocation49_spill] sm:$0xff] }
 0x37d   :  { %v5650_v12 = vpop.eup %5649  ;;  %5669 = vtanh.f32 %v3007_v7  ;;  %v2498_v47 = vpop.f32.mrb[154].mxu0  ;;  %v3195_v20 = vadd.f32 1.0, %v7671_v16  ;;  %v2880_v2 = vmul.f32 0.5, %v2493_v24  ;;  %v2752_v16 = vadd.f32 %v2751_v55, %v6532_v46  ;;  %v8908_v55 = vld [vmem:[#allocation51_spill] sm:$0xff] }
 0x37e   :  { %v5652_v52 = vpop.eup %5651  ;;  %v3324_v17 = vmul.f32 %v5644_v37, %v3100_v56  ;;  %v2973_v51 = vmul.f32 0.5, %v2941_v54  ;;  %v3069_v23 = vadd.f32 1.0, %v5650_v12  ;;  %v2755_v22 = vpop.f32.mrb[154].mxu1  ;;  %5671 = vtanh.f32 %v2746_v28 }
 0x37f   :  { %v5654_v29 = vpop.eup %5653  ;;  %v2500_v27 = vpop.f32.mrb[155].mxu0  ;;  %5673 = vtanh.f32 %v2880_v2  ;;  %v3008_v12 = vmul.f32 0.5, %v2495_v10  ;;  %v3196_v24 = vadd.f32 1.0, %v5638_v62  ;;  %v3197_v5 = vadd.f32 1.0, %v5648_v4 }
 0x380   :  { %v2757_v61 = vpop.f32.mrb[155].mxu1  ;;  %v5656_v49 = vpop.eup %5655  ;;  %v7697_v58 = vadd.f32 %v3324_v17, %v3292_v30  ;;  %v3293_v48 = vmul.f32 %v2973_v51, %v8906_v43  ;;  %v3101_v37 = vmul.f32 0.5, %v3069_v23  ;;  %v2942_v56 = vadd.f32 1.0, %v5654_v29 }
 0x381   :  { %v5658_v54 = vpop.eup %5657  ;;  %v7700_v7 = vmul.f32 %v5656_v49, %v3226_v1  ;;  %v2504_v13 = vpop.f32.mrb[156].mxu0  ;;  %v3136_v23 = vmul.f32 0.5, %v2750_v34  ;;  %v2499_v29 = vadd.f32 %v2498_v47, %v6918_v35  ;;  %v3228_v34 = vmul.f32 0.5, %v3196_v24 }
 0x382   :  { %8905 = vst [vmem:[#allocation26_spill] sm:$0xff] %v7697_v58  ;;  %v5660_v28 = vpop.eup %5659  ;;  %5675 = vtanh.f32 %v7697_v58  ;;  %v3325_v25 = vmul.f32 %v5652_v52, %v3101_v37  ;;  %v2974_v9 = vmul.f32 0.5, %v2942_v56  ;;  %v2761_v30 = vpop.f32.mrb[156].mxu1  ;;  %v2756_v52 = vadd.f32 %v2755_v22, %v6530_v45 }
 0x383   :  { %v5662_v17 = vpop.eup %5661  ;;  %v3070_v51 = vadd.f32 1.0, %v5660_v28  ;;  %v2506_v49 = vpop.f32.mrb[157].mxu0  ;;  %5677 = vtanh.f32 %v3008_v12  ;;  %v2881_v56 = vmul.f32 0.5, %v2499_v29  ;;  %v3227_v28 = vmul.f32 0.5, %v3195_v20 }
 0x384   :  { %v7705_v1 = vpop.f32.mrb[157].mxu1  ;;  %v5664_v10 = vpop.eup %5663  ;;  %v7707_v2 = vadd.f32 %v3325_v25, %v3293_v48  ;;  %v3294_v62 = vmul.f32 %v2974_v9, %v8908_v55  ;;  %5679 = vtanh.f32 %v2752_v16  ;;  %v2501_v47 = vadd.f32 %v2500_v27, %v6528_v42 }
 0x385   :  { %v3102_v43 = vmul.f32 0.5, %v3070_v51  ;;  %v2943_v37 = vadd.f32 1.0, %v5664_v10  ;;  %v5666_v4 = vpop.eup %5665  ;;  %v7713_v60 = vmul.f32 0.5, %v3197_v5  ;;  %v3137_v22 = vmul.f32 0.5, %v2756_v52  ;;  %v8910_v52 = vld [vmem:[#allocation53_spill] sm:$0xff] }
 0x386   :  { %8907 = vst [vmem:[#allocation34_spill] sm:$0xff] %v7707_v2  ;;  %5681 = vtanh.f32 %v7707_v2  ;;  %v5668_v58 = vpop.eup %5667  ;;  %v3009_v51 = vmul.f32 0.5, %v2501_v47  ;;  %v2505_v16 = vadd.f32 %v2504_v13, %v6918_v35  ;;  %v2758_v27 = vadd.f32 %v2757_v61, %v6532_v46 }
 0x387   :  { %v3326_v48 = vmul.f32 %v5662_v17, %v3102_v43  ;;  %v2975_v25 = vmul.f32 0.5, %v2943_v37  ;;  %5683 = vtanh.f32 %v2881_v56  ;;  %v5670_v9 = vpop.eup %5669  ;;  %v7715_v12 = vmul.f32 %v5668_v58, %v3227_v28 }
 0x388   :  { %v5672_v29 = vpop.eup %5671  ;;  %v3071_v24 = vadd.f32 1.0, %v5670_v9  ;;  %5685 = vtanh.f32 %v3136_v23  ;;  %v2882_v5 = vmul.f32 0.5, %v2505_v16  ;;  %v2762_v17 = vadd.f32 %v2761_v30, %v6530_v45 }
 0x389   :  { %v7718_v20 = vadd.f32 %v3326_v48, %v3294_v62  ;;  %5687 = vtanh.f32 %v3009_v51  ;;  %v2507_v10 = vadd.f32 %v2506_v49, %v6528_v42  ;;  %v5674_v55 = vpop.eup %5673  ;;  %v3198_v58 = vadd.f32 1.0, %v5658_v54 }
 0x38a   :  { %v3295_v43 = vmul.f32 %v2975_v25, %v8910_v52  ;;  %v3103_v13 = vmul.f32 0.5, %v3071_v24  ;;  %v2944_v23 = vadd.f32 1.0, %v5674_v55  ;;  %v3138_v61 = vmul.f32 0.5, %v2762_v17  ;;  %v2510_v56 = vpop.f32.mrb[158].mxu0  ;;  %v2767_v30 = vpop.f32.mrb[158].mxu1 }
 0x38b   :  { %8909 = vst [vmem:[#allocation50_spill] sm:$0xff] %v7718_v20  ;;  %5689 = vtanh.f32 %v7718_v20  ;;  %v3010_v37 = vmul.f32 0.5, %v2507_v10  ;;  %v2511_v28 = vadd.f32 %v2510_v56, %v6918_v35  ;;  %v2512_v47 = vpop.f32.mrb[159].mxu0  ;;  %v2769_v48 = vpop.f32.mrb[159].mxu1 }
 0x38c   :  { %v5676_v62 = vpop.eup %5675  ;;  %5691 = vtanh.f32 %v3137_v22  ;;  %v3327_v49 = vmul.f32 %v5672_v29, %v3103_v13 }
 0x38d   :  { %v7727_v54 = vmul.f32 %v5676_v62, %v3228_v34  ;;  %5693 = vtanh.f32 %v2882_v5 }
 0x38e   :  { %6301 = shalt.err (!%p6298_p11)  }
 0x38f   :  { %s7756_s25 = scalar_lea.hbm %s8748_s4, 8192 }
 0x390   :  { %p6303_p12 = scmp.ne.s32.totalorder %s6888_s10, %s7756_s25  ;;  %p6306_p1 = scmp.lt.u32.totalorder %s6897_s14, %s7756_s25 }
 0x391   :  { %p6308_p4 = scmp.lt.u32.totalorder %s7756_s25, %s6888_s10 }
 0x392   :  { %p6307_p2 = por %p6306_p1, %p6284_p3 }
 0x394   :  { %p6309_p5 = por %p6308_p4, %p6307_p2 }
 0x396   :  { %p6310_p7 = pnand %p6309_p5, %p6303_p12 }
 0x398   :  { %6313 = shalt.err (!%p6310_p7)  }
 0x399   :  { %2289 = dma.vmem_to_hbm [thread:$0]  %s7725_s23, 4096, %s6888_s10, [#allocation3 + $0x1]  ;;  %v5678_v34 = vpop.eup %5677  ;;  %v3199_v25 = vadd.f32 1.0, %v5666_v4  ;;  %v2976_v9 = vmul.f32 0.5, %v2944_v23  ;;  %5695 = vtanh.f32 %v2758_v27  ;;  %v2764_v22 = vadd.f32 %v7705_v1, %v6532_v46  ;;  %v8914_v17 = vld [vmem:[#allocation54_spill] sm:$0xff]  ;;  %v2773_v13 = vpop.f32.mrb[160].mxu1 }
 0x39a   :  { %v5680_v51 = vpop.eup %5679  ;;  %v7773_v16 = vadd.f32 %v3327_v49, %v3295_v43  ;;  %v3072_v29 = vadd.f32 1.0, %v5678_v34  ;;  %5697 = vtanh.f32 %v3010_v37  ;;  %v2883_v24 = vmul.f32 0.5, %v2511_v28  ;;  %v2516_v43 = vpop.f32.mrb[160].mxu0 }
 0x39b   :  { %v5682_v5 = vpop.eup %5681  ;;  %v3296_v10 = vmul.f32 %v2976_v9, %v8914_v17  ;;  %5699 = vtanh.f32 %v3138_v61  ;;  %v2768_v55 = vadd.f32 %v2767_v30, %v6530_v45  ;;  %v2513_v1 = vadd.f32 %v2512_v47, %v6528_v42  ;;  %v2518_v56 = vpop.f32.mrb[161].mxu0 }
 0x39c   :  { %8913 = vst [vmem:[#allocation35_spill] sm:$0xff] %v7773_v16  ;;  %v5684_v52 = vpop.eup %5683  ;;  %v7778_v4 = vmul.f32 %v5682_v5, %v7713_v60  ;;  %5701 = vtanh.f32 %v7773_v16  ;;  %v3104_v27 = vmul.f32 0.5, %v3072_v29  ;;  %v3230_v62 = vmul.f32 0.5, %v3198_v58  ;;  %v2775_v61 = vpop.f32.mrb[161].mxu1 }
 0x39d   :  { %v2945_v23 = vadd.f32 1.0, %v5684_v52  ;;  %5703 = vtanh.f32 %v2883_v24  ;;  %v2517_v37 = vadd.f32 %v2516_v43, %v6918_v35  ;;  %v5686_v49 = vpop.eup %5685  ;;  %v3231_v30 = vmul.f32 0.5, %v3199_v25 }
 0x39e   :  { %v3328_v28 = vmul.f32 %v5680_v51, %v3104_v27  ;;  %5705 = vtanh.f32 %v2764_v22  ;;  %v3011_v60 = vmul.f32 0.5, %v2513_v1  ;;  %v5688_v34 = vpop.eup %5687  ;;  %v3139_v5 = vmul.f32 0.5, %v2768_v55  ;;  %v2522_v51 = vpop.f32.mrb[162].mxu0  ;;  %v8916_v55 = vld [vmem:[#allocation55_spill] sm:$0xff] }
 0x39f   :  { %v2977_v9 = vmul.f32 0.5, %v2945_v23  ;;  %v2884_v29 = vmul.f32 0.5, %v2517_v37  ;;  %v2774_v47 = vadd.f32 %v2773_v13, %v6530_v45  ;;  %v5690_v17 = vpop.eup %5689  ;;  %v3073_v58 = vadd.f32 1.0, %v5688_v34  ;;  %v2779_v27 = vpop.f32.mrb[162].mxu1 }
 0x3a0   :  { %v7784_v16 = vadd.f32 %v3328_v28, %v3296_v10  ;;  %5707 = vtanh.f32 %v3011_v60  ;;  %v2770_v24 = vadd.f32 %v2769_v48, %v6532_v46  ;;  %v5692_v52 = vpop.eup %5691  ;;  %v7787_v43 = vmul.f32 %v5690_v17, %v3230_v62  ;;  %v2524_v37 = vpop.f32.mrb[163].mxu0 }
 0x3a1   :  { %v3200_v25 = vadd.f32 1.0, %v5686_v49  ;;  %5709 = vtanh.f32 %v2884_v29  ;;  %v3140_v22 = vmul.f32 0.5, %v2774_v47  ;;  %v5694_v1 = vpop.eup %5693  ;;  %v3297_v13 = vmul.f32 %v2977_v9, %v8916_v55  ;;  %v2781_v28 = vpop.f32.mrb[163].mxu1 }
 0x3a2   :  { %8915 = vst [vmem:[#allocation52_spill] sm:$0xff] %v7784_v16  ;;  %5711 = vtanh.f32 %v7784_v16  ;;  %v3105_v23 = vmul.f32 0.5, %v3073_v58  ;;  %v2519_v10 = vadd.f32 %v2518_v56, %v6528_v42  ;;  %v2946_v48 = vadd.f32 1.0, %v5694_v1 }
 0x3a3   :  { %v5696_v60 = vpop.eup %5695  ;;  %5713 = vtanh.f32 %v3139_v5  ;;  %v2523_v62 = vadd.f32 %v2522_v51, %v6918_v35  ;;  %v2780_v49 = vadd.f32 %v2779_v27, %v6530_v45  ;;  %v2776_v17 = vadd.f32 %v2775_v61, %v6532_v46 }
 0x3a4   :  { %v5698_v34 = vpop.eup %5697  ;;  %v3329_v29 = vmul.f32 %v5696_v60, %v3105_v23  ;;  %5715 = vtanh.f32 %v2770_v24  ;;  %v3012_v47 = vmul.f32 0.5, %v2519_v10  ;;  %v2978_v9 = vmul.f32 0.5, %v2946_v48  ;;  %v8919_v23 = vld [vmem:[#allocation56_spill] sm:$0xff] }
 0x3a5   :  { %v5700_v16 = vpop.eup %5699  ;;  %v3074_v58 = vadd.f32 1.0, %v5698_v34  ;;  %5717 = vtanh.f32 %v3140_v22  ;;  %v2885_v56 = vmul.f32 0.5, %v2523_v62  ;;  %v3141_v5 = vmul.f32 0.5, %v2780_v49  ;;  %v2785_v62 = vpop.f32.mrb[164].mxu1 }
 0x3a6   :  { %v5702_v55 = vpop.eup %5701  ;;  %v7795_v20 = vadd.f32 %v3329_v29, %v3297_v13  ;;  %5719 = vtanh.f32 %v3012_v47  ;;  %v2525_v51 = vadd.f32 %v2524_v37, %v6528_v42  ;;  %v3298_v24 = vmul.f32 %v2978_v9, %v8919_v23  ;;  %v2528_v13 = vpop.f32.mrb[164].mxu0 }
 0x3a7   :  { %v5704_v1 = vpop.eup %5703  ;;  %v7798_v27 = vmul.f32 %v5702_v55, %v3231_v30  ;;  %v3106_v10 = vmul.f32 0.5, %v3074_v58  ;;  %5721 = vtanh.f32 %v2885_v56  ;;  %v2782_v48 = vadd.f32 %v2781_v28, %v6532_v46  ;;  %v2530_v30 = vpop.f32.mrb[165].mxu0 }
 0x3a8   :  { %8917 = vst [vmem:[#allocation36_spill] sm:$0xff] %v7795_v20  ;;  %v5706_v61 = vpop.eup %5705  ;;  %5723 = vtanh.f32 %v7795_v20  ;;  %v2947_v60 = vadd.f32 1.0, %v5704_v1  ;;  %v3013_v22 = vmul.f32 0.5, %v2525_v51  ;;  %v3232_v34 = vmul.f32 0.5, %v3200_v25  ;;  %v2787_v29 = vpop.f32.mrb[165].mxu1 }
 0x3a9   :  { %8918 = vst [vmem:[#allocation28_spill] sm:$0xff] %v7798_v27  ;;  %v3330_v49 = vmul.f32 %v5706_v61, %v3106_v10  ;;  %5725 = vtanh.f32 %v2776_v17  ;;  %v2529_v37 = vadd.f32 %v2528_v13, %v6918_v35  ;;  %v3201_v9 = vadd.f32 1.0, %v5692_v52 }
 0x3aa   :  { %v5708_v47 = vpop.eup %5707  ;;  %v2979_v58 = vmul.f32 0.5, %v2947_v60  ;;  %5727 = vtanh.f32 %v3013_v22  ;;  %v2531_v56 = vadd.f32 %v2530_v30, %v6528_v42  ;;  %v2786_v28 = vadd.f32 %v2785_v62, %v6530_v45  ;;  %v2534_v22 = vpop.f32.mrb[166].mxu0 }
 0x3ab   :  { %v5710_v55 = vpop.eup %5709  ;;  %v7805_v1 = vadd.f32 %v3330_v49, %v3298_v24  ;;  %v3075_v51 = vadd.f32 1.0, %v5708_v47  ;;  %5729 = vtanh.f32 %v3141_v5  ;;  %v2886_v10 = vmul.f32 0.5, %v2529_v37  ;;  %v2791_v24 = vpop.f32.mrb[166].mxu1 }
 0x3ac   :  { %v5712_v25 = vpop.eup %5711  ;;  %v3299_v17 = vmul.f32 %v2979_v58, %v7268_v57  ;;  %v2948_v23 = vadd.f32 1.0, %v5710_v55  ;;  %5731 = vtanh.f32 %v2782_v48  ;;  %v3014_v60 = vmul.f32 0.5, %v2531_v56  ;;  %v2536_v62 = vpop.f32.mrb[167].mxu0 }
 0x3ad   :  { %8920 = vst [vmem:[#allocation27_spill] sm:$0xff] %v7805_v1  ;;  %v5714_v61 = vpop.eup %5713  ;;  %v7809_v13 = vmul.f32 %v5712_v25, %v3232_v34  ;;  %5733 = vtanh.f32 %v7805_v1  ;;  %v3107_v52 = vmul.f32 0.5, %v3075_v51  ;;  %v2788_v5 = vadd.f32 %v2787_v29, %v6532_v46  ;;  %v2793_v47 = vpop.f32.mrb[167].mxu1 }
 0x3ae   :  { %v5716_v49 = vpop.eup %5715  ;;  %v2980_v30 = vmul.f32 0.5, %v2948_v23  ;;  %5735 = vtanh.f32 %v2886_v10  ;;  %v3233_v58 = vmul.f32 0.5, %v3201_v9  ;;  %v3202_v48 = vadd.f32 1.0, %v5700_v16  ;;  %v2540_v2 = vpop.f32.mrb[168].mxu0 }
 0x3af   :  { %8921 = vst [vmem:[#allocation37_spill] sm:$0xff] %v7809_v13  ;;  %v5718_v57 = vpop.eup %5717  ;;  %v3331_v37 = vmul.f32 %v5716_v49, %v3107_v52  ;;  %v2535_v34 = vadd.f32 %v2534_v22, %v6918_v35  ;;  %v3203_v25 = vadd.f32 1.0, %v5714_v61  ;;  %v3142_v1 = vmul.f32 0.5, %v2786_v28  ;;  %v2797_v44 = vpop.f32.mrb[168].mxu1 }
 0x3b0   :  { %v5720_v55 = vpop.eup %5719  ;;  %5737 = vtanh.f32 %v3014_v60  ;;  %v2537_v56 = vadd.f32 %v2536_v62, %v6528_v42  ;;  %v2792_v29 = vadd.f32 %v2791_v24, %v6530_v45  ;;  %v3300_v16 = vmul.f32 %v2980_v30, %v7304_v6  ;;  %v2542_v61 = vpop.f32.mrb[169].mxu0 }
 0x3b1   :  { %v5722_v51 = vpop.eup %5721  ;;  %v7815_v20 = vadd.f32 %v3331_v37, %v3299_v17  ;;  %v3076_v23 = vadd.f32 1.0, %v5720_v55  ;;  %v2887_v10 = vmul.f32 0.5, %v2535_v34  ;;  %5739 = vtanh.f32 %v2788_v5  ;;  %v2799_v28 = vpop.f32.mrb[169].mxu1 }
 0x3b2   :  { %v5724_v9 = vpop.eup %5723  ;;  %v2949_v52 = vadd.f32 1.0, %v5722_v51  ;;  %v3015_v22 = vmul.f32 0.5, %v2537_v56  ;;  %v2541_v62 = vadd.f32 %v2540_v2, %v6918_v35  ;;  %v3234_v24 = vmul.f32 0.5, %v3202_v48  ;;  %v2546_v56 = vpop.f32.mrb[170].mxu0 }
 0x3b3   :  { %8922 = vst [vmem:[#allocation38_spill] sm:$0xff] %v7815_v20  ;;  %v5726_v60 = vpop.eup %5725  ;;  %v7819_v49 = vmul.f32 %v5724_v9, %v3233_v58  ;;  %5741 = vtanh.f32 %v7815_v20  ;;  %v3108_v17 = vmul.f32 0.5, %v3076_v23  ;;  %v3235_v34 = vmul.f32 0.5, %v3203_v25  ;;  %v2803_v51 = vpop.f32.mrb[170].mxu1 }
 0x3b4   :  { %v5728_v37 = vpop.eup %5727  ;;  %v2981_v55 = vmul.f32 0.5, %v2949_v52  ;;  %5743 = vtanh.f32 %v2887_v10  ;;  %v2888_v5 = vmul.f32 0.5, %v2541_v62  ;;  %v3204_v58 = vadd.f32 1.0, %v5718_v57  ;;  %v2548_v20 = vpop.f32.mrb[171].mxu0 }
 0x3b5   :  { %8923 = vst [vmem:[#allocation39_spill] sm:$0xff] %v7819_v49  ;;  %v5730_v13 = vpop.eup %5729  ;;  %v3332_v6 = vmul.f32 %v5726_v60, %v3108_v17  ;;  %v3077_v30 = vadd.f32 1.0, %v5728_v37  ;;  %5745 = vtanh.f32 %v3142_v1  ;;  %v3143_v9 = vmul.f32 0.5, %v2792_v29  ;;  %v2805_v2 = vpop.f32.mrb[171].mxu1 }
 0x3b6   :  { %v5732_v27 = vpop.eup %5731  ;;  %5747 = vtanh.f32 %v3015_v22  ;;  %v2794_v23 = vadd.f32 %v2793_v47, %v6532_v46  ;;  %v3301_v25 = vmul.f32 %v2981_v55, %v7328_v14  ;;  %v2543_v52 = vadd.f32 %v2542_v61, %v6528_v42 }
 0x3b7   :  { %v5734_v49 = vpop.eup %5733  ;;  %v7824_v48 = vadd.f32 %v3332_v6, %v3300_v16  ;;  %v3109_v10 = vmul.f32 0.5, %v3077_v30  ;;  %5749 = vtanh.f32 %v2888_v5  ;;  %v2798_v57 = vadd.f32 %v2797_v44, %v6530_v45 }
 0x3b8   :  { %v5736_v1 = vpop.eup %5735  ;;  %v7828_v60 = vmul.f32 %v5734_v49, %v3234_v24  ;;  %v2547_v29 = vadd.f32 %v2546_v56, %v6918_v35  ;;  %v3016_v17 = vmul.f32 0.5, %v2543_v52  ;;  %v3205_v62 = vadd.f32 1.0, %v5730_v13  ;;  %v2552_v56 = vpop.f32.mrb[172].mxu0 }
 0x3b9   :  { %8924 = vst [vmem:[#allocation40_spill] sm:$0xff] %v7824_v48  ;;  %5751 = vtanh.f32 %v7824_v48  ;;  %v3333_v47 = vmul.f32 %v5732_v27, %v3109_v10  ;;  %v2950_v22 = vadd.f32 1.0, %v5736_v1  ;;  %v2800_v14 = vadd.f32 %v2799_v28, %v6532_v46 }
 0x3ba   :  { %v5738_v16 = vpop.eup %5737  ;;  %5753 = vtanh.f32 %v2794_v23  ;;  %v2889_v37 = vmul.f32 0.5, %v2547_v29  ;;  %v3236_v44 = vmul.f32 0.5, %v3204_v58  ;;  %v3144_v6 = vmul.f32 0.5, %v2798_v57  ;;  %v2809_v23 = vpop.f32.mrb[172].mxu1 }
 0x3bb   :  { %v7834_v61 = vadd.f32 %v3333_v47, %v3301_v25  ;;  %v2982_v49 = vmul.f32 0.5, %v2950_v22  ;;  %v3078_v24 = vadd.f32 1.0, %v5738_v16  ;;  %5755 = vtanh.f32 %v3016_v17  ;;  %v5740_v55 = vpop.eup %5739  ;;  %v2811_v1 = vpop.f32.mrb[173].mxu1 }
 0x3bc   :  { %5757 = vtanh.f32 %v3143_v9  ;;  %v2549_v30 = vadd.f32 %v2548_v20, %v6528_v42  ;;  %v2804_v28 = vadd.f32 %v2803_v51, %v6530_v45  ;;  %v2553_v58 = vadd.f32 %v2552_v56, %v6918_v35  ;;  %v2554_v9 = vpop.f32.mrb[173].mxu0 }
 0x3bd   :  { %8925 = vst [vmem:[#allocation41_spill] sm:$0xff] %v7834_v61  ;;  %v5742_v27 = vpop.eup %5741  ;;  %5759 = vtanh.f32 %v7834_v61  ;;  %v3302_v13 = vmul.f32 %v2982_v49, %v7350_v26  ;;  %v3110_v5 = vmul.f32 0.5, %v3078_v24  ;;  %v3237_v57 = vmul.f32 0.5, %v3205_v62  ;;  %v2558_v49 = vpop.f32.mrb[174].mxu0 }
 0x3be   :  { %v5744_v25 = vpop.eup %5743  ;;  %v7840_v10 = vmul.f32 %v5742_v27, %v3235_v34  ;;  %5761 = vtanh.f32 %v2889_v37  ;;  %v3017_v52 = vmul.f32 0.5, %v2549_v30  ;;  %v2806_v51 = vadd.f32 %v2805_v2, %v6532_v46  ;;  %v2815_v24 = vpop.f32.mrb[174].mxu1 }
 0x3bf   :  { %v5746_v20 = vpop.eup %5745  ;;  %v3334_v29 = vmul.f32 %v5740_v55, %v3110_v5  ;;  %v2951_v47 = vadd.f32 1.0, %v5744_v25  ;;  %5763 = vtanh.f32 %v2800_v14  ;;  %v2890_v22 = vmul.f32 0.5, %v2553_v58  ;;  %v2560_v55 = vpop.f32.mrb[175].mxu0 }
 0x3c0   :  { %v5748_v26 = vpop.eup %5747  ;;  %5765 = vtanh.f32 %v3017_v52  ;;  %v2555_v17 = vadd.f32 %v2554_v9, %v6528_v42  ;;  %v3145_v27 = vmul.f32 0.5, %v2804_v28  ;;  %v2810_v62 = vadd.f32 %v2809_v23, %v6530_v45  ;;  %v2817_v5 = vpop.f32.mrb[175].mxu1 }
 0x3c1   :  { %v7845_v34 = vadd.f32 %v3334_v29, %v3302_v13  ;;  %v2983_v16 = vmul.f32 0.5, %v2951_v47  ;;  %v3079_v37 = vadd.f32 1.0, %v5748_v26  ;;  %5767 = vtanh.f32 %v3144_v6  ;;  %v5750_v30 = vpop.eup %5749  ;;  %v2564_v26 = vpop.f32.mrb[176].mxu0 }
 0x3c2   :  { %5769 = vtanh.f32 %v2890_v22  ;;  %v3018_v14 = vmul.f32 0.5, %v2555_v17  ;;  %v2952_v25 = vadd.f32 1.0, %v5750_v30  ;;  %v2812_v6 = vadd.f32 %v2811_v1, %v6532_v46  ;;  %v7854_v22 = vpop.f32.mrb[176].mxu1 }
 0x3c3   :  { %8926 = vst [vmem:[#allocation42_spill] sm:$0xff] %v7845_v34  ;;  %v5752_v56 = vpop.eup %5751  ;;  %5771 = vtanh.f32 %v7845_v34  ;;  %v3303_v2 = vmul.f32 %v2983_v16, %v7378_v39  ;;  %v3111_v13 = vmul.f32 0.5, %v3079_v37  ;;  %v2559_v28 = vadd.f32 %v2558_v49, %v6918_v35  ;;  %v2823_v30 = vpop.f32.mrb[177].mxu1 }
 0x3c4   :  { %v5754_v52 = vpop.eup %5753  ;;  %v7850_v58 = vmul.f32 %v5752_v56, %v3236_v44  ;;  %5773 = vtanh.f32 %v2806_v51  ;;  %v3206_v23 = vadd.f32 1.0, %v5746_v20  ;;  %v2984_v47 = vmul.f32 0.5, %v2952_v25  ;;  %v2566_v44 = vpop.f32.mrb[177].mxu0 }
 0x3c5   :  { %v5756_v9 = vpop.eup %5755  ;;  %v3335_v29 = vmul.f32 %v5754_v52, %v3111_v13  ;;  %5775 = vtanh.f32 %v3018_v14  ;;  %v3146_v16 = vmul.f32 0.5, %v2810_v62  ;;  %v2891_v37 = vmul.f32 0.5, %v2559_v28  ;;  %v2570_v28 = vpop.f32.mrb[178].mxu0 }
 0x3c6   :  { %v5758_v17 = vpop.eup %5757  ;;  %v3080_v39 = vadd.f32 1.0, %v5756_v9  ;;  %5777 = vtanh.f32 %v3145_v27  ;;  %v2816_v1 = vadd.f32 %v2815_v24, %v6530_v45  ;;  %v2561_v20 = vadd.f32 %v2560_v55, %v6528_v42 }
 0x3c7   :  { %v5760_v51 = vpop.eup %5759  ;;  %v7856_v56 = vadd.f32 %v3335_v29, %v3303_v2  ;;  %5779 = vtanh.f32 %v2812_v6  ;;  %v3304_v13 = vmul.f32 %v2984_v47, %v7411_v32  ;;  %v2818_v2 = vadd.f32 %v2817_v5, %v6532_v46  ;;  %v7865_v6 = vpop.f32.mrb[178].mxu1 }
 0x3c8   :  { %v5762_v49 = vpop.eup %5761  ;;  %v7860_v14 = vmul.f32 %v5760_v51, %v3237_v57  ;;  %v3112_v25 = vmul.f32 0.5, %v3080_v39  ;;  %5781 = vtanh.f32 %v2891_v37  ;;  %v3019_v52 = vmul.f32 0.5, %v2561_v20  ;;  %v2572_v29 = vpop.f32.mrb[179].mxu0 }
 0x3c9   :  { %8927 = vst [vmem:[#allocation43_spill] sm:$0xff] %v7856_v56  ;;  %v5764_v27 = vpop.eup %5763  ;;  %5783 = vtanh.f32 %v7856_v56  ;;  %v2953_v62 = vadd.f32 1.0, %v5762_v49  ;;  %v3238_v9 = vmul.f32 0.5, %v3206_v23  ;;  %v2565_v57 = vadd.f32 %v2564_v26, %v6918_v35  ;;  %v7868_v51 = vpop.f32.mrb[179].mxu1 }
 0x3ca   :  { %8928 = vst [vmem:[#allocation44_spill] sm:$0xff] %v7860_v14  ;;  %v5766_v24 = vpop.eup %5765  ;;  %v3336_v55 = vmul.f32 %v5764_v27, %v3112_v25  ;;  %v3207_v47 = vadd.f32 1.0, %v5758_v17  ;;  %5785 = vtanh.f32 %v3019_v52  ;;  %v3147_v5 = vmul.f32 0.5, %v2816_v1  ;;  %v2576_v26 = vpop.f32.mrb[180].mxu0 }
 0x3cb   :  { %v5768_v32 = vpop.eup %5767  ;;  %v2985_v39 = vmul.f32 0.5, %v2953_v62  ;;  %v3081_v37 = vadd.f32 1.0, %v5766_v24  ;;  %5787 = vtanh.f32 %v3146_v16  ;;  %v2892_v56 = vmul.f32 0.5, %v2565_v57  ;;  %v7873_v61 = vpop.f32.mrb[180].mxu1 }
 0x3cc   :  { %v5770_v49 = vpop.eup %5769  ;;  %v7870_v20 = vadd.f32 %v3336_v55, %v3304_v13  ;;  %5789 = vtanh.f32 %v2818_v2  ;;  %v2567_v13 = vadd.f32 %v2566_v44, %v6528_v42  ;;  %v2578_v62 = vpop.f32.mrb[181].mxu0  ;;  %v3239_v52 = vmul.f32 0.5, %v3207_v47 }
 0x3cd   :  { %v5772_v34 = vpop.eup %5771  ;;  %v3305_v23 = vmul.f32 %v2985_v39, %v7429_v53  ;;  %v3113_v25 = vmul.f32 0.5, %v3081_v37  ;;  %v2954_v27 = vadd.f32 1.0, %v5770_v49  ;;  %v7879_v16 = vpop.f32.mrb[181].mxu1  ;;  %v3208_v2 = vadd.f32 1.0, %v5768_v32 }
 0x3ce   :  { %8929 = vst [vmem:[#allocation45_spill] sm:$0xff] %v7870_v20  ;;  %v5774_v48 = vpop.eup %5773  ;;  %v7875_v17 = vmul.f32 %v5772_v34, %v3238_v9  ;;  %5791 = vtanh.f32 %v7870_v20  ;;  %v3020_v39 = vmul.f32 0.5, %v2567_v13  ;;  %v2571_v37 = vadd.f32 %v2570_v28, %v6918_v35  ;;  %v2582_v20 = vpop.f32.mrb[182].mxu0 }
 0x3cf   :  { %v5776_v1 = vpop.eup %5775  ;;  %v3337_v24 = vmul.f32 %v5774_v48, %v3113_v25  ;;  %v2986_v53 = vmul.f32 0.5, %v2954_v27  ;;  %5793 = vtanh.f32 %v2892_v56  ;;  %v2822_v44 = vadd.f32 %v7854_v22, %v6530_v45  ;;  %v7887_v47 = vpop.f32.mrb[182].mxu1 }
 0x3d0   :  { %8930 = vst [vmem:[#allocation46_spill] sm:$0xff] %v7875_v17  ;;  %v5778_v55 = vpop.eup %5777  ;;  %v3082_v57 = vadd.f32 1.0, %v5776_v1  ;;  %5795 = vtanh.f32 %v3147_v5  ;;  %v2824_v49 = vadd.f32 %v2823_v30, %v6532_v46  ;;  %v2893_v25 = vmul.f32 0.5, %v2571_v37  ;;  %v2584_v27 = vpop.f32.mrb[183].mxu0 }
 0x3d1   :  { %v5780_v34 = vpop.eup %5779  ;;  %v7882_v9 = vadd.f32 %v3337_v24, %v3305_v23  ;;  %v3306_v56 = vmul.f32 %v2986_v53, %v7449_v63  ;;  %5797 = vtanh.f32 %v3020_v39  ;;  %v7890_v28 = vpop.f32.mrb[183].mxu1  ;;  %v3209_v13 = vadd.f32 1.0, %v5778_v55 }
 0x3d2   :  { %v5782_v48 = vpop.eup %5781  ;;  %v3114_v32 = vmul.f32 0.5, %v3082_v57  ;;  %v2573_v22 = vadd.f32 %v2572_v29, %v6528_v42  ;;  %v3240_v1 = vmul.f32 0.5, %v3208_v2  ;;  %v3148_v53 = vmul.f32 0.5, %v2822_v44  ;;  %v7898_v37 = vpop.f32.mrb[184].mxu0 }
 0x3d3   :  { %8931 = vst [vmem:[#allocation47_spill] sm:$0xff] %v7882_v9  ;;  %v5784_v23 = vpop.eup %5783  ;;  %5799 = vtanh.f32 %v7882_v9  ;;  %v2955_v5 = vadd.f32 1.0, %v5782_v48  ;;  %v2828_v57 = vadd.f32 %v7865_v6, %v6530_v45  ;;  %v7900_v55 = vpop.f32.mrb[184].mxu1  ;;  %v3241_v44 = vmul.f32 0.5, %v3209_v13 }
 0x3d4   :  { %v7894_v30 = vmul.f32 %v5784_v23, %v3239_v52  ;;  %v3338_v24 = vmul.f32 %v5780_v34, %v3114_v32  ;;  %5801 = vtanh.f32 %v2893_v25  ;;  %v5786_v17 = vpop.eup %5785  ;;  %v3021_v39 = vmul.f32 0.5, %v2573_v22  ;;  %v2590_v2 = vpop.f32.mrb[185].mxu0 }
 0x3d5   :  { %v2987_v63 = vmul.f32 0.5, %v2955_v5  ;;  %v5788_v9 = vpop.eup %5787  ;;  %v3083_v29 = vadd.f32 1.0, %v5786_v17  ;;  %5803 = vtanh.f32 %v2824_v49  ;;  %v2577_v52 = vadd.f32 %v2576_v26, %v6918_v35  ;;  %v7905_v34 = vpop.f32.mrb[185].mxu1 }
 0x3d6   :  { %8932 = vst [vmem:[#allocation48_spill] sm:$0xff] %v7894_v30  ;;  %v7902_v48 = vadd.f32 %v3338_v24, %v3306_v56  ;;  %v5790_v32 = vpop.eup %5789  ;;  %5805 = vtanh.f32 %v3021_v39  ;;  %v2830_v6 = vadd.f32 %v7868_v51, %v6532_v46  ;;  %v2579_v17 = vadd.f32 %v2578_v62, %v6528_v42  ;;  %v7915_v24 = vpop.f32.mrb[186].mxu0 }
 0x3d7   :  { %v3307_v25 = vmul.f32 %v2987_v63, %v7464_v15  ;;  %v3115_v56 = vmul.f32 0.5, %v3083_v29  ;;  %v2894_v5 = vmul.f32 0.5, %v2577_v52  ;;  %v3149_v22 = vmul.f32 0.5, %v2828_v57  ;;  %v7917_v15 = vpop.f32.mrb[186].mxu1 }
 0x3d8   :  { %8933 = vst [vmem:[#allocation49_spill] sm:$0xff] %v7902_v48  ;;  %v5792_v23 = vpop.eup %5791  ;;  %5807 = vtanh.f32 %v7902_v48  ;;  %v2583_v13 = vadd.f32 %v2582_v20, %v6918_v35  ;;  %v3022_v39 = vmul.f32 0.5, %v2579_v17  ;;  %v7919_v48 = vpop.f32.mrb[187].mxu0  ;;  %v3210_v52 = vadd.f32 1.0, %v5788_v9 }
 0x3d9   :  { %v5794_v49 = vpop.eup %5793  ;;  %v7912_v26 = vmul.f32 %v5792_v23, %v3240_v1  ;;  %5809 = vtanh.f32 %v3148_v53  ;;  %v3339_v63 = vmul.f32 %v5790_v32, %v3115_v56  ;;  %v7921_v29 = vpop.f32.mrb[187].mxu1  ;;  %v2836_v1 = vadd.f32 %v7879_v16, %v6532_v46 }
 0x3da   :  { %v2956_v51 = vadd.f32 1.0, %v5794_v49  ;;  %5811 = vtanh.f32 %v2894_v5  ;;  %v5796_v62 = vpop.eup %5795  ;;  %v2895_v53 = vmul.f32 0.5, %v2583_v13  ;;  %v2585_v32 = vadd.f32 %v2584_v27, %v6528_v42  ;;  %v7934_v16 = vpop.f32.mrb[188].mxu1 }
 0x3db   :  { %8934 = vst [vmem:[#allocation51_spill] sm:$0xff] %v7912_v26  ;;  %5813 = vtanh.f32 %v2830_v6  ;;  %v5798_v20 = vpop.eup %5797  ;;  %v7925_v57 = vadd.f32 %v3339_v63, %v3307_v25  ;;  %v2834_v17 = vadd.f32 %v7873_v61, %v6530_v45  ;;  %v2840_v9 = vadd.f32 %v7887_v47, %v6530_v45  ;;  %v7932_v6 = vpop.f32.mrb[188].mxu0 }
 0x3dc   :  { %v2988_v23 = vmul.f32 0.5, %v2956_v51  ;;  %5815 = vtanh.f32 %v3022_v39  ;;  %v3084_v5 = vadd.f32 1.0, %v5798_v20  ;;  %v3023_v13 = vmul.f32 0.5, %v2585_v32  ;;  %v7940_v63 = vpop.f32.mrb[189].mxu0 }
 0x3dd   :  { %8935 = vst [vmem:[#allocation53_spill] sm:$0xff] %v7925_v57  ;;  %v5800_v56 = vpop.eup %5799  ;;  %5817 = vtanh.f32 %v3149_v22  ;;  %v7942_v22 = vpop.f32.mrb[189].mxu1  ;;  %v2842_v47 = vadd.f32 %v7890_v28, %v6532_v46  ;;  %v3242_v20 = vmul.f32 0.5, %v3210_v52  ;;  %v3150_v28 = vmul.f32 0.5, %v2834_v17 }
 0x3de   :  { %v5802_v49 = vpop.eup %5801  ;;  %v7936_v25 = vmul.f32 %v5800_v56, %v3241_v44  ;;  %5819 = vtanh.f32 %v7925_v57  ;;  %v3308_v27 = vmul.f32 %v2988_v23, %v7478_v8  ;;  %v3116_v61 = vmul.f32 0.5, %v3084_v5  ;;  %v7951_v5 = vpop.f32.mrb[190].mxu1 }
 0x3df   :  { %v2957_v51 = vadd.f32 1.0, %v5802_v49  ;;  %5821 = vtanh.f32 %v2895_v53  ;;  %v5804_v39 = vpop.eup %5803  ;;  %v2589_v44 = vadd.f32 %v7898_v37, %v6918_v35  ;;  %v2591_v56 = vadd.f32 %v2590_v2, %v6528_v42 }
 0x3e0   :  { %8936 = vst [vmem:[#allocation54_spill] sm:$0xff] %v7936_v25  ;;  %5823 = vtanh.f32 %v2836_v1  ;;  %v5806_v8 = vpop.eup %5805  ;;  %v3211_v23 = vadd.f32 1.0, %v5796_v62  ;;  %v3340_v32 = vmul.f32 %v5804_v39, %v3116_v61  ;;  %v7949_v25 = vpop.f32.mrb[190].mxu0  ;;  %v3151_v62 = vmul.f32 0.5, %v2840_v9 }
 0x3e1   :  { %v2989_v57 = vmul.f32 0.5, %v2957_v51  ;;  %5825 = vtanh.f32 %v3023_v13  ;;  %v3085_v49 = vadd.f32 1.0, %v5806_v8  ;;  %v2896_v26 = vmul.f32 0.5, %v2589_v44  ;;  %v7953_v52 = vpop.f32.mrb[191].mxu0  ;;  %v7955_v1 = vpop.f32.mrb[191].mxu1 }
 0x3e2   :  { %v5808_v53 = vpop.eup %5807  ;;  %v7959_v2 = vadd.f32 %v3340_v32, %v3308_v27  ;;  %5827 = vtanh.f32 %v2842_v47  ;;  %v3024_v39 = vmul.f32 0.5, %v2591_v56  ;;  %v3243_v17 = vmul.f32 0.5, %v3211_v23 }
 0x3e3   :  { %v5810_v37 = vpop.eup %5809  ;;  %v7957_v30 = vmul.f32 %v5808_v53, %v3242_v20  ;;  %v3309_v61 = vmul.f32 %v2989_v57, %v7486_v11  ;;  %v3117_v51 = vmul.f32 0.5, %v3085_v49  ;;  %5829 = vtanh.f32 %v2896_v26 }
 0x3e4   :  { %v5812_v13 = vpop.eup %5811  ;;  %5831 = vtanh.f32 %v7959_v2  ;;  %v2595_v14 = vadd.f32 %v7915_v24, %v6918_v35  ;;  %v2848_v9 = vadd.f32 %v7905_v34, %v6532_v46  ;;  %v2597_v11 = vadd.f32 %v7919_v48, %v6528_v42 }
 0x3e5   :  { %v5814_v8 = vpop.eup %5813  ;;  %v2958_v44 = vadd.f32 1.0, %v5812_v13  ;;  %5833 = vtanh.f32 %v3150_v28  ;;  %v3212_v23 = vadd.f32 1.0, %v5810_v37  ;;  %v2846_v24 = vadd.f32 %v7900_v55, %v6530_v45 }
 0x3e6   :  { %v5816_v20 = vpop.eup %5815  ;;  %v3341_v53 = vmul.f32 %v5814_v8, %v3117_v51  ;;  %5835 = vtanh.f32 %v3024_v39  ;;  %v2897_v47 = vmul.f32 0.5, %v2595_v14  ;;  %v3025_v14 = vmul.f32 0.5, %v2597_v11 }
 0x3e7   :  { %v5818_v57 = vpop.eup %5817  ;;  %v2990_v26 = vmul.f32 0.5, %v2958_v44  ;;  %v3086_v27 = vadd.f32 1.0, %v5816_v20  ;;  %5837 = vtanh.f32 %v3151_v62  ;;  %v2854_v37 = vadd.f32 %v7921_v29, %v6532_v46 }
 0x3e8   :  { %v5820_v56 = vpop.eup %5819  ;;  %v7969_v32 = vadd.f32 %v3341_v53, %v3309_v61  ;;  %5839 = vtanh.f32 %v2897_v47  ;;  %v2852_v55 = vadd.f32 %v7917_v15, %v6530_v45  ;;  %v2601_v39 = vadd.f32 %v7932_v6, %v6918_v35 }
 0x3e9   :  { %v5822_v49 = vpop.eup %5821  ;;  %v7973_v28 = vmul.f32 %v5820_v56, %v3243_v17  ;;  %v3310_v34 = vmul.f32 %v2990_v26, %v7506_v31  ;;  %v3118_v13 = vmul.f32 0.5, %v3086_v27  ;;  %v3244_v31 = vmul.f32 0.5, %v3212_v23 }
 0x3ea   :  { %8937 = vst [vmem:[#allocation55_spill] sm:$0xff] %v7969_v32  ;;  %v5824_v48 = vpop.eup %5823  ;;  %5841 = vtanh.f32 %v7969_v32  ;;  %v2959_v51 = vadd.f32 1.0, %v5822_v49  ;;  %v3213_v20 = vadd.f32 1.0, %v5818_v57  ;;  %v3152_v11 = vmul.f32 0.5, %v2846_v24 }
 0x3eb   :  { %v5826_v61 = vpop.eup %5825  ;;  %v3342_v62 = vmul.f32 %v5824_v48, %v3118_v13  ;;  %5843 = vtanh.f32 %v2848_v9  ;;  %v2898_v26 = vmul.f32 0.5, %v2601_v39  ;;  %v2603_v15 = vadd.f32 %v7940_v63, %v6528_v42 }
 0x3ec   :  { %v2991_v8 = vmul.f32 0.5, %v2959_v51  ;;  %v3087_v17 = vadd.f32 1.0, %v5826_v61  ;;  %5845 = vtanh.f32 %v3025_v14  ;;  %v5828_v44 = vpop.eup %5827  ;;  %v3153_v56 = vmul.f32 0.5, %v2852_v55 }
 0x3ed   :  { %v7983_v53 = vadd.f32 %v3342_v62, %v3310_v34  ;;  %v5830_v29 = vpop.eup %5829  ;;  %5847 = vtanh.f32 %v2854_v37  ;;  %v2607_v57 = vadd.f32 %v7949_v25, %v6918_v35  ;;  %v3026_v34 = vmul.f32 0.5, %v2603_v15 }
 0x3ee   :  { %v3311_v27 = vmul.f32 %v2991_v8, %v7523_v50  ;;  %v3119_v9 = vmul.f32 0.5, %v3087_v17  ;;  %v5832_v47 = vpop.eup %5831  ;;  %v2960_v6 = vadd.f32 1.0, %v5830_v29  ;;  %v2860_v37 = vadd.f32 %v7942_v22, %v6532_v46 }
 0x3ef   :  { %8938 = vst [vmem:[#allocation56_spill] sm:$0xff] %v7983_v53  ;;  %5849 = vtanh.f32 %v7983_v53  ;;  %v5834_v23 = vpop.eup %5833  ;;  %v7991_v49 = vmul.f32 %v5832_v47, %v3244_v31  ;;  %v2899_v48 = vmul.f32 0.5, %v2607_v57  ;;  %v3245_v25 = vmul.f32 0.5, %v3213_v20 }
 0x3f0   :  { %v3343_v24 = vmul.f32 %v5828_v44, %v3119_v9  ;;  %5851 = vtanh.f32 %v2898_v26  ;;  %v5836_v50 = vpop.eup %5835  ;;  %v2992_v13 = vmul.f32 0.5, %v2960_v6  ;;  %v3214_v62 = vadd.f32 1.0, %v5834_v23 }
 0x3f1   :  { %5853 = vtanh.f32 %v3152_v11  ;;  %v5838_v51 = vpop.eup %5837  ;;  %v3088_v14 = vadd.f32 1.0, %v5836_v50  ;;  %v2609_v55 = vadd.f32 %v7953_v52, %v6528_v42  ;;  %v2858_v22 = vadd.f32 %v7934_v16, %v6530_v45 }
 0x3f2   :  { %v7993_v63 = vadd.f32 %v3343_v24, %v3311_v27  ;;  %5855 = vtanh.f32 %v3026_v34  ;;  %v5840_v61 = vpop.eup %5839  ;;  %v3312_v31 = vmul.f32 %v2992_v13, %v7539_v59  ;;  %v2866_v9 = vadd.f32 %v7955_v1, %v6532_v46 }
 0x3f3   :  { %5857 = vtanh.f32 %v3153_v56  ;;  %v3120_v8 = vmul.f32 0.5, %v3088_v14  ;;  %v2961_v17 = vadd.f32 1.0, %v5840_v61  ;;  %v3027_v20 = vmul.f32 0.5, %v2609_v55 }
 0x3f4   :  { %8939 = vst [vmem:[#allocation59_spill] sm:$0xff] %v7993_v63  ;;  %v5842_v39 = vpop.eup %5841  ;;  %5859 = vtanh.f32 %v7993_v63  ;;  %v3246_v15 = vmul.f32 0.5, %v3214_v62  ;;  %v3215_v47 = vadd.f32 1.0, %v5838_v51  ;;  %v3154_v23 = vmul.f32 0.5, %v2858_v22 }
 0x3f5   :  { %v5844_v44 = vpop.eup %5843  ;;  %v8001_v11 = vmul.f32 %v5842_v39, %v3245_v25  ;;  %5861 = vtanh.f32 %v2899_v48  ;;  %v2993_v27 = vmul.f32 0.5, %v2961_v17  ;;  %v2864_v50 = vadd.f32 %v7951_v5, %v6530_v45 }
 0x3f6   :  { %v5846_v26 = vpop.eup %5845  ;;  %v3344_v29 = vmul.f32 %v5844_v44, %v3120_v8  ;;  %5863 = vtanh.f32 %v2860_v37  ;;  %v3247_v14 = vmul.f32 0.5, %v3215_v47 }
 0x3f7   :  { %v3089_v52 = vadd.f32 1.0, %v5846_v26  ;;  %5865 = vtanh.f32 %v3027_v20  ;;  %v5848_v59 = vpop.eup %5847  ;;  %v3313_v57 = vmul.f32 %v2993_v27, %v7557_v18  ;;  %v3155_v39 = vmul.f32 0.5, %v2864_v50 }
 0x3f8   :  { %v8007_v6 = vadd.f32 %v3344_v29, %v3312_v31 }
 0x3f9   :  { %v5850_v56 = vpop.eup %5849  ;;  %v3121_v16 = vmul.f32 0.5, %v3089_v52 }
 0x3fa   :  { %8940 = vst [vmem:[#allocation60_spill] sm:$0xff] %v8007_v6  ;;  %v5852_v24 = vpop.eup %5851  ;;  %v8010_v34 = vmul.f32 %v5850_v56, %v3246_v15  ;;  %5867 = vtanh.f32 %v8007_v6 }
 0x3fb   :  { %v5854_v13 = vpop.eup %5853  ;;  %v3345_v1 = vmul.f32 %v5848_v59, %v3121_v16  ;;  %v2962_v48 = vadd.f32 1.0, %v5852_v24  ;;  %5869 = vtanh.f32 %v2866_v9 }
 0x3fc   :  { %v5856_v51 = vpop.eup %5855  ;;  %5871 = vtanh.f32 %v3154_v23  ;;  %v3216_v55 = vadd.f32 1.0, %v5854_v13 }
 0x3fd   :  { %v5858_v37 = vpop.eup %5857  ;;  %v8015_v61 = vadd.f32 %v3345_v1, %v3313_v57  ;;  %v2994_v18 = vmul.f32 0.5, %v2962_v48  ;;  %v3090_v25 = vadd.f32 1.0, %v5856_v51 }
 0x3fe   :  { %v5860_v62 = vpop.eup %5859  ;;  %v3248_v52 = vmul.f32 0.5, %v3216_v55  ;;  %v3217_v15 = vadd.f32 1.0, %v5858_v37 }
 0x3ff   :  { %8941 = vst [vmem:[#allocation61_spill] sm:$0xff] %v8015_v61  ;;  %v5862_v31 = vpop.eup %5861  ;;  %v8017_v8 = vmul.f32 %v5860_v62, %v3247_v14  ;;  %5873 = vtanh.f32 %v8015_v61  ;;  %v3314_v5 = vmul.f32 %v2994_v18, %v7568_v3  ;;  %v3122_v17 = vmul.f32 0.5, %v3090_v25 }
 0x400   :  { %v5864_v44 = vpop.eup %5863  ;;  %v2963_v22 = vadd.f32 1.0, %v5862_v31  ;;  %5875 = vtanh.f32 %v3155_v39  ;;  %v3249_v24 = vmul.f32 0.5, %v3217_v15 }
 0x401   :  { %v5866_v20 = vpop.eup %5865  ;;  %v3346_v26 = vmul.f32 %v5864_v44, %v3122_v17 }
 0x402   :  { %v2995_v29 = vmul.f32 0.5, %v2963_v22  ;;  %v3091_v27 = vadd.f32 1.0, %v5866_v20 }
 0x403   :  { %v8021_v9 = vadd.f32 %v3346_v26, %v3314_v5 }
 0x404   :  { %v5868_v59 = vpop.eup %5867  ;;  %v3315_v47 = vmul.f32 %v2995_v29, %v7575_v40  ;;  %v3123_v56 = vmul.f32 0.5, %v3091_v27 }
 0x405   :  { %8942 = vst [vmem:[#allocation62_spill] sm:$0xff] %v8021_v9  ;;  %v5870_v57 = vpop.eup %5869  ;;  %v8024_v16 = vmul.f32 %v5868_v59, %v3248_v52  ;;  %5877 = vtanh.f32 %v8021_v9 }
 0x406   :  { %v3347_v3 = vmul.f32 %v5870_v57, %v3123_v56  ;;  %v5872_v23 = vpop.eup %5871 }
 0x407   :  { %v3218_v48 = vadd.f32 1.0, %v5872_v23 }
 0x408   :  { %v8027_v50 = vadd.f32 %v3347_v3, %v3315_v47 }
 0x409   :  { %v5874_v13 = vpop.eup %5873  ;;  %v3250_v14 = vmul.f32 0.5, %v3218_v48 }
 0x40a   :  { %8943 = vst [vmem:[#allocation63_spill] sm:$0xff] %v8027_v50  ;;  %v8029_v1 = vmul.f32 %v5874_v13, %v3249_v24  ;;  %5879 = vtanh.f32 %v8027_v50  ;;  %v5876_v51 = vpop.eup %5875 }
 0x40b   :  { %v3219_v37 = vadd.f32 1.0, %v5876_v51 }
 0x40d   :  { %v3251_v25 = vmul.f32 0.5, %v3219_v37 }
 0x40f   :  { %v5878_v40 = vpop.eup %5877 }
 0x410   :  { %v8032_v18 = vmul.f32 %v5878_v40, %v3250_v14 }
 0x414   :  { %v5880_v62 = vpop.eup %5879 }
 0x415   :  { %v8034_v55 = vmul.f32 %v5880_v62, %v3251_v25 }
 0x416   :  { %6369 = dma.done.wait [#allocation3], 4096 }
 0x417   :  { %6370 = vsyncadd [#allocation3], 4294963200  ;;  %3621 = vmatprep.mubr.f32.mxu0 %v8843_v38  ;;  %3878 = vmatprep.mubr.f32.mxu1 %v8843_v38  ;;  %3447 = vst [vmem:[#allocation2] sm:$0xff] %v7615_v21  ;;  %v8944_v39 = vld [vmem:[#allocation28_spill] sm:$0xff]  ;;  %v8945_v31 = vld [vmem:[#allocation37_spill] sm:$0xff] }
 0x418   :  { %3448 = vst [vmem:[#allocation2 + $0x8] sm:$0xff] %v7644_v19  ;;  %3449 = vst [vmem:[#allocation2 + $0x10] sm:$0xff] %v7655_v33  ;;  %v8946_v5 = vld [vmem:[#allocation39_spill] sm:$0xff]  ;;  %v8947_v17 = vld [vmem:[#allocation44_spill] sm:$0xff] }
 0x419   :  { %3450 = vst [vmem:[#allocation2 + $0x18] sm:$0xff] %v7666_v36  ;;  %3451 = vst [vmem:[#allocation2 + $0x20] sm:$0xff] %v7675_v41  ;;  %v8948_v44 = vld [vmem:[#allocation46_spill] sm:$0xff]  ;;  %v8949_v22 = vld [vmem:[#allocation48_spill] sm:$0xff] }
 0x41a   :  { %3452 = vst [vmem:[#allocation2 + $0x28] sm:$0xff] %v7686_v0  ;;  %3453 = vst [vmem:[#allocation2 + $0x30] sm:$0xff] %v7700_v7  ;;  %v8950_v20 = vld [vmem:[#allocation51_spill] sm:$0xff]  ;;  %v8951_v26 = vld [vmem:[#allocation54_spill] sm:$0xff] }
 0x41b   :  { %3454 = vst [vmem:[#allocation2 + $0x38] sm:$0xff] %v7715_v12  ;;  %3455 = vst [vmem:[#allocation2 + $0x40] sm:$0xff] %v7727_v54  ;;  %v3494_v29 = vld [vmem:[#allocation8 + $0x8] sm:$0xff]  ;;  %v3493_v52 = vld [vmem:[#allocation8] sm:$0xff] }
 0x41c   :  { %3456 = vst [vmem:[#allocation2 + $0x48] sm:$0xff] %v7778_v4  ;;  %3457 = vst [vmem:[#allocation2 + $0x50] sm:$0xff] %v7787_v43  ;;  %v3498_v27 = vld [vmem:[#allocation8 + $0x28] sm:$0xff]  ;;  %v3497_v15 = vld [vmem:[#allocation8 + $0x20] sm:$0xff] }
 0x41d   :  { %3458 = vst [vmem:[#allocation2 + $0x58] sm:$0xff] %v8944_v39  ;;  %3459 = vst [vmem:[#allocation2 + $0x60] sm:$0xff] %v8945_v31  ;;  %v4911_v59 = vpack.c.bf16 %v3498_v27, %v3494_v29  ;;  %v3502_v47 = vld [vmem:[#allocation8 + $0x48] sm:$0xff]  ;;  %v4913_v57 = vpack.c.bf16 %v3497_v15, %v3493_v52  ;;  %v3501_v23 = vld [vmem:[#allocation8 + $0x40] sm:$0xff] }
 0x41e   :  { %3460 = vst [vmem:[#allocation2 + $0x68] sm:$0xff] %v8946_v5  ;;  %3461 = vst [vmem:[#allocation2 + $0x70] sm:$0xff] %v7828_v60  ;;  %v3506_v56 = vld [vmem:[#allocation8 + $0x68] sm:$0xff]  ;;  %v3505_v24 = vld [vmem:[#allocation8 + $0x60] sm:$0xff] }
 0x41f   :  { %3462 = vst [vmem:[#allocation2 + $0x78] sm:$0xff] %v7840_v10  ;;  %3463 = vst [vmem:[#allocation2 + $0x80] sm:$0xff] %v7850_v58  ;;  %v4915_v3 = vpack.c.bf16 %v3506_v56, %v3502_v47  ;;  %v3496_v13 = vld [vmem:[#allocation8 + $0x18] sm:$0xff]  ;;  %4912 = vmatprep.subr.bf16.mxu0 %v4911_v59  ;;  %v3495_v51 = vld [vmem:[#allocation8 + $0x10] sm:$0xff]  ;;  %v4917_v40 = vpack.c.bf16 %v3505_v24, %v3501_v23 }
 0x420   :  { %3464 = vst [vmem:[#allocation2 + $0x88] sm:$0xff] %v8947_v17  ;;  %3465 = vst [vmem:[#allocation2 + $0x90] sm:$0xff] %v8948_v44  ;;  %v3500_v48 = vld [vmem:[#allocation8 + $0x38] sm:$0xff]  ;;  %v3499_v14 = vld [vmem:[#allocation8 + $0x30] sm:$0xff]  ;;  %4914 = vmatpush1.bf16.msra.mxu0 %v4913_v57 }
 0x421   :  { %3466 = vst [vmem:[#allocation2 + $0x98] sm:$0xff] %v8949_v22  ;;  %3467 = vst [vmem:[#allocation2 + $0xa0] sm:$0xff] %v8950_v20  ;;  %v4943_v37 = vpack.c.bf16 %v3500_v48, %v3496_v13  ;;  %v4945_v25 = vpack.c.bf16 %v3499_v14, %v3495_v51  ;;  %v3510_v62 = vld [vmem:[#allocation8 + $0x88] sm:$0xff]  ;;  %v3509_v9 = vld [vmem:[#allocation8 + $0x80] sm:$0xff]  ;;  %4916 = vmatprep.subr.bf16.mxu0 %v4915_v3 }
 0x422   :  { %3468 = vst [vmem:[#allocation2 + $0xa8] sm:$0xff] %v8951_v26  ;;  %3469 = vst [vmem:[#allocation2 + $0xb0] sm:$0xff] %v7957_v30  ;;  %v3514_v50 = vld [vmem:[#allocation8 + $0xa8] sm:$0xff]  ;;  %v3513_v27 = vld [vmem:[#allocation8 + $0xa0] sm:$0xff] }
 0x423   :  { %3470 = vst [vmem:[#allocation2 + $0xb8] sm:$0xff] %v7973_v28  ;;  %3471 = vst [vmem:[#allocation2 + $0xc0] sm:$0xff] %v7991_v49  ;;  %v4919_v29 = vpack.c.bf16 %v3514_v50, %v3510_v62  ;;  %v3504_v61 = vld [vmem:[#allocation8 + $0x58] sm:$0xff]  ;;  %4944 = vmatprep.subr.bf16.mxu1 %v4943_v37  ;;  %v3503_v47 = vld [vmem:[#allocation8 + $0x50] sm:$0xff]  ;;  %v4921_v57 = vpack.c.bf16 %v3513_v27, %v3509_v9 }
 0x424   :  { %3472 = vst [vmem:[#allocation2 + $0xc8] sm:$0xff] %v8001_v11  ;;  %3473 = vst [vmem:[#allocation2 + $0xd0] sm:$0xff] %v8010_v34  ;;  %v3508_v52 = vld [vmem:[#allocation8 + $0x78] sm:$0xff]  ;;  %v3507_v56 = vld [vmem:[#allocation8 + $0x70] sm:$0xff]  ;;  %4946 = vmatpush1.bf16.msra.mxu1 %v4945_v25  ;;  %4918 = vmatpush1.bf16.msra.mxu0 %v4917_v40 }
 0x425   :  { %3474 = vst [vmem:[#allocation2 + $0xd8] sm:$0xff] %v8017_v8  ;;  %3475 = vst [vmem:[#allocation2 + $0xe0] sm:$0xff] %v8024_v16  ;;  %v4947_v15 = vpack.c.bf16 %v3508_v52, %v3504_v61  ;;  %v3518_v59 = vld [vmem:[#allocation8 + $0xc8] sm:$0xff]  ;;  %v4949_v6 = vpack.c.bf16 %v3507_v56, %v3503_v47  ;;  %v3512_v23 = vld [vmem:[#allocation8 + $0x98] sm:$0xff]  ;;  %4920 = vmatprep.subr.bf16.mxu0 %v4919_v29 }
 0x426   :  { %3476 = vst [vmem:[#allocation2 + $0xe8] sm:$0xff] %v8029_v1  ;;  %3477 = vst [vmem:[#allocation2 + $0xf0] sm:$0xff] %v8032_v18  ;;  %v3522_v63 = vld [vmem:[#allocation8 + $0xe8] sm:$0xff]  ;;  %v3516_v24 = vld [vmem:[#allocation8 + $0xb8] sm:$0xff] }
 0x427   :  { %3478 = vst [vmem:[#allocation2 + $0xf8] sm:$0xff] %v8034_v55  ;;  %4948 = vmatprep.subr.bf16.mxu1 %v4947_v15  ;;  %v3511_v13 = vld [vmem:[#allocation8 + $0x90] sm:$0xff]  ;;  %v4923_v3 = vpack.c.bf16 %v3522_v63, %v3518_v59  ;;  %v3517_v50 = vld [vmem:[#allocation8 + $0xc0] sm:$0xff]  ;;  %v4951_v51 = vpack.c.bf16 %v3516_v24, %v3512_v23  ;;  %v3526_v37 = vld [vmem:[#allocation8 + $0x108] sm:$0xff] }
 0x428   :  { %v3521_v48 = vld [vmem:[#allocation8 + $0xe0] sm:$0xff]  ;;  %v3515_v14 = vld [vmem:[#allocation8 + $0xb0] sm:$0xff]  ;;  %v3530_v61 = vld [vmem:[#allocation8 + $0x128] sm:$0xff]  ;;  %4950 = vmatpush1.bf16.msra.mxu1 %v4949_v6  ;;  %4922 = vmatpush1.bf16.msra.mxu0 %v4921_v57 }
 0x429   :  { %v3520_v62 = vld [vmem:[#allocation8 + $0xd8] sm:$0xff]  ;;  %v4953_v52 = vpack.c.bf16 %v3515_v14, %v3511_v13  ;;  %v4925_v47 = vpack.c.bf16 %v3521_v48, %v3517_v50  ;;  %4952 = vmatprep.subr.bf16.mxu1 %v4951_v51  ;;  %v3525_v9 = vld [vmem:[#allocation8 + $0x100] sm:$0xff]  ;;  %v3519_v27 = vld [vmem:[#allocation8 + $0xd0] sm:$0xff]  ;;  %4924 = vmatprep.subr.bf16.mxu0 %v4923_v3  ;;  %v4927_v29 = vpack.c.bf16 %v3530_v61, %v3526_v37 }
 0x42a   :  { %v3524_v25 = vld [vmem:[#allocation8 + $0xf8] sm:$0xff]  ;;  %v3523_v15 = vld [vmem:[#allocation8 + $0xf0] sm:$0xff]  ;;  %v3529_v63 = vld [vmem:[#allocation8 + $0x120] sm:$0xff] }
 0x42b   :  { %v4955_v40 = vpack.c.bf16 %v3524_v25, %v3520_v62  ;;  %v3528_v56 = vld [vmem:[#allocation8 + $0x118] sm:$0xff]  ;;  %v3534_v23 = vld [vmem:[#allocation8 + $0x148] sm:$0xff]  ;;  %v4957_v53 = vpack.c.bf16 %v3523_v15, %v3519_v27  ;;  %v4929_v6 = vpack.c.bf16 %v3529_v63, %v3525_v9  ;;  %v3533_v13 = vld [vmem:[#allocation8 + $0x140] sm:$0xff] }
 0x42c   :  { %v3532_v59 = vld [vmem:[#allocation8 + $0x138] sm:$0xff]  ;;  %v3538_v24 = vld [vmem:[#allocation8 + $0x168] sm:$0xff]  ;;  %4954 = vmatpush1.bf16.msra.mxu1 %v4953_v52  ;;  %4926 = vmatpush1.bf16.msra.mxu0 %v4925_v47  ;;  %v3527_v50 = vld [vmem:[#allocation8 + $0x110] sm:$0xff] }
 0x42d   :  { %4956 = vmatprep.subr.bf16.mxu1 %v4955_v40  ;;  %v4959_v57 = vpack.c.bf16 %v3532_v59, %v3528_v56  ;;  %v3531_v48 = vld [vmem:[#allocation8 + $0x130] sm:$0xff]  ;;  %4928 = vmatprep.subr.bf16.mxu0 %v4927_v29  ;;  %v4931_v51 = vpack.c.bf16 %v3538_v24, %v3534_v23  ;;  %v3537_v14 = vld [vmem:[#allocation8 + $0x160] sm:$0xff]  ;;  %v3536_v62 = vld [vmem:[#allocation8 + $0x158] sm:$0xff] }
 0x42e   :  { %v3540_v3 = vld [vmem:[#allocation8 + $0x178] sm:$0xff]  ;;  %v3542_v37 = vld [vmem:[#allocation8 + $0x188] sm:$0xff]  ;;  %v4961_v25 = vpack.c.bf16 %v3531_v48, %v3527_v50  ;;  %v4933_v32 = vpack.c.bf16 %v3537_v14, %v3533_v13  ;;  %v3541_v52 = vld [vmem:[#allocation8 + $0x180] sm:$0xff] }
 0x42f   :  { %v3546_v61 = vld [vmem:[#allocation8 + $0x1a8] sm:$0xff]  ;;  %v4963_v47 = vpack.c.bf16 %v3540_v3, %v3536_v62  ;;  %v3535_v9 = vld [vmem:[#allocation8 + $0x150] sm:$0xff]  ;;  %v3545_v15 = vld [vmem:[#allocation8 + $0x1a0] sm:$0xff] }
 0x430   :  { %4958 = vmatpush1.bf16.msra.mxu1 %v4957_v53  ;;  %4930 = vmatpush1.bf16.msra.mxu0 %v4929_v6  ;;  %v3539_v40 = vld [vmem:[#allocation8 + $0x170] sm:$0xff]  ;;  %v4935_v27 = vpack.c.bf16 %v3546_v61, %v3542_v37  ;;  %v3544_v63 = vld [vmem:[#allocation8 + $0x198] sm:$0xff]  ;;  %v3550_v56 = vld [vmem:[#allocation8 + $0x1c8] sm:$0xff]  ;;  %v4937_v24 = vpack.c.bf16 %v3545_v15, %v3541_v52 }
 0x431   :  { %4960 = vmatprep.subr.bf16.mxu1 %v4959_v57  ;;  %4932 = vmatprep.subr.bf16.mxu0 %v4931_v51  ;;  %v3548_v29 = vld [vmem:[#allocation8 + $0x1b8] sm:$0xff]  ;;  %v3554_v59 = vld [vmem:[#allocation8 + $0x1e8] sm:$0xff]  ;;  %v4965_v23 = vpack.c.bf16 %v3539_v40, %v3535_v9  ;;  %v3549_v53 = vld [vmem:[#allocation8 + $0x1c0] sm:$0xff] }
 0x432   :  { %v4967_v6 = vpack.c.bf16 %v3548_v29, %v3544_v63  ;;  %v3543_v13 = vld [vmem:[#allocation8 + $0x190] sm:$0xff]  ;;  %v4939_v50 = vpack.c.bf16 %v3554_v59, %v3550_v56  ;;  %v3553_v48 = vld [vmem:[#allocation8 + $0x1e0] sm:$0xff]  ;;  %v3552_v14 = vld [vmem:[#allocation8 + $0x1d8] sm:$0xff] }
 0x433   :  { %v3547_v57 = vld [vmem:[#allocation8 + $0x1b0] sm:$0xff]  ;;  %v3556_v51 = vld [vmem:[#allocation8 + $0x1f8] sm:$0xff]  ;;  %v4941_v3 = vpack.c.bf16 %v3553_v48, %v3549_v53 }
 0x434   :  { %4962 = vmatpush1.bf16.msra.mxu1 %v4961_v25  ;;  %4934 = vmatpush1.bf16.msra.mxu0 %v4933_v32  ;;  %v4969_v62 = vpack.c.bf16 %v3547_v57, %v3543_v13  ;;  %v4971_v37 = vpack.c.bf16 %v3556_v51, %v3552_v14  ;;  %v3551_v61 = vld [vmem:[#allocation8 + $0x1d0] sm:$0xff] }
 0x435   :  { %4964 = vmatprep.subr.bf16.mxu1 %v4963_v47  ;;  %4936 = vmatprep.subr.bf16.mxu0 %v4935_v27  ;;  %v3555_v25 = vld [vmem:[#allocation8 + $0x1f0] sm:$0xff] }
 0x436   :  { %v4973_v32 = vpack.c.bf16 %v3555_v25, %v3551_v61 }
 0x438   :  { %4966 = vmatpush1.bf16.msra.mxu1 %v4965_v23  ;;  %4938 = vmatpush1.bf16.msra.mxu0 %v4937_v24 }
 0x439   :  { %4968 = vmatprep.subr.bf16.mxu1 %v4967_v6  ;;  %4940 = vmatprep.subr.bf16.mxu0 %v4939_v50 }
 0x43c   :  { %4970 = vmatpush1.bf16.msra.mxu1 %v4969_v62  ;;  %4942 = vmatpush1.bf16.msra.mxu0 %v4941_v3 }
 0x43d   :  { %4972 = vmatprep.subr.bf16.mxu1 %v4971_v37 }
 0x43f   :  { %3622 = vmatmul.mubr.f32.vlgmr.msra.gmra.mrb[192].mxu0 %v7615_v21 }
 0x440   :  { %4974 = vmatpush1.bf16.msra.mxu1 %v4973_v32  ;;  %3627 = vmatprep.mubr.f32.mxu0 %v8843_v38 }
 0x443   :  { %3879 = vmatmul.mubr.f32.vlgmr.msra.gmra.mrb[192].mxu1 %v7615_v21  ;;  %3628 = vmatmul.mubr.f32.gmra.mrb[194].mxu0 %v7644_v19 }
 0x444   :  { %3884 = vmatprep.mubr.f32.mxu1 %v8843_v38  ;;  %3633 = vmatprep.mubr.f32.mxu0 %v8843_v38 }
 0x447   :  { %3885 = vmatmul.mubr.f32.gmra.mrb[194].mxu1 %v7644_v19  ;;  %3634 = vmatmul.mubr.f32.gmra.mrb[196].mxu0 %v7655_v33 }
 0x448   :  { %3890 = vmatprep.mubr.f32.mxu1 %v8843_v38  ;;  %3639 = vmatprep.mubr.f32.mxu0 %v8843_v38 }
 0x44b   :  { %3891 = vmatmul.mubr.f32.gmra.mrb[196].mxu1 %v7655_v33  ;;  %3640 = vmatmul.mubr.f32.gmra.mrb[198].mxu0 %v7666_v36 }
 0x44c   :  { %3896 = vmatprep.mubr.f32.mxu1 %v8843_v38  ;;  %3645 = vmatprep.mubr.f32.mxu0 %v8843_v38 }
 0x44f   :  { %3897 = vmatmul.mubr.f32.gmra.mrb[198].mxu1 %v7666_v36  ;;  %3646 = vmatmul.mubr.f32.gmra.mrb[200].mxu0 %v7675_v41 }
 0x450   :  { %3902 = vmatprep.mubr.f32.mxu1 %v8843_v38  ;;  %3651 = vmatprep.mubr.f32.mxu0 %v8843_v38 }
 0x453   :  { %3903 = vmatmul.mubr.f32.gmra.mrb[200].mxu1 %v7675_v41  ;;  %3652 = vmatmul.mubr.f32.gmra.mrb[202].mxu0 %v7686_v0 }
 0x454   :  { %3908 = vmatprep.mubr.f32.mxu1 %v8843_v38  ;;  %3657 = vmatprep.mubr.f32.mxu0 %v8843_v38 }
 0x457   :  { %3909 = vmatmul.mubr.f32.gmra.mrb[202].mxu1 %v7686_v0  ;;  %3658 = vmatmul.mubr.f32.gmra.mrb[204].mxu0 %v7700_v7 }
 0x458   :  { %3914 = vmatprep.mubr.f32.mxu1 %v8843_v38  ;;  %3663 = vmatprep.mubr.f32.mxu0 %v8843_v38 }
 0x45b   :  { %3915 = vmatmul.mubr.f32.gmra.mrb[204].mxu1 %v7700_v7  ;;  %3664 = vmatmul.mubr.f32.gmra.mrb[206].mxu0 %v7715_v12 }
 0x45c   :  { %3920 = vmatprep.mubr.f32.mxu1 %v8843_v38  ;;  %3669 = vmatprep.mubr.f32.mxu0 %v8843_v38 }
 0x45f   :  { %3921 = vmatmul.mubr.f32.gmra.mrb[206].mxu1 %v7715_v12  ;;  %3670 = vmatmul.mubr.f32.gmra.mrb[208].mxu0 %v7727_v54 }
 0x460   :  { %3926 = vmatprep.mubr.f32.mxu1 %v8843_v38  ;;  %3675 = vmatprep.mubr.f32.mxu0 %v8843_v38 }
 0x463   :  { %3927 = vmatmul.mubr.f32.gmra.mrb[208].mxu1 %v7727_v54  ;;  %3676 = vmatmul.mubr.f32.gmra.mrb[210].mxu0 %v7778_v4 }
 0x464   :  { %3932 = vmatprep.mubr.f32.mxu1 %v8843_v38  ;;  %3681 = vmatprep.mubr.f32.mxu0 %v8843_v38 }
 0x467   :  { %3933 = vmatmul.mubr.f32.gmra.mrb[210].mxu1 %v7778_v4  ;;  %3682 = vmatmul.mubr.f32.gmra.mrb[212].mxu0 %v7787_v43 }
 0x468   :  { %3938 = vmatprep.mubr.f32.mxu1 %v8843_v38  ;;  %3687 = vmatprep.mubr.f32.mxu0 %v8843_v38 }
 0x46b   :  { %3939 = vmatmul.mubr.f32.gmra.mrb[212].mxu1 %v7787_v43  ;;  %3688 = vmatmul.mubr.f32.gmra.mrb[214].mxu0 %v8944_v39 }
 0x46c   :  { %3944 = vmatprep.mubr.f32.mxu1 %v8843_v38  ;;  %3693 = vmatprep.mubr.f32.mxu0 %v8843_v38 }
 0x46f   :  { %3945 = vmatmul.mubr.f32.gmra.mrb[214].mxu1 %v8944_v39  ;;  %3694 = vmatmul.mubr.f32.gmra.mrb[216].mxu0 %v8945_v31 }
 0x470   :  { %3950 = vmatprep.mubr.f32.mxu1 %v8843_v38  ;;  %3699 = vmatprep.mubr.f32.mxu0 %v8843_v38 }
 0x473   :  { %3951 = vmatmul.mubr.f32.gmra.mrb[216].mxu1 %v8945_v31  ;;  %3700 = vmatmul.mubr.f32.gmra.mrb[218].mxu0 %v8946_v5 }
 0x474   :  { %3956 = vmatprep.mubr.f32.mxu1 %v8843_v38  ;;  %3705 = vmatprep.mubr.f32.mxu0 %v8843_v38 }
 0x477   :  { %3957 = vmatmul.mubr.f32.gmra.mrb[218].mxu1 %v8946_v5  ;;  %3706 = vmatmul.mubr.f32.gmra.mrb[220].mxu0 %v7828_v60 }
 0x478   :  { %3962 = vmatprep.mubr.f32.mxu1 %v8843_v38  ;;  %3711 = vmatprep.mubr.f32.mxu0 %v8843_v38 }
 0x47b   :  { %3963 = vmatmul.mubr.f32.gmra.mrb[220].mxu1 %v7828_v60  ;;  %3712 = vmatmul.mubr.f32.gmra.mrb[222].mxu0 %v7840_v10 }
 0x47c   :  { %3968 = vmatprep.mubr.f32.mxu1 %v8843_v38  ;;  %3717 = vmatprep.mubr.f32.mxu0 %v8843_v38 }
 0x47f   :  { %3969 = vmatmul.mubr.f32.gmra.mrb[222].mxu1 %v7840_v10  ;;  %3718 = vmatmul.mubr.f32.gmra.mrb[224].mxu0 %v7850_v58 }
 0x480   :  { %3974 = vmatprep.mubr.f32.mxu1 %v8843_v38  ;;  %3723 = vmatprep.mubr.f32.mxu0 %v8843_v38 }
 0x483   :  { %3975 = vmatmul.mubr.f32.gmra.mrb[224].mxu1 %v7850_v58  ;;  %3724 = vmatmul.mubr.f32.gmra.mrb[226].mxu0 %v8947_v17 }
 0x484   :  { %3980 = vmatprep.mubr.f32.mxu1 %v8843_v38  ;;  %3729 = vmatprep.mubr.f32.mxu0 %v8843_v38 }
 0x487   :  { %3981 = vmatmul.mubr.f32.gmra.mrb[226].mxu1 %v8947_v17  ;;  %3730 = vmatmul.mubr.f32.gmra.mrb[228].mxu0 %v8948_v44 }
 0x488   :  { %3986 = vmatprep.mubr.f32.mxu1 %v8843_v38  ;;  %3735 = vmatprep.mubr.f32.mxu0 %v8843_v38 }
 0x48b   :  { %3987 = vmatmul.mubr.f32.gmra.mrb[228].mxu1 %v8948_v44  ;;  %3736 = vmatmul.mubr.f32.gmra.mrb[230].mxu0 %v8949_v22 }
 0x48c   :  { %3992 = vmatprep.mubr.f32.mxu1 %v8843_v38  ;;  %3741 = vmatprep.mubr.f32.mxu0 %v8843_v38 }
 0x48f   :  { %3993 = vmatmul.mubr.f32.gmra.mrb[230].mxu1 %v8949_v22  ;;  %3742 = vmatmul.mubr.f32.gmra.mrb[232].mxu0 %v8950_v20 }
 0x490   :  { %3998 = vmatprep.mubr.f32.mxu1 %v8843_v38  ;;  %3747 = vmatprep.mubr.f32.mxu0 %v8843_v38 }
 0x493   :  { %3999 = vmatmul.mubr.f32.gmra.mrb[232].mxu1 %v8950_v20  ;;  %3748 = vmatmul.mubr.f32.gmra.mrb[234].mxu0 %v8951_v26 }
 0x494   :  { %4004 = vmatprep.mubr.f32.mxu1 %v8843_v38  ;;  %3753 = vmatprep.mubr.f32.mxu0 %v8843_v38 }
 0x497   :  { %4005 = vmatmul.mubr.f32.gmra.mrb[234].mxu1 %v8951_v26  ;;  %3754 = vmatmul.mubr.f32.gmra.mrb[236].mxu0 %v7957_v30 }
 0x498   :  { %4010 = vmatprep.mubr.f32.mxu1 %v8843_v38  ;;  %3759 = vmatprep.mubr.f32.mxu0 %v8843_v38 }
 0x49b   :  { %4011 = vmatmul.mubr.f32.gmra.mrb[236].mxu1 %v7957_v30  ;;  %3760 = vmatmul.mubr.f32.gmra.mrb[238].mxu0 %v7973_v28 }
 0x49c   :  { %4016 = vmatprep.mubr.f32.mxu1 %v8843_v38  ;;  %3765 = vmatprep.mubr.f32.mxu0 %v8843_v38 }
 0x49f   :  { %4017 = vmatmul.mubr.f32.gmra.mrb[238].mxu1 %v7973_v28  ;;  %3766 = vmatmul.mubr.f32.gmra.mrb[240].mxu0 %v7991_v49 }
 0x4a0   :  { %4022 = vmatprep.mubr.f32.mxu1 %v8843_v38  ;;  %3771 = vmatprep.mubr.f32.mxu0 %v8843_v38 }
 0x4a3   :  { %4023 = vmatmul.mubr.f32.gmra.mrb[240].mxu1 %v7991_v49  ;;  %3772 = vmatmul.mubr.f32.gmra.mrb[242].mxu0 %v8001_v11 }
 0x4a4   :  { %4028 = vmatprep.mubr.f32.mxu1 %v8843_v38  ;;  %3777 = vmatprep.mubr.f32.mxu0 %v8843_v38 }
 0x4a7   :  { %4029 = vmatmul.mubr.f32.gmra.mrb[242].mxu1 %v8001_v11  ;;  %3778 = vmatmul.mubr.f32.gmra.mrb[244].mxu0 %v8010_v34 }
 0x4a8   :  { %4034 = vmatprep.mubr.f32.mxu1 %v8843_v38  ;;  %3783 = vmatprep.mubr.f32.mxu0 %v8843_v38 }
 0x4ab   :  { %4035 = vmatmul.mubr.f32.gmra.mrb[244].mxu1 %v8010_v34  ;;  %3784 = vmatmul.mubr.f32.gmra.mrb[246].mxu0 %v8017_v8 }
 0x4ac   :  { %4040 = vmatprep.mubr.f32.mxu1 %v8843_v38  ;;  %3789 = vmatprep.mubr.f32.mxu0 %v8843_v38 }
 0x4af   :  { %4041 = vmatmul.mubr.f32.gmra.mrb[246].mxu1 %v8017_v8  ;;  %3790 = vmatmul.mubr.f32.gmra.mrb[248].mxu0 %v8024_v16 }
 0x4b0   :  { %4046 = vmatprep.mubr.f32.mxu1 %v8843_v38  ;;  %3795 = vmatprep.mubr.f32.mxu0 %v8843_v38 }
 0x4b3   :  { %4047 = vmatmul.mubr.f32.gmra.mrb[248].mxu1 %v8024_v16  ;;  %3796 = vmatmul.mubr.f32.gmra.mrb[250].mxu0 %v8029_v1 }
 0x4b4   :  { %4052 = vmatprep.mubr.f32.mxu1 %v8843_v38  ;;  %3801 = vmatprep.mubr.f32.mxu0 %v8843_v38 }
 0x4b7   :  { %4053 = vmatmul.mubr.f32.gmra.mrb[250].mxu1 %v8029_v1  ;;  %3802 = vmatmul.mubr.f32.gmra.mrb[252].mxu0 %v8032_v18 }
 0x4b8   :  { %4058 = vmatprep.mubr.f32.mxu1 %v8843_v38  ;;  %3807 = vmatprep.mubr.f32.mxu0 %v8843_v38 }
 0x4bb   :  { %4059 = vmatmul.mubr.f32.gmra.mrb[252].mxu1 %v8032_v18  ;;  %3808 = vmatmul.mubr.f32.gmra.mrb[254].mxu0 %v8034_v55 }
 0x4bc   :  { %4064 = vmatprep.mubr.f32.mxu1 %v8843_v38 }
 0x4bf   :  { %4065 = vmatmul.mubr.f32.gmra.mrb[254].mxu1 %v8034_v55 }
 0x512   :  { %v3623_v21 = vpop.f32.mrb[192].mxu0 }
 0x513   :  { %v3624_v19 = vadd.f32 %v3623_v21, %v6918_v35  ;;  %v3625_v33 = vpop.f32.mrb[193].mxu0 }
 0x514   :  { %v3626_v36 = vadd.f32 %v3625_v33, %v6528_v42 }
 0x515   :  { %v4071_v41 = vmul.f32 0.5, %v3624_v19  ;;  %v8952_v19 = vld [vmem:[#allocation29_spill] sm:$0xff] }
 0x516   :  { %v3880_v0 = vpop.f32.mrb[192].mxu1  ;;  %v4199_v7 = vmul.f32 0.5, %v3626_v36  ;;  %v3629_v12 = vpop.f32.mrb[194].mxu0 }
 0x517   :  { %v3881_v54 = vadd.f32 %v3880_v0, %v6530_v45  ;;  %v3882_v4 = vpop.f32.mrb[193].mxu1  ;;  %5882 = vtanh.f32 %v4071_v41  ;;  %v3630_v43 = vadd.f32 %v3629_v12, %v6918_v35  ;;  %v3631_v60 = vpop.f32.mrb[195].mxu0 }
 0x518   :  { %v3883_v38 = vadd.f32 %v3882_v4, %v6532_v46  ;;  %5884 = vtanh.f32 %v4199_v7  ;;  %v3632_v10 = vadd.f32 %v3631_v60, %v6528_v42 }
 0x519   :  { %v4327_v58 = vmul.f32 0.5, %v3881_v54  ;;  %v4072_v30 = vmul.f32 0.5, %v3630_v43 }
 0x51a   :  { %5886 = vtanh.f32 %v3883_v38  ;;  %v3886_v28 = vpop.f32.mrb[194].mxu1  ;;  %v4200_v49 = vmul.f32 0.5, %v3632_v10  ;;  %v3635_v11 = vpop.f32.mrb[196].mxu0 }
 0x51b   :  { %5888 = vtanh.f32 %v4327_v58  ;;  %v3887_v34 = vadd.f32 %v3886_v28, %v6530_v45  ;;  %v3888_v8 = vpop.f32.mrb[195].mxu1  ;;  %v3636_v16 = vadd.f32 %v3635_v11, %v6918_v35  ;;  %v3637_v1 = vpop.f32.mrb[197].mxu0 }
 0x51c   :  { %5890 = vtanh.f32 %v4072_v30  ;;  %v3889_v18 = vadd.f32 %v3888_v8, %v6532_v46  ;;  %v3638_v55 = vadd.f32 %v3637_v1, %v6528_v42  ;;  %v8953_v1 = vld [vmem:[#allocation30_spill] sm:$0xff] }
 0x51d   :  { %5892 = vtanh.f32 %v4200_v49  ;;  %v4328_v39 = vmul.f32 0.5, %v3887_v34  ;;  %v4073_v31 = vmul.f32 0.5, %v3636_v16 }
 0x51e   :  { %5894 = vtanh.f32 %v3889_v18  ;;  %v3892_v5 = vpop.f32.mrb[196].mxu1  ;;  %v4201_v17 = vmul.f32 0.5, %v3638_v55  ;;  %v3641_v44 = vpop.f32.mrb[198].mxu0 }
 0x51f   :  { %5896 = vtanh.f32 %v4328_v39  ;;  %v3893_v22 = vadd.f32 %v3892_v5, %v6530_v45  ;;  %v3894_v20 = vpop.f32.mrb[197].mxu1  ;;  %v3642_v26 = vadd.f32 %v3641_v44, %v6918_v35  ;;  %v3643_v52 = vpop.f32.mrb[199].mxu0 }
 0x520   :  { %5898 = vtanh.f32 %v4073_v31  ;;  %v3895_v47 = vadd.f32 %v3894_v20, %v6532_v46  ;;  %v3644_v9 = vadd.f32 %v3643_v52, %v6528_v42 }
 0x521   :  { %5900 = vtanh.f32 %v4201_v17  ;;  %v4329_v40 = vmul.f32 0.5, %v3893_v22  ;;  %v5883_v27 = vpop.eup %5882  ;;  %v4074_v15 = vmul.f32 0.5, %v3642_v26 }
 0x522   :  { %5902 = vtanh.f32 %v3895_v47  ;;  %v3898_v63 = vpop.f32.mrb[198].mxu1  ;;  %v5885_v29 = vpop.eup %5884  ;;  %v4135_v56 = vadd.f32 1.0, %v5883_v27  ;;  %v4202_v59 = vmul.f32 0.5, %v3644_v9 }
 0x523   :  { %5904 = vtanh.f32 %v4329_v40  ;;  %v3647_v23 = vpop.f32.mrb[200].mxu0  ;;  %v3899_v24 = vadd.f32 %v3898_v63, %v6530_v45  ;;  %v3900_v53 = vpop.f32.mrb[199].mxu1  ;;  %v4263_v13 = vadd.f32 1.0, %v5885_v29 }
 0x524   :  { %v5887_v6 = vpop.eup %5886  ;;  %5906 = vtanh.f32 %v4074_v15  ;;  %v3648_v57 = vadd.f32 %v3647_v23, %v6918_v35  ;;  %v3649_v50 = vpop.f32.mrb[201].mxu0  ;;  %v3901_v48 = vadd.f32 %v3900_v53, %v6532_v46  ;;  %v4167_v51 = vmul.f32 0.5, %v4135_v56 }
 0x525   :  { %v5889_v14 = vpop.eup %5888  ;;  %5908 = vtanh.f32 %v4202_v59  ;;  %v3650_v62 = vadd.f32 %v3649_v50, %v6528_v42  ;;  %v4330_v3 = vmul.f32 0.5, %v3899_v24  ;;  %v4295_v61 = vmul.f32 0.5, %v4263_v13  ;;  %v8954_v24 = vld [vmem:[#allocation31_spill] sm:$0xff] }
 0x526   :  { %v5891_v37 = vpop.eup %5890  ;;  %v4075_v25 = vmul.f32 0.5, %v3648_v57  ;;  %5910 = vtanh.f32 %v3901_v48  ;;  %v3904_v32 = vpop.f32.mrb[200].mxu1  ;;  %v4487_v33 = vmul.f32 %v4167_v51, %v8952_v19  ;;  %v4391_v49 = vadd.f32 1.0, %v5889_v14 }
 0x527   :  { %v5893_v21 = vpop.eup %5892  ;;  %v4136_v36 = vadd.f32 1.0, %v5891_v37  ;;  %v4203_v41 = vmul.f32 0.5, %v3650_v62  ;;  %5912 = vtanh.f32 %v4330_v3  ;;  %v3653_v0 = vpop.f32.mrb[202].mxu0  ;;  %v4519_v4 = vmul.f32 %v5887_v6, %v4295_v61 }
 0x528   :  { %v3906_v7 = vpop.f32.mrb[201].mxu1  ;;  %v5895_v12 = vpop.eup %5894  ;;  %v4264_v54 = vadd.f32 1.0, %v5893_v21  ;;  %5914 = vtanh.f32 %v4075_v25  ;;  %v3654_v10 = vadd.f32 %v3653_v0, %v6918_v35  ;;  %v3905_v34 = vadd.f32 %v3904_v32, %v6530_v45 }
 0x529   :  { %v3655_v43 = vpop.f32.mrb[203].mxu0  ;;  %v5897_v60 = vpop.eup %5896  ;;  %v4168_v38 = vmul.f32 0.5, %v4136_v36  ;;  %5916 = vtanh.f32 %v4203_v41  ;;  %v4551_v11 = vadd.f32 %v4519_v4, %v4487_v33  ;;  %v3907_v40 = vadd.f32 %v3906_v7, %v6532_v46  ;;  %v8955_v7 = vld [vmem:[#allocation57_spill] sm:$0xff] }
 0x52a   :  { %v3656_v58 = vadd.f32 %v3655_v43, %v6528_v42  ;;  %v5899_v30 = vpop.eup %5898  ;;  %v4296_v28 = vmul.f32 0.5, %v4264_v54  ;;  %v3910_v8 = vpop.f32.mrb[202].mxu1  ;;  %v4076_v39 = vmul.f32 0.5, %v3654_v10  ;;  %v4392_v20 = vadd.f32 1.0, %v5897_v60 }
 0x52b   :  { %v5901_v16 = vpop.eup %5900  ;;  %v4488_v18 = vmul.f32 %v4168_v38, %v8953_v1  ;;  %v4137_v55 = vadd.f32 1.0, %v5899_v30  ;;  %v3659_v5 = vpop.f32.mrb[204].mxu0  ;;  %5918 = vtanh.f32 %v4551_v11  ;;  %v4331_v29 = vmul.f32 0.5, %v3905_v34 }
 0x52c   :  { %v4204_v31 = vmul.f32 0.5, %v3656_v58  ;;  %v3912_v17 = vpop.f32.mrb[203].mxu1  ;;  %v5903_v44 = vpop.eup %5902  ;;  %v4265_v22 = vadd.f32 1.0, %v5901_v16  ;;  %v4520_v26 = vmul.f32 %v5895_v12, %v4296_v28  ;;  %5920 = vtanh.f32 %v4076_v39 }
 0x52d   :  { %v3661_v52 = vpop.f32.mrb[205].mxu0  ;;  %v5905_v47 = vpop.eup %5904  ;;  %v4169_v9 = vmul.f32 0.5, %v4137_v55  ;;  %v4423_v23 = vmul.f32 0.5, %v4391_v49  ;;  %v3660_v13 = vadd.f32 %v3659_v5, %v6918_v35  ;;  %v4424_v14 = vmul.f32 0.5, %v4392_v20 }
 0x52e   :  { %v5907_v27 = vpop.eup %5906  ;;  %v4297_v15 = vmul.f32 0.5, %v4265_v22  ;;  %v4552_v63 = vadd.f32 %v4520_v26, %v4488_v18  ;;  %5922 = vtanh.f32 %v4204_v31  ;;  %v3916_v56 = vpop.f32.mrb[204].mxu1  ;;  %v3662_v32 = vadd.f32 %v3661_v52, %v6528_v42 }
 0x52f   :  { %v5909_v59 = vpop.eup %5908  ;;  %v4489_v53 = vmul.f32 %v4169_v9, %v8954_v24  ;;  %v4138_v6 = vadd.f32 1.0, %v5907_v27  ;;  %v3665_v57 = vpop.f32.mrb[206].mxu0  ;;  %v4077_v25 = vmul.f32 0.5, %v3660_v13  ;;  %v3911_v36 = vadd.f32 %v3910_v8, %v6530_v45 }
 0x530   :  { %v3918_v50 = vpop.f32.mrb[205].mxu1  ;;  %v5911_v48 = vpop.eup %5910  ;;  %5924 = vtanh.f32 %v4552_v63  ;;  %v4266_v51 = vadd.f32 1.0, %v5909_v59  ;;  %v4521_v62 = vmul.f32 %v5903_v44, %v4297_v15  ;;  %v4205_v4 = vmul.f32 0.5, %v3662_v32  ;;  %v8956_v59 = vld [vmem:[#allocation32_spill] sm:$0xff] }
 0x531   :  { %v3667_v3 = vpop.f32.mrb[207].mxu0  ;;  %v5913_v37 = vpop.eup %5912  ;;  %v4170_v61 = vmul.f32 0.5, %v4138_v6  ;;  %5926 = vtanh.f32 %v3907_v40  ;;  %v4393_v38 = vadd.f32 1.0, %v5905_v47  ;;  %v4332_v49 = vmul.f32 0.5, %v3911_v36 }
 0x532   :  { %v5915_v21 = vpop.eup %5914  ;;  %v4298_v19 = vmul.f32 0.5, %v4266_v51  ;;  %v4553_v33 = vadd.f32 %v4521_v62, %v4489_v53  ;;  %5928 = vtanh.f32 %v4331_v29  ;;  %v8224_v41 = vpop.f32.mrb[206].mxu1  ;;  %v4394_v28 = vadd.f32 1.0, %v5913_v37 }
 0x533   :  { %v5917_v0 = vpop.eup %5916  ;;  %v4490_v12 = vmul.f32 %v4170_v61, %v8955_v7  ;;  %v4139_v54 = vadd.f32 1.0, %v5915_v21  ;;  %5930 = vtanh.f32 %v4077_v25  ;;  %v3671_v43 = vpop.f32.mrb[208].mxu0  ;;  %v3913_v11 = vadd.f32 %v3912_v17, %v6532_v46 }
 0x534   :  { %v3924_v60 = vpop.f32.mrb[207].mxu1  ;;  %5932 = vtanh.f32 %v4553_v33  ;;  %v4267_v10 = vadd.f32 1.0, %v5917_v0  ;;  %v4522_v58 = vmul.f32 %v5911_v48, %v4298_v19  ;;  %v3673_v30 = vpop.f32.mrb[209].mxu0  ;;  %v3666_v1 = vadd.f32 %v3665_v57, %v6918_v35 }
 0x535   :  { %5934 = vtanh.f32 %v4205_v4  ;;  %v5919_v34 = vpop.eup %5918  ;;  %v4171_v8 = vmul.f32 0.5, %v4139_v54  ;;  %v3668_v18 = vadd.f32 %v3667_v3, %v6528_v42  ;;  %v3917_v44 = vadd.f32 %v3916_v56, %v6530_v45 }
 0x536   :  { %v4554_v16 = vadd.f32 %v4522_v58, %v4490_v12  ;;  %v8230_v55 = vpop.f32.mrb[208].mxu1  ;;  %v5921_v39 = vpop.eup %5920  ;;  %v8232_v31 = vmul.f32 %v5919_v34, %v4423_v23  ;;  %v4299_v5 = vmul.f32 0.5, %v4267_v10  ;;  %5936 = vtanh.f32 %v4332_v49 }
 0x537   :  { %v3677_v22 = vpop.f32.mrb[210].mxu0  ;;  %v3930_v20 = vpop.f32.mrb[209].mxu1  ;;  %v4140_v17 = vadd.f32 1.0, %v5921_v39  ;;  %v4078_v52 = vmul.f32 0.5, %v3666_v1  ;;  %v4206_v47 = vmul.f32 0.5, %v3668_v18  ;;  %v4333_v27 = vmul.f32 0.5, %v3917_v44 }
 0x538   :  { %v5923_v26 = vpop.eup %5922  ;;  %5938 = vtanh.f32 %v4554_v16  ;;  %v3679_v9 = vpop.f32.mrb[211].mxu0  ;;  %v3919_v15 = vadd.f32 %v3918_v50, %v6532_v46  ;;  %v4425_v29 = vmul.f32 0.5, %v4393_v38  ;;  %v4491_v23 = vmul.f32 %v4171_v8, %v8956_v59  ;;  %v8959_v1 = vld [vmem:[#allocation25_spill] sm:$0xff]  ;;  %v8960_v39 = vld [vmem:[#allocation58_spill] sm:$0xff] }
 0x539   :  { %v4268_v40 = vadd.f32 1.0, %v5923_v26  ;;  %5940 = vtanh.f32 %v3913_v11  ;;  %v3672_v56 = vadd.f32 %v3671_v43, %v6918_v35  ;;  %v4426_v13 = vmul.f32 0.5, %v4394_v28 }
 0x53a   :  { %v5925_v63 = vpop.eup %5924  ;;  %5942 = vtanh.f32 %v4078_v52  ;;  %v8238_v24 = vpop.f32.mrb[210].mxu1  ;;  %v3674_v57 = vadd.f32 %v3673_v30, %v6528_v42  ;;  %v4172_v62 = vmul.f32 0.5, %v4140_v17  ;;  %v3925_v0 = vadd.f32 %v3924_v60, %v6532_v46 }
 0x53b   :  { %v5927_v53 = vpop.eup %5926  ;;  %v8240_v6 = vmul.f32 %v5925_v63, %v4424_v14  ;;  %5944 = vtanh.f32 %v4206_v47  ;;  %v3683_v48 = vpop.f32.mrb[212].mxu0  ;;  %v4300_v3 = vmul.f32 0.5, %v4268_v40  ;;  %v4079_v32 = vmul.f32 0.5, %v3672_v56 }
 0x53c   :  { %v8243_v51 = vpop.f32.mrb[211].mxu1  ;;  %v5929_v50 = vpop.eup %5928  ;;  %v4523_v37 = vmul.f32 %v5927_v53, %v4299_v5  ;;  %5946 = vtanh.f32 %v4333_v27  ;;  %v4207_v21 = vmul.f32 0.5, %v3674_v57  ;;  %v3923_v14 = vadd.f32 %v8224_v41, %v6530_v45 }
 0x53d   :  { %8957 = vst [vmem:[#allocation28_spill] sm:$0xff] %v8240_v6  ;;  %v3685_v61 = vpop.f32.mrb[213].mxu0  ;;  %v5931_v25 = vpop.eup %5930  ;;  %5948 = vtanh.f32 %v3919_v15  ;;  %v3678_v7 = vadd.f32 %v3677_v22, %v6918_v35  ;;  %v3680_v38 = vadd.f32 %v3679_v9, %v6528_v42  ;;  %v4395_v11 = vadd.f32 1.0, %v5929_v50 }
 0x53e   :  { %v5933_v19 = vpop.eup %5932  ;;  %v4555_v33 = vadd.f32 %v4523_v37, %v4491_v23  ;;  %v4141_v36 = vadd.f32 1.0, %v5931_v25  ;;  %v8249_v12 = vpop.f32.mrb[212].mxu1  ;;  %5950 = vtanh.f32 %v4079_v32  ;;  %v4334_v43 = vmul.f32 0.5, %v3923_v14 }
 0x53f   :  { %v5935_v54 = vpop.eup %5934  ;;  %v8251_v4 = vmul.f32 %v5933_v19, %v4425_v29  ;;  %v3689_v10 = vpop.f32.mrb[214].mxu0  ;;  %v4080_v28 = vmul.f32 0.5, %v3678_v7  ;;  %v4208_v34 = vmul.f32 0.5, %v3680_v38  ;;  %v3929_v8 = vadd.f32 %v8230_v55, %v6530_v45 }
 0x540   :  { %v8254_v58 = vpop.f32.mrb[213].mxu1  ;;  %5952 = vtanh.f32 %v4555_v33  ;;  %v4173_v41 = vmul.f32 0.5, %v4141_v36  ;;  %v4269_v30 = vadd.f32 1.0, %v5935_v54  ;;  %v3691_v49 = vpop.f32.mrb[215].mxu0  ;;  %v4492_v18 = vmul.f32 %v4172_v62, %v8959_v1  ;;  %v8962_v36 = vld [vmem:[#allocation33_spill] sm:$0xff] }
 0x541   :  { %8958 = vst [vmem:[#allocation37_spill] sm:$0xff] %v8251_v4  ;;  %v5937_v60 = vpop.eup %5936  ;;  %5954 = vtanh.f32 %v4207_v21  ;;  %v3931_v44 = vadd.f32 %v3930_v20, %v6532_v46  ;;  %v4335_v52 = vmul.f32 0.5, %v3929_v8  ;;  %v3684_v47 = vadd.f32 %v3683_v48, %v6918_v35 }
 0x542   :  { %v5939_v16 = vpop.eup %5938  ;;  %v4493_v5 = vmul.f32 %v4173_v41, %v8960_v39  ;;  %5956 = vtanh.f32 %v4334_v43  ;;  %v8261_v22 = vpop.f32.mrb[214].mxu1  ;;  %v4301_v27 = vmul.f32 0.5, %v4269_v30  ;;  %v3686_v63 = vadd.f32 %v3685_v61, %v6528_v42 }
 0x543   :  { %v5941_v26 = vpop.eup %5940  ;;  %v8263_v17 = vmul.f32 %v5939_v16, %v4426_v13  ;;  %5958 = vtanh.f32 %v3925_v0  ;;  %v8266_v9 = vpop.f32.mrb[216].mxu0  ;;  %v4081_v23 = vmul.f32 0.5, %v3684_v47  ;;  %v3935_v56 = vadd.f32 %v8238_v24, %v6530_v45 }
 0x544   :  { %v8268_v55 = vpop.f32.mrb[215].mxu1  ;;  %v5943_v40 = vpop.eup %5942  ;;  %v4524_v15 = vmul.f32 %v5941_v26, %v4300_v3  ;;  %5960 = vtanh.f32 %v4080_v28  ;;  %v4209_v48 = vmul.f32 0.5, %v3686_v63  ;;  %v4427_v3 = vmul.f32 0.5, %v4395_v11 }
 0x545   :  { %8961 = vst [vmem:[#allocation39_spill] sm:$0xff] %v8263_v17  ;;  %v8271_v20 = vpop.f32.mrb[217].mxu0  ;;  %v5945_v29 = vpop.eup %5944  ;;  %v4142_v59 = vadd.f32 1.0, %v5943_v40  ;;  %5962 = vtanh.f32 %v4208_v34  ;;  %v4336_v61 = vmul.f32 0.5, %v3935_v56  ;;  %v4396_v21 = vadd.f32 1.0, %v5937_v60 }
 0x546   :  { %v5947_v53 = vpop.eup %5946  ;;  %v4556_v13 = vadd.f32 %v4524_v15, %v4492_v18  ;;  %v4270_v57 = vadd.f32 1.0, %v5945_v29  ;;  %5964 = vtanh.f32 %v4335_v52  ;;  %v8275_v50 = vpop.f32.mrb[216].mxu1  ;;  %v3937_v7 = vadd.f32 %v8243_v51, %v6532_v46  ;;  %v8964_v29 = vld [vmem:[#allocation26_spill] sm:$0xff] }
 0x547   :  { %v5949_v62 = vpop.eup %5948  ;;  %v4174_v37 = vmul.f32 0.5, %v4142_v59  ;;  %5966 = vtanh.f32 %v3931_v44  ;;  %v8277_v25 = vpop.f32.mrb[218].mxu0  ;;  %v3690_v54 = vadd.f32 %v3689_v10, %v6918_v35  ;;  %v3692_v30 = vadd.f32 %v3691_v49, %v6528_v42 }
 0x548   :  { %v8279_v32 = vpop.f32.mrb[217].mxu1  ;;  %5968 = vtanh.f32 %v4556_v13  ;;  %v4302_v14 = vmul.f32 0.5, %v4270_v57  ;;  %v4525_v24 = vmul.f32 %v5949_v62, %v4301_v27  ;;  %v8281_v19 = vpop.f32.mrb[219].mxu0  ;;  %v3941_v8 = vadd.f32 %v8249_v12, %v6530_v45 }
 0x549   :  { %v5951_v33 = vpop.eup %5950  ;;  %v4494_v0 = vmul.f32 %v4174_v37, %v8962_v36  ;;  %5970 = vtanh.f32 %v4081_v23  ;;  %v4082_v34 = vmul.f32 0.5, %v3690_v54  ;;  %v4210_v39 = vmul.f32 0.5, %v3692_v30 }
 0x54a   :  { %v5953_v43 = vpop.eup %5952  ;;  %v4557_v38 = vadd.f32 %v4525_v24, %v4493_v5  ;;  %v4143_v41 = vadd.f32 1.0, %v5951_v33  ;;  %5972 = vtanh.f32 %v4209_v48  ;;  %v8288_v28 = vpop.f32.mrb[218].mxu1  ;;  %v4397_v44 = vadd.f32 1.0, %v5947_v53 }
 0x54b   :  { %v5955_v60 = vpop.eup %5954  ;;  %v8290_v11 = vmul.f32 %v5953_v43, %v4427_v3  ;;  %5974 = vtanh.f32 %v4336_v61  ;;  %v8294_v16 = vpop.f32.mrb[220].mxu0  ;;  %v4337_v26 = vmul.f32 0.5, %v3941_v8  ;;  %v3943_v52 = vadd.f32 %v8254_v58, %v6532_v46 }
 0x54c   :  { %v8296_v51 = vpop.f32.mrb[219].mxu1  ;;  %v5957_v10 = vpop.eup %5956  ;;  %5976 = vtanh.f32 %v4557_v38  ;;  %v4175_v1 = vmul.f32 0.5, %v4143_v41  ;;  %v4271_v18 = vadd.f32 1.0, %v5955_v60  ;;  %v3696_v56 = vadd.f32 %v8266_v9, %v6918_v35 }
 0x54d   :  { %8963 = vst [vmem:[#allocation44_spill] sm:$0xff] %v8290_v11  ;;  %v8298_v49 = vpop.f32.mrb[221].mxu0  ;;  %v5959_v5 = vpop.eup %5958  ;;  %5978 = vtanh.f32 %v3937_v7  ;;  %v4398_v40 = vadd.f32 1.0, %v5957_v10  ;;  %v3698_v62 = vadd.f32 %v8271_v20, %v6528_v42  ;;  %v4428_v61 = vmul.f32 0.5, %v4396_v21 }
 0x54e   :  { %v5961_v47 = vpop.eup %5960  ;;  %v4303_v12 = vmul.f32 0.5, %v4271_v18  ;;  %v4526_v27 = vmul.f32 %v5959_v5, %v4302_v14  ;;  %5980 = vtanh.f32 %v4082_v34  ;;  %v8302_v15 = vpop.f32.mrb[220].mxu1  ;;  %v4495_v59 = vmul.f32 %v4175_v1, %v8964_v29 }
 0x54f   :  { %v5963_v63 = vpop.eup %5962  ;;  %v4144_v23 = vadd.f32 1.0, %v5961_v47  ;;  %5982 = vtanh.f32 %v4210_v39  ;;  %v8307_v53 = vpop.f32.mrb[222].mxu0  ;;  %v4429_v14 = vmul.f32 0.5, %v4397_v44  ;;  %v4083_v24 = vmul.f32 0.5, %v3696_v56 }
 0x550   :  { %v8309_v13 = vpop.f32.mrb[221].mxu1  ;;  %v5965_v58 = vpop.eup %5964  ;;  %v4558_v57 = vadd.f32 %v4526_v27, %v4494_v0  ;;  %v4272_v48 = vadd.f32 1.0, %v5963_v63  ;;  %5984 = vtanh.f32 %v4337_v26  ;;  %v4211_v7 = vmul.f32 0.5, %v3698_v62 }
 0x551   :  { %v8313_v3 = vpop.f32.mrb[223].mxu0  ;;  %v5967_v37 = vpop.eup %5966  ;;  %5986 = vtanh.f32 %v3943_v52  ;;  %v4176_v9 = vmul.f32 0.5, %v4144_v23  ;;  %v4430_v38 = vmul.f32 0.5, %v4398_v40  ;;  %v3947_v8 = vadd.f32 %v8261_v22, %v6530_v45  ;;  %v8966_v52 = vld [vmem:[#allocation34_spill] sm:$0xff] }
 0x552   :  { %v5969_v33 = vpop.eup %5968  ;;  %5988 = vtanh.f32 %v4558_v57  ;;  %v4527_v36 = vmul.f32 %v5967_v37, %v4303_v12  ;;  %v8315_v54 = vpop.f32.mrb[222].mxu1  ;;  %v4304_v41 = vmul.f32 0.5, %v4272_v48  ;;  %v3949_v39 = vadd.f32 %v8268_v55, %v6532_v46 }
 0x553   :  { %v5971_v0 = vpop.eup %5970  ;;  %v8317_v43 = vmul.f32 %v5969_v33, %v4428_v61  ;;  %5990 = vtanh.f32 %v4083_v24  ;;  %v8319_v20 = vpop.f32.mrb[224].mxu0  ;;  %v3702_v5 = vadd.f32 %v8277_v25, %v6918_v35  ;;  %v3704_v44 = vadd.f32 %v8281_v19, %v6528_v42  ;;  %v8968_v19 = vld [vmem:[#allocation50_spill] sm:$0xff] }
 0x554   :  { %v8321_v30 = vpop.f32.mrb[223].mxu1  ;;  %v5973_v21 = vpop.eup %5972  ;;  %v4559_v60 = vadd.f32 %v4527_v36, %v4495_v59  ;;  %v4145_v34 = vadd.f32 1.0, %v5971_v0  ;;  %5992 = vtanh.f32 %v4211_v7  ;;  %v4496_v47 = vmul.f32 %v4176_v9, %v8966_v52  ;;  %v8970_v52 = vld [vmem:[#allocation35_spill] sm:$0xff] }
 0x555   :  { %8965 = vst [vmem:[#allocation46_spill] sm:$0xff] %v8317_v43  ;;  %v8325_v10 = vpop.f32.mrb[225].mxu0  ;;  %v5975_v1 = vpop.eup %5974  ;;  %v4273_v18 = vadd.f32 1.0, %v5973_v21  ;;  %v4338_v40 = vmul.f32 0.5, %v3947_v8  ;;  %v4399_v29 = vadd.f32 1.0, %v5965_v58  ;;  %v4084_v55 = vmul.f32 0.5, %v3702_v5 }
 0x556   :  { %v5977_v26 = vpop.eup %5976  ;;  %5994 = vtanh.f32 %v4559_v60  ;;  %v4177_v12 = vmul.f32 0.5, %v4145_v34  ;;  %v8334_v22 = vpop.f32.mrb[224].mxu1  ;;  %v3953_v58 = vadd.f32 %v8275_v50, %v6530_v45  ;;  %v3955_v36 = vadd.f32 %v8279_v32, %v6532_v46 }
 0x557   :  { %v5979_v27 = vpop.eup %5978  ;;  %v8336_v63 = vmul.f32 %v5977_v26, %v4429_v14  ;;  %5996 = vtanh.f32 %v3949_v39  ;;  %v8338_v59 = vpop.f32.mrb[226].mxu0  ;;  %v4305_v57 = vmul.f32 0.5, %v4273_v18  ;;  %v4212_v14 = vmul.f32 0.5, %v3704_v44 }
 0x558   :  { %v8340_v25 = vpop.f32.mrb[225].mxu1  ;;  %v5981_v23 = vpop.eup %5980  ;;  %v4497_v56 = vmul.f32 %v4177_v12, %v8968_v19  ;;  %v4528_v48 = vmul.f32 %v5979_v27, %v4304_v41  ;;  %5998 = vtanh.f32 %v4338_v40  ;;  %v3708_v7 = vadd.f32 %v8294_v16, %v6918_v35 }
 0x559   :  { %8967 = vst [vmem:[#allocation48_spill] sm:$0xff] %v8336_v63  ;;  %v8343_v62 = vpop.f32.mrb[227].mxu0  ;;  %v5983_v37 = vpop.eup %5982  ;;  %v4146_v61 = vadd.f32 1.0, %v5981_v23  ;;  %6000 = vtanh.f32 %v4084_v55  ;;  %v4431_v21 = vmul.f32 0.5, %v4399_v29  ;;  %v4339_v34 = vmul.f32 0.5, %v3953_v58 }
 0x55a   :  { %v5985_v24 = vpop.eup %5984  ;;  %v4560_v33 = vadd.f32 %v4528_v48, %v4496_v47  ;;  %v4274_v9 = vadd.f32 1.0, %v5983_v37  ;;  %v8351_v0 = vpop.f32.mrb[226].mxu1  ;;  %6002 = vtanh.f32 %v4212_v14  ;;  %v4400_v39 = vadd.f32 1.0, %v5975_v1 }
 0x55b   :  { %v5987_v41 = vpop.eup %5986  ;;  %v4178_v60 = vmul.f32 0.5, %v4146_v61  ;;  %v8353_v8 = vpop.f32.mrb[228].mxu0  ;;  %v4085_v5 = vmul.f32 0.5, %v3708_v7  ;;  %v3710_v1 = vadd.f32 %v8298_v49, %v6528_v42 }
 0x55c   :  { %v8355_v18 = vpop.f32.mrb[227].mxu1  ;;  %v5989_v50 = vpop.eup %5988  ;;  %6004 = vtanh.f32 %v4560_v33  ;;  %v4529_v32 = vmul.f32 %v5987_v41, %v4305_v57  ;;  %v4306_v12 = vmul.f32 0.5, %v4274_v9 }
 0x55d   :  { %v8357_v44 = vpop.f32.mrb[229].mxu0  ;;  %v5991_v16 = vpop.eup %5990  ;;  %v8359_v26 = vmul.f32 %v5989_v50, %v4430_v38  ;;  %v4498_v47 = vmul.f32 %v4178_v60, %v8970_v52  ;;  %6006 = vtanh.f32 %v4339_v34 }
 0x55e   :  { %v5993_v40 = vpop.eup %5992  ;;  %v4561_v27 = vadd.f32 %v4529_v32, %v4497_v56  ;;  %v4147_v29 = vadd.f32 1.0, %v5991_v16  ;;  %6008 = vtanh.f32 %v3955_v36  ;;  %v8364_v55 = vpop.f32.mrb[228].mxu1 }
 0x55f   :  { %8969 = vst [vmem:[#allocation51_spill] sm:$0xff] %v8359_v26 }
 0x560   :  { %6326 = shalt.err (!%p6276_p0)  }
 0x561   :  { %s8374_s9 = scalar_lea.hbm %s8748_s4, 12288  ;;  %p6330_p10 = scmp.lt.u32.totalorder %s7756_s25, %s8748_s4 }
 0x562   :  { %p6328_p3 = scmp.ne.s32.totalorder %s7756_s25, %s8374_s9  ;;  %p6331_p13 = scmp.lt.u32.totalorder %s6897_s14, %s8374_s9 }
 0x563   :  { %p6333_p8 = scmp.lt.u32.totalorder %s8374_s9, %s7756_s25 }
 0x564   :  { %p6332_p0 = por %p6331_p13, %p6330_p10 }
 0x566   :  { %p6334_p12 = por %p6333_p8, %p6332_p0 }
 0x568   :  { %p6335_p1 = pnand %p6334_p12, %p6328_p3 }
 0x56a   :  { %6338 = shalt.err (!%p6335_p1)  }
 0x56b   :  { %3492 = dma.vmem_to_hbm [thread:$0]  %s6859_s29, 4096, %s7756_s25, [#allocation3]  ;;  %v4275_v49 = vadd.f32 1.0, %v5993_v40  ;;  %6010 = vtanh.f32 %v4085_v5  ;;  %v3959_v38 = vadd.f32 %v8288_v28, %v6530_v45  ;;  %v3961_v23 = vadd.f32 %v8296_v51, %v6532_v46  ;;  %v8395_v19 = vpop.f32.mrb[230].mxu0  ;;  %v8397_v56 = vpop.f32.mrb[229].mxu1  ;;  %v8972_v5 = vld [vmem:[#allocation52_spill] sm:$0xff] }
 0x56c   :  { %v5995_v57 = vpop.eup %5994  ;;  %6012 = vtanh.f32 %v4561_v27  ;;  %v4179_v48 = vmul.f32 0.5, %v4147_v29  ;;  %v4213_v37 = vmul.f32 0.5, %v3710_v1  ;;  %v3714_v61 = vadd.f32 %v8307_v53, %v6918_v35  ;;  %v8401_v14 = vpop.f32.mrb[231].mxu0  ;;  %v8984_v63 = vld [vmem:[#allocation42_spill] sm:$0xff]  ;;  %v8986_v11 = vld [vmem:[#allocation43_spill] sm:$0xff] }
 0x56d   :  { %v5997_v58 = vpop.eup %5996  ;;  %v8403_v33 = vmul.f32 %v5995_v57, %v4431_v21  ;;  %v4432_v28 = vmul.f32 0.5, %v4400_v39  ;;  %v4340_v9 = vmul.f32 0.5, %v3959_v38  ;;  %6014 = vtanh.f32 %v3961_v23  ;;  %v8405_v60 = vpop.f32.mrb[230].mxu1  ;;  %v8990_v6 = vld [vmem:[#allocation47_spill] sm:$0xff] }
 0x56e   :  { %v5999_v51 = vpop.eup %5998  ;;  %v4401_v36 = vadd.f32 1.0, %v5985_v24  ;;  %v4530_v7 = vmul.f32 %v5997_v58, %v4306_v12  ;;  %6016 = vtanh.f32 %v4213_v37  ;;  %v4086_v41 = vmul.f32 0.5, %v3714_v61  ;;  %v8411_v32 = vpop.f32.mrb[232].mxu0 }
 0x56f   :  { %8971 = vst [vmem:[#allocation54_spill] sm:$0xff] %v8403_v33  ;;  %v6001_v34 = vpop.eup %6000  ;;  %v4307_v50 = vmul.f32 0.5, %v4275_v49  ;;  %6018 = vtanh.f32 %v4340_v9  ;;  %v3716_v53 = vadd.f32 %v8313_v3, %v6528_v42  ;;  %v3965_v21 = vadd.f32 %v8302_v15, %v6530_v45  ;;  %v8413_v39 = vpop.f32.mrb[231].mxu1 }
 0x570   :  { %v4499_v24 = vmul.f32 %v4179_v48, %v8972_v5  ;;  %v4562_v16 = vadd.f32 %v4530_v7, %v4498_v47  ;;  %v4148_v52 = vadd.f32 1.0, %v6001_v34  ;;  %6020 = vtanh.f32 %v4086_v41  ;;  %v8416_v12 = vpop.f32.mrb[233].mxu0  ;;  %v6003_v40 = vpop.eup %6002 }
 0x571   :  { %v4214_v27 = vmul.f32 0.5, %v3716_v53  ;;  %v4341_v29 = vmul.f32 0.5, %v3965_v21  ;;  %v3967_v3 = vadd.f32 %v8309_v13, %v6532_v46  ;;  %v3720_v15 = vadd.f32 %v8319_v20, %v6918_v35  ;;  %v6005_v1 = vpop.eup %6004  ;;  %v8424_v23 = vpop.f32.mrb[232].mxu1 }
 0x572   :  { %6022 = vtanh.f32 %v4562_v16  ;;  %v4180_v49 = vmul.f32 0.5, %v4148_v52  ;;  %v4276_v38 = vadd.f32 1.0, %v6003_v40  ;;  %v3722_v47 = vadd.f32 %v8325_v10, %v6528_v42  ;;  %v6007_v57 = vpop.eup %6006  ;;  %v8430_v61 = vpop.f32.mrb[234].mxu0  ;;  %v8974_v16 = vld [vmem:[#allocation36_spill] sm:$0xff] }
 0x573   :  { %v8426_v48 = vmul.f32 %v6005_v1, %v4432_v28  ;;  %6024 = vtanh.f32 %v4214_v27  ;;  %v4087_v37 = vmul.f32 0.5, %v3720_v15  ;;  %v3971_v13 = vadd.f32 %v8315_v54, %v6530_v45  ;;  %v8432_v20 = vpop.f32.mrb[233].mxu1  ;;  %v6009_v58 = vpop.eup %6008 }
 0x574   :  { %v4433_v9 = vmul.f32 0.5, %v4401_v36  ;;  %v4402_v7 = vadd.f32 1.0, %v5999_v51  ;;  %v4308_v41 = vmul.f32 0.5, %v4276_v38  ;;  %6026 = vtanh.f32 %v4341_v29  ;;  %v8434_v10 = vpop.f32.mrb[235].mxu0  ;;  %v8439_v27 = vpop.f32.mrb[234].mxu1 }
 0x575   :  { %8973 = vst [vmem:[#allocation29_spill] sm:$0xff] %v8426_v48  ;;  %v6011_v34 = vpop.eup %6010  ;;  %v4531_v53 = vmul.f32 %v6009_v58, %v4307_v50  ;;  %6028 = vtanh.f32 %v3967_v3  ;;  %v4215_v28 = vmul.f32 0.5, %v3722_v47  ;;  %v4342_v21 = vmul.f32 0.5, %v3971_v13  ;;  %v8445_v3 = vpop.f32.mrb[236].mxu0 }
 0x576   :  { %v6013_v5 = vpop.eup %6012  ;;  %v4500_v52 = vmul.f32 %v4180_v49, %v8974_v16  ;;  %v4149_v54 = vadd.f32 1.0, %v6011_v34  ;;  %6030 = vtanh.f32 %v4087_v37  ;;  %v3973_v40 = vadd.f32 %v8321_v30, %v6532_v46  ;;  %v8447_v15 = vpop.f32.mrb[235].mxu1 }
 0x577   :  { %v6015_v51 = vpop.eup %6014  ;;  %v8441_v36 = vmul.f32 %v6013_v5, %v4433_v9  ;;  %v4563_v29 = vadd.f32 %v4531_v53, %v4499_v24  ;;  %6032 = vtanh.f32 %v4215_v28  ;;  %v3726_v50 = vadd.f32 %v8338_v59, %v6918_v35  ;;  %v8451_v47 = vpop.f32.mrb[237].mxu0 }
 0x578   :  { %v6017_v1 = vpop.eup %6016  ;;  %v4403_v49 = vadd.f32 1.0, %v6007_v57  ;;  %v4532_v38 = vmul.f32 %v6015_v51, %v4308_v41  ;;  %6034 = vtanh.f32 %v4342_v21  ;;  %v3728_v30 = vadd.f32 %v8343_v62, %v6528_v42  ;;  %v8455_v57 = vpop.f32.mrb[236].mxu1 }
 0x579   :  { %8975 = vst [vmem:[#allocation30_spill] sm:$0xff] %v8441_v36  ;;  %v6019_v37 = vpop.eup %6018  ;;  %6036 = vtanh.f32 %v4563_v29  ;;  %v4277_v24 = vadd.f32 1.0, %v6017_v1  ;;  %v4088_v13 = vmul.f32 0.5, %v3726_v50  ;;  %v3977_v59 = vadd.f32 %v8334_v22, %v6530_v45  ;;  %v8457_v21 = vpop.f32.mrb[238].mxu0 }
 0x57a   :  { %v6021_v58 = vpop.eup %6020  ;;  %v4434_v9 = vmul.f32 0.5, %v4402_v7  ;;  %v4181_v34 = vmul.f32 0.5, %v4149_v54  ;;  %v4564_v53 = vadd.f32 %v4532_v38, %v4500_v52  ;;  %6038 = vtanh.f32 %v3973_v40  ;;  %v8459_v5 = vpop.f32.mrb[237].mxu1  ;;  %v8977_v38 = vld [vmem:[#allocation27_spill] sm:$0xff] }
 0x57b   :  { %v4404_v41 = vadd.f32 1.0, %v6019_v37  ;;  %v4150_v28 = vadd.f32 1.0, %v6021_v58  ;;  %6040 = vtanh.f32 %v4088_v13  ;;  %v4216_v62 = vmul.f32 0.5, %v3728_v30  ;;  %v8463_v7 = vpop.f32.mrb[239].mxu0  ;;  %v8474_v13 = vpop.f32.mrb[238].mxu1 }
 0x57c   :  { %v6023_v16 = vpop.eup %6022  ;;  %v4309_v51 = vmul.f32 0.5, %v4277_v24  ;;  %6042 = vtanh.f32 %v4564_v53  ;;  %v4343_v29 = vmul.f32 0.5, %v3977_v59  ;;  %v3979_v22 = vadd.f32 %v8340_v25, %v6532_v46  ;;  %v8476_v53 = vpop.f32.mrb[240].mxu0 }
 0x57d   :  { %v6025_v52 = vpop.eup %6024  ;;  %v8465_v54 = vmul.f32 %v6023_v16, %v4434_v9  ;;  %v4435_v40 = vmul.f32 0.5, %v4403_v49  ;;  %6044 = vtanh.f32 %v4216_v62  ;;  %v3732_v50 = vadd.f32 %v8353_v8, %v6918_v35  ;;  %v8478_v8 = vpop.f32.mrb[239].mxu1 }
 0x57e   :  { %v6027_v1 = vpop.eup %6026  ;;  %v4501_v30 = vmul.f32 %v4181_v34, %v8977_v38  ;;  %v4278_v37 = vadd.f32 1.0, %v6025_v52  ;;  %v3734_v24 = vadd.f32 %v8357_v44, %v6528_v42  ;;  %v3983_v25 = vadd.f32 %v8351_v0, %v6530_v45  ;;  %v8480_v44 = vpop.f32.mrb[241].mxu0 }
 0x57f   :  { %8976 = vst [vmem:[#allocation31_spill] sm:$0xff] %v8465_v54  ;;  %v6029_v59 = vpop.eup %6028  ;;  %v4436_v58 = vmul.f32 0.5, %v4404_v41  ;;  %v4182_v9 = vmul.f32 0.5, %v4150_v28  ;;  %6046 = vtanh.f32 %v3979_v22  ;;  %v4089_v49 = vmul.f32 0.5, %v3732_v50 }
 0x580   :  { %v6031_v62 = vpop.eup %6030  ;;  %v4533_v34 = vmul.f32 %v6029_v59, %v4309_v51  ;;  %6048 = vtanh.f32 %v4343_v29  ;;  %v4217_v16 = vmul.f32 0.5, %v3734_v24  ;;  %v4344_v52 = vmul.f32 0.5, %v3983_v25  ;;  %v8486_v51 = vpop.f32.mrb[240].mxu1  ;;  %v8978_v24 = vld [vmem:[#allocation38_spill] sm:$0xff] }
 0x581   :  { %v6033_v38 = vpop.eup %6032  ;;  %v4310_v0 = vmul.f32 0.5, %v4278_v37  ;;  %v4151_v54 = vadd.f32 1.0, %v6031_v62  ;;  %6050 = vtanh.f32 %v4089_v49  ;;  %v3985_v41 = vadd.f32 %v8355_v18, %v6532_v46  ;;  %v8491_v49 = vpop.f32.mrb[242].mxu0 }
 0x582   :  { %v6035_v28 = vpop.eup %6034  ;;  %v4565_v22 = vadd.f32 %v4533_v34, %v4501_v30  ;;  %v4279_v50 = vadd.f32 1.0, %v6033_v38  ;;  %6052 = vtanh.f32 %v4217_v16  ;;  %v3738_v36 = vadd.f32 %v8395_v19, %v6918_v35  ;;  %v8493_v18 = vpop.f32.mrb[241].mxu1 }
 0x583   :  { %v6037_v29 = vpop.eup %6036  ;;  %v4502_v25 = vmul.f32 %v4182_v9, %v8978_v24  ;;  %v4405_v59 = vadd.f32 1.0, %v6027_v1  ;;  %6054 = vtanh.f32 %v4344_v52  ;;  %v3740_v37 = vadd.f32 %v8401_v14, %v6528_v42  ;;  %v8497_v16 = vpop.f32.mrb[243].mxu0 }
 0x584   :  { %v6039_v30 = vpop.eup %6038  ;;  %v8495_v62 = vmul.f32 %v6037_v29, %v4435_v40  ;;  %6056 = vtanh.f32 %v4565_v22  ;;  %v4183_v34 = vmul.f32 0.5, %v4151_v54  ;;  %v4090_v19 = vmul.f32 0.5, %v3738_v36  ;;  %v8501_v26 = vpop.f32.mrb[242].mxu1 }
 0x585   :  { %v6041_v38 = vpop.eup %6040  ;;  %v4311_v48 = vmul.f32 0.5, %v4279_v50  ;;  %v4406_v9 = vadd.f32 1.0, %v6035_v28  ;;  %v4534_v1 = vmul.f32 %v6039_v30, %v4310_v0  ;;  %6058 = vtanh.f32 %v3985_v41  ;;  %v8509_v41 = vpop.f32.mrb[244].mxu0  ;;  %v8981_v50 = vld [vmem:[#allocation40_spill] sm:$0xff] }
 0x586   :  { %8979 = vst [vmem:[#allocation57_spill] sm:$0xff] %v8495_v62  ;;  %v6043_v52 = vpop.eup %6042  ;;  %v4152_v24 = vadd.f32 1.0, %v6041_v38  ;;  %6060 = vtanh.f32 %v4090_v19  ;;  %v4218_v14 = vmul.f32 0.5, %v3740_v37  ;;  %v3989_v33 = vadd.f32 %v8364_v55, %v6530_v45  ;;  %v8511_v28 = vpop.f32.mrb[243].mxu1 }
 0x587   :  { %v6045_v40 = vpop.eup %6044  ;;  %v8503_v22 = vmul.f32 %v6043_v52, %v4436_v58  ;;  %v4566_v36 = vadd.f32 %v4534_v1, %v4502_v25  ;;  %v3991_v54 = vadd.f32 %v8397_v56, %v6532_v46  ;;  %v3744_v0 = vadd.f32 %v8411_v32, %v6918_v35  ;;  %v8514_v30 = vpop.f32.mrb[245].mxu0 }
 0x588   :  { %v4503_v29 = vmul.f32 %v4183_v34, %v8981_v50  ;;  %v4280_v37 = vadd.f32 1.0, %v6045_v40  ;;  %6062 = vtanh.f32 %v4218_v14  ;;  %v4345_v55 = vmul.f32 0.5, %v3989_v33 }
 0x589   :  { %8980 = vst [vmem:[#allocation32_spill] sm:$0xff] %v8503_v22  ;;  %v6047_v58 = vpop.eup %6046  ;;  %v4437_v19 = vmul.f32 0.5, %v4405_v59  ;;  %6064 = vtanh.f32 %v4566_v36  ;;  %v4091_v25 = vmul.f32 0.5, %v3744_v0  ;;  %v3746_v56 = vadd.f32 %v8416_v12, %v6528_v42  ;;  %v8518_v22 = vpop.f32.mrb[244].mxu1 }
 0x58a   :  { %v6049_v38 = vpop.eup %6048  ;;  %v4438_v32 = vmul.f32 0.5, %v4406_v9  ;;  %v4184_v1 = vmul.f32 0.5, %v4152_v24  ;;  %v4535_v52 = vmul.f32 %v6047_v58, %v4311_v48  ;;  %6066 = vtanh.f32 %v4345_v55  ;;  %v8522_v59 = vpop.f32.mrb[246].mxu0  ;;  %v8982_v58 = vld [vmem:[#allocation41_spill] sm:$0xff] }
 0x58b   :  { %v6051_v34 = vpop.eup %6050  ;;  %v4312_v40 = vmul.f32 0.5, %v4280_v37  ;;  %6068 = vtanh.f32 %v3991_v54  ;;  %v4219_v33 = vmul.f32 0.5, %v3746_v56  ;;  %v3995_v14 = vadd.f32 %v8405_v60, %v6530_v45  ;;  %v8524_v36 = vpop.f32.mrb[245].mxu1 }
 0x58c   :  { %v6053_v0 = vpop.eup %6052  ;;  %v4567_v12 = vadd.f32 %v4535_v52, %v4503_v29  ;;  %v4153_v50 = vadd.f32 1.0, %v6051_v34  ;;  %6070 = vtanh.f32 %v4091_v25  ;;  %v3997_v48 = vadd.f32 %v8413_v39, %v6532_v46  ;;  %v8528_v9 = vpop.f32.mrb[247].mxu0 }
 0x58d   :  { %v6055_v24 = vpop.eup %6054  ;;  %v4281_v37 = vadd.f32 1.0, %v6053_v0  ;;  %6072 = vtanh.f32 %v4219_v33  ;;  %v4346_v54 = vmul.f32 0.5, %v3995_v14  ;;  %v3750_v60 = vadd.f32 %v8430_v61, %v6918_v35  ;;  %v8535_v25 = vpop.f32.mrb[246].mxu1 }
 0x58e   :  { %v6057_v55 = vpop.eup %6056  ;;  %v4504_v56 = vmul.f32 %v4184_v1, %v8982_v58  ;;  %6074 = vtanh.f32 %v4567_v12  ;;  %v4185_v62 = vmul.f32 0.5, %v4153_v50  ;;  %v3752_v29 = vadd.f32 %v8434_v10, %v6528_v42  ;;  %v8539_v14 = vpop.f32.mrb[248].mxu0 }
 0x58f   :  { %v6059_v39 = vpop.eup %6058  ;;  %v8537_v52 = vmul.f32 %v6057_v55, %v4437_v19  ;;  %v4407_v34 = vadd.f32 1.0, %v6049_v38  ;;  %6076 = vtanh.f32 %v4346_v54  ;;  %v4092_v33 = vmul.f32 0.5, %v3750_v60  ;;  %v8541_v0 = vpop.f32.mrb[247].mxu1 }
 0x590   :  { %v6061_v61 = vpop.eup %6060  ;;  %v4505_v1 = vmul.f32 %v4185_v62, %v8984_v63  ;;  %v4313_v12 = vmul.f32 0.5, %v4281_v37  ;;  %v4536_v50 = vmul.f32 %v6059_v39, %v4312_v40  ;;  %6078 = vtanh.f32 %v3997_v48  ;;  %v8544_v58 = vpop.f32.mrb[249].mxu0 }
 0x591   :  { %8983 = vst [vmem:[#allocation25_spill] sm:$0xff] %v8537_v52  ;;  %v4154_v10 = vadd.f32 1.0, %v6061_v61  ;;  %6080 = vtanh.f32 %v4092_v33  ;;  %v4220_v43 = vmul.f32 0.5, %v3752_v29  ;;  %v4001_v19 = vadd.f32 %v8424_v23, %v6530_v45  ;;  %v8554_v62 = vpop.f32.mrb[248].mxu1  ;;  %v8556_v39 = vpop.f32.mrb[250].mxu0 }
 0x592   :  { %v6063_v38 = vpop.eup %6062  ;;  %v4568_v54 = vadd.f32 %v4536_v50, %v4504_v56  ;;  %v4003_v60 = vadd.f32 %v8432_v20, %v6532_v46  ;;  %v3756_v55 = vadd.f32 %v8445_v3, %v6918_v35  ;;  %v3758_v63 = vadd.f32 %v8451_v47, %v6528_v42  ;;  %v8558_v23 = vpop.f32.mrb[249].mxu1 }
 0x593   :  { %v6065_v40 = vpop.eup %6064  ;;  %v4186_v48 = vmul.f32 0.5, %v4154_v10  ;;  %v4282_v37 = vadd.f32 1.0, %v6063_v38  ;;  %6082 = vtanh.f32 %v4220_v43  ;;  %v4347_v29 = vmul.f32 0.5, %v4001_v19  ;;  %v8562_v61 = vpop.f32.mrb[251].mxu0 }
 0x594   :  { %v6067_v56 = vpop.eup %6066  ;;  %v8560_v33 = vmul.f32 %v6065_v40, %v4438_v32  ;;  %6084 = vtanh.f32 %v4568_v54  ;;  %v4093_v20 = vmul.f32 0.5, %v3756_v55  ;;  %v4221_v3 = vmul.f32 0.5, %v3758_v63  ;;  %v8569_v54 = vpop.f32.mrb[250].mxu1 }
 0x595   :  { %v6069_v47 = vpop.eup %6068  ;;  %v4439_v50 = vmul.f32 0.5, %v4407_v34  ;;  %v4408_v52 = vadd.f32 1.0, %v6055_v24  ;;  %v4506_v10 = vmul.f32 %v4186_v48, %v8986_v11  ;;  %6086 = vtanh.f32 %v4347_v29  ;;  %v8573_v11 = vpop.f32.mrb[252].mxu0 }
 0x596   :  { %8985 = vst [vmem:[#allocation58_spill] sm:$0xff] %v8560_v33  ;;  %v6071_v43 = vpop.eup %6070  ;;  %v4537_v19 = vmul.f32 %v6069_v47, %v4313_v12  ;;  %6088 = vtanh.f32 %v4003_v60  ;;  %v4007_v38 = vadd.f32 %v8439_v27, %v6530_v45  ;;  %v4009_v32 = vadd.f32 %v8447_v15, %v6532_v46  ;;  %v8575_v34 = vpop.f32.mrb[251].mxu1 }
 0x597   :  { %v6073_v55 = vpop.eup %6072  ;;  %v4314_v63 = vmul.f32 0.5, %v4282_v37  ;;  %v4155_v40 = vadd.f32 1.0, %v6071_v43  ;;  %6090 = vtanh.f32 %v4093_v20  ;;  %v3762_v24 = vadd.f32 %v8457_v21, %v6918_v35  ;;  %v8577_v29 = vpop.f32.mrb[253].mxu0 }
 0x598   :  { %v6075_v12 = vpop.eup %6074  ;;  %v4569_v60 = vadd.f32 %v4537_v19, %v4505_v1  ;;  %v4283_v48 = vadd.f32 1.0, %v6073_v55  ;;  %6092 = vtanh.f32 %v4221_v3  ;;  %v4348_v27 = vmul.f32 0.5, %v4007_v38  ;;  %v8583_v4 = vpop.f32.mrb[252].mxu1  ;;  %v8988_v55 = vld [vmem:[#allocation45_spill] sm:$0xff] }
 0x599   :  { %v6077_v15 = vpop.eup %6076  ;;  %v8579_v47 = vmul.f32 %v6075_v12, %v4439_v50  ;;  %v4187_v37 = vmul.f32 0.5, %v4155_v40  ;;  %6094 = vtanh.f32 %v4009_v32  ;;  %v4094_v20 = vmul.f32 0.5, %v3762_v24  ;;  %v8587_v38 = vpop.f32.mrb[254].mxu0 }
 0x59a   :  { %v6079_v43 = vpop.eup %6078  ;;  %v4440_v33 = vmul.f32 0.5, %v4408_v52  ;;  %v4409_v21 = vadd.f32 1.0, %v6067_v56  ;;  %6096 = vtanh.f32 %v4569_v60  ;;  %v3764_v17 = vadd.f32 %v8463_v7, %v6528_v42  ;;  %v8589_v32 = vpop.f32.mrb[253].mxu1 }
 0x59b   :  { %8987 = vst [vmem:[#allocation33_spill] sm:$0xff] %v8579_v47  ;;  %v6081_v1 = vpop.eup %6080  ;;  %v4315_v3 = vmul.f32 0.5, %v4283_v48  ;;  %v4538_v19 = vmul.f32 %v6079_v43, %v4314_v63  ;;  %6098 = vtanh.f32 %v4348_v27  ;;  %v4013_v50 = vadd.f32 %v8455_v57, %v6530_v45  ;;  %v8592_v24 = vpop.f32.mrb[255].mxu0 }
 0x59c   :  { %v4507_v52 = vmul.f32 %v4187_v37, %v8988_v55  ;;  %v4156_v56 = vadd.f32 1.0, %v6081_v1  ;;  %6100 = vtanh.f32 %v4094_v20  ;;  %v4222_v40 = vmul.f32 0.5, %v3764_v17  ;;  %v8600_v20 = vpop.f32.mrb[254].mxu1 }
 0x59d   :  { %v6083_v7 = vpop.eup %6082  ;;  %v4570_v12 = vadd.f32 %v4538_v19, %v4506_v10  ;;  %v4349_v60 = vmul.f32 0.5, %v4013_v50  ;;  %v4015_v63 = vadd.f32 %v8459_v5, %v6532_v46  ;;  %v3768_v57 = vadd.f32 %v8476_v53, %v6918_v35  ;;  %v8606_v19 = vpop.f32.mrb[255].mxu1 }
 0x59e   :  { %v6085_v48 = vpop.eup %6084  ;;  %v4188_v27 = vmul.f32 0.5, %v4156_v56  ;;  %v4284_v43 = vadd.f32 1.0, %v6083_v7  ;;  %6102 = vtanh.f32 %v4222_v40  ;;  %v3770_v37 = vadd.f32 %v8480_v44, %v6528_v42 }
 0x59f   :  { %v6087_v17 = vpop.eup %6086  ;;  %v8602_v1 = vmul.f32 %v6085_v48, %v4440_v33  ;;  %6104 = vtanh.f32 %v4570_v12  ;;  %v4095_v10 = vmul.f32 0.5, %v3768_v57  ;;  %v4019_v5 = vadd.f32 %v8474_v13, %v6530_v45 }
 0x5a0   :  { %v6089_v53 = vpop.eup %6088  ;;  %v4410_v50 = vadd.f32 1.0, %v6077_v15  ;;  %v4316_v55 = vmul.f32 0.5, %v4284_v43  ;;  %6106 = vtanh.f32 %v4349_v60  ;;  %v4223_v44 = vmul.f32 0.5, %v3770_v37 }
 0x5a1   :  { %8989 = vst [vmem:[#allocation26_spill] sm:$0xff] %v8602_v1  ;;  %v6091_v56 = vpop.eup %6090  ;;  %v4539_v40 = vmul.f32 %v6089_v53, %v4315_v3  ;;  %6108 = vtanh.f32 %v4015_v63  ;;  %v4350_v7 = vmul.f32 0.5, %v4019_v5  ;;  %v4508_v33 = vmul.f32 %v4188_v27, %v8990_v6 }
 0x5a2   :  { %v6093_v47 = vpop.eup %6092  ;;  %v4157_v48 = vadd.f32 1.0, %v6091_v56  ;;  %6110 = vtanh.f32 %v4095_v10  ;;  %v4021_v12 = vadd.f32 %v8478_v8, %v6532_v46  ;;  %v4441_v57 = vmul.f32 0.5, %v4409_v21 }
 0x5a3   :  { %v6095_v13 = vpop.eup %6094  ;;  %v4571_v1 = vadd.f32 %v4539_v40, %v4507_v52  ;;  %6112 = vtanh.f32 %v4223_v44  ;;  %v3774_v15 = vadd.f32 %v8491_v49, %v6918_v35  ;;  %v4285_v3 = vadd.f32 1.0, %v6093_v47 }
 0x5a4   :  { %v6097_v60 = vpop.eup %6096  ;;  %v4540_v63 = vmul.f32 %v6095_v13, %v4316_v55  ;;  %6114 = vtanh.f32 %v4350_v7  ;;  %v3776_v43 = vadd.f32 %v8497_v16, %v6528_v42  ;;  %v4189_v37 = vmul.f32 0.5, %v4157_v48 }
 0x5a5   :  { %v6099_v6 = vpop.eup %6098  ;;  %v8615_v27 = vmul.f32 %v6097_v60, %v4441_v57  ;;  %6116 = vtanh.f32 %v4571_v1  ;;  %v4096_v8 = vmul.f32 0.5, %v3774_v15  ;;  %v4442_v21 = vmul.f32 0.5, %v4410_v50  ;;  %v8991_v50 = vld [vmem:[#allocation49_spill] sm:$0xff] }
 0x5a6   :  { %v6101_v10 = vpop.eup %6100  ;;  %v4411_v52 = vadd.f32 1.0, %v6087_v17  ;;  %v4572_v5 = vadd.f32 %v4540_v63, %v4508_v33  ;;  %6118 = vtanh.f32 %v4021_v12  ;;  %v4224_v49 = vmul.f32 0.5, %v3776_v43 }
 0x5a7   :  { %v4158_v53 = vadd.f32 1.0, %v6101_v10  ;;  %6120 = vtanh.f32 %v4096_v8  ;;  %v4025_v47 = vadd.f32 %v8486_v51, %v6530_v45  ;;  %v4317_v56 = vmul.f32 0.5, %v4285_v3 }
 0x5a8   :  { %v6103_v55 = vpop.eup %6102  ;;  %6122 = vtanh.f32 %v4572_v5  ;;  %v4027_v16 = vadd.f32 %v8493_v18, %v6532_v46  ;;  %v3780_v1 = vadd.f32 %v8509_v41, %v6918_v35  ;;  %v4509_v17 = vmul.f32 %v4189_v37, %v8991_v50 }
 0x5a9   :  { %v6105_v40 = vpop.eup %6104  ;;  %v4286_v44 = vadd.f32 1.0, %v6103_v55  ;;  %6124 = vtanh.f32 %v4224_v49  ;;  %v4351_v7 = vmul.f32 0.5, %v4025_v47  ;;  %v3782_v12 = vadd.f32 %v8514_v30, %v6528_v42  ;;  %v8992_v49 = vld [vmem:[#allocation53_spill] sm:$0xff] }
 0x5aa   :  { %v6107_v33 = vpop.eup %6106  ;;  %v8624_v48 = vmul.f32 %v6105_v40, %v4442_v21  ;;  %6126 = vtanh.f32 %v4027_v16  ;;  %v4097_v51 = vmul.f32 0.5, %v3780_v1  ;;  %v4443_v57 = vmul.f32 0.5, %v4411_v52 }
 0x5ab   :  { %v6109_v13 = vpop.eup %6108  ;;  %v4412_v18 = vadd.f32 1.0, %v6099_v6  ;;  %v4190_v15 = vmul.f32 0.5, %v4158_v53  ;;  %v4318_v60 = vmul.f32 0.5, %v4286_v44  ;;  %v4225_v63 = vmul.f32 0.5, %v3782_v12 }
 0x5ac   :  { %v6111_v41 = vpop.eup %6110  ;;  %v4541_v3 = vmul.f32 %v6109_v13, %v4317_v56  ;;  %6128 = vtanh.f32 %v4097_v51  ;;  %v4031_v43 = vadd.f32 %v8501_v26, %v6530_v45  ;;  %v4033_v10 = vadd.f32 %v8511_v28, %v6532_v46 }
 0x5ad   :  { %v6113_v37 = vpop.eup %6112  ;;  %v4159_v8 = vadd.f32 1.0, %v6111_v41  ;;  %6130 = vtanh.f32 %v4351_v7  ;;  %v3786_v30 = vadd.f32 %v8522_v59, %v6918_v35  ;;  %v4510_v47 = vmul.f32 %v4190_v15, %v8992_v49 }
 0x5ae   :  { %v6115_v21 = vpop.eup %6114  ;;  %v4573_v6 = vadd.f32 %v4541_v3, %v4509_v17  ;;  %v4287_v52 = vadd.f32 1.0, %v6113_v37  ;;  %6132 = vtanh.f32 %v4225_v63  ;;  %v4352_v5 = vmul.f32 0.5, %v4031_v43 }
 0x5af   :  { %v6117_v53 = vpop.eup %6116  ;;  %v4191_v55 = vmul.f32 0.5, %v4159_v8  ;;  %6134 = vtanh.f32 %v4033_v10  ;;  %v4098_v26 = vmul.f32 0.5, %v3786_v30  ;;  %v4444_v1 = vmul.f32 0.5, %v4412_v18 }
 0x5b0   :  { %v6119_v56 = vpop.eup %6118  ;;  %v8635_v16 = vmul.f32 %v6117_v53, %v4443_v57  ;;  %6136 = vtanh.f32 %v4573_v6  ;;  %v3788_v28 = vadd.f32 %v8528_v9, %v6528_v42  ;;  %v4413_v40 = vadd.f32 1.0, %v6107_v33  ;;  %v8993_v53 = vld [vmem:[#allocation55_spill] sm:$0xff] }
 0x5b1   :  { %v6121_v59 = vpop.eup %6120  ;;  %v4319_v50 = vmul.f32 0.5, %v4287_v52  ;;  %v4542_v17 = vmul.f32 %v6119_v56, %v4318_v60  ;;  %6138 = vtanh.f32 %v4352_v5  ;;  %v4511_v7 = vmul.f32 %v4191_v55, %v7959_v2 }
 0x5b2   :  { %v6123_v44 = vpop.eup %6122  ;;  %v4160_v51 = vadd.f32 1.0, %v6121_v59  ;;  %6140 = vtanh.f32 %v4098_v26  ;;  %v4226_v12 = vmul.f32 0.5, %v3788_v28  ;;  %v4039_v18 = vadd.f32 %v8524_v36, %v6532_v46 }
 0x5b3   :  { %v6125_v13 = vpop.eup %6124  ;;  %v8640_v15 = vmul.f32 %v6123_v44, %v4444_v1  ;;  %v4574_v57 = vadd.f32 %v4542_v17, %v4510_v47  ;;  %v3792_v9 = vadd.f32 %v8539_v14, %v6918_v35  ;;  %v4037_v2 = vadd.f32 %v8518_v22, %v6530_v45 }
 0x5b4   :  { %v6127_v33 = vpop.eup %6126  ;;  %v4192_v41 = vmul.f32 0.5, %v4160_v51  ;;  %v4288_v60 = vadd.f32 1.0, %v6125_v13  ;;  %6142 = vtanh.f32 %v4226_v12  ;;  %v3794_v43 = vadd.f32 %v8544_v58, %v6528_v42 }
 0x5b5   :  { %6144 = vtanh.f32 %v4574_v57  ;;  %v4543_v3 = vmul.f32 %v6127_v33, %v4319_v50  ;;  %v4099_v63 = vmul.f32 0.5, %v3792_v9  ;;  %v4445_v8 = vmul.f32 0.5, %v4413_v40 }
 0x5b6   :  { %v6129_v37 = vpop.eup %6128  ;;  %v4414_v10 = vadd.f32 1.0, %v6115_v21  ;;  %v4320_v36 = vmul.f32 0.5, %v4288_v60  ;;  %6146 = vtanh.f32 %v4039_v18  ;;  %v4227_v52 = vmul.f32 0.5, %v3794_v43 }
 0x5b7   :  { %v6131_v30 = vpop.eup %6130  ;;  %v4575_v6 = vadd.f32 %v4543_v3, %v4511_v7  ;;  %v4161_v14 = vadd.f32 1.0, %v6129_v37  ;;  %v4512_v49 = vmul.f32 %v4192_v41, %v8993_v53  ;;  %v4353_v47 = vmul.f32 0.5, %v4037_v2  ;;  %v8994_v41 = vld [vmem:[#allocation56_spill] sm:$0xff] }
 0x5b8   :  { %v6133_v5 = vpop.eup %6132  ;;  %6148 = vtanh.f32 %v4099_v63  ;;  %v4045_v22 = vadd.f32 %v8541_v0, %v6532_v46  ;;  %v4043_v21 = vadd.f32 %v8535_v25, %v6530_v45  ;;  %v3798_v26 = vadd.f32 %v8556_v39, %v6918_v35 }
 0x5b9   :  { %v6135_v55 = vpop.eup %6134  ;;  %6150 = vtanh.f32 %v4575_v6  ;;  %v4289_v58 = vadd.f32 1.0, %v6133_v5  ;;  %v3800_v28 = vadd.f32 %v8562_v61, %v6528_v42  ;;  %v4446_v50 = vmul.f32 0.5, %v4414_v10 }
 0x5ba   :  { %v6137_v56 = vpop.eup %6136  ;;  %v4544_v1 = vmul.f32 %v6135_v55, %v4320_v36  ;;  %6152 = vtanh.f32 %v4227_v52  ;;  %v4193_v0 = vmul.f32 0.5, %v4161_v14  ;;  %v4415_v44 = vadd.f32 1.0, %v6131_v30  ;;  %v8995_v52 = vld [vmem:[#allocation59_spill] sm:$0xff] }
 0x5bb   :  { %v6139_v59 = vpop.eup %6138  ;;  %v8659_v40 = vmul.f32 %v6137_v56, %v4445_v8  ;;  %6154 = vtanh.f32 %v4045_v22  ;;  %v4100_v25 = vmul.f32 0.5, %v3798_v26  ;;  %v4321_v51 = vmul.f32 0.5, %v4289_v58 }
 0x5bc   :  { %v6141_v17 = vpop.eup %6140  ;;  %v4576_v7 = vadd.f32 %v4544_v1, %v4512_v49  ;;  %6156 = vtanh.f32 %v4353_v47  ;;  %v4354_v39 = vmul.f32 0.5, %v4043_v21  ;;  %v4228_v13 = vmul.f32 0.5, %v3800_v28 }
 0x5bd   :  { %v4162_v12 = vadd.f32 1.0, %v6141_v17  ;;  %v4051_v61 = vadd.f32 %v8558_v23, %v6532_v46  ;;  %v3804_v18 = vadd.f32 %v8573_v11, %v6918_v35  ;;  %v3806_v9 = vadd.f32 %v8577_v29, %v6528_v42 }
 0x5be   :  { %v6143_v57 = vpop.eup %6142  ;;  %6158 = vtanh.f32 %v4576_v7  ;;  %v4513_v60 = vmul.f32 %v4193_v0, %v8994_v41  ;;  %v4447_v10 = vmul.f32 0.5, %v4415_v44  ;;  %v4416_v23 = vadd.f32 1.0, %v6139_v59 }
 0x5bf   :  { %v6145_v33 = vpop.eup %6144  ;;  %v4194_v2 = vmul.f32 0.5, %v4162_v12  ;;  %v4290_v3 = vadd.f32 1.0, %v6143_v57  ;;  %6160 = vtanh.f32 %v4100_v25  ;;  %v4101_v43 = vmul.f32 0.5, %v3804_v18 }
 0x5c0   :  { %v8668_v63 = vmul.f32 %v6145_v33, %v4446_v50  ;;  %6162 = vtanh.f32 %v4228_v13  ;;  %v4229_v37 = vmul.f32 0.5, %v3806_v9  ;;  %v6147_v8 = vpop.eup %6146  ;;  %v4049_v11 = vadd.f32 %v8554_v62, %v6530_v45  ;;  %v8996_v13 = vld [vmem:[#allocation60_spill] sm:$0xff] }
 0x5c1   :  { %6164 = vtanh.f32 %v4354_v39  ;;  %v4322_v29 = vmul.f32 0.5, %v4290_v3  ;;  %v4545_v30 = vmul.f32 %v6147_v8, %v4321_v51  ;;  %v4057_v6 = vadd.f32 %v8575_v34, %v6532_v46 }
 0x5c2   :  { %v6149_v36 = vpop.eup %6148  ;;  %6166 = vtanh.f32 %v4051_v61  ;;  %v4514_v5 = vmul.f32 %v4194_v2, %v8995_v52  ;;  %v3810_v49 = vadd.f32 %v8587_v38, %v6918_v35  ;;  %v4055_v62 = vadd.f32 %v8569_v54, %v6530_v45 }
 0x5c3   :  { %v6151_v14 = vpop.eup %6150  ;;  %v4163_v53 = vadd.f32 1.0, %v6149_v36  ;;  %6168 = vtanh.f32 %v4101_v43  ;;  %v4577_v55 = vadd.f32 %v4545_v30, %v4513_v60  ;;  %v4355_v26 = vmul.f32 0.5, %v4049_v11  ;;  %v8997_v43 = vld [vmem:[#allocation61_spill] sm:$0xff] }
 0x5c4   :  { %v6153_v47 = vpop.eup %6152  ;;  %v8677_v22 = vmul.f32 %v6151_v14, %v4447_v10  ;;  %6170 = vtanh.f32 %v4229_v37  ;;  %v4102_v34 = vmul.f32 0.5, %v3810_v49  ;;  %v3812_v28 = vadd.f32 %v8592_v24, %v6528_v42 }
 0x5c5   :  { %v6155_v58 = vpop.eup %6154  ;;  %v4291_v21 = vadd.f32 1.0, %v6153_v47  ;;  %6172 = vtanh.f32 %v4057_v6  ;;  %v4448_v35 = vmul.f32 0.5, %v4416_v23  ;;  %v4195_v38 = vmul.f32 0.5, %v4163_v53 }
 0x5c6   :  { %v6157_v56 = vpop.eup %6156  ;;  %6174 = vtanh.f32 %v4577_v55  ;;  %v4546_v1 = vmul.f32 %v6155_v58, %v4322_v29  ;;  %v4356_v0 = vmul.f32 0.5, %v4055_v62  ;;  %v4230_v17 = vmul.f32 0.5, %v3812_v28 }
 0x5c7   :  { %6176 = vtanh.f32 %v4102_v34  ;;  %v4323_v7 = vmul.f32 0.5, %v4291_v21  ;;  %v4063_v25 = vadd.f32 %v8589_v32, %v6532_v46  ;;  %v4417_v12 = vadd.f32 1.0, %v6157_v56  ;;  %v8998_v34 = vld [vmem:[#allocation62_spill] sm:$0xff] }
 0x5c8   :  { %v6159_v59 = vpop.eup %6158  ;;  %v4578_v50 = vadd.f32 %v4546_v1, %v4514_v5  ;;  %6178 = vtanh.f32 %v4355_v26  ;;  %v4061_v42 = vadd.f32 %v8583_v4, %v6530_v45  ;;  %v4515_v57 = vmul.f32 %v4195_v38, %v8996_v13 }
 0x5c9   :  { %v6161_v44 = vpop.eup %6160  ;;  %v8683_v54 = vmul.f32 %v6159_v59, %v4448_v35  ;;  %v4069_v18 = vadd.f32 %v8606_v19, %v6532_v46  ;;  %v4449_v3 = vmul.f32 0.5, %v4417_v12  ;;  %v4067_v8 = vadd.f32 %v8600_v20, %v6530_v45  ;;  %v8999_v35 = vld [vmem:[#allocation63_spill] sm:$0xff] }
 0x5ca   :  { %v6163_v51 = vpop.eup %6162  ;;  %6180 = vtanh.f32 %v4578_v50  ;;  %v4164_v39 = vadd.f32 1.0, %v6161_v44  ;;  %v4357_v36 = vmul.f32 0.5, %v4061_v42 }
 0x5cb   :  { %v6165_v24 = vpop.eup %6164  ;;  %v4292_v61 = vadd.f32 1.0, %v6163_v51  ;;  %6182 = vtanh.f32 %v4230_v17  ;;  %v4358_v5 = vmul.f32 0.5, %v4067_v8 }
 0x5cc   :  { %v6167_v9 = vpop.eup %6166  ;;  %v4196_v33 = vmul.f32 0.5, %v4164_v39  ;;  %6184 = vtanh.f32 %v4356_v0  ;;  %v4418_v23 = vadd.f32 1.0, %v6165_v24 }
 0x5cd   :  { %v6169_v41 = vpop.eup %6168  ;;  %v4324_v32 = vmul.f32 0.5, %v4292_v61  ;;  %v4547_v60 = vmul.f32 %v6167_v9, %v4323_v7  ;;  %6186 = vtanh.f32 %v4063_v25 }
 0x5ce   :  { %v6171_v2 = vpop.eup %6170  ;;  %v4516_v37 = vmul.f32 %v4196_v33, %v8997_v43  ;;  %v4165_v4 = vadd.f32 1.0, %v6169_v41  ;;  %6188 = vtanh.f32 %v4069_v18  ;;  %v4450_v49 = vmul.f32 0.5, %v4418_v23 }
 0x5cf   :  { %v6173_v10 = vpop.eup %6172  ;;  %v4579_v11 = vadd.f32 %v4547_v60, %v4515_v57  ;;  %v4293_v19 = vadd.f32 1.0, %v6171_v2 }
 0x5d0   :  { %v6175_v46 = vpop.eup %6174  ;;  %v4548_v29 = vmul.f32 %v6173_v10, %v4324_v32  ;;  %v4197_v14 = vmul.f32 0.5, %v4165_v4 }
 0x5d1   :  { %v8695_v30 = vmul.f32 %v6175_v46, %v4449_v3  ;;  %6190 = vtanh.f32 %v4579_v11  ;;  %v6177_v6 = vpop.eup %6176  ;;  %v4325_v20 = vmul.f32 0.5, %v4293_v19 }
 0x5d2   :  { %v4580_v52 = vadd.f32 %v4548_v29, %v4516_v37  ;;  %v6179_v53 = vpop.eup %6178  ;;  %v4166_v47 = vadd.f32 1.0, %v6177_v6  ;;  %6192 = vtanh.f32 %v4357_v36  ;;  %v4517_v56 = vmul.f32 %v4197_v14, %v8998_v34 }
 0x5d3   :  { %v4419_v26 = vadd.f32 1.0, %v6179_v53 }
 0x5d4   :  { %v6181_v45 = vpop.eup %6180  ;;  %6194 = vtanh.f32 %v4580_v52  ;;  %v4198_v58 = vmul.f32 0.5, %v4166_v47 }
 0x5d5   :  { %v6183_v55 = vpop.eup %6182  ;;  %v4642_v62 = vmul.f32 %v6181_v45, %v4450_v49  ;;  %6196 = vtanh.f32 %v4358_v5  ;;  %v4451_v44 = vmul.f32 0.5, %v4419_v26 }
 0x5d6   :  { %v6185_v21 = vpop.eup %6184  ;;  %v4294_v1 = vadd.f32 1.0, %v6183_v55  ;;  %v4518_v38 = vmul.f32 %v4198_v58, %v8999_v35 }
 0x5d7   :  { %v6187_v28 = vpop.eup %6186  ;;  %v4420_v17 = vadd.f32 1.0, %v6185_v21 }
 0x5d8   :  { %v4326_v59 = vmul.f32 0.5, %v4294_v1  ;;  %v4549_v50 = vmul.f32 %v6187_v28, %v4325_v20  ;;  %v6189_v0 = vpop.eup %6188 }
 0x5d9   :  { %v4452_v24 = vmul.f32 0.5, %v4420_v17 }
 0x5da   :  { %v4581_v7 = vadd.f32 %v4549_v50, %v4517_v56  ;;  %v4550_v25 = vmul.f32 %v6189_v0, %v4326_v59 }
 0x5db   :  { %v6191_v51 = vpop.eup %6190 }
 0x5dc   :  { %v4643_v12 = vmul.f32 %v6191_v51, %v4451_v44  ;;  %6198 = vtanh.f32 %v4581_v7  ;;  %v4582_v39 = vadd.f32 %v4550_v25, %v4518_v38  ;;  %v6193_v42 = vpop.eup %6192 }
 0x5dd   :  { %v4421_v18 = vadd.f32 1.0, %v6193_v42 }
 0x5de   :  { %v6195_v13 = vpop.eup %6194  ;;  %6200 = vtanh.f32 %v4582_v39 }
 0x5df   :  { %v4644_v57 = vmul.f32 %v6195_v13, %v4452_v24  ;;  %v6197_v61 = vpop.eup %6196  ;;  %v4453_v33 = vmul.f32 0.5, %v4421_v18 }
 0x5e0   :  { %v4422_v9 = vadd.f32 1.0, %v6197_v61 }
 0x5e2   :  { %v4454_v60 = vmul.f32 0.5, %v4422_v9 }
 0x5e6   :  { %v6199_v41 = vpop.eup %6198 }
 0x5e7   :  { %v4645_v32 = vmul.f32 %v6199_v41, %v4453_v33 }
 0x5e8   :  { %v6201_v2 = vpop.eup %6200 }
 0x5e9   :  { %v4646_v3 = vmul.f32 %v6201_v2, %v4454_v60 }
 0x5ea   :  { %6371 = dma.done.wait [#allocation3 + $0x1], 4096 }
 0x5eb   :  { %6372 = vsyncadd [#allocation3 + $0x1], 4294963200  ;;  %4649 = vst [vmem:[#allocation2 + $0x100] sm:$0xff] %v8232_v31  ;;  %v9000_v43 = vld [vmem:[#allocation28_spill] sm:$0xff]  ;;  %v9001_v37 = vld [vmem:[#allocation37_spill] sm:$0xff] }
 0x5ec   :  { %4650 = vst [vmem:[#allocation2 + $0x108] sm:$0xff] %v9000_v43  ;;  %4651 = vst [vmem:[#allocation2 + $0x110] sm:$0xff] %v9001_v37  ;;  %v9002_v4 = vld [vmem:[#allocation39_spill] sm:$0xff]  ;;  %v9003_v8 = vld [vmem:[#allocation44_spill] sm:$0xff] }
 0x5ed   :  { %4652 = vst [vmem:[#allocation2 + $0x118] sm:$0xff] %v9002_v4  ;;  %4653 = vst [vmem:[#allocation2 + $0x120] sm:$0xff] %v9003_v8  ;;  %v9004_v10 = vld [vmem:[#allocation46_spill] sm:$0xff]  ;;  %v9005_v23 = vld [vmem:[#allocation48_spill] sm:$0xff] }
 0x5ee   :  { %4654 = vst [vmem:[#allocation2 + $0x128] sm:$0xff] %v9004_v10  ;;  %4655 = vst [vmem:[#allocation2 + $0x130] sm:$0xff] %v9005_v23  ;;  %v9006_v11 = vld [vmem:[#allocation51_spill] sm:$0xff]  ;;  %v9007_v36 = vld [vmem:[#allocation54_spill] sm:$0xff] }
 0x5ef   :  { %4656 = vst [vmem:[#allocation2 + $0x138] sm:$0xff] %v9006_v11  ;;  %4657 = vst [vmem:[#allocation2 + $0x140] sm:$0xff] %v9007_v36  ;;  %v9008_v46 = vld [vmem:[#allocation29_spill] sm:$0xff]  ;;  %v9009_v19 = vld [vmem:[#allocation30_spill] sm:$0xff] }
 0x5f0   :  { %4658 = vst [vmem:[#allocation2 + $0x148] sm:$0xff] %v9008_v46  ;;  %4659 = vst [vmem:[#allocation2 + $0x150] sm:$0xff] %v9009_v19  ;;  %v9010_v31 = vld [vmem:[#allocation31_spill] sm:$0xff]  ;;  %v9011_v29 = vld [vmem:[#allocation57_spill] sm:$0xff] }
 0x5f1   :  { %4660 = vst [vmem:[#allocation2 + $0x158] sm:$0xff] %v9010_v31  ;;  %4661 = vst [vmem:[#allocation2 + $0x160] sm:$0xff] %v9011_v29  ;;  %v9012_v6 = vld [vmem:[#allocation32_spill] sm:$0xff]  ;;  %v9013_v14 = vld [vmem:[#allocation25_spill] sm:$0xff] }
 0x5f2   :  { %4662 = vst [vmem:[#allocation2 + $0x168] sm:$0xff] %v9012_v6  ;;  %4663 = vst [vmem:[#allocation2 + $0x170] sm:$0xff] %v9013_v14  ;;  %v9014_v52 = vld [vmem:[#allocation58_spill] sm:$0xff]  ;;  %v9015_v5 = vld [vmem:[#allocation33_spill] sm:$0xff] }
 0x5f3   :  { %4664 = vst [vmem:[#allocation2 + $0x178] sm:$0xff] %v9014_v52  ;;  %4665 = vst [vmem:[#allocation2 + $0x180] sm:$0xff] %v9015_v5  ;;  %v9016_v53 = vld [vmem:[#allocation26_spill] sm:$0xff] }
 0x5f4   :  { %4666 = vst [vmem:[#allocation2 + $0x188] sm:$0xff] %v9016_v53  ;;  %4667 = vst [vmem:[#allocation2 + $0x190] sm:$0xff] %v8615_v27 }
 0x5f5   :  { %4668 = vst [vmem:[#allocation2 + $0x198] sm:$0xff] %v8624_v48  ;;  %4669 = vst [vmem:[#allocation2 + $0x1a0] sm:$0xff] %v8635_v16 }
 0x5f6   :  { %4670 = vst [vmem:[#allocation2 + $0x1a8] sm:$0xff] %v8640_v15  ;;  %4671 = vst [vmem:[#allocation2 + $0x1b0] sm:$0xff] %v8659_v40 }
 0x5f7   :  { %4672 = vst [vmem:[#allocation2 + $0x1b8] sm:$0xff] %v8668_v63  ;;  %4673 = vst [vmem:[#allocation2 + $0x1c0] sm:$0xff] %v8677_v22 }
 0x5f8   :  { %4674 = vst [vmem:[#allocation2 + $0x1c8] sm:$0xff] %v8683_v54  ;;  %4675 = vst [vmem:[#allocation2 + $0x1d0] sm:$0xff] %v8695_v30 }
 0x5f9   :  { %4676 = vst [vmem:[#allocation2 + $0x1d8] sm:$0xff] %v4642_v62  ;;  %4677 = vst [vmem:[#allocation2 + $0x1e0] sm:$0xff] %v4643_v12 }
 0x5fa   :  { %4678 = vst [vmem:[#allocation2 + $0x1e8] sm:$0xff] %v4644_v57  ;;  %4679 = vst [vmem:[#allocation2 + $0x1f0] sm:$0xff] %v4645_v32 }
 0x5fb   :  { %4680 = vst [vmem:[#allocation2 + $0x1f8] sm:$0xff] %v4646_v3 }
 0x5fc   :  { %6351 = shalt.err (!%p6298_p11)  }
 0x5fd   :  { %p6353_p2 = scmp.ne.s32.totalorder %s8374_s9, %s6897_s14  ;;  %p6355_p4 = scmp.lt.u32.totalorder %s8374_s9, %s8748_s4 }
 0x5fe   :  { %p6356_p5 = scmp.lt.u32.totalorder %s6897_s14, %s6897_s14 }
 0x600   :  { %p6357_p7 = por %p6356_p5, %p6355_p4 }
 0x602   :  { %p6359_p3 = por %p6357_p7, %p6331_p13 }
 0x604   :  { %p6360_p10 = pnand %p6359_p3, %p6353_p2 }
 0x606   :  { %6363 = shalt.err (!%p6360_p10)  }
 0x607   :  { %4694 = dma.vmem_to_hbm [thread:$0]  %s7725_s23, 4096, %s8374_s9, [#allocation3 + $0x1] }
 0x608   :  { %6373 = dma.done.wait [#allocation3], 4096 }
 0x609   :  { %6374 = vsyncadd [#allocation3], 4294963200 }
 0x60a   :  { %6375 = dma.done.wait [#allocation3 + $0x1], 4096 }
 0x60b   :  { %6376 = vsyncadd [#allocation3 + $0x1], 4294963200 }
 0x60c   :  { %4699 = vsyncpa [#allocation5], 1 }
 0x60d   :  { %4700 = vsyncpa [#allocation7], 1 }
 0x60e   :  { %4701 = vsyncmov [#allocation3] }
 0x611   :  { %s4702_s11 = vpop.sfrf %4701 }
 0x612   :  { %p4717_p6 = scmp.ne.s32.totalorder %s4702_s11, 0 }
 0x614   :  { %4706 = shalt.err (%p4717_p6)  }
 0x615   :  { %4708 = vsyncmov [#allocation3 + $0x1] }
 0x618   :  { %s4709_s4 = vpop.sfrf %4708 }
 0x619   :  { %p4718_p9 = scmp.ne.s32.totalorder %s4709_s4, 0 }
 0x61b   :  { %4713 = shalt.err (%p4718_p9)  }

</bundles_post_ra>
